<compile_context>
chip_gen: v7x
topology: tpu7x:2x2x1
jax: 0.10.0
libtpu: 0.0.40
codegen_flags: <defaults>
</compile_context>

<pallas_src>
import jax
import jax.numpy as jnp
import numpy as np
from jax import lax
from jax.experimental import pallas as pl
from jax.experimental.pallas import tpu as pltpu

LEAK = 0.2
BN_EPS = 1e-5
MXU_DTYPE = jnp.bfloat16      # matmul operand dtype (accumulation stays f32)

_VMEM = pl.BlockSpec(memory_space=pltpu.MemorySpace.VMEM)


# ------------------------------ static geometry ------------------------------

def _round_up(x, m):
    return (x + m - 1) // m * m


def _layer_geometry(batch, H, k, s, p, cin, cout, bn, act):
    """Static geometry of one (square) conv layer in the row-buffer form."""
    Hpp = H + 2 * p                      # padded height == padded width
    Wpp = Hpp
    assert Hpp % s == 0, (Hpp, s)
    Ho = (Hpp - k) // s + 1              # true output size (square)
    Hg = Hpp // s                        # junk-grid rows per image
    Mg = Hg * Wpp                        # junk-grid rows (flat) per image
    R = Hpp * Wpp                        # row pitch per image (= s * Mg)
    margin = _round_up((k - 1) * (Wpp + 1), 8)   # tap-read overhang, zeroed
    rows = batch * R + margin
    return dict(k=k, s=s, p=p, H=H, Ho=Ho, Wo=Ho, Hpp=Hpp, Wpp=Wpp,
                Hg=Hg, Mg=Mg, R=R, rows=rows, Cin=cin, Cout=cout,
                bn=bn, act=act)


def _prep_weight(w, mxu_dtype):
    """OIHW (Cout, Cin, kh, kw) -> (kh*kw*Cin, Cout), tap-major rows
    (matches the lane-concat order of the in-kernel im2col)."""
    cout, cin, kh, kw = w.shape
    w2 = jnp.transpose(w, (2, 3, 1, 0)).reshape(kh * kw * cin, cout)
    return w2.astype(mxu_dtype)


def _valid_row_mask(batch, spec):
    """0/1 column marking junk-grid rows that are real conv outputs."""
    m = np.zeros((batch * spec["Mg"], 1), np.float32)
    for n in range(batch):
        for ho in range(spec["Ho"]):
            base = n * spec["Mg"] + ho * spec["Wpp"]
            m[base:base + spec["Wo"], 0] = 1.0
    return jnp.asarray(m)


def _build_layers(params, insize, batch):
    """Replays the DCGAN_D module structure; returns (specs, flat params)."""
    defs = []    # (w, k, s, pad, H, bn_params_or_None, act)
    defs.append((params["initial_w"], 4, 2, 1, insize, None, True))
    size = insize // 2
    for lyr in params["extra"]:
        defs.append((lyr["w"], 3, 1, 1, size, (lyr["gamma"], lyr["beta"]), True))
    for lyr in params["pyramid"]:
        defs.append((lyr["w"], 4, 2, 1, size, (lyr["gamma"], lyr["beta"]), True))
        size //= 2
    assert size == 4, size
    defs.append((params["final_w"], 4, 1, 0, size, None, False))

    specs, flat = [], []
    for idx, (w, k, s, p, H, bnp, act) in enumerate(defs):
        cout, cin = int(w.shape[0]), int(w.shape[1])
        spec = _layer_geometry(batch, H, k, s, p, cin, cout,
                               bn=bnp is not None, act=act)
        is_final = idx == len(defs) - 1
        flat.append(_prep_weight(w, jnp.float32 if is_final else MXU_DTYPE))
        if bnp is not None:
            gamma, beta = bnp
            flat.append(_valid_row_mask(batch, spec))
            flat.append(gamma.reshape(1, cout).astype(jnp.float32))
            flat.append(beta.reshape(1, cout).astype(jnp.float32))
        specs.append(spec)
    assert specs[-1]["Ho"] == 1 and specs[-1]["Wo"] == 1
    return specs, flat


# ------------------------------ fused kernel ---------------------------------

def _make_fused_kernel(specs, batch):
    n_layers = len(specs)
    n_params = sum(1 + (3 if sp["bn"] else 0) for sp in specs)

    def kernel(*refs):
        x_ref = refs[0]
        param_refs = refs[1:1 + n_params]
        o_ref = refs[1 + n_params]
        scratch_refs = refs[2 + n_params:]           # one per non-final layer

        src_ref = x_ref                              # padded row buffer (rows, Cin)
        pi = 0
        for li, sp in enumerate(specs):
            w_ref = param_refs[pi]
            pi += 1
            if sp["bn"]:
                mask_ref = param_refs[pi]
                gamma_ref = param_refs[pi + 1]
                beta_ref = param_refs[pi + 2]
                pi += 3

            k, s, Wpp, Mg = sp["k"], sp["s"], sp["Wpp"], sp["Mg"]
            n_rows = batch * Mg                      # junk-grid rows, all images

            # ---- fused im2col: one (strided) row-slice per tap, lane-concat
            # into an (n_rows, k*k*Cin) patch tile -> single MXU matmul with
            # K = k*k*Cin.  No masks, no gather-as-matmul.
            taps = []
            for i in range(k):
                for j in range(k):
                    off = i * Wpp + j
                    if s == 1:
                        taps.append(src_ref[pl.ds(off, n_rows), :])
                    else:
                        taps.append(src_ref[pl.ds(off, n_rows, stride=s), :])
            patch = jnp.concatenate(taps, axis=1)
            patch = patch.astype(w_ref.dtype)        # bf16 MXU operands
            y = jnp.dot(patch, w_ref[...], preferred_element_type=jnp.float32)

            # ---- epilogue (all f32)
            if sp["bn"]:
                # Training-mode BatchNorm over the N*Ho*Wo valid rows only;
                # two-pass variance (review correctness concern).
                mask = mask_ref[...]                             # (n_rows, 1)
                inv_cnt = 1.0 / float(batch * sp["Ho"] * sp["Wo"])
                mean = jnp.sum(y * mask, axis=0, keepdims=True) * inv_cnt
                diff = y - mean
                var = jnp.sum(diff * diff * mask, axis=0, keepdims=True) * inv_cnt
                y = diff * lax.rsqrt(var + BN_EPS)
                y = y * gamma_ref[...] + beta_ref[...]
            if sp["act"]:
                y = jnp.maximum(y, LEAK * y)                     # LeakyReLU(0.2)

            if li == n_layers - 1:
                # Final conv: the only valid junk-grid row per image is n*Mg
                # (Ho == Wo == 1).
                for n in range(batch):
                    o_ref[pl.ds(n, 1), :] = y[n * Mg:n * Mg + 1, :]
            else:
                # Compact valid rows into the next layer's zero-padded row
                # buffer (wo runs are contiguous per (n, ho)).
                nxt = specs[li + 1]
                dst_ref = scratch_refs[li]
                dst_ref[...] = jnp.zeros(dst_ref.shape, dst_ref.dtype)
                for n in range(batch):
                    for ho in range(sp["Ho"]):
                        src_row = n * Mg + ho * Wpp
                        dst_row = (n * nxt["R"]
                                   + (ho + nxt["p"]) * nxt["Wpp"] + nxt["p"])
                        dst_ref[pl.ds(dst_row, sp["Wo"]), :] = (
                            y[src_row:src_row + sp["Wo"], :])
                src_ref = dst_ref

    return kernel


# --------------------------------- JAX glue ----------------------------------

def _pack_input_rows(x, spec0):
    """NCHW -> zero-padded row buffer (N*Hpp*Wpp + margin, C).  This is the
    single layout conversion at the model boundary."""
    _, _, _, _ = x.shape
    p = spec0["p"]
    xp = jnp.transpose(x, (0, 2, 3, 1)).astype(jnp.float32)      # NHWC
    xp = jnp.pad(xp, ((0, 0), (p, p), (p, p), (0, 0)))
    rows = xp.reshape(-1, xp.shape[-1])
    return jnp.pad(rows, ((0, spec0["rows"] - rows.shape[0]), (0, 0)))


def dcgan_d_forward(params, x):
    """x: (N, C, H, W) float32 -> (N, 1, 1, 1) float32."""
    N = int(x.shape[0])
    insize = int(x.shape[2])
    specs, flat = _build_layers(params, insize, N)
    x_rows = _pack_input_rows(x, specs[0])

    scratch = [pltpu.VMEM((sp["rows"], sp["Cin"]), jnp.float32)
               for sp in specs[1:]]

    # Explicit VMEM budget (review, v7x): everything resident, grid-free.
    resident = (x_rows.size * x_rows.dtype.itemsize
                + sum(int(np.prod(a.shape)) * a.dtype.itemsize for a in flat)
                + sum(sp["rows"] * sp["Cin"] * 4 for sp in specs[1:])
                + N * 4)
    vmem_limit = int(min(96 << 20, max(16 << 20, 4 * resident)))

    kernel = _make_fused_kernel(specs, N)
    out = pl.pallas_call(
        kernel,
        out_shape=jax.ShapeDtypeStruct((N, 1), jnp.float32),
        in_specs=[_VMEM] * (1 + len(flat)),
        out_specs=_VMEM,
        scratch_shapes=scratch,
        compiler_params=pltpu.CompilerParams(vmem_limit_bytes=vmem_limit),
    )(x_rows, *flat)
    return out.reshape(N, 1, 1, 1)


# ------------------------------ parameter init -------------------------------

def init_dcgan_d_params(key, insize=16, channel_num=4, feature_num=32,
                        n_extra_layers=0):
    assert insize % 16 == 0, "input size has to be a multiple of 16"
    params = {}

    def normal(key, shape, scale=0.02):
        return scale * jax.random.normal(key, shape, dtype=jnp.float32)

    keys = iter(jax.random.split(key, 64))

    # initial conv: channel_num -> feature_num, 4x4 s2 p1
    params["initial_w"] = normal(next(keys), (feature_num, channel_num, 4, 4))

    csize, cndf = insize // 2, feature_num

    # extra layers: cndf -> cndf, 3x3 s1 p1 + BN
    params["extra"] = []
    for _ in range(n_extra_layers):
        params["extra"].append({
            "w": normal(next(keys), (cndf, cndf, 3, 3)),
            "gamma": 1.0 + normal(next(keys), (cndf,), 0.01),
            "beta": normal(next(keys), (cndf,), 0.01),
        })

    # pyramid layers: cndf -> 2*cndf, 4x4 s2 p1 + BN
    params["pyramid"] = []
    while csize > 4:
        in_feat, out_feat = cndf, cndf * 2
        params["pyramid"].append({
            "w": normal(next(keys), (out_feat, in_feat, 4, 4)),
            "gamma": 1.0 + normal(next(keys), (out_feat,), 0.01),
            "beta": normal(next(keys), (out_feat,), 0.01),
        })
        cndf *= 2
        csize //= 2

    # final conv: cndf -> 1, 4x4 s1 p0
    params["final_w"] = normal(next(keys), (1, cndf, 4, 4))
    return params


# ------------------------------ pure-JAX reference ---------------------------

def _conv_ref(x, w, stride, pad):
    return lax.conv_general_dilated(
        x, w, (stride, stride), [(pad, pad), (pad, pad)],
        dimension_numbers=("NCHW", "OIHW", "NCHW"))


def _bn_ref(x, gamma, beta):
    mean = jnp.mean(x, axis=(0, 2, 3), keepdims=True)
    var = jnp.mean((x - mean) ** 2, axis=(0, 2, 3), keepdims=True)
    xn = (x - mean) * lax.rsqrt(var + BN_EPS)
    return xn * gamma.reshape(1, -1, 1, 1) + beta.reshape(1, -1, 1, 1)


def _lrelu_ref(x):
    return jnp.maximum(x, LEAK * x)


def dcgan_d_reference(params, x):
    out = _lrelu_ref(_conv_ref(x, params["initial_w"], 2, 1))
    for layer in params["extra"]:
        out = _lrelu_ref(_bn_ref(_conv_ref(out, layer["w"], 1, 1),
                                 layer["gamma"], layer["beta"]))
    for layer in params["pyramid"]:
        out = _lrelu_ref(_bn_ref(_conv_ref(out, layer["w"], 2, 1),
                                 layer["gamma"], layer["beta"]))
    return _conv_ref(out, params["final_w"], 1, 0)


# ------------------------------------------------------------------------------

if __name__ == "__main__":
    key = jax.random.PRNGKey(0)
    k_param, k_x = jax.random.split(key)

    BATCH, CH, INSIZE, FEAT = 2, 4, 16, 32
    params = init_dcgan_d_params(k_param, insize=INSIZE, channel_num=CH,
                                 feature_num=FEAT, n_extra_layers=0)
    x = jax.random.normal(k_x, (BATCH, CH, INSIZE, INSIZE), dtype=jnp.float32)

    out = jax.block_until_ready(dcgan_d_forward(params, x))
    ref = jax.block_until_ready(dcgan_d_reference(params, x))

    assert out.shape == (BATCH, 1, 1, 1), out.shape
    # bf16 MXU operands (f32 accumulation/epilogue, f32 reference) -> loosened
    # tolerance per the performance review.
    np.testing.assert_allclose(np.asarray(out), np.asarray(ref),
                               rtol=5e-2, atol=6e-2)

    print("KERNEL_OK")
</pallas_src>

<mosaic_0001>
module attributes {stable_mosaic.version = 11 : i64} {
  func.func @kernel(%arg0: memref<712x4xf32, #tpu.memory_space<vmem>>, %arg1: memref<64x32xbf16, #tpu.memory_space<vmem>>, %arg2: memref<512x64xbf16, #tpu.memory_space<vmem>>, %arg3: memref<100x1xf32, #tpu.memory_space<vmem>>, %arg4: memref<1x64xf32, #tpu.memory_space<vmem>>, %arg5: memref<1x64xf32, #tpu.memory_space<vmem>>, %arg6: memref<1024x1xf32, #tpu.memory_space<vmem>>, %arg7: memref<2x1xf32, #tpu.memory_space<vmem>>, %arg8: memref<240x32xf32, #tpu.memory_space<vmem>>, %arg9: memref<48x64xf32, #tpu.memory_space<vmem>>) attributes {dimension_semantics = [], scalar_prefetch = 0 : i64, scratch_operands = 2 : i64, tpu.core_type = #tpu.core_type<tc>} {
    %c0 = arith.constant 0 : index
    %c0_0 = arith.constant 0 : index
    %0 = tpu.strided_load %arg0[%c0, %c0_0] {strides = array<i32: 2, 1>} : memref<712x4xf32, #tpu.memory_space<vmem>>, vector<324x4xf32>
    %c1 = arith.constant 1 : index
    %c0_1 = arith.constant 0 : index
    %1 = tpu.strided_load %arg0[%c1, %c0_1] {strides = array<i32: 2, 1>} : memref<712x4xf32, #tpu.memory_space<vmem>>, vector<324x4xf32>
    %c2 = arith.constant 2 : index
    %c0_2 = arith.constant 0 : index
    %2 = tpu.strided_load %arg0[%c2, %c0_2] {strides = array<i32: 2, 1>} : memref<712x4xf32, #tpu.memory_space<vmem>>, vector<324x4xf32>
    %c3 = arith.constant 3 : index
    %c0_3 = arith.constant 0 : index
    %3 = tpu.strided_load %arg0[%c3, %c0_3] {strides = array<i32: 2, 1>} : memref<712x4xf32, #tpu.memory_space<vmem>>, vector<324x4xf32>
    %c18 = arith.constant 18 : index
    %c0_4 = arith.constant 0 : index
    %4 = tpu.strided_load %arg0[%c18, %c0_4] {strides = array<i32: 2, 1>} : memref<712x4xf32, #tpu.memory_space<vmem>>, vector<324x4xf32>
    %c19 = arith.constant 19 : index
    %c0_5 = arith.constant 0 : index
    %5 = tpu.strided_load %arg0[%c19, %c0_5] {strides = array<i32: 2, 1>} : memref<712x4xf32, #tpu.memory_space<vmem>>, vector<324x4xf32>
    %c20 = arith.constant 20 : index
    %c0_6 = arith.constant 0 : index
    %6 = tpu.strided_load %arg0[%c20, %c0_6] {strides = array<i32: 2, 1>} : memref<712x4xf32, #tpu.memory_space<vmem>>, vector<324x4xf32>
    %c21 = arith.constant 21 : index
    %c0_7 = arith.constant 0 : index
    %7 = tpu.strided_load %arg0[%c21, %c0_7] {strides = array<i32: 2, 1>} : memref<712x4xf32, #tpu.memory_space<vmem>>, vector<324x4xf32>
    %c36 = arith.constant 36 : index
    %c0_8 = arith.constant 0 : index
    %8 = tpu.strided_load %arg0[%c36, %c0_8] {strides = array<i32: 2, 1>} : memref<712x4xf32, #tpu.memory_space<vmem>>, vector<324x4xf32>
    %c37 = arith.constant 37 : index
    %c0_9 = arith.constant 0 : index
    %9 = tpu.strided_load %arg0[%c37, %c0_9] {strides = array<i32: 2, 1>} : memref<712x4xf32, #tpu.memory_space<vmem>>, vector<324x4xf32>
    %c38 = arith.constant 38 : index
    %c0_10 = arith.constant 0 : index
    %10 = tpu.strided_load %arg0[%c38, %c0_10] {strides = array<i32: 2, 1>} : memref<712x4xf32, #tpu.memory_space<vmem>>, vector<324x4xf32>
    %c39 = arith.constant 39 : index
    %c0_11 = arith.constant 0 : index
    %11 = tpu.strided_load %arg0[%c39, %c0_11] {strides = array<i32: 2, 1>} : memref<712x4xf32, #tpu.memory_space<vmem>>, vector<324x4xf32>
    %c54 = arith.constant 54 : index
    %c0_12 = arith.constant 0 : index
    %12 = tpu.strided_load %arg0[%c54, %c0_12] {strides = array<i32: 2, 1>} : memref<712x4xf32, #tpu.memory_space<vmem>>, vector<324x4xf32>
    %c55 = arith.constant 55 : index
    %c0_13 = arith.constant 0 : index
    %13 = tpu.strided_load %arg0[%c55, %c0_13] {strides = array<i32: 2, 1>} : memref<712x4xf32, #tpu.memory_space<vmem>>, vector<324x4xf32>
    %c56 = arith.constant 56 : index
    %c0_14 = arith.constant 0 : index
    %14 = tpu.strided_load %arg0[%c56, %c0_14] {strides = array<i32: 2, 1>} : memref<712x4xf32, #tpu.memory_space<vmem>>, vector<324x4xf32>
    %c57 = arith.constant 57 : index
    %c0_15 = arith.constant 0 : index
    %15 = tpu.strided_load %arg0[%c57, %c0_15] {strides = array<i32: 2, 1>} : memref<712x4xf32, #tpu.memory_space<vmem>>, vector<324x4xf32>
    %16 = tpu.concatenate %0, %1, %2, %3, %4, %5, %6, %7, %8, %9, %10, %11, %12, %13, %14, %15 in 1 : vector<324x4xf32>, vector<324x4xf32>, vector<324x4xf32>, vector<324x4xf32>, vector<324x4xf32>, vector<324x4xf32>, vector<324x4xf32>, vector<324x4xf32>, vector<324x4xf32>, vector<324x4xf32>, vector<324x4xf32>, vector<324x4xf32>, vector<324x4xf32>, vector<324x4xf32>, vector<324x4xf32>, vector<324x4xf32> -> vector<324x64xf32>
    %17 = arith.truncf %16 : vector<324x64xf32> to vector<324x64xbf16>
    %c0_16 = arith.constant 0 : index
    %c0_17 = arith.constant 0 : index
    %18 = vector.load %arg1[%c0_16, %c0_17] : memref<64x32xbf16, #tpu.memory_space<vmem>>, vector<64x32xbf16>
    %cst = arith.constant dense<0.000000e+00> : vector<324x32xf32>
    %19 = tpu.matmul %17, %18, %cst {dimension_numbers = #tpu.dot_dimension_numbers<[1], [0], [0], [1], [0, 0, 1, 1], [], []>} : vector<324x64xbf16>, vector<64x32xbf16>, vector<324x32xf32> -> vector<324x32xf32>
    %cst_18 = arith.constant 2.000000e-01 : f32
    %20 = vector.broadcast %cst_18 : f32 to vector<324x32xf32>
    %21 = arith.mulf %20, %19 : vector<324x32xf32>
    %22 = arith.maximumf %19, %21 : vector<324x32xf32>
    %cst_19 = arith.constant 0.000000e+00 : f32
    %23 = vector.broadcast %cst_19 : f32 to vector<240x32xf32>
    %c0_20 = arith.constant 0 : index
    %c0_21 = arith.constant 0 : index
    %24 = vector.load %arg8[%c0_20, %c0_21] : memref<240x32xf32, #tpu.memory_space<vmem>>, vector<240x32xf32>
    tpu.vector_store %arg8[%c0_20, %c0_21], %23 {strides = array<i32>} : memref<240x32xf32, #tpu.memory_space<vmem>>, vector<240x32xf32>,
    %25 = vector.extract_strided_slice %22 {offsets = [0, 0], sizes = [8, 32], strides = [1, 1]} : vector<324x32xf32> to vector<8x32xf32>
    %c11 = arith.constant 11 : index
    %c0_22 = arith.constant 0 : index
    %26 = vector.load %arg8[%c11, %c0_22] : memref<240x32xf32, #tpu.memory_space<vmem>>, vector<8x32xf32>
    tpu.vector_store %arg8[%c11, %c0_22], %25 {strides = array<i32>} : memref<240x32xf32, #tpu.memory_space<vmem>>, vector<8x32xf32>,
    %27 = vector.extract_strided_slice %22 {offsets = [18, 0], sizes = [8, 32], strides = [1, 1]} : vector<324x32xf32> to vector<8x32xf32>
    %c21_23 = arith.constant 21 : index
    %c0_24 = arith.constant 0 : index
    %28 = vector.load %arg8[%c21_23, %c0_24] : memref<240x32xf32, #tpu.memory_space<vmem>>, vector<8x32xf32>
    tpu.vector_store %arg8[%c21_23, %c0_24], %27 {strides = array<i32>} : memref<240x32xf32, #tpu.memory_space<vmem>>, vector<8x32xf32>,
    %29 = vector.extract_strided_slice %22 {offsets = [36, 0], sizes = [8, 32], strides = [1, 1]} : vector<324x32xf32> to vector<8x32xf32>
    %c31 = arith.constant 31 : index
    %c0_25 = arith.constant 0 : index
    %30 = vector.load %arg8[%c31, %c0_25] : memref<240x32xf32, #tpu.memory_space<vmem>>, vector<8x32xf32>
    tpu.vector_store %arg8[%c31, %c0_25], %29 {strides = array<i32>} : memref<240x32xf32, #tpu.memory_space<vmem>>, vector<8x32xf32>,
    %31 = vector.extract_strided_slice %22 {offsets = [54, 0], sizes = [8, 32], strides = [1, 1]} : vector<324x32xf32> to vector<8x32xf32>
    %c41 = arith.constant 41 : index
    %c0_26 = arith.constant 0 : index
    %32 = vector.load %arg8[%c41, %c0_26] : memref<240x32xf32, #tpu.memory_space<vmem>>, vector<8x32xf32>
    tpu.vector_store %arg8[%c41, %c0_26], %31 {strides = array<i32>} : memref<240x32xf32, #tpu.memory_space<vmem>>, vector<8x32xf32>,
    %33 = vector.extract_strided_slice %22 {offsets = [72, 0], sizes = [8, 32], strides = [1, 1]} : vector<324x32xf32> to vector<8x32xf32>
    %c51 = arith.constant 51 : index
    %c0_27 = arith.constant 0 : index
    %34 = vector.load %arg8[%c51, %c0_27] : memref<240x32xf32, #tpu.memory_space<vmem>>, vector<8x32xf32>
    tpu.vector_store %arg8[%c51, %c0_27], %33 {strides = array<i32>} : memref<240x32xf32, #tpu.memory_space<vmem>>, vector<8x32xf32>,
    %35 = vector.extract_strided_slice %22 {offsets = [90, 0], sizes = [8, 32], strides = [1, 1]} : vector<324x32xf32> to vector<8x32xf32>
    %c61 = arith.constant 61 : index
    %c0_28 = arith.constant 0 : index
    %36 = vector.load %arg8[%c61, %c0_28] : memref<240x32xf32, #tpu.memory_space<vmem>>, vector<8x32xf32>
    tpu.vector_store %arg8[%c61, %c0_28], %35 {strides = array<i32>} : memref<240x32xf32, #tpu.memory_space<vmem>>, vector<8x32xf32>,
    %37 = vector.extract_strided_slice %22 {offsets = [108, 0], sizes = [8, 32], strides = [1, 1]} : vector<324x32xf32> to vector<8x32xf32>
    %c71 = arith.constant 71 : index
    %c0_29 = arith.constant 0 : index
    %38 = vector.load %arg8[%c71, %c0_29] : memref<240x32xf32, #tpu.memory_space<vmem>>, vector<8x32xf32>
    tpu.vector_store %arg8[%c71, %c0_29], %37 {strides = array<i32>} : memref<240x32xf32, #tpu.memory_space<vmem>>, vector<8x32xf32>,
    %39 = vector.extract_strided_slice %22 {offsets = [126, 0], sizes = [8, 32], strides = [1, 1]} : vector<324x32xf32> to vector<8x32xf32>
    %c81 = arith.constant 81 : index
    %c0_30 = arith.constant 0 : index
    %40 = vector.load %arg8[%c81, %c0_30] : memref<240x32xf32, #tpu.memory_space<vmem>>, vector<8x32xf32>
    tpu.vector_store %arg8[%c81, %c0_30], %39 {strides = array<i32>} : memref<240x32xf32, #tpu.memory_space<vmem>>, vector<8x32xf32>,
    %41 = vector.extract_strided_slice %22 {offsets = [162, 0], sizes = [8, 32], strides = [1, 1]} : vector<324x32xf32> to vector<8x32xf32>
    %c111 = arith.constant 111 : index
    %c0_31 = arith.constant 0 : index
    %42 = vector.load %arg8[%c111, %c0_31] : memref<240x32xf32, #tpu.memory_space<vmem>>, vector<8x32xf32>
    tpu.vector_store %arg8[%c111, %c0_31], %41 {strides = array<i32>} : memref<240x32xf32, #tpu.memory_space<vmem>>, vector<8x32xf32>,
    %43 = vector.extract_strided_slice %22 {offsets = [180, 0], sizes = [8, 32], strides = [1, 1]} : vector<324x32xf32> to vector<8x32xf32>
    %c121 = arith.constant 121 : index
    %c0_32 = arith.constant 0 : index
    %44 = vector.load %arg8[%c121, %c0_32] : memref<240x32xf32, #tpu.memory_space<vmem>>, vector<8x32xf32>
    tpu.vector_store %arg8[%c121, %c0_32], %43 {strides = array<i32>} : memref<240x32xf32, #tpu.memory_space<vmem>>, vector<8x32xf32>,
    %45 = vector.extract_strided_slice %22 {offsets = [198, 0], sizes = [8, 32], strides = [1, 1]} : vector<324x32xf32> to vector<8x32xf32>
    %c131 = arith.constant 131 : index
    %c0_33 = arith.constant 0 : index
    %46 = vector.load %arg8[%c131, %c0_33] : memref<240x32xf32, #tpu.memory_space<vmem>>, vector<8x32xf32>
    tpu.vector_store %arg8[%c131, %c0_33], %45 {strides = array<i32>} : memref<240x32xf32, #tpu.memory_space<vmem>>, vector<8x32xf32>,
    %47 = vector.extract_strided_slice %22 {offsets = [216, 0], sizes = [8, 32], strides = [1, 1]} : vector<324x32xf32> to vector<8x32xf32>
    %c141 = arith.constant 141 : index
    %c0_34 = arith.constant 0 : index
    %48 = vector.load %arg8[%c141, %c0_34] : memref<240x32xf32, #tpu.memory_space<vmem>>, vector<8x32xf32>
    tpu.vector_store %arg8[%c141, %c0_34], %47 {strides = array<i32>} : memref<240x32xf32, #tpu.memory_space<vmem>>, vector<8x32xf32>,
    %49 = vector.extract_strided_slice %22 {offsets = [234, 0], sizes = [8, 32], strides = [1, 1]} : vector<324x32xf32> to vector<8x32xf32>
    %c151 = arith.constant 151 : index
    %c0_35 = arith.constant 0 : index
    %50 = vector.load %arg8[%c151, %c0_35] : memref<240x32xf32, #tpu.memory_space<vmem>>, vector<8x32xf32>
    tpu.vector_store %arg8[%c151, %c0_35], %49 {strides = array<i32>} : memref<240x32xf32, #tpu.memory_space<vmem>>, vector<8x32xf32>,
    %51 = vector.extract_strided_slice %22 {offsets = [252, 0], sizes = [8, 32], strides = [1, 1]} : vector<324x32xf32> to vector<8x32xf32>
    %c161 = arith.constant 161 : index
    %c0_36 = arith.constant 0 : index
    %52 = vector.load %arg8[%c161, %c0_36] : memref<240x32xf32, #tpu.memory_space<vmem>>, vector<8x32xf32>
    tpu.vector_store %arg8[%c161, %c0_36], %51 {strides = array<i32>} : memref<240x32xf32, #tpu.memory_space<vmem>>, vector<8x32xf32>,
    %53 = vector.extract_strided_slice %22 {offsets = [270, 0], sizes = [8, 32], strides = [1, 1]} : vector<324x32xf32> to vector<8x32xf32>
    %c171 = arith.constant 171 : index
    %c0_37 = arith.constant 0 : index
    %54 = vector.load %arg8[%c171, %c0_37] : memref<240x32xf32, #tpu.memory_space<vmem>>, vector<8x32xf32>
    tpu.vector_store %arg8[%c171, %c0_37], %53 {strides = array<i32>} : memref<240x32xf32, #tpu.memory_space<vmem>>, vector<8x32xf32>,
    %55 = vector.extract_strided_slice %22 {offsets = [288, 0], sizes = [8, 32], strides = [1, 1]} : vector<324x32xf32> to vector<8x32xf32>
    %c181 = arith.constant 181 : index
    %c0_38 = arith.constant 0 : index
    %56 = vector.load %arg8[%c181, %c0_38] : memref<240x32xf32, #tpu.memory_space<vmem>>, vector<8x32xf32>
    tpu.vector_store %arg8[%c181, %c0_38], %55 {strides = array<i32>} : memref<240x32xf32, #tpu.memory_space<vmem>>, vector<8x32xf32>,
    %c0_39 = arith.constant 0 : index
    %c0_40 = arith.constant 0 : index
    %57 = tpu.strided_load %arg8[%c0_39, %c0_40] {strides = array<i32: 2, 1>} : memref<240x32xf32, #tpu.memory_space<vmem>>, vector<100x32xf32>
    %c1_41 = arith.constant 1 : index
    %c0_42 = arith.constant 0 : index
    %58 = tpu.strided_load %arg8[%c1_41, %c0_42] {strides = array<i32: 2, 1>} : memref<240x32xf32, #tpu.memory_space<vmem>>, vector<100x32xf32>
    %c2_43 = arith.constant 2 : index
    %c0_44 = arith.constant 0 : index
    %59 = tpu.strided_load %arg8[%c2_43, %c0_44] {strides = array<i32: 2, 1>} : memref<240x32xf32, #tpu.memory_space<vmem>>, vector<100x32xf32>
    %c3_45 = arith.constant 3 : index
    %c0_46 = arith.constant 0 : index
    %60 = tpu.strided_load %arg8[%c3_45, %c0_46] {strides = array<i32: 2, 1>} : memref<240x32xf32, #tpu.memory_space<vmem>>, vector<100x32xf32>
    %c10 = arith.constant 10 : index
    %c0_47 = arith.constant 0 : index
    %61 = tpu.strided_load %arg8[%c10, %c0_47] {strides = array<i32: 2, 1>} : memref<240x32xf32, #tpu.memory_space<vmem>>, vector<100x32xf32>
    %c11_48 = arith.constant 11 : index
    %c0_49 = arith.constant 0 : index
    %62 = tpu.strided_load %arg8[%c11_48, %c0_49] {strides = array<i32: 2, 1>} : memref<240x32xf32, #tpu.memory_space<vmem>>, vector<100x32xf32>
    %c12 = arith.constant 12 : index
    %c0_50 = arith.constant 0 : index
    %63 = tpu.strided_load %arg8[%c12, %c0_50] {strides = array<i32: 2, 1>} : memref<240x32xf32, #tpu.memory_space<vmem>>, vector<100x32xf32>
    %c13 = arith.constant 13 : index
    %c0_51 = arith.constant 0 : index
    %64 = tpu.strided_load %arg8[%c13, %c0_51] {strides = array<i32: 2, 1>} : memref<240x32xf32, #tpu.memory_space<vmem>>, vector<100x32xf32>
    %c20_52 = arith.constant 20 : index
    %c0_53 = arith.constant 0 : index
    %65 = tpu.strided_load %arg8[%c20_52, %c0_53] {strides = array<i32: 2, 1>} : memref<240x32xf32, #tpu.memory_space<vmem>>, vector<100x32xf32>
    %c21_54 = arith.constant 21 : index
    %c0_55 = arith.constant 0 : index
    %66 = tpu.strided_load %arg8[%c21_54, %c0_55] {strides = array<i32: 2, 1>} : memref<240x32xf32, #tpu.memory_space<vmem>>, vector<100x32xf32>
    %c22 = arith.constant 22 : index
    %c0_56 = arith.constant 0 : index
    %67 = tpu.strided_load %arg8[%c22, %c0_56] {strides = array<i32: 2, 1>} : memref<240x32xf32, #tpu.memory_space<vmem>>, vector<100x32xf32>
    %c23 = arith.constant 23 : index
    %c0_57 = arith.constant 0 : index
    %68 = tpu.strided_load %arg8[%c23, %c0_57] {strides = array<i32: 2, 1>} : memref<240x32xf32, #tpu.memory_space<vmem>>, vector<100x32xf32>
    %c30 = arith.constant 30 : index
    %c0_58 = arith.constant 0 : index
    %69 = tpu.strided_load %arg8[%c30, %c0_58] {strides = array<i32: 2, 1>} : memref<240x32xf32, #tpu.memory_space<vmem>>, vector<100x32xf32>
    %c31_59 = arith.constant 31 : index
    %c0_60 = arith.constant 0 : index
    %70 = tpu.strided_load %arg8[%c31_59, %c0_60] {strides = array<i32: 2, 1>} : memref<240x32xf32, #tpu.memory_space<vmem>>, vector<100x32xf32>
    %c32 = arith.constant 32 : index
    %c0_61 = arith.constant 0 : index
    %71 = tpu.strided_load %arg8[%c32, %c0_61] {strides = array<i32: 2, 1>} : memref<240x32xf32, #tpu.memory_space<vmem>>, vector<100x32xf32>
    %c33 = arith.constant 33 : index
    %c0_62 = arith.constant 0 : index
    %72 = tpu.strided_load %arg8[%c33, %c0_62] {strides = array<i32: 2, 1>} : memref<240x32xf32, #tpu.memory_space<vmem>>, vector<100x32xf32>
    %73 = tpu.concatenate %57, %58, %59, %60, %61, %62, %63, %64, %65, %66, %67, %68, %69, %70, %71, %72 in 1 : vector<100x32xf32>, vector<100x32xf32>, vector<100x32xf32>, vector<100x32xf32>, vector<100x32xf32>, vector<100x32xf32>, vector<100x32xf32>, vector<100x32xf32>, vector<100x32xf32>, vector<100x32xf32>, vector<100x32xf32>, vector<100x32xf32>, vector<100x32xf32>, vector<100x32xf32>, vector<100x32xf32>, vector<100x32xf32> -> vector<100x512xf32>
    %74 = arith.truncf %73 : vector<100x512xf32> to vector<100x512xbf16>
    %c0_63 = arith.constant 0 : index
    %c0_64 = arith.constant 0 : index
    %75 = vector.load %arg2[%c0_63, %c0_64] : memref<512x64xbf16, #tpu.memory_space<vmem>>, vector<512x64xbf16>
    %cst_65 = arith.constant dense<0.000000e+00> : vector<100x64xf32>
    %76 = tpu.matmul %74, %75, %cst_65 {dimension_numbers = #tpu.dot_dimension_numbers<[1], [0], [0], [1], [0, 0, 1, 1], [], []>} : vector<100x512xbf16>, vector<512x64xbf16>, vector<100x64xf32> -> vector<100x64xf32>
    %c0_66 = arith.constant 0 : index
    %c0_67 = arith.constant 0 : index
    %77 = vector.load %arg3[%c0_66, %c0_67] : memref<100x1xf32, #tpu.memory_space<vmem>>, vector<100x1xf32>
    %78 = vector.broadcast %77 : vector<100x1xf32> to vector<100x64xf32>
    %79 = arith.mulf %76, %78 : vector<100x64xf32>
    %cst_68 = arith.constant dense<0.000000e+00> : vector<64xf32>
    %80 = vector.multi_reduction <add>, %79, %cst_68 [0] : vector<100x64xf32> to vector<64xf32>
    %81 = vector.shape_cast %80 : vector<64xf32> to vector<1x64xf32>
    %cst_69 = arith.constant 3.125000e-02 : f32
    %82 = vector.broadcast %cst_69 : f32 to vector<1x64xf32>
    %83 = arith.mulf %81, %82 : vector<1x64xf32>
    %84 = vector.broadcast %83 : vector<1x64xf32> to vector<100x64xf32>
    %85 = arith.subf %76, %84 : vector<100x64xf32>
    %86 = arith.mulf %85, %85 : vector<100x64xf32>
    %87 = vector.broadcast %77 : vector<100x1xf32> to vector<100x64xf32>
    %88 = arith.mulf %86, %87 : vector<100x64xf32>
    %cst_70 = arith.constant dense<0.000000e+00> : vector<64xf32>
    %89 = vector.multi_reduction <add>, %88, %cst_70 [0] : vector<100x64xf32> to vector<64xf32>
    %90 = vector.shape_cast %89 : vector<64xf32> to vector<1x64xf32>
    %cst_71 = arith.constant 3.125000e-02 : f32
    %91 = vector.broadcast %cst_71 : f32 to vector<1x64xf32>
    %92 = arith.mulf %90, %91 : vector<1x64xf32>
    %cst_72 = arith.constant 9.99999974E-6 : f32
    %93 = vector.broadcast %cst_72 : f32 to vector<1x64xf32>
    %94 = arith.addf %92, %93 : vector<1x64xf32>
    %95 = math.rsqrt %94 : vector<1x64xf32>
    %96 = vector.broadcast %95 : vector<1x64xf32> to vector<100x64xf32>
    %97 = arith.mulf %85, %96 : vector<100x64xf32>
    %c0_73 = arith.constant 0 : index
    %c0_74 = arith.constant 0 : index
    %98 = vector.load %arg4[%c0_73, %c0_74] : memref<1x64xf32, #tpu.memory_space<vmem>>, vector<1x64xf32>
    %99 = vector.broadcast %98 : vector<1x64xf32> to vector<100x64xf32>
    %100 = arith.mulf %97, %99 : vector<100x64xf32>
    %c0_75 = arith.constant 0 : index
    %c0_76 = arith.constant 0 : index
    %101 = vector.load %arg5[%c0_75, %c0_76] : memref<1x64xf32, #tpu.memory_space<vmem>>, vector<1x64xf32>
    %102 = vector.broadcast %101 : vector<1x64xf32> to vector<100x64xf32>
    %103 = arith.addf %100, %102 : vector<100x64xf32>
    %cst_77 = arith.constant 2.000000e-01 : f32
    %104 = vector.broadcast %cst_77 : f32 to vector<100x64xf32>
    %105 = arith.mulf %104, %103 : vector<100x64xf32>
    %106 = arith.maximumf %103, %105 : vector<100x64xf32>
    %cst_78 = arith.constant 0.000000e+00 : f32
    %107 = vector.broadcast %cst_78 : f32 to vector<48x64xf32>
    %c0_79 = arith.constant 0 : index
    %c0_80 = arith.constant 0 : index
    %108 = vector.load %arg9[%c0_79, %c0_80] : memref<48x64xf32, #tpu.memory_space<vmem>>, vector<48x64xf32>
    tpu.vector_store %arg9[%c0_79, %c0_80], %107 {strides = array<i32>} : memref<48x64xf32, #tpu.memory_space<vmem>>, vector<48x64xf32>,
    %109 = vector.extract_strided_slice %106 {offsets = [0, 0], sizes = [4, 64], strides = [1, 1]} : vector<100x64xf32> to vector<4x64xf32>
    %c0_81 = arith.constant 0 : index
    %c0_82 = arith.constant 0 : index
    %110 = vector.load %arg9[%c0_81, %c0_82] : memref<48x64xf32, #tpu.memory_space<vmem>>, vector<4x64xf32>
    tpu.vector_store %arg9[%c0_81, %c0_82], %109 {strides = array<i32>} : memref<48x64xf32, #tpu.memory_space<vmem>>, vector<4x64xf32>,
    %111 = vector.extract_strided_slice %106 {offsets = [10, 0], sizes = [4, 64], strides = [1, 1]} : vector<100x64xf32> to vector<4x64xf32>
    %c4 = arith.constant 4 : index
    %c0_83 = arith.constant 0 : index
    %112 = vector.load %arg9[%c4, %c0_83] : memref<48x64xf32, #tpu.memory_space<vmem>>, vector<4x64xf32>
    tpu.vector_store %arg9[%c4, %c0_83], %111 {strides = array<i32>} : memref<48x64xf32, #tpu.memory_space<vmem>>, vector<4x64xf32>,
    %113 = vector.extract_strided_slice %106 {offsets = [20, 0], sizes = [4, 64], strides = [1, 1]} : vector<100x64xf32> to vector<4x64xf32>
    %c8 = arith.constant 8 : index
    %c0_84 = arith.constant 0 : index
    %114 = vector.load %arg9[%c8, %c0_84] : memref<48x64xf32, #tpu.memory_space<vmem>>, vector<4x64xf32>
    tpu.vector_store %arg9[%c8, %c0_84], %113 {strides = array<i32>} : memref<48x64xf32, #tpu.memory_space<vmem>>, vector<4x64xf32>,
    %115 = vector.extract_strided_slice %106 {offsets = [30, 0], sizes = [4, 64], strides = [1, 1]} : vector<100x64xf32> to vector<4x64xf32>
    %c12_85 = arith.constant 12 : index
    %c0_86 = arith.constant 0 : index
    %116 = vector.load %arg9[%c12_85, %c0_86] : memref<48x64xf32, #tpu.memory_space<vmem>>, vector<4x64xf32>
    tpu.vector_store %arg9[%c12_85, %c0_86], %115 {strides = array<i32>} : memref<48x64xf32, #tpu.memory_space<vmem>>, vector<4x64xf32>,
    %117 = vector.extract_strided_slice %106 {offsets = [50, 0], sizes = [4, 64], strides = [1, 1]} : vector<100x64xf32> to vector<4x64xf32>
    %c16 = arith.constant 16 : index
    %c0_87 = arith.constant 0 : index
    %118 = vector.load %arg9[%c16, %c0_87] : memref<48x64xf32, #tpu.memory_space<vmem>>, vector<4x64xf32>
    tpu.vector_store %arg9[%c16, %c0_87], %117 {strides = array<i32>} : memref<48x64xf32, #tpu.memory_space<vmem>>, vector<4x64xf32>,
    %119 = vector.extract_strided_slice %106 {offsets = [60, 0], sizes = [4, 64], strides = [1, 1]} : vector<100x64xf32> to vector<4x64xf32>
    %c20_88 = arith.constant 20 : index
    %c0_89 = arith.constant 0 : index
    %120 = vector.load %arg9[%c20_88, %c0_89] : memref<48x64xf32, #tpu.memory_space<vmem>>, vector<4x64xf32>
    tpu.vector_store %arg9[%c20_88, %c0_89], %119 {strides = array<i32>} : memref<48x64xf32, #tpu.memory_space<vmem>>, vector<4x64xf32>,
    %121 = vector.extract_strided_slice %106 {offsets = [70, 0], sizes = [4, 64], strides = [1, 1]} : vector<100x64xf32> to vector<4x64xf32>
    %c24 = arith.constant 24 : index
    %c0_90 = arith.constant 0 : index
    %122 = vector.load %arg9[%c24, %c0_90] : memref<48x64xf32, #tpu.memory_space<vmem>>, vector<4x64xf32>
    tpu.vector_store %arg9[%c24, %c0_90], %121 {strides = array<i32>} : memref<48x64xf32, #tpu.memory_space<vmem>>, vector<4x64xf32>,
    %123 = vector.extract_strided_slice %106 {offsets = [80, 0], sizes = [4, 64], strides = [1, 1]} : vector<100x64xf32> to vector<4x64xf32>
    %c28 = arith.constant 28 : index
    %c0_91 = arith.constant 0 : index
    %124 = vector.load %arg9[%c28, %c0_91] : memref<48x64xf32, #tpu.memory_space<vmem>>, vector<4x64xf32>
    tpu.vector_store %arg9[%c28, %c0_91], %123 {strides = array<i32>} : memref<48x64xf32, #tpu.memory_space<vmem>>, vector<4x64xf32>,
    %c0_92 = arith.constant 0 : index
    %c0_93 = arith.constant 0 : index
    %125 = vector.load %arg9[%c0_92, %c0_93] : memref<48x64xf32, #tpu.memory_space<vmem>>, vector<32x64xf32>
    %c1_94 = arith.constant 1 : index
    %c0_95 = arith.constant 0 : index
    %126 = vector.load %arg9[%c1_94, %c0_95] : memref<48x64xf32, #tpu.memory_space<vmem>>, vector<32x64xf32>
    %c2_96 = arith.constant 2 : index
    %c0_97 = arith.constant 0 : index
    %127 = vector.load %arg9[%c2_96, %c0_97] : memref<48x64xf32, #tpu.memory_space<vmem>>, vector<32x64xf32>
    %c3_98 = arith.constant 3 : index
    %c0_99 = arith.constant 0 : index
    %128 = vector.load %arg9[%c3_98, %c0_99] : memref<48x64xf32, #tpu.memory_space<vmem>>, vector<32x64xf32>
    %c4_100 = arith.constant 4 : index
    %c0_101 = arith.constant 0 : index
    %129 = vector.load %arg9[%c4_100, %c0_101] : memref<48x64xf32, #tpu.memory_space<vmem>>, vector<32x64xf32>
    %c5 = arith.constant 5 : index
    %c0_102 = arith.constant 0 : index
    %130 = vector.load %arg9[%c5, %c0_102] : memref<48x64xf32, #tpu.memory_space<vmem>>, vector<32x64xf32>
    %c6 = arith.constant 6 : index
    %c0_103 = arith.constant 0 : index
    %131 = vector.load %arg9[%c6, %c0_103] : memref<48x64xf32, #tpu.memory_space<vmem>>, vector<32x64xf32>
    %c7 = arith.constant 7 : index
    %c0_104 = arith.constant 0 : index
    %132 = vector.load %arg9[%c7, %c0_104] : memref<48x64xf32, #tpu.memory_space<vmem>>, vector<32x64xf32>
    %c8_105 = arith.constant 8 : index
    %c0_106 = arith.constant 0 : index
    %133 = vector.load %arg9[%c8_105, %c0_106] : memref<48x64xf32, #tpu.memory_space<vmem>>, vector<32x64xf32>
    %c9 = arith.constant 9 : index
    %c0_107 = arith.constant 0 : index
    %134 = vector.load %arg9[%c9, %c0_107] : memref<48x64xf32, #tpu.memory_space<vmem>>, vector<32x64xf32>
    %c10_108 = arith.constant 10 : index
    %c0_109 = arith.constant 0 : index
    %135 = vector.load %arg9[%c10_108, %c0_109] : memref<48x64xf32, #tpu.memory_space<vmem>>, vector<32x64xf32>
    %c11_110 = arith.constant 11 : index
    %c0_111 = arith.constant 0 : index
    %136 = vector.load %arg9[%c11_110, %c0_111] : memref<48x64xf32, #tpu.memory_space<vmem>>, vector<32x64xf32>
    %c12_112 = arith.constant 12 : index
    %c0_113 = arith.constant 0 : index
    %137 = vector.load %arg9[%c12_112, %c0_113] : memref<48x64xf32, #tpu.memory_space<vmem>>, vector<32x64xf32>
    %c13_114 = arith.constant 13 : index
    %c0_115 = arith.constant 0 : index
    %138 = vector.load %arg9[%c13_114, %c0_115] : memref<48x64xf32, #tpu.memory_space<vmem>>, vector<32x64xf32>
    %c14 = arith.constant 14 : index
    %c0_116 = arith.constant 0 : index
    %139 = vector.load %arg9[%c14, %c0_116] : memref<48x64xf32, #tpu.memory_space<vmem>>, vector<32x64xf32>
    %c15 = arith.constant 15 : index
    %c0_117 = arith.constant 0 : index
    %140 = vector.load %arg9[%c15, %c0_117] : memref<48x64xf32, #tpu.memory_space<vmem>>, vector<32x64xf32>
    %141 = tpu.concatenate %125, %126, %127, %128, %129, %130, %131, %132, %133, %134, %135, %136, %137, %138, %139, %140 in 1 : vector<32x64xf32>, vector<32x64xf32>, vector<32x64xf32>, vector<32x64xf32>, vector<32x64xf32>, vector<32x64xf32>, vector<32x64xf32>, vector<32x64xf32>, vector<32x64xf32>, vector<32x64xf32>, vector<32x64xf32>, vector<32x64xf32>, vector<32x64xf32>, vector<32x64xf32>, vector<32x64xf32>, vector<32x64xf32> -> vector<32x1024xf32>
    %c0_118 = arith.constant 0 : index
    %c0_119 = arith.constant 0 : index
    %142 = vector.load %arg6[%c0_118, %c0_119] : memref<1024x1xf32, #tpu.memory_space<vmem>>, vector<1024x1xf32>
    %cst_120 = arith.constant dense<0.000000e+00> : vector<32x1xf32>
    %143 = tpu.matmul %141, %142, %cst_120 {dimension_numbers = #tpu.dot_dimension_numbers<[1], [0], [0], [1], [0, 0, 1, 1], [], []>} : vector<32x1024xf32>, vector<1024x1xf32>, vector<32x1xf32> -> vector<32x1xf32>
    %144 = vector.extract_strided_slice %143 {offsets = [0, 0], sizes = [1, 1], strides = [1, 1]} : vector<32x1xf32> to vector<1x1xf32>
    %c0_121 = arith.constant 0 : index
    %c0_122 = arith.constant 0 : index
    %145 = vector.load %arg7[%c0_121, %c0_122] : memref<2x1xf32, #tpu.memory_space<vmem>>, vector<1x1xf32>
    tpu.vector_store %arg7[%c0_121, %c0_122], %144 {strides = array<i32>} : memref<2x1xf32, #tpu.memory_space<vmem>>, vector<1x1xf32>,
    %146 = vector.extract_strided_slice %143 {offsets = [16, 0], sizes = [1, 1], strides = [1, 1]} : vector<32x1xf32> to vector<1x1xf32>
    %c1_123 = arith.constant 1 : index
    %c0_124 = arith.constant 0 : index
    %147 = vector.load %arg7[%c1_123, %c0_124] : memref<2x1xf32, #tpu.memory_space<vmem>>, vector<1x1xf32>
    tpu.vector_store %arg7[%c1_123, %c0_124], %146 {strides = array<i32>} : memref<2x1xf32, #tpu.memory_space<vmem>>, vector<1x1xf32>,
    return
  }
}

</mosaic_0001>

<bundles_post_ra>
// kernel: tpu_custom_call.1
= control target key start
LH: loop header
LB: loop body
LE: loop exit
PB: predicated region body
PF: predicated region fallthrough
CT: control target
= control target key end

     0   :  { %s9673_s17 = smov 4   ;;  %s9674_s28 = smov 8   ;;  %vm3090_vm0 = vcmask 31744   ;;  %vm3132_vm1 = vcmask 64512   ;;  %vm3174_vm2 = vcmask 97280   ;;  %vm14867_vm3 = vcmask 261120   ;;  %s14815_s0 = inlined_call_operand.vmem [shape: f32[712,4], index: 0, kind: input, shape index: {}]   ;;  %s14816_s1 = inlined_call_operand.vmem [shape: bf16[64,32], index: 1, kind: input, shape index: {}]   ;;  %s14817_s2 = inlined_call_operand.vmem [shape: bf16[512,64], index: 2, kind: input, shape index: {}]   ;;  %s14818_s3 = inlined_call_operand.vmem [shape: f32[100,1], index: 3, kind: input, shape index: {}]   ;;  %s14819_s6 = inlined_call_operand.vmem [shape: f32[1024,1], index: 6, kind: input, shape index: {}]   ;;  %s14820_s4 = inlined_call_operand.vmem [shape: f32[1,64], index: 4, kind: input, shape index: {}]   ;;  %s14821_s5 = inlined_call_operand.vmem [shape: f32[1,64], index: 5, kind: input, shape index: {}]   ;;  %s14822_s7 = inlined_call_operand.vmem [shape: f32[2,1], index: 7, kind: output, shape index: {}]  }
   0x1   :  { %v6680_v0 = vld [vmem:[%s14815_s0 + $0x41] ss:$2 sm:$0xff]  ;;  %v6681_v1 = vld [vmem:[%s14815_s0 + $0x51] ss:$2 sm:$0xff]  ;;  %v9808_v30 = vld [vmem:[%s14815_s0 + $0x12] ss:$2 sm:$0xff] }
   0x2   :  { %v6676_v2 = vld [vmem:[%s14815_s0 + $0x1] ss:$2 sm:$0xff]  ;;  %v7699_v3 = vpack.i.bf16 %v6681_v1, %v6680_v0  ;;  %v6677_v4 = vld [vmem:[%s14815_s0 + $0x11] ss:$2 sm:$0xff]  ;;  %v9820_v34 = vld [vmem:[%s14815_s0 + $0x42] ss:$2 sm:$0xff] }
   0x3   :  { %v6682_v5 = vld [vmem:[%s14815_s0 + $0x61] ss:$2 sm:$0xff]  ;;  %v6683_v6 = vld [vmem:[%s14815_s0 + $0x71] ss:$2 sm:$0xff]  ;;  %v7689_v7 = vpack.i.bf16 %v6677_v4, %v6676_v2  ;;  %v9825_v35 = vld [vmem:[%s14815_s0 + $0x22] ss:$2 sm:$0xff] }
   0x4   :  { %v6678_v8 = vld [vmem:[%s14815_s0 + $0x21] ss:$2 sm:$0xff]  ;;  %v6679_v9 = vld [vmem:[%s14815_s0 + $0x31] ss:$2 sm:$0xff]  ;;  %7700 = vrot.lane.b32.xlu1 %v7699_v3, %s9673_s17  ;;  %v7704_v10 = vpack.i.bf16 %v6683_v6, %v6682_v5  ;;  %v9830_v36 = vld [vmem:[%s14815_s0 + $0x32] ss:$2 sm:$0xff] }
   0x5   :  { %7690 = vrot.lane.b32.xlu0 %v7689_v7, %s9673_s17  ;;  %v7694_v11 = vpack.i.bf16 %v6679_v9, %v6678_v8  ;;  %v6686_v12 = vld [vmem:[%s14815_s0 + $0xa1] ss:$2 sm:$0xff]  ;;  %v6687_v13 = vld [vmem:[%s14815_s0 + $0xb1] ss:$2 sm:$0xff]  ;;  %v9836_v38 = vld [vmem:[%s14815_s0 + $0x52] ss:$2 sm:$0xff] }
   0x6   :  { %v6684_v14 = vld [vmem:[%s14815_s0 + $0x81] ss:$2 sm:$0xff]  ;;  %v6685_v15 = vld [vmem:[%s14815_s0 + $0x91] ss:$2 sm:$0xff]  ;;  %v7714_v16 = vpack.i.bf16 %v6687_v13, %v6686_v12  ;;  %v9841_v39 = vld [vmem:[%s14815_s0 + $0x82] ss:$2 sm:$0xff] }
   0x7   :  { %v7709_v17 = vpack.i.bf16 %v6685_v15, %v6684_v14  ;;  %v6690_v18 = vld [vmem:[%s14815_s0 + $0xe1] ss:$2 sm:$0xff]  ;;  %v6691_v19 = vld [vmem:[%s14815_s0 + $0xf1] ss:$2 sm:$0xff]  ;;  %14875 = vst [vmem:[#allocation4_spill] sm:$0xff] %v9841_v39  ;;  %s9675_s24 = smov 12  }
   0x8   :  { %7705 = vrot.lane.b32.xlu1 %v7704_v10, %s9673_s17  ;;  %v6688_v20 = vld [vmem:[%s14815_s0 + $0xc1] ss:$2 sm:$0xff]  ;;  %v6689_v21 = vld [vmem:[%s14815_s0 + $0xd1] ss:$2 sm:$0xff]  ;;  %v7724_v22 = vpack.i.bf16 %v6691_v19, %v6690_v18  ;;  %v9846_v40 = vld [vmem:[%s14815_s0 + $0x62] ss:$2 sm:$0xff]  ;;  %v7794_v10 = vpack.i.bf16 %v9830_v36, %v9825_v35 }
   0x9   :  { %7695 = vrot.lane.b32.xlu0 %v7694_v11, %s9673_s17  ;;  %v7719_v23 = vpack.i.bf16 %v6689_v21, %v6688_v20  ;;  %v6694_v24 = vld [vmem:[%s14815_s0 + $0x121] ss:$2 sm:$0xff]  ;;  %v6695_v25 = vld [vmem:[%s14815_s0 + $0x131] ss:$2 sm:$0xff]  ;;  %v9855_v43 = vld [vmem:[%s14815_s0 + $0x92] ss:$2 sm:$0xff] }
   0xa   :  { %v6692_v26 = vld [vmem:[%s14815_s0 + $0x101] ss:$2 sm:$0xff]  ;;  %v6693_v27 = vld [vmem:[%s14815_s0 + $0x111] ss:$2 sm:$0xff]  ;;  %v7734_v31 = vpack.i.bf16 %v6695_v25, %v6694_v24  ;;  %14876 = vst [vmem:[#allocation5_spill] sm:$0xff] %v9855_v43  ;;  %v7809_v42 = vpack.i.bf16 %v9855_v43, %v9841_v39  ;;  %s9676_s29 = smov 16  }
   0xb   :  { %v6698_v28 = vld [vmem:[%s14815_s0 + $0x161] ss:$2 sm:$0xff]  ;;  %v6699_v29 = vld [vmem:[%s14815_s0 + $0x171] ss:$2 sm:$0xff]  ;;  %v7729_v37 = vpack.i.bf16 %v6693_v27, %v6692_v26  ;;  %v9860_v44 = vld [vmem:[%s14815_s0 + $0x72] ss:$2 sm:$0xff] }
   0xc   :  { %7715 = vrot.lane.b32.xlu1 %v7714_v16, %s9673_s17  ;;  %v6696_v32 = vld [vmem:[%s14815_s0 + $0x141] ss:$2 sm:$0xff]  ;;  %v6697_v33 = vld [vmem:[%s14815_s0 + $0x151] ss:$2 sm:$0xff]  ;;  %14877 = vst [vmem:[#allocation6_spill] sm:$0xff] %v9860_v44  ;;  %v7744_v53 = vpack.i.bf16 %v6699_v29, %v6698_v28  ;;  %v7804_v46 = vpack.i.bf16 %v9860_v44, %v9846_v40  ;;  %s9677_s26 = smov 20  }
   0xd   :  { %7710 = vrot.lane.b32.xlu0 %v7709_v17, %s9673_s17  ;;  %v9865_v45 = vld [vmem:[%s14815_s0 + $0xc2] ss:$2 sm:$0xff]  ;;  %v6702_v47 = vld [vmem:[%s14815_s0 + $0x1a1] ss:$2 sm:$0xff]  ;;  %v6703_v48 = vld [vmem:[%s14815_s0 + $0x1b1] ss:$2 sm:$0xff]  ;;  %v7739_v60 = vpack.i.bf16 %v6697_v33, %v6696_v32 }
   0xe   :  { %14878 = vst [vmem:[#allocation7_spill] sm:$0xff] %v9865_v45  ;;  %v9878_v49 = vld [vmem:[%s14815_s0 + $0xd2] ss:$2 sm:$0xff]  ;;  %v9883_v50 = vld [vmem:[%s14815_s0 + $0xa2] ss:$2 sm:$0xff]  ;;  %v7754_v11 = vpack.i.bf16 %v6703_v48, %v6702_v47  ;;  %s9678_s30 = smov 24  }
   0xf   :  { %14879 = vst [vmem:[#allocation8_spill] sm:$0xff] %v9878_v49  ;;  %14880 = vst [vmem:[#allocation9_spill] sm:$0xff] %v9883_v50  ;;  %v9888_v51 = vld [vmem:[%s14815_s0 + $0xb2] ss:$2 sm:$0xff]  ;;  %v6700_v54 = vld [vmem:[%s14815_s0 + $0x181] ss:$2 sm:$0xff]  ;;  %v7819_v44 = vpack.i.bf16 %v9878_v49, %v9865_v45 }
  0x10   :  { %7725 = vrot.lane.b32.xlu1 %v7724_v22, %s9673_s17  ;;  %14881 = vst [vmem:[#allocation10_spill] sm:$0xff] %v9888_v51  ;;  %v9899_v55 = vld [vmem:[%s14815_s0 + $0x102] ss:$2 sm:$0xff]  ;;  %v9909_v57 = vld [vmem:[%s14815_s0 + $0xf2] ss:$2 sm:$0xff]  ;;  %v7814_v39 = vpack.i.bf16 %v9888_v51, %v9883_v50  ;;  %s9680_s11 = smov 32  }
  0x11   :  { %7720 = vrot.lane.b32.xlu0 %v7719_v23, %s9673_s17  ;;  %14882 = vst [vmem:[#allocation11_spill] sm:$0xff] %v9899_v55  ;;  %v9904_v56 = vld [vmem:[%s14815_s0 + $0xe2] ss:$2 sm:$0xff]  ;;  %14884 = vst [vmem:[#allocation13_spill] sm:$0xff] %v9909_v57  ;;  %v6701_v61 = vld [vmem:[%s14815_s0 + $0x191] ss:$2 sm:$0xff] }
  0x12   :  { %14883 = vst [vmem:[#allocation12_spill] sm:$0xff] %v9904_v56  ;;  %v9922_v62 = vld [vmem:[%s14815_s0 + $0x112] ss:$2 sm:$0xff]  ;;  %v9927_v63 = vld [vmem:[%s14815_s0 + $0x122] ss:$2 sm:$0xff]  ;;  %v7749_v17 = vpack.i.bf16 %v6701_v61, %v6700_v54  ;;  %v7824_v49 = vpack.i.bf16 %v9909_v57, %v9904_v56  ;;  %s9681_s14 = smov 28  }
  0x13   :  { %14885 = vst [vmem:[#allocation14_spill] sm:$0xff] %v9922_v62  ;;  %14886 = vst [vmem:[#allocation15_spill] sm:$0xff] %v9927_v63  ;;  %v9936_v2 = vld [vmem:[%s14815_s0 + $0x142] ss:$2 sm:$0xff]  ;;  %v9941_v3 = vld [vmem:[%s14815_s0 + $0x152] ss:$2 sm:$0xff]  ;;  %v7829_v45 = vpack.i.bf16 %v9922_v62, %v9899_v55 }
  0x14   :  { %7735 = vrot.lane.b32.xlu1 %v7734_v31, %s9673_s17  ;;  %14887 = vst [vmem:[#allocation16_spill] sm:$0xff] %v9936_v2  ;;  %14888 = vst [vmem:[#allocation17_spill] sm:$0xff] %v9941_v3  ;;  %v9946_v4 = vld [vmem:[%s14815_s0 + $0x132] ss:$2 sm:$0xff]  ;;  %v6706_v6 = vld [vmem:[%s14815_s0 + $0x1e1] ss:$2 sm:$0xff]  ;;  %v7839_v55 = vpack.i.bf16 %v9941_v3, %v9936_v2 }
  0x15   :  { %7730 = vrot.lane.b32.xlu0 %v7729_v37, %s9673_s17  ;;  %14889 = vst [vmem:[#allocation18_spill] sm:$0xff] %v9946_v4  ;;  %v9956_v7 = vld [vmem:[%s14815_s0 + $0x182] ss:$2 sm:$0xff]  ;;  %v9966_v9 = vld [vmem:[%s14815_s0 + $0x172] ss:$2 sm:$0xff]  ;;  %v7834_v62 = vpack.i.bf16 %v9946_v4, %v9927_v63  ;;  %s9682_s21 = smov 40  }
  0x16   :  { %14890 = vst [vmem:[#allocation19_spill] sm:$0xff] %v9956_v7  ;;  %v9961_v8 = vld [vmem:[%s14815_s0 + $0x162] ss:$2 sm:$0xff]  ;;  %14892 = vst [vmem:[#allocation21_spill] sm:$0xff] %v9966_v9  ;;  %v6707_v12 = vld [vmem:[%s14815_s0 + $0x1f1] ss:$2 sm:$0xff] }
  0x17   :  { %14891 = vst [vmem:[#allocation20_spill] sm:$0xff] %v9961_v8  ;;  %v9977_v13 = vld [vmem:[%s14815_s0 + $0x192] ss:$2 sm:$0xff]  ;;  %v9982_v14 = vld [vmem:[%s14815_s0 + $0x1a2] ss:$2 sm:$0xff]  ;;  %v7764_v27 = vpack.i.bf16 %v6707_v12, %v6706_v6  ;;  %v7844_v3 = vpack.i.bf16 %v9966_v9, %v9961_v8  ;;  %s9684_s8 = smov 48  }
  0x18   :  { %7745 = vrot.lane.b32.xlu1 %v7744_v53, %s9673_s17  ;;  %14893 = vst [vmem:[#allocation22_spill] sm:$0xff] %v9977_v13  ;;  %v6704_v18 = vld [vmem:[%s14815_s0 + $0x1c1] ss:$2 sm:$0xff]  ;;  %v6705_v19 = vld [vmem:[%s14815_s0 + $0x1d1] ss:$2 sm:$0xff]  ;;  %v7849_v2 = vpack.i.bf16 %v9977_v13, %v9956_v7  ;;  %s9685_s10 = smov 44  }
  0x19   :  { %7740 = vrot.lane.b32.xlu0 %v7739_v60, %s9673_s17  ;;  %v9998_v20 = vld [vmem:[%s14815_s0 + $0x1c2] ss:$2 sm:$0xff]  ;;  %v10005_v22 = vld [vmem:[%s14815_s0 + $0x1d2] ss:$2 sm:$0xff]  ;;  %v6710_v28 = vld [vmem:[%s14815_s0 + $0x221] ss:$2 sm:$0xff]  ;;  %v7759_v31 = vpack.i.bf16 %v6705_v19, %v6704_v18 }
  0x1a   :  { %v10010_v23 = vld [vmem:[%s14815_s0 + $0x1b2] ss:$2 sm:$0xff]  ;;  %v10015_v24 = vld [vmem:[%s14815_s0 + $0x1e2] ss:$2 sm:$0xff]  ;;  %v6711_v29 = vld [vmem:[%s14815_s0 + $0x231] ss:$2 sm:$0xff]  ;;  %v7859_v7 = vpack.i.bf16 %v10005_v22, %v9998_v20 }
  0x1b   :  { %v6708_v32 = vld [vmem:[%s14815_s0 + $0x201] ss:$2 sm:$0xff]  ;;  %v6709_v33 = vld [vmem:[%s14815_s0 + $0x211] ss:$2 sm:$0xff]  ;;  %v10038_v37 = vld [vmem:[%s14815_s0 + $0x202] ss:$2 sm:$0xff]  ;;  %v7774_v61 = vpack.i.bf16 %v6711_v29, %v6710_v28  ;;  %v7854_v13 = vpack.i.bf16 %v10010_v23, %v9982_v14 }
  0x1c   :  { %7755 = vrot.lane.b32.xlu1 %v7754_v11, %s9673_s17  ;;  %v10043_v47 = vld [vmem:[%s14815_s0 + $0x212] ss:$2 sm:$0xff]  ;;  %v10053_v53 = vld [vmem:[%s14815_s0 + $0x222] ss:$2 sm:$0xff]  ;;  %v6714_v6 = vld [vmem:[%s14815_s0 + $0x261] ss:$2 sm:$0xff]  ;;  %v7769_v12 = vpack.i.bf16 %v6709_v33, %v6708_v32  ;;  %v7799_v32 = vpack.i.bf16 %v9836_v38, %v9820_v34 }
  0x1d   :  { %7750 = vrot.lane.b32.xlu0 %v7749_v17, %s9673_s17  ;;  %v10048_v48 = vld [vmem:[%s14815_s0 + $0x1f2] ss:$2 sm:$0xff]  ;;  %v6715_v11 = vld [vmem:[%s14815_s0 + $0x271] ss:$2 sm:$0xff]  ;;  %v6712_v17 = vld [vmem:[%s14815_s0 + $0x241] ss:$2 sm:$0xff]  ;;  %v7869_v8 = vpack.i.bf16 %v10043_v47, %v10038_v37 }
  0x1e   :  { %v6713_v18 = vld [vmem:[%s14815_s0 + $0x251] ss:$2 sm:$0xff]  ;;  %v10076_v19 = vld [vmem:[%s14815_s0 + $0x242] ss:$2 sm:$0xff]  ;;  %v10086_v28 = vld [vmem:[%s14815_s0 + $0x232] ss:$2 sm:$0xff]  ;;  %v7784_v33 = vpack.i.bf16 %v6715_v11, %v6714_v6  ;;  %v7864_v9 = vpack.i.bf16 %v10048_v48, %v10015_v24 }
  0x1f   :  { %v10091_v29 = vld [vmem:[%s14815_s0 + $0x262] ss:$2 sm:$0xff]  ;;  %v7779_v60 = vpack.i.bf16 %v6713_v18, %v6712_v17  ;;  %v10105_v26 = vld [vmem:[%s14815_s0 + $0x1e3] ss:$2 sm:$0xff]  ;;  %v10179_v16 = vld [vmem:[%s14815_s0 + $0x253] ss:$2 sm:$0xff] }
  0x20   :  { %7765 = vrot.lane.b32.xlu1 %v7764_v27, %s9673_s17  ;;  %v10081_v27 = vld [vmem:[%s14815_s0 + $0x252] ss:$2 sm:$0xff]  ;;  %v6717_v54 = vld [vmem:[%s14815_s0 + $0x2] ss:$2 sm:$0xff]  ;;  %14894 = vst [vmem:[#allocation23_spill] sm:$0xff] %v10105_v26  ;;  %14901 = vst [vmem:[#allocation30_spill] sm:$0xff] %v10179_v16 }
  0x21   :  { %7760 = vrot.lane.b32.xlu0 %v7759_v31, %s9673_s17  ;;  %v10110_v31 = vld [vmem:[%s14815_s0 + $0x1d3] ss:$2 sm:$0xff]  ;;  %v10120_v11 = vld [vmem:[%s14815_s0 + $0x23] ss:$2 sm:$0xff]  ;;  %vm9686_vm4 = vmmov 0   ;;  %vm3773_vm5 = vcmask 523264  }
  0x22   :  { %14895 = vst [vmem:[#allocation24_spill] sm:$0xff] %v10110_v31  ;;  %v6716_v6 = vld [vmem:[%s14815_s0 + $0x281] ss:$2 sm:$0xf]  ;;  %s9687_s18 = smov 52   ;;  %s9688_s27 = smov 56  }
  0x23   :  { %v10138_v18 = vld [vmem:[%s14815_s0 + $0x223] ss:$2 sm:$0xff]  ;;  %v10192_v21 = vld [vmem:[%s14815_s0 + $0x233] ss:$2 sm:$0xff]  ;;  %s9689_s13 = smov 60   ;;  %vm3216_vm6 = vcmask 130048  }
  0x24   :  { %7775 = vrot.lane.b32.xlu1 %v7774_v61, %s9673_s17  ;;  %v7789_v61 = vpack.i.bf16 %v9808_v30, %v6717_v54  ;;  %v10133_v54 = vld [vmem:[%s14815_s0 + $0x13] ss:$2 sm:$0xff]  ;;  %14896 = vst [vmem:[#allocation25_spill] sm:$0xff] %v10138_v18  ;;  %v10148_v17 = vld [vmem:[%s14815_s0 + $0x43] ss:$2 sm:$0xff]  ;;  %14902 = vst [vmem:[#allocation31_spill] sm:$0xff] %v10192_v21 }
  0x25   :  { %7770 = vrot.lane.b32.xlu0 %v7769_v12, %s9673_s17  ;;  %v10125_v12 = vld [vmem:[%s14815_s0 + $0x33] ss:$2 sm:$0xff]  ;;  %v10160_v25 = vld [vmem:[%s14815_s0 + $0x203] ss:$2 sm:$0xff]  ;;  %vm3258_vm7 = vcmask 162816   ;;  %vm14869_vm8 = vcmask 195584  }
  0x26   :  { %14899 = vst [vmem:[#allocation28_spill] sm:$0xff] %v10160_v25  ;;  %v10174_v15 = vld [vmem:[%s14815_s0 + $0x263] ss:$2 sm:$0xff]  ;;  %v10204_v5 = vld [vmem:[%s14815_s0 + $0x73] ss:$2 sm:$0xff]  ;;  %v7894_v4 = vpack.i.bf16 %v10125_v12, %v10120_v11  ;;  %vm14868_vm9 = vcmask 228352  }
  0x27   :  { %14900 = vst [vmem:[#allocation29_spill] sm:$0xff] %v10174_v15  ;;  %v10209_v59 = vld [vmem:[%s14815_s0 + $0x53] ss:$2 sm:$0xff]  ;;  %v10214_v0 = vld [vmem:[%s14815_s0 + $0x83] ss:$2 sm:$0xff]  ;;  %vm14866_vm10 = vcmask 293888  }
  0x28   :  { %7785 = vrot.lane.b32.xlu1 %v7784_v33, %s9673_s17  ;;  %v10143_v33 = vld [vmem:[%s14815_s0 + $0x213] ss:$2 sm:$0xff]  ;;  %v10231_v1 = vld [vmem:[%s14815_s0 + $0xa3] ss:$2 sm:$0xff]  ;;  %vm3468_vm11 = vcmask 326656   ;;  %vm14865_vm12 = vcmask 359424  }
  0x29   :  { %7780 = vrot.lane.b32.xlu0 %v7779_v60, %s9673_s17  ;;  %14897 = vst [vmem:[#allocation26_spill] sm:$0xff] %v10143_v33  ;;  %v10153_v60 = vld [vmem:[%s14815_s0 + $0x1f3] ss:$2 sm:$0xff]  ;;  %v10261_v43 = vld [vmem:[%s14815_s0 + $0xe3] ss:$2 sm:$0xff]  ;;  %vm3552_vm13 = vcmask 392192  }
  0x2a   :  { %14898 = vst [vmem:[#allocation27_spill] sm:$0xff] %v10153_v60  ;;  %v10236_v52 = vld [vmem:[%s14815_s0 + $0xb3] ss:$2 sm:$0xff]  ;;  %v10291_v50 = vld [vmem:[%s14815_s0 + $0x123] ss:$2 sm:$0xff]  ;;  %vm3594_vm14 = vcmask 424960  }
  0x2b   :  { %v10266_v58 = vld [vmem:[%s14815_s0 + $0xf3] ss:$2 sm:$0xff]  ;;  %v10321_v56 = vld [vmem:[%s14815_s0 + $0x163] ss:$2 sm:$0xff]  ;;  %vm3636_vm15 = vcmask 457728   ;;  %s9691_s12 = smov 96  }
  0x2c   :  { %7790 = vrot.lane.b32.xlu1 %v7789_v61, %s9674_s28  ;;  %v10187_v61 = vld [vmem:[%s14815_s0 + $0x63] ss:$2 sm:$0xff]  ;;  %v10296_v41 = vld [vmem:[%s14815_s0 + $0x133] ss:$2 sm:$0xff] }
  0x2d   :  { %985 = vrot.lane.b32.xlu0 %v6716_v6, %s9673_s17  ;;  %v10199_v6 = vld [vmem:[%s14815_s0 + $0x243] ss:$2 sm:$0xff]  ;;  %v10326_v51 = vld [vmem:[%s14815_s0 + $0x173] ss:$2 sm:$0xff] }
  0x2e   :  { %14903 = vst [vmem:[#allocation32_spill] sm:$0xff] %v10199_v6  ;;  %v10351_v63 = vld [vmem:[%s14815_s0 + $0x1a3] ss:$2 sm:$0xff]  ;;  %v10356_v57 = vld [vmem:[%s14815_s0 + $0x1b3] ss:$2 sm:$0xff] }
  0x2f   :  { %14904 = vst [vmem:[#allocation33_spill] sm:$0xff] %v10351_v63 }
  0x30   :  { %7800 = vrot.lane.b32.xlu1 %v7799_v32, %s9674_s28  ;;  %v10241_v32 = vld [vmem:[%s14815_s0 + $0x93] ss:$2 sm:$0xff] }
  0x31   :  { %7795 = vrot.lane.b32.xlu0 %v7794_v10, %s9674_s28  ;;  %v10246_v10 = vld [vmem:[%s14815_s0 + $0xc3] ss:$2 sm:$0xff] }
  0x34   :  { %7810 = vrot.lane.b32.xlu1 %v7809_v42, %s9674_s28  ;;  %v10271_v42 = vld [vmem:[%s14815_s0 + $0xd3] ss:$2 sm:$0xff] }
  0x35   :  { %7805 = vrot.lane.b32.xlu0 %v7804_v46, %s9674_s28  ;;  %v10276_v46 = vld [vmem:[%s14815_s0 + $0x103] ss:$2 sm:$0xff] }
  0x38   :  { %7820 = vrot.lane.b32.xlu1 %v7819_v44, %s9674_s28  ;;  %v10301_v44 = vld [vmem:[%s14815_s0 + $0x113] ss:$2 sm:$0xff] }
  0x39   :  { %7815 = vrot.lane.b32.xlu0 %v7814_v39, %s9674_s28  ;;  %v10306_v39 = vld [vmem:[%s14815_s0 + $0x143] ss:$2 sm:$0xff] }
  0x3c   :  { %7830 = vrot.lane.b32.xlu1 %v7829_v45, %s9674_s28  ;;  %v10331_v45 = vld [vmem:[%s14815_s0 + $0x153] ss:$2 sm:$0xff] }
  0x3d   :  { %7825 = vrot.lane.b32.xlu0 %v7824_v49, %s9674_s28  ;;  %v10336_v49 = vld [vmem:[%s14815_s0 + $0x183] ss:$2 sm:$0xff] }
  0x40   :  { %7840 = vrot.lane.b32.xlu1 %v7839_v55, %s9674_s28  ;;  %v10361_v55 = vld [vmem:[%s14815_s0 + $0x193] ss:$2 sm:$0xff] }
  0x41   :  { %7835 = vrot.lane.b32.xlu0 %v7834_v62, %s9674_s28  ;;  %14905 = vst [vmem:[#allocation34_spill] sm:$0xff] %v10361_v55  ;;  %v10366_v62 = vld [vmem:[%s14815_s0 + $0x1c3] ss:$2 sm:$0xff] }
  0x44   :  { %7850 = vrot.lane.b32.xlu1 %v7849_v2, %s9674_s28  ;;  %v7879_v2 = vpack.i.bf16 %v10081_v27, %v10076_v19 }
  0x45   :  { %7845 = vrot.lane.b32.xlu0 %v7844_v3, %s9674_s28  ;;  %v7874_v3 = vpack.i.bf16 %v10086_v28, %v10053_v53 }
  0x48   :  { %7860 = vrot.lane.b32.xlu1 %v7859_v7, %s9674_s28  ;;  %v10393_v7 = vld [vmem:[%s14815_s0 + $0x272] ss:$2 sm:$0xff] }
  0x49   :  { %7855 = vrot.lane.b32.xlu0 %v7854_v13, %s9674_s28  ;;  %14906 = vst [vmem:[#allocation35_spill] sm:$0xff] %v10393_v7  ;;  %v7884_v13 = vpack.i.bf16 %v10393_v7, %v10091_v29  ;;  %v7899_v7 = vpack.i.bf16 %v10209_v59, %v10148_v17 }
  0x4c   :  { %7870 = vrot.lane.b32.xlu1 %v7869_v8, %s9674_s28  ;;  %v6757_v8 = vld [vmem:[%s14815_s0 + $0x282] ss:$2 sm:$0xf] }
  0x4d   :  { %7865 = vrot.lane.b32.xlu0 %v7864_v9, %s9674_s28  ;;  %v6758_v9 = vld [vmem:[%s14815_s0 + $0x3] ss:$2 sm:$0xff] }
  0x50   :  { %7880 = vrot.lane.b32.xlu1 %v7879_v2, %s9674_s28  ;;  %v7889_v2 = vpack.i.bf16 %v10133_v54, %v6758_v9  ;;  %v7919_v9 = vpack.i.bf16 %v10271_v42, %v10246_v10 }
  0x51   :  { %7875 = vrot.lane.b32.xlu0 %v7874_v3, %s9674_s28  ;;  %v7904_v3 = vpack.i.bf16 %v10204_v5, %v10187_v61 }
  0x54   :  { %1149 = vrot.lane.b32.xlu1 %v6757_v8, %s9674_s28  ;;  %v7914_v8 = vpack.i.bf16 %v10236_v52, %v10231_v1 }
  0x55   :  { %7885 = vrot.lane.b32.xlu0 %v7884_v13, %s9674_s28  ;;  %v7909_v13 = vpack.i.bf16 %v10241_v32, %v10214_v0  ;;  %s9690_s28 = smov 64  }
  0x58   :  { %7895 = vrot.lane.b32.xlu1 %v7894_v4, %s9675_s24  ;;  %v7924_v4 = vpack.i.bf16 %v10266_v58, %v10261_v43 }
  0x59   :  { %7890 = vrot.lane.b32.xlu0 %v7889_v2, %s9675_s24  ;;  %v7934_v2 = vpack.i.bf16 %v10296_v41, %v10291_v50 }
  0x5c   :  { %7905 = vrot.lane.b32.xlu1 %v7904_v3, %s9675_s24  ;;  %v7944_v3 = vpack.i.bf16 %v10326_v51, %v10321_v56 }
  0x5d   :  { %7900 = vrot.lane.b32.xlu0 %v7899_v7, %s9675_s24  ;;  %v7929_v7 = vpack.i.bf16 %v10301_v44, %v10276_v46 }
  0x60   :  { %7915 = vrot.lane.b32.xlu1 %v7914_v8, %s9675_s24  ;;  %v7939_v8 = vpack.i.bf16 %v10331_v45, %v10306_v39 }
  0x61   :  { %7910 = vrot.lane.b32.xlu0 %v7909_v13, %s9675_s24  ;;  %v7954_v13 = vpack.i.bf16 %v10356_v57, %v10351_v63 }
  0x64   :  { %7925 = vrot.lane.b32.xlu1 %v7924_v4, %s9675_s24  ;;  %v7949_v4 = vpack.i.bf16 %v10361_v55, %v10336_v49 }
  0x65   :  { %7920 = vrot.lane.b32.xlu0 %v7919_v9, %s9675_s24  ;;  %v7964_v9 = vpack.i.bf16 %v10153_v60, %v10105_v26  ;;  %v14931_v26 = vld [vmem:[#allocation13_spill] sm:$0xff] }
  0x68   :  { %7935 = vrot.lane.b32.xlu1 %v7934_v2, %s9675_s24  ;;  %v7959_v2 = vpack.i.bf16 %v10110_v31, %v10366_v62 }
  0x69   :  { %7930 = vrot.lane.b32.xlu0 %v7929_v7, %s9675_s24  ;;  %v7974_v7 = vpack.i.bf16 %v10192_v21, %v10138_v18  ;;  %v14919_v21 = vld [vmem:[#allocation6_spill] sm:$0xff] }
  0x6c   :  { %7945 = vrot.lane.b32.xlu1 %v7944_v3, %s9675_s24  ;;  %v7969_v3 = vpack.i.bf16 %v10143_v33, %v10160_v25  ;;  %v14937_v25 = vld [vmem:[#allocation18_spill] sm:$0xff] }
  0x6d   :  { %7940 = vrot.lane.b32.xlu0 %v7939_v8, %s9675_s24  ;;  %v10461_v8 = vld [vmem:[%s14815_s0 + $0x273] ss:$2 sm:$0xff] }
  0x6e   :  { %14907 = vst [vmem:[#allocation36_spill] sm:$0xff] %v10461_v8 }
  0x70   :  { %7955 = vrot.lane.b32.xlu1 %v7954_v13, %s9675_s24 }
  0x71   :  { %7950 = vrot.lane.b32.xlu0 %v7949_v4, %s9675_s24 }
  0x74   :  { %7965 = vrot.lane.b32.xlu1 %v7964_v9, %s9675_s24  ;;  %v7984_v9 = vpack.i.bf16 %v10461_v8, %v10174_v15  ;;  %v14918_v15 = vld [vmem:[#allocation4_spill] sm:$0xff]  ;;  %v14925_v8 = vld [vmem:[#allocation10_spill] sm:$0xff] }
  0x75   :  { %7960 = vrot.lane.b32.xlu0 %v7959_v2, %s9675_s24  ;;  %v7979_v2 = vpack.i.bf16 %v10179_v16, %v10199_v6  ;;  %v14920_v6 = vpack.i.bf16 %v14918_v15, %v14919_v21  ;;  %v14927_v15 = vld [vmem:[#allocation15_spill] sm:$0xff]  ;;  %v14928_v21 = vld [vmem:[#allocation14_spill] sm:$0xff] }
  0x76   :  { %v10463_v13 = vpop.permute.xlu1 %7700 }
  0x77   :  { %14908 = vst [vmem:[#allocation37_spill] sm:$0xff] %v10463_v13  ;;  %v10465_v4 = vpop.permute.xlu0 %7690 }
  0x78   :  { %14909 = vst [vmem:[#allocation38_spill] sm:$0xff] %v10465_v4  ;;  %7975 = vrot.lane.b32.xlu1 %v7974_v7, %s9675_s24  ;;  %v6798_v7 = vld [vmem:[%s14815_s0 + $0x283] ss:$2 sm:$0xf] }
  0x79   :  { %7970 = vrot.lane.b32.xlu0 %v7969_v3, %s9675_s24  ;;  %v14912_v3 = vpack.i.bf16 %v9825_v35, %v9808_v30  ;;  %v14915_v35 = vld [vmem:[#allocation9_spill] sm:$0xff] }
  0x7a   :  { %v10473_v33 = vpop.permute.xlu1 %7705 }
  0x7b   :  { %14910 = vst [vmem:[#allocation39_spill] sm:$0xff] %v10473_v33  ;;  %v10475_v18 = vpop.permute.xlu0 %7695 }
  0x7c   :  { %14911 = vst [vmem:[#allocation40_spill] sm:$0xff] %v10475_v18  ;;  %7985 = vrot.lane.b32.xlu1 %v7984_v9, %s9675_s24  ;;  %v14914_v18 = vpack.i.bf16 %v9820_v34, %v9830_v36  ;;  %v14921_v34 = vld [vmem:[#allocation12_spill] sm:$0xff] }
  0x7d   :  { %7980 = vrot.lane.b32.xlu0 %v7979_v2, %s9675_s24  ;;  %v14913_v2 = vpack.i.bf16 %v9846_v40, %v9836_v38  ;;  %v14922_v36 = vld [vmem:[#allocation8_spill] sm:$0xff] }
  0x7e   :  { %v10479_v13 = vpop.permute.xlu1 %7715 }
  0x7f   :  { %v7711_v4 = vpop.permute.xlu0 %7710 }
  0x80   :  { %7990 = vrot.lane.b32.xlu1 %v14912_v3, %s9676_s29 }
  0x81   :  { %1313 = vrot.lane.b32.xlu0 %v6798_v7, %s9675_s24  ;;  %v14916_v7 = vld [vmem:[#allocation5_spill] sm:$0xff]  ;;  %s9683_s24 = smov 36  }
  0x82   :  { %v10489_v33 = vpop.permute.xlu1 %7725  ;;  %v14917_v3 = vpack.i.bf16 %v14915_v35, %v14916_v7 }
  0x83   :  { %v10491_v9 = vpop.permute.xlu0 %7720 }
  0x84   :  { %8000 = vrot.lane.b32.xlu1 %v14913_v2, %s9676_s29  ;;  %v14924_v2 = vld [vmem:[#allocation7_spill] sm:$0xff] }
  0x85   :  { %7995 = vrot.lane.b32.xlu0 %v14914_v18, %s9676_s29  ;;  %v14923_v18 = vpack.i.bf16 %v14921_v34, %v14922_v36  ;;  %v14926_v31 = vpack.i.bf16 %v14924_v2, %v14925_v8  ;;  %v14934_v8 = vld [vmem:[#allocation17_spill] sm:$0xff]  ;;  %v14936_v2 = vld [vmem:[#allocation16_spill] sm:$0xff] }
  0x86   :  { %v10501_v16 = vpop.permute.xlu1 %7735  ;;  %v14938_v55 = vpack.i.bf16 %v14936_v2, %v14937_v25  ;;  %v14944_v25 = vpack.i.bf16 %v10015_v24, %v10005_v22  ;;  %v14947_v2 = vpack.i.bf16 %v10038_v37, %v10048_v48  ;;  %v7713_v24 = vunpack.i.h.bf16 %v7711_v4  ;;  %v6644_v37 = vld [vmem:[%s14815_s0 + $0x90] ss:$2 sm:$0xff] }
  0x87   :  { %v10503_v30 = vpop.permute.xlu0 %7730  ;;  %v14951_v48 = vpack.i.bf16 %v10076_v19, %v10086_v28  ;;  %v6646_v19 = vld [vmem:[%s14815_s0 + $0xb0] ss:$2 sm:$0xff] }
  0x88   :  { %8010 = vrot.lane.b32.xlu1 %v14917_v3, %s9676_s29  ;;  %v14930_v3 = vld [vmem:[#allocation11_spill] sm:$0xff] }
  0x89   :  { %8005 = vrot.lane.b32.xlu0 %v14920_v6, %s9676_s29  ;;  %v14929_v6 = vpack.i.bf16 %v14927_v15, %v14928_v21  ;;  %v14932_v60 = vpack.i.bf16 %v14930_v3, %v14931_v26  ;;  %v14939_v26 = vld [vmem:[#allocation22_spill] sm:$0xff]  ;;  %v14942_v3 = vld [vmem:[#allocation21_spill] sm:$0xff] }
  0x8a   :  { %v10513_v38 = vpop.permute.xlu1 %7745 }
  0x8b   :  { %v10515_v40 = vpop.permute.xlu0 %7740 }
  0x8c   :  { %8020 = vrot.lane.b32.xlu1 %v14923_v18, %s9676_s29 }
  0x8d   :  { %8015 = vrot.lane.b32.xlu0 %v14926_v31, %s9676_s29  ;;  %v14933_v31 = vld [vmem:[#allocation20_spill] sm:$0xff] }
  0x8e   :  { %v10525_v35 = vpop.permute.xlu1 %7755  ;;  %v14935_v18 = vpack.i.bf16 %v14933_v31, %v14934_v8 }
  0x8f   :  { %v10527_v7 = vpop.permute.xlu0 %7750 }
  0x90   :  { %8030 = vrot.lane.b32.xlu1 %v14929_v6, %s9676_s29  ;;  %v14941_v6 = vld [vmem:[#allocation19_spill] sm:$0xff] }
  0x91   :  { %8025 = vrot.lane.b32.xlu0 %v14932_v60, %s9676_s29  ;;  %v14940_v60 = vpack.i.bf16 %v9982_v14, %v14939_v26  ;;  %v14943_v63 = vpack.i.bf16 %v14941_v6, %v14942_v3  ;;  %v7712_v26 = vunpack.i.l.bf16 %v7711_v4  ;;  %v6800_v4 = vld [vmem:[%s14815_s0 + $0x292] ss:$2 sm:$0xf]  ;;  %v7718_v3 = vunpack.i.h.bf16 %v10479_v13 }
  0x92   :  { %v10537_v34 = vpop.permute.xlu1 %7765 }
  0x93   :  { %v10539_v36 = vpop.permute.xlu0 %7760 }
  0x94   :  { %8040 = vrot.lane.b32.xlu1 %v14935_v18, %s9676_s29 }
  0x95   :  { %8035 = vrot.lane.b32.xlu0 %v14938_v55, %s9676_s29  ;;  %v14945_v55 = vpack.i.bf16 %v9998_v20, %v10010_v23  ;;  %v6799_v20 = vld [vmem:[%s14815_s0 + $0x282] ss:$2 sm:$0xff] }
  0x96   :  { %v10549_v15 = vpop.permute.xlu1 %7775 }
  0x97   :  { %v10551_v21 = vpop.permute.xlu0 %7770 }
  0x98   :  { %8050 = vrot.lane.b32.xlu1 %v14940_v60, %s9676_s29  ;;  %v14952_v60 = vld [vmem:[#allocation35_spill] sm:$0xff] }
  0x99   :  { %8045 = vrot.lane.b32.xlu0 %v14943_v63, %s9676_s29  ;;  %v14946_v63 = vpack.i.bf16 %v10053_v53, %v10043_v47  ;;  %v6643_v47 = vld [vmem:[%s14815_s0 + $0x80] ss:$2 sm:$0xff]  ;;  %v14950_v53 = vpack.i.bf16 %v10091_v29, %v10081_v27  ;;  %v8084_v6 = vpack.i.bf16 %v6799_v20, %v14952_v60  ;;  %v7717_v27 = vunpack.i.l.bf16 %v10479_v13  ;;  %v6648_v60 = vld [vmem:[%s14815_s0 + $0xd0] ss:$2 sm:$0xff] }
  0x9a   :  { %v10561_v31 = vpop.permute.xlu1 %7785  ;;  %v3100_v20 = vsel %vm3090_vm0, %v6644_v37, %v7713_v24  ;;  %v7723_v13 = vunpack.i.h.bf16 %v10491_v9  ;;  %v3102_v24 = vsel %vm3090_vm0, %v6646_v19, %v7718_v3  ;;  %v7733_v37 = vunpack.i.h.bf16 %v10503_v30  ;;  %v6652_v3 = vld [vmem:[%s14815_s0 + $0x110] ss:$2 sm:$0xff] }
  0x9b   :  { %v10563_v8 = vpop.permute.xlu0 %7780  ;;  %v7728_v19 = vunpack.i.h.bf16 %v10489_v33 }
  0x9c   :  { %8060 = vrot.lane.b32.xlu1 %v14944_v25, %s9676_s29  ;;  %v6645_v25 = vld [vmem:[%s14815_s0 + $0xa0] ss:$2 sm:$0xff] }
  0x9d   :  { %8055 = vrot.lane.b32.xlu0 %v14945_v55, %s9676_s29 }
  0x9e   :  { %v10573_v14 = vpop.permute.xlu1 %7790 }
  0x9f   :  { %v10575_v18 = vpop.permute.xlu0 %985 }
  0xa0   :  { %8070 = vrot.lane.b32.xlu1 %v14946_v63, %s9676_s29 }
  0xa1   :  { %8065 = vrot.lane.b32.xlu0 %v14947_v2, %s9676_s29  ;;  %v3099_v2 = vsel %vm3090_vm0, %v6643_v47, %v7712_v26 }
  0xa2   :  { %v10585_v22 = vpop.permute.xlu1 %7800 }
  0xa3   :  { %14948 = vst [vmem:[#allocation9_spill] sm:$0xff] %v10585_v22  ;;  %v10590_v23 = vpop.permute.xlu0 %7795 }
  0xa4   :  { %14949 = vst [vmem:[#allocation5_spill] sm:$0xff] %v10590_v23  ;;  %8080 = vrot.lane.b32.xlu1 %v14950_v53, %s9676_s29  ;;  %v7722_v53 = vunpack.i.l.bf16 %v10491_v9  ;;  %v3101_v9 = vsel %vm3090_vm0, %v6645_v25, %v7717_v27 }
  0xa5   :  { %8075 = vrot.lane.b32.xlu0 %v14951_v48, %s9676_s29  ;;  %v6647_v48 = vld [vmem:[%s14815_s0 + $0xc0] ss:$2 sm:$0xff] }
  0xa6   :  { %v7811_v29 = vpop.permute.xlu1 %7810 }
  0xa7   :  { %v7813_v28 = vunpack.i.h.bf16 %v7811_v29  ;;  %v7812_v55 = vunpack.i.l.bf16 %v7811_v29  ;;  %v10618_v63 = vpop.permute.xlu0 %7805 }
  0xa8   :  { %14953 = vst [vmem:[#allocation4_spill] sm:$0xff] %v10618_v63  ;;  %1438 = vrot.lane.b32.xlu1 %v6800_v4, %s9676_s29  ;;  %v7732_v4 = vunpack.i.l.bf16 %v10503_v30  ;;  %v14954_v30 = vpack.i.bf16 %v10148_v17, %v10125_v12  ;;  %v6649_v12 = vld [vmem:[%s14815_s0 + $0xe0] ss:$2 sm:$0xff]  ;;  %v6650_v17 = vld [vmem:[%s14815_s0 + $0xf0] ss:$2 sm:$0xff] }
  0xa9   :  { %v10632_v29 = vsel %vm3132_vm1, %v3099_v2, %v7812_v55  ;;  %v10635_v26 = vsel %vm3132_vm1, %v3100_v20, %v7813_v28  ;;  %8085 = vrot.lane.b32.xlu0 %v8084_v6, %s9676_s29  ;;  %v3103_v55 = vsel %vm3090_vm0, %v6647_v48, %v7722_v53  ;;  %v3104_v2 = vsel %vm3090_vm0, %v6648_v60, %v7723_v13  ;;  %v6651_v6 = vld [vmem:[%s14815_s0 + $0x100] ss:$2 sm:$0xff]  ;;  %v6654_v48 = vld [vmem:[%s14815_s0 + $0x130] ss:$2 sm:$0xff] }
  0xaa   :  { %v7821_v47 = vpop.permute.xlu1 %7820  ;;  %v7727_v28 = vunpack.i.l.bf16 %v10489_v33  ;;  %v7738_v33 = vunpack.i.h.bf16 %v10501_v16  ;;  %v3107_v60 = vsel %vm3090_vm0, %v6651_v6, %v7732_v4  ;;  %v3106_v4 = vsel %vm3090_vm0, %v6650_v17, %v7728_v19  ;;  %v6656_v6 = vld [vmem:[%s14815_s0 + $0x150] ss:$2 sm:$0xff] }
  0xab   :  { %v7823_v63 = vunpack.i.h.bf16 %v7821_v47  ;;  %v7822_v22 = vunpack.i.l.bf16 %v7821_v47  ;;  %v7816_v23 = vpop.permute.xlu0 %7815  ;;  %v3108_v47 = vsel %vm3090_vm0, %v6652_v3, %v7733_v37  ;;  %v6655_v37 = vld [vmem:[%s14815_s0 + $0x140] ss:$2 sm:$0xff] }
  0xac   :  { %v7818_v27 = vunpack.i.h.bf16 %v7816_v23  ;;  %v7817_v25 = vunpack.i.l.bf16 %v7816_v23  ;;  %8095 = vrot.lane.b32.xlu1 %v14954_v30, %s9677_s26  ;;  %v14955_v23 = vpack.i.bf16 %v10120_v11, %v10133_v54  ;;  %v6653_v54 = vld [vmem:[%s14815_s0 + $0x120] ss:$2 sm:$0xff]  ;;  %v14956_v30 = vpack.i.bf16 %v10214_v0, %v10204_v5 }
  0xad   :  { %v10657_v20 = vsel %vm3132_vm1, %v3103_v55, %v7822_v22  ;;  %v10660_v13 = vsel %vm3132_vm1, %v3104_v2, %v7823_v63  ;;  %v7737_v22 = vunpack.i.l.bf16 %v10501_v16  ;;  %v7743_v2 = vunpack.i.h.bf16 %v10515_v40 }
  0xae   :  { %8090 = vrot.lane.b32.xlu0 %v14955_v23, %s9677_s26  ;;  %v10675_v63 = vsel %vm3132_vm1, %v3101_v9, %v7817_v25  ;;  %v10678_v53 = vsel %vm3132_vm1, %v3102_v24, %v7818_v27  ;;  %v7831_v11 = vpop.permute.xlu1 %7830  ;;  %v7742_v24 = vunpack.i.l.bf16 %v10515_v40  ;;  %v3105_v23 = vsel %vm3090_vm0, %v6649_v12, %v7727_v28 }
  0xaf   :  { %v7833_v16 = vunpack.i.h.bf16 %v7831_v11  ;;  %v7832_v55 = vunpack.i.l.bf16 %v7831_v11  ;;  %v7826_v9 = vpop.permute.xlu0 %7825  ;;  %v14957_v0 = vpack.i.bf16 %v10187_v61, %v10209_v59  ;;  %v3109_v5 = vsel %vm3090_vm0, %v6653_v54, %v7737_v22  ;;  %v6660_v22 = vld [vmem:[%s14815_s0 + $0x190] ss:$2 sm:$0xff] }
  0xb0   :  { %v7828_v27 = vunpack.i.h.bf16 %v7826_v9  ;;  %v7827_v25 = vunpack.i.l.bf16 %v7826_v9  ;;  %8105 = vrot.lane.b32.xlu1 %v14956_v30, %s9677_s26  ;;  %v3110_v19 = vsel %vm3090_vm0, %v6654_v48, %v7738_v33  ;;  %v7753_v11 = vunpack.i.h.bf16 %v10527_v7  ;;  %v6659_v33 = vld [vmem:[%s14815_s0 + $0x180] ss:$2 sm:$0xff] }
  0xb1   :  { %v10703_v40 = vsel %vm3132_vm1, %v3107_v60, %v7832_v55  ;;  %v10706_v3 = vsel %vm3132_vm1, %v3108_v47, %v7833_v16  ;;  %v7752_v60 = vunpack.i.l.bf16 %v10527_v7  ;;  %v3111_v59 = vsel %vm3090_vm0, %v6655_v37, %v7742_v24  ;;  %v6662_v37 = vld [vmem:[%s14815_s0 + $0x1b0] ss:$2 sm:$0xff] }
  0xb2   :  { %8100 = vrot.lane.b32.xlu0 %v14957_v0, %s9677_s26  ;;  %v10715_v28 = vsel %vm3132_vm1, %v3105_v23, %v7827_v25  ;;  %v10718_v12 = vsel %vm3132_vm1, %v3106_v4, %v7828_v27  ;;  %v7841_v17 = vpop.permute.xlu1 %7840  ;;  %v3112_v61 = vsel %vm3090_vm0, %v6656_v6, %v7743_v2  ;;  %v14958_v7 = vpack.i.bf16 %v10246_v10, %v10236_v52  ;;  %v6657_v52 = vld [vmem:[%s14815_s0 + $0x160] ss:$2 sm:$0xff]  ;;  %v6658_v10 = vld [vmem:[%s14815_s0 + $0x170] ss:$2 sm:$0xff] }
  0xb3   :  { %v7843_v47 = vunpack.i.h.bf16 %v7841_v17  ;;  %v7842_v16 = vunpack.i.l.bf16 %v7841_v17  ;;  %v7836_v55 = vpop.permute.xlu0 %7835  ;;  %v7748_v9 = vunpack.i.h.bf16 %v10513_v38  ;;  %v7747_v24 = vunpack.i.l.bf16 %v10513_v38 }
  0xb4   :  { %v7838_v54 = vunpack.i.h.bf16 %v7836_v55  ;;  %v7837_v48 = vunpack.i.l.bf16 %v7836_v55  ;;  %8115 = vrot.lane.b32.xlu1 %v14958_v7, %s9677_s26  ;;  %v14959_v25 = vpack.i.bf16 %v10231_v1, %v10241_v32  ;;  %v7758_v38 = vunpack.i.h.bf16 %v10525_v35  ;;  %v6661_v32 = vld [vmem:[%s14815_s0 + $0x1a0] ss:$2 sm:$0xff] }
  0xb5   :  { %v10737_v2 = vsel %vm3132_vm1, %v3111_v59, %v7842_v16  ;;  %v10740_v27 = vsel %vm3132_vm1, %v3112_v61, %v7843_v47  ;;  %v7757_v30 = vunpack.i.l.bf16 %v10525_v35  ;;  %v3115_v6 = vsel %vm3090_vm0, %v6659_v33, %v7752_v60  ;;  %v6664_v33 = vld [vmem:[%s14815_s0 + $0x1d0] ss:$2 sm:$0xff] }
  0xb6   :  { %8110 = vrot.lane.b32.xlu0 %v14959_v25, %s9677_s26  ;;  %v10755_v23 = vsel %vm3132_vm1, %v3109_v5, %v7837_v48  ;;  %v10758_v4 = vsel %vm3132_vm1, %v3110_v19, %v7838_v54  ;;  %v7851_v1 = vpop.permute.xlu1 %7850  ;;  %v3116_v0 = vsel %vm3090_vm0, %v6660_v22, %v7753_v11  ;;  %v7763_v47 = vunpack.i.h.bf16 %v10539_v36  ;;  %v6663_v11 = vld [vmem:[%s14815_s0 + $0x1c0] ss:$2 sm:$0xff] }
  0xb7   :  { %v7853_v35 = vunpack.i.h.bf16 %v7851_v1  ;;  %v7852_v17 = vunpack.i.l.bf16 %v7851_v1  ;;  %v7846_v5 = vpop.permute.xlu0 %7845  ;;  %v7762_v19 = vunpack.i.l.bf16 %v10539_v36  ;;  %v14960_v59 = vpack.i.bf16 %v10276_v46, %v10266_v58 }
  0xb8   :  { %v7848_v16 = vunpack.i.h.bf16 %v7846_v5  ;;  %v7847_v55 = vunpack.i.l.bf16 %v7846_v5  ;;  %v3113_v61 = vsel %vm3090_vm0, %v6657_v52, %v7747_v24  ;;  %v3114_v60 = vsel %vm3090_vm0, %v6658_v10, %v7748_v9 }
  0xb9   :  { %8125 = vrot.lane.b32.xlu1 %v14960_v59, %s9677_s26  ;;  %v10783_v36 = vsel %vm3132_vm1, %v3115_v6, %v7852_v17  ;;  %v10786_v22 = vsel %vm3132_vm1, %v3116_v0, %v7853_v35  ;;  %v14961_v58 = vpack.i.bf16 %v10261_v43, %v10271_v42  ;;  %v3117_v46 = vsel %vm3090_vm0, %v6661_v32, %v7757_v30  ;;  %v6668_v30 = vld [vmem:[%s14815_s0 + $0x210] ss:$2 sm:$0xff] }
  0xba   :  { %v3118_v54 = vsel %vm3090_vm0, %v6662_v37, %v7758_v38  ;;  %v10795_v48 = vsel %vm3132_vm1, %v3113_v61, %v7847_v55  ;;  %v10798_v7 = vsel %vm3132_vm1, %v3114_v60, %v7848_v16  ;;  %v7861_v9 = vpop.permute.xlu1 %7860  ;;  %v7773_v24 = vunpack.i.h.bf16 %v10551_v21  ;;  %v6667_v38 = vld [vmem:[%s14815_s0 + $0x200] ss:$2 sm:$0xff] }
  0xbb   :  { %8120 = vrot.lane.b32.xlu0 %v14961_v58, %s9677_s26  ;;  %v7772_v25 = vunpack.i.l.bf16 %v10551_v21  ;;  %v7863_v52 = vunpack.i.h.bf16 %v7861_v9  ;;  %v7862_v10 = vunpack.i.l.bf16 %v7861_v9  ;;  %v7856_v1 = vpop.permute.xlu0 %7855  ;;  %v3119_v43 = vsel %vm3090_vm0, %v6663_v11, %v7762_v19  ;;  %v6669_v11 = vld [vmem:[%s14815_s0 + $0x220] ss:$2 sm:$0xff] }
  0xbc   :  { %v3120_v42 = vsel %vm3090_vm0, %v6664_v33, %v7763_v47  ;;  %v7858_v32 = vunpack.i.h.bf16 %v7856_v1  ;;  %v7857_v37 = vunpack.i.l.bf16 %v7856_v1  ;;  %v14962_v21 = vpack.i.bf16 %v10306_v39, %v10296_v41  ;;  %v6665_v41 = vld [vmem:[%s14815_s0 + $0x1e0] ss:$2 sm:$0xff]  ;;  %v6666_v39 = vld [vmem:[%s14815_s0 + $0x1f0] ss:$2 sm:$0xff] }
  0xbd   :  { %v7768_v6 = vunpack.i.h.bf16 %v10537_v34  ;;  %v7767_v0 = vunpack.i.l.bf16 %v10537_v34  ;;  %v10817_v35 = vsel %vm3132_vm1, %v3119_v43, %v7862_v10  ;;  %v10820_v17 = vsel %vm3132_vm1, %v3120_v42, %v7863_v52  ;;  %v6671_v52 = vld [vmem:[%s14815_s0 + $0x240] ss:$2 sm:$0xff]  ;;  %v6672_v10 = vld [vmem:[%s14815_s0 + $0x250] ss:$2 sm:$0xff] }
  0xbe   :  { %8135 = vrot.lane.b32.xlu1 %v14962_v21, %s9677_s26  ;;  %v14963_v5 = vpack.i.bf16 %v10291_v50, %v10301_v44  ;;  %v7778_v34 = vunpack.i.h.bf16 %v10549_v15  ;;  %v7777_v47 = vunpack.i.l.bf16 %v10549_v15  ;;  %v10835_v19 = vsel %vm3132_vm1, %v3117_v46, %v7857_v37  ;;  %v7871_v50 = vpop.permute.xlu1 %7870  ;;  %v6670_v15 = vld [vmem:[%s14815_s0 + $0x230] ss:$2 sm:$0xff] }
  0xbf   :  { %v10838_v16 = vsel %vm3132_vm1, %v3118_v54, %v7858_v32  ;;  %v3123_v44 = vsel %vm3090_vm0, %v6667_v38, %v7772_v25  ;;  %v3124_v55 = vsel %vm3090_vm0, %v6668_v30, %v7773_v24  ;;  %v7873_v59 = vunpack.i.h.bf16 %v7871_v50  ;;  %v7866_v60 = vpop.permute.xlu0 %7865  ;;  %v6675_v32 = vld [vmem:[%s14815_s0 + $0x280] ss:$2 sm:$0xf] }
  0xc0   :  { %8130 = vrot.lane.b32.xlu0 %v14963_v5, %s9677_s26  ;;  %v7872_v61 = vunpack.i.l.bf16 %v7871_v50  ;;  %v7783_v33 = vunpack.i.h.bf16 %v10563_v8  ;;  %v7782_v58 = vunpack.i.l.bf16 %v10563_v8  ;;  %v7868_v46 = vunpack.i.h.bf16 %v7866_v60 }
  0xc1   :  { %v7867_v54 = vunpack.i.l.bf16 %v7866_v60  ;;  %v14964_v9 = vpack.i.bf16 %v10336_v49, %v10326_v51  ;;  %v3121_v24 = vsel %vm3090_vm0, %v6665_v41, %v7767_v0  ;;  %v3122_v25 = vsel %vm3090_vm0, %v6666_v39, %v7768_v6 }
  0xc2   :  { %v10863_v8 = vsel %vm3132_vm1, %v3123_v44, %v7872_v61  ;;  %v10866_v1 = vsel %vm3132_vm1, %v3124_v55, %v7873_v59  ;;  %v14965_v51 = vpack.i.bf16 %v10321_v56, %v10331_v45  ;;  %v10876_v43 = vsel %vm3132_vm1, %v3122_v25, %v7868_v46  ;;  %v7881_v42 = vpop.permute.xlu1 %7880  ;;  %v14967_v44 = vld [vmem:[#allocation33_spill] sm:$0xff]  ;;  %v14968_v55 = vld [vmem:[#allocation34_spill] sm:$0xff] }
  0xc3   :  { %8145 = vrot.lane.b32.xlu1 %v14964_v9, %s9677_s26  ;;  %v10873_v49 = vsel %vm3132_vm1, %v3121_v24, %v7867_v54  ;;  %v3125_v38 = vsel %vm3090_vm0, %v6669_v11, %v7777_v47  ;;  %v3126_v30 = vsel %vm3090_vm0, %v6670_v15, %v7778_v34  ;;  %v7883_v37 = vunpack.i.h.bf16 %v7881_v42  ;;  %v7876_v6 = vpop.permute.xlu0 %7875  ;;  %v14970_v54 = vld [vmem:[#allocation28_spill] sm:$0xff]  ;;  %v14971_v9 = vld [vmem:[#allocation27_spill] sm:$0xff] }
  0xc4   :  { %8140 = vrot.lane.b32.xlu0 %v14965_v51, %s9677_s26  ;;  %v7882_v21 = vunpack.i.l.bf16 %v7881_v42  ;;  %v3127_v56 = vsel %vm3090_vm0, %v6671_v52, %v7782_v58  ;;  %v3128_v45 = vsel %vm3090_vm0, %v6672_v10, %v7783_v33  ;;  %v7878_v0 = vunpack.i.h.bf16 %v7876_v6  ;;  %v14973_v10 = vld [vmem:[#allocation23_spill] sm:$0xff]  ;;  %v14974_v51 = vld [vmem:[#allocation24_spill] sm:$0xff] }
  0xc5   :  { %v7877_v5 = vunpack.i.l.bf16 %v7876_v6  ;;  %v14966_v41 = vpack.i.bf16 %v10366_v62, %v10356_v57  ;;  %v7788_v39 = vunpack.i.h.bf16 %v10561_v31  ;;  %v7787_v34 = vunpack.i.l.bf16 %v10561_v31  ;;  %v6673_v57 = vld [vmem:[%s14815_s0 + $0x260] ss:$2 sm:$0xff]  ;;  %v6674_v62 = vld [vmem:[%s14815_s0 + $0x270] ss:$2 sm:$0xff] }
  0xc6   :  { %v10892_v47 = vsel %vm3132_vm1, %v3127_v56, %v7882_v21  ;;  %v10895_v50 = vsel %vm3132_vm1, %v3128_v45, %v7883_v37  ;;  %v14969_v59 = vpack.i.bf16 %v14967_v44, %v14968_v55  ;;  %v3131_v31 = vsel %vm3090_vm0, %v6675_v32, %v10575_v18  ;;  %v1150_v11 = vpop.permute.xlu1 %1149  ;;  %v6801_v18 = vld [vmem:[%s14815_s0 + $0x283] ss:$2 sm:$0xff]  ;;  %v14978_v45 = vld [vmem:[#allocation31_spill] sm:$0xff]  ;;  %v10956_v44 = vld [vmem:[%s14815_s0 + $0x24] ss:$2 sm:$0xff] }
  0xc7   :  { %8155 = vrot.lane.b32.xlu1 %v14966_v41, %s9677_s26  ;;  %v10910_v61 = vsel %vm3132_vm1, %v3125_v38, %v7877_v5  ;;  %v10913_v60 = vsel %vm3132_vm1, %v3126_v30, %v7878_v0  ;;  %v10916_v15 = vsel %vm3132_vm1, %v3131_v31, %v1150_v11  ;;  %v7886_v33 = vpop.permute.xlu0 %7885  ;;  %v14972_v24 = vpack.i.bf16 %v14970_v54, %v14971_v9  ;;  %v14976_v21 = vld [vmem:[#allocation36_spill] sm:$0xff]  ;;  %v14980_v5 = vld [vmem:[#allocation25_spill] sm:$0xff]  ;;  %v14981_v41 = vld [vmem:[#allocation26_spill] sm:$0xff] }
  0xc8   :  { %8150 = vrot.lane.b32.xlu0 %v14969_v59, %s9677_s26  ;;  %v7888_v58 = vunpack.i.h.bf16 %v7886_v33  ;;  %v7887_v46 = vunpack.i.l.bf16 %v7886_v33  ;;  %v3129_v25 = vsel %vm3090_vm0, %v6673_v57, %v7787_v34  ;;  %v3130_v52 = vsel %vm3090_vm0, %v6674_v62, %v7788_v39  ;;  %v14977_v56 = vld [vmem:[#allocation32_spill] sm:$0xff]  ;;  %v14983_v62 = vld [vmem:[#allocation29_spill] sm:$0xff]  ;;  %v14984_v31 = vld [vmem:[#allocation30_spill] sm:$0xff] }
  0xc9   :  { %v14975_v42 = vpack.i.bf16 %v14973_v10, %v14974_v51  ;;  %v8184_v6 = vpack.i.bf16 %v6801_v18, %v14976_v21  ;;  %v14979_v0 = vpack.i.bf16 %v14977_v56, %v14978_v45  ;;  %v14982_v39 = vpack.i.bf16 %v14980_v5, %v14981_v41  ;;  %v6803_v34 = vld [vmem:[%s14815_s0 + $0x14] ss:$2 sm:$0xff]  ;;  %v6802_v33 = vld [vmem:[%s14815_s0 + $0x293] ss:$2 sm:$0xf] }
  0xca   :  { %v10932_v38 = vsel %vm3132_vm1, %v3129_v25, %v7887_v46  ;;  %v10935_v30 = vsel %vm3132_vm1, %v3130_v52, %v7888_v58  ;;  %v10937_v32 = vpop.permute.xlu1 %7895  ;;  %v8189_v57 = vpack.i.bf16 %v10956_v44, %v6803_v34  ;;  %v14985_v11 = vpack.i.bf16 %v14983_v62, %v14984_v31  ;;  %v10974_v58 = vld [vmem:[%s14815_s0 + $0x34] ss:$2 sm:$0xff]  ;;  %v10979_v54 = vld [vmem:[%s14815_s0 + $0x15] ss:$2 sm:$0xff]  ;;  %v10984_v9 = vld [vmem:[%s14815_s0 + $0x25] ss:$2 sm:$0xff] }
  0xcb   :  { %8165 = vrot.lane.b32.xlu1 %v14972_v24, %s9677_s26  ;;  %v10939_v37 = vpop.permute.xlu0 %7890  ;;  %v10989_v52 = vld [vmem:[%s14815_s0 + $0x26] ss:$2 sm:$0xff]  ;;  %v10994_v10 = vld [vmem:[%s14815_s0 + $0x36] ss:$2 sm:$0xff]  ;;  %v8199_v21 = vpack.i.bf16 %v10974_v58, %v10956_v44  ;;  %v14863_v5 = vmov 0.0  }
  0xcc   :  { %8160 = vrot.lane.b32.xlu0 %v14975_v42, %s9677_s26  ;;  %7433 = vmatprep.subr.bf16.mxu0 %v14863_v5  ;;  %4080 = vst.msk [vmem:[#allocation2] sm:$0xff] %vm14867_vm3, %v14863_v5  ;;  %4081 = vst.msk [vmem:[#allocation2 + $0x8] sm:$0xff] %vm14867_vm3, %v14863_v5 }
  0xcd   :  { %4082 = vst.msk [vmem:[#allocation2 + $0x10] sm:$0xff] %vm14867_vm3, %v14863_v5  ;;  %4083 = vst.msk [vmem:[#allocation2 + $0x18] sm:$0xff] %vm14867_vm3, %v14863_v5  ;;  %7441 = vmatprep.mubr.msk.bf16.mxu0 %vm9686_vm4, %v14863_v5 }
  0xce   :  { %v10958_v55 = vpop.permute.xlu1 %7905  ;;  %4084 = vst.msk [vmem:[#allocation2 + $0x20] sm:$0xff] %vm14867_vm3, %v14863_v5  ;;  %4085 = vst.msk [vmem:[#allocation2 + $0x28] sm:$0xff] %vm14867_vm3, %v14863_v5 }
  0xcf   :  { %8175 = vrot.lane.b32.xlu1 %v14979_v0, %s9677_s26  ;;  %v10960_v59 = vpop.permute.xlu0 %7900  ;;  %v8194_v0 = vpack.i.bf16 %v10984_v9, %v10979_v54  ;;  %4086 = vst.msk [vmem:[#allocation2 + $0x30] sm:$0xff] %vm14867_vm3, %v14863_v5  ;;  %4087 = vst.msk [vmem:[#allocation2 + $0x38] sm:$0xff] %vm14867_vm3, %v14863_v5  ;;  %v11106_v54 = vld [vmem:[%s14815_s0 + $0x46] ss:$2 sm:$0xff] }
  0xd0   :  { %8170 = vrot.lane.b32.xlu0 %v14982_v39, %s9677_s26  ;;  %4088 = vst.msk [vmem:[#allocation2 + $0x40] sm:$0xff] %vm14867_vm3, %v14863_v5  ;;  %4089 = vst.msk [vmem:[#allocation2 + $0x48] sm:$0xff] %vm14867_vm3, %v14863_v5  ;;  %v11083_v39 = vld [vmem:[%s14815_s0 + $0x35] ss:$2 sm:$0xff] }
  0xd1   :  { %4090 = vst.msk [vmem:[#allocation2 + $0x50] sm:$0xff] %vm14867_vm3, %v14863_v5  ;;  %4091 = vst.msk [vmem:[#allocation2 + $0x58] sm:$0xff] %vm14867_vm3, %v14863_v5 }
  0xd2   :  { %v7916_v46 = vpop.permute.xlu1 %7915  ;;  %4092 = vst.msk [vmem:[#allocation2 + $0x60] sm:$0xff] %vm14867_vm3, %v14863_v5  ;;  %4093 = vst.msk [vmem:[#allocation2 + $0x68] sm:$0xff] %vm14867_vm3, %v14863_v5 }
  0xd3   :  { %8185 = vrot.lane.b32.xlu1 %v8184_v6, %s9677_s26  ;;  %v7918_v24 = vunpack.i.h.bf16 %v7916_v46  ;;  %v7917_v18 = vunpack.i.l.bf16 %v7916_v46  ;;  %v7911_v25 = vpop.permute.xlu0 %7910  ;;  %v9631_v6 = vld [vmem:[%s14816_s1] sm:$0xff]   ;;  %4094 = vst.msk [vmem:[#allocation2 + $0x70] sm:$0xff] %vm14867_vm3, %v14863_v5  ;;  %4095 = vst.msk [vmem:[#allocation2 + $0x78] sm:$0xff] %vm14867_vm3, %v14863_v5  ;;  %v8204_v46 = vpack.i.bf16 %v11083_v39, %v10984_v9 }
  0xd4   :  { %8180 = vrot.lane.b32.xlu0 %v14985_v11, %s9677_s26  ;;  %v7913_v51 = vunpack.i.h.bf16 %v7911_v25  ;;  %v7912_v42 = vunpack.i.l.bf16 %v7911_v25  ;;  %4096 = vst.msk [vmem:[#allocation2 + $0x80] sm:$0xff] %vm14867_vm3, %v14863_v5  ;;  %4097 = vst.msk [vmem:[#allocation2 + $0x88] sm:$0xff] %vm14867_vm3, %v14863_v5  ;;  %7434 = vmatpush3.bf16.msra.mxu0 %v9631_v6  ;;  %v6931_v9 = vld [vmem:[%s14815_s0 + $0x37] ss:$2 sm:$0xff] }
  0xd5   :  { %v11004_v56 = vsel %vm3174_vm2, %v10675_v63, %v7917_v18  ;;  %v11008_v45 = vsel %vm3174_vm2, %v10678_v53, %v7918_v24  ;;  %4098 = vst.msk [vmem:[#allocation2 + $0x90] sm:$0xff] %vm14867_vm3, %v14863_v5  ;;  %4099 = vst.msk [vmem:[#allocation2 + $0x98] sm:$0xff] %vm14867_vm3, %v14863_v5  ;;  %7435 = vmatprep.subr.bf16.mxu0 %v14863_v5  ;;  %v6930_v18 = vld [vmem:[%s14815_s0 + $0x27] ss:$2 sm:$0xff] }
  0xd6   :  { %4100 = vst.msk [vmem:[#allocation2 + $0xa0] sm:$0xff] %vm14867_vm3, %v14863_v5  ;;  %4101 = vst.msk [vmem:[#allocation2 + $0xa8] sm:$0xff] %vm14867_vm3, %v14863_v5  ;;  %v11074_v63 = vsel %vm3174_vm2, %v10632_v29, %v7912_v42  ;;  %v11078_v53 = vsel %vm3174_vm2, %v10635_v26, %v7913_v51  ;;  %v7926_v41 = vpop.permute.xlu1 %7925  ;;  %v8209_v29 = vpack.i.bf16 %v10994_v10, %v10989_v52  ;;  %v9632_v26 = vld [vmem:[%s14816_s1 + $0x8] sm:$0xff]  }
  0xd7   :  { %8190 = vrot.lane.b32.xlu1 %v8189_v57, %s9678_s30  ;;  %4102 = vst.msk [vmem:[#allocation2 + $0xb0] sm:$0xff] %vm14867_vm3, %v14863_v5  ;;  %4103 = vst.msk [vmem:[#allocation2 + $0xb8] sm:$0xff] %vm14867_vm3, %v14863_v5  ;;  %v7928_v34 = vunpack.i.h.bf16 %v7926_v41  ;;  %v7927_v44 = vunpack.i.l.bf16 %v7926_v41  ;;  %v7921_v57 = vpop.permute.xlu0 %7920  ;;  %v8214_v41 = vpack.i.bf16 %v6931_v9, %v6930_v18 }
  0xd8   :  { %1563 = vrot.lane.b32.xlu0 %v6802_v33, %s9677_s26  ;;  %4104 = vst.msk [vmem:[#allocation2 + $0xc0] sm:$0xff] %vm14867_vm3, %v14863_v5  ;;  %4105 = vst.msk [vmem:[#allocation2 + $0xc8] sm:$0xff] %vm14867_vm3, %v14863_v5  ;;  %v7923_v62 = vunpack.i.h.bf16 %v7921_v57  ;;  %v7922_v31 = vunpack.i.l.bf16 %v7921_v57  ;;  %7436 = vmatpush3.bf16.msra.mxu0 %v9632_v26 }
  0xd9   :  { %4106 = vst.msk [vmem:[#allocation2 + $0xd0] sm:$0xff] %vm14867_vm3, %v14863_v5  ;;  %4107 = vst.msk [vmem:[#allocation2 + $0xd8] sm:$0xff] %vm14867_vm3, %v14863_v5  ;;  %v11094_v11 = vsel %vm3174_vm2, %v10715_v28, %v7927_v44  ;;  %v11098_v33 = vsel %vm3174_vm2, %v10718_v12, %v7928_v34  ;;  %7437 = vmatprep.subr.bf16.mxu0 %v14863_v5 }
  0xda   :  { %4108 = vst.msk [vmem:[#allocation2 + $0xe0] sm:$0xff] %vm14867_vm3, %v14863_v5  ;;  %v11110_v24 = vsel %vm3174_vm2, %v10657_v20, %v7922_v31  ;;  %v11114_v28 = vsel %vm3174_vm2, %v10660_v13, %v7923_v62  ;;  %v7936_v12 = vpop.permute.xlu1 %7935  ;;  %v8219_v13 = vpack.i.bf16 %v11106_v54, %v10994_v10  ;;  %v11141_v10 = vld [vmem:[%s14815_s0 + $0x44] ss:$2 sm:$0xff] }
  0xdb   :  { %8200 = vrot.lane.b32.xlu1 %v8199_v21, %s9680_s11  ;;  %v7938_v25 = vunpack.i.h.bf16 %v7936_v12  ;;  %v7937_v52 = vunpack.i.l.bf16 %v7936_v12  ;;  %v7931_v51 = vpop.permute.xlu0 %7930  ;;  %v9633_v21 = vld [vmem:[%s14816_s1 + $0x10] sm:$0xff]   ;;  %6009 = vst.msk [vmem:[#allocation3] sm:$0xff] %vm3773_vm5, %v14863_v5  ;;  %6010 = vst.msk [vmem:[#allocation3 + $0x8] sm:$0xff] %vm3773_vm5, %v14863_v5 }
  0xdc   :  { %8195 = vrot.lane.b32.xlu0 %v8194_v0, %s9681_s14  ;;  %v7933_v20 = vunpack.i.h.bf16 %v7931_v51  ;;  %v7932_v42 = vunpack.i.l.bf16 %v7931_v51  ;;  %7438 = vmatpush3.bf16.msra.mxu0 %v9633_v21  ;;  %6011 = vst.msk [vmem:[#allocation3 + $0x10] sm:$0xff] %vm3773_vm5, %v14863_v5  ;;  %6012 = vst.msk [vmem:[#allocation3 + $0x18] sm:$0xff] %vm3773_vm5, %v14863_v5 }
  0xdd   :  { %v11131_v6 = vsel %vm3174_vm2, %v10755_v23, %v7937_v52  ;;  %v11135_v0 = vsel %vm3174_vm2, %v10758_v4, %v7938_v25  ;;  %v11154_v4 = vld [vmem:[%s14815_s0 + $0x47] ss:$2 sm:$0xff]  ;;  %7439 = vmatprep.subr.bf16.mxu0 %v14863_v5  ;;  %v6975_v52 = vld [vmem:[%s14815_s0 + $0x38] ss:$2 sm:$0xff]  ;;  %6013 = vst.msk [vmem:[#allocation3 + $0x20] sm:$0xff] %vm3773_vm5, %v14863_v5  ;;  %6014 = vst.msk [vmem:[#allocation3 + $0x28] sm:$0xff] %vm3773_vm5, %v14863_v5 }
  0xde   :  { %v11145_v34 = vsel %vm3174_vm2, %v10703_v40, %v7932_v42  ;;  %v11149_v23 = vsel %vm3174_vm2, %v10706_v3, %v7933_v20  ;;  %v7946_v44 = vpop.permute.xlu1 %7945  ;;  %v8229_v40 = vpack.i.bf16 %v11141_v10, %v10974_v58  ;;  %v9634_v3 = vld [vmem:[%s14816_s1 + $0x18] sm:$0xff]   ;;  %v8224_v18 = vpack.i.bf16 %v11154_v4, %v6931_v9  ;;  %v11176_v58 = vld [vmem:[%s14815_s0 + $0x45] ss:$2 sm:$0xff]  ;;  %v6976_v9 = vld [vmem:[%s14815_s0 + $0x48] ss:$2 sm:$0xff] }
  0xdf   :  { %8210 = vrot.lane.b32.xlu1 %v8209_v29, %s9682_s21  ;;  %v7948_v57 = vunpack.i.h.bf16 %v7946_v44  ;;  %v7947_v62 = vunpack.i.l.bf16 %v7946_v44  ;;  %v7941_v31 = vpop.permute.xlu0 %7940  ;;  %v8234_v44 = vpack.i.bf16 %v6976_v9, %v6975_v52  ;;  %v6892_v9 = vld [vmem:[%s14815_s0 + $0x56] ss:$2 sm:$0xff] }
  0xe0   :  { %8205 = vrot.lane.b32.xlu0 %v8204_v46, %s9683_s24  ;;  %v7943_v29 = vunpack.i.h.bf16 %v7941_v31  ;;  %v7942_v26 = vunpack.i.l.bf16 %v7941_v31  ;;  %7440 = vmatpush3.bf16.msra.mxu0 %v9634_v3  ;;  %v7017_v31 = vld [vmem:[%s14815_s0 + $0x49] ss:$2 sm:$0xff] }
  0xe1   :  { %v11165_v46 = vsel %vm3174_vm2, %v10795_v48, %v7947_v62  ;;  %v11169_v12 = vsel %vm3174_vm2, %v10798_v7, %v7948_v57  ;;  %v7016_v62 = vld [vmem:[%s14815_s0 + $0x39] ss:$2 sm:$0xff] }
  0xe2   :  { %v11180_v25 = vsel %vm3174_vm2, %v10737_v2, %v7942_v26  ;;  %v11184_v48 = vsel %vm3174_vm2, %v10740_v27, %v7943_v29  ;;  %v7956_v7 = vpop.permute.xlu1 %7955  ;;  %v8239_v27 = vpack.i.bf16 %v11176_v58, %v11083_v39  ;;  %v11209_v39 = vld [vmem:[%s14815_s0 + $0x54] ss:$2 sm:$0xff]  ;;  %v8244_v52 = vpack.i.bf16 %v7017_v31, %v7016_v62  ;;  %v6933_v31 = vld [vmem:[%s14815_s0 + $0x57] ss:$2 sm:$0xff] }
  0xe3   :  { %8220 = vrot.lane.b32.xlu1 %v8219_v13, %s9684_s8  ;;  %v7958_v51 = vunpack.i.h.bf16 %v7956_v7  ;;  %v7957_v20 = vunpack.i.l.bf16 %v7956_v7  ;;  %v7951_v42 = vpop.permute.xlu0 %7950  ;;  %v11278_v62 = vld [vmem:[%s14815_s0 + $0x66] ss:$2 sm:$0xff] }
  0xe4   :  { %8215 = vrot.lane.b32.xlu0 %v8214_v41, %s9685_s10  ;;  %v7953_v13 = vunpack.i.h.bf16 %v7951_v42  ;;  %v7952_v2 = vunpack.i.l.bf16 %v7951_v42 }
  0xe5   :  { %v11199_v21 = vsel %vm3174_vm2, %v10835_v19, %v7957_v20  ;;  %v11203_v41 = vsel %vm3174_vm2, %v10838_v16, %v7958_v51 }
  0xe6   :  { %v11225_v19 = vsel %vm3174_vm2, %v10783_v36, %v7952_v2  ;;  %v11229_v16 = vsel %vm3174_vm2, %v10786_v22, %v7953_v13  ;;  %v7966_v57 = vpop.permute.xlu1 %7965  ;;  %v8249_v36 = vpack.i.bf16 %v11209_v39, %v11141_v10 }
  0xe7   :  { %8230 = vrot.lane.b32.xlu1 %v8229_v40, %s9678_s30  ;;  %v7968_v29 = vunpack.i.h.bf16 %v7966_v57  ;;  %v7967_v26 = vunpack.i.l.bf16 %v7966_v57  ;;  %v7961_v40 = vpop.permute.xlu0 %7960 }
  0xe8   :  { %8225 = vrot.lane.b32.xlu0 %v8224_v18, %s9687_s18  ;;  %v7963_v3 = vunpack.i.h.bf16 %v7961_v40  ;;  %v7962_v18 = vunpack.i.l.bf16 %v7961_v40 }
  0xe9   :  { %v11242_v22 = vsel %vm3174_vm2, %v10873_v49, %v7967_v26  ;;  %v11246_v7 = vsel %vm3174_vm2, %v10876_v43, %v7968_v29  ;;  %v6848_v43 = vld [vmem:[%s14815_s0 + $0x55] ss:$2 sm:$0xff] }
  0xea   :  { %v11254_v51 = vsel %vm3174_vm2, %v10817_v35, %v7962_v18  ;;  %v11258_v49 = vsel %vm3174_vm2, %v10820_v17, %v7963_v3  ;;  %v7976_v10 = vpop.permute.xlu1 %7975  ;;  %v8254_v57 = vpack.i.bf16 %v6848_v43, %v11176_v58  ;;  %v8269_v18 = vpack.i.bf16 %v11278_v62, %v6892_v9 }
  0xeb   :  { %8240 = vrot.lane.b32.xlu1 %v8239_v27, %s9681_s14  ;;  %v7978_v20 = vunpack.i.h.bf16 %v7976_v10  ;;  %v7977_v42 = vunpack.i.l.bf16 %v7976_v10  ;;  %v7971_v13 = vpop.permute.xlu0 %7970 }
  0xec   :  { %8235 = vrot.lane.b32.xlu0 %v8234_v44, %s9688_s27  ;;  %v7973_v2 = vunpack.i.h.bf16 %v7971_v13  ;;  %v7972_v27 = vunpack.i.l.bf16 %v7971_v13  ;;  %v8259_v44 = vpack.i.bf16 %v6892_v9, %v11106_v54 }
  0xed   :  { %v11267_v35 = vsel %vm3174_vm2, %v10910_v61, %v7977_v42  ;;  %v11271_v17 = vsel %vm3174_vm2, %v10913_v60, %v7978_v20  ;;  %v6849_v42 = vld [vmem:[%s14815_s0 + $0x65] ss:$2 sm:$0xff] }
  0xee   :  { %v11282_v54 = vsel %vm3174_vm2, %v10863_v8, %v7972_v27  ;;  %v11286_v61 = vsel %vm3174_vm2, %v10866_v1, %v7973_v2  ;;  %v7986_v60 = vpop.permute.xlu1 %7985  ;;  %v6977_v2 = vld [vmem:[%s14815_s0 + $0x58] ss:$2 sm:$0xff] }
  0xef   :  { %8250 = vrot.lane.b32.xlu1 %v8249_v36, %s9680_s11  ;;  %v7988_v29 = vunpack.i.h.bf16 %v7986_v60  ;;  %v7987_v58 = vunpack.i.l.bf16 %v7986_v60  ;;  %v7981_v26 = vpop.permute.xlu0 %7980  ;;  %v8264_v36 = vpack.i.bf16 %v6933_v31, %v11154_v4 }
  0xf0   :  { %8245 = vrot.lane.b32.xlu0 %v8244_v52, %s9689_s13  ;;  %v7983_v40 = vunpack.i.h.bf16 %v7981_v26  ;;  %v7982_v3 = vunpack.i.l.bf16 %v7981_v26  ;;  %v6808_v52 = vld [vmem:[%s14815_s0 + $0x64] ss:$2 sm:$0xff] }
  0xf1   :  { %v11295_v8 = vsel %vm3174_vm2, %v10932_v38, %v7987_v58  ;;  %v11299_v1 = vsel %vm3174_vm2, %v10935_v30, %v7988_v29  ;;  %v11319_v30 = vld [vmem:[%s14815_s0 + $0x67] ss:$2 sm:$0xff] }
  0xf2   :  { %v11308_v10 = vsel %vm3174_vm2, %v10892_v47, %v7982_v3  ;;  %v11312_v38 = vsel %vm3174_vm2, %v10895_v50, %v7983_v40  ;;  %v11314_v9 = vpop.permute.xlu1 %7990  ;;  %v8279_v47 = vpack.i.bf16 %v6808_v52, %v11209_v39  ;;  %v8274_v50 = vpack.i.bf16 %v11319_v30, %v6933_v31  ;;  %v7018_v31 = vld [vmem:[%s14815_s0 + $0x59] ss:$2 sm:$0xff]  ;;  %v7019_v29 = vld [vmem:[%s14815_s0 + $0x69] ss:$2 sm:$0xff] }
  0xf3   :  { %8260 = vrot.lane.b32.xlu1 %v8259_v44, %s9682_s21  ;;  %v1314_v4 = vpop.permute.xlu0 %1313  ;;  %v8289_v39 = vpack.i.bf16 %v6849_v42, %v6848_v43 }
  0xf4   :  { %8255 = vrot.lane.b32.xlu0 %v8254_v57, %s9683_s24  ;;  %v11323_v20 = vsel %vm3174_vm2, %v10916_v15, %v1314_v4  ;;  %v6978_v15 = vld [vmem:[%s14815_s0 + $0x68] ss:$2 sm:$0xff] }
  0xf5   :  { %v8284_v44 = vpack.i.bf16 %v6978_v15, %v6977_v2  ;;  %v11347_v57 = vld [vmem:[%s14815_s0 + $0x74] ss:$2 sm:$0xff] }
  0xf6   :  { %v11332_v13 = vpop.permute.xlu1 %8000  ;;  %v8299_v40 = vpack.i.bf16 %v11347_v57, %v6808_v52  ;;  %v6894_v4 = vld [vmem:[%s14815_s0 + $0x76] ss:$2 sm:$0xff]  ;;  %v11374_v52 = vld [vmem:[%s14815_s0 + $0x75] ss:$2 sm:$0xff] }
  0xf7   :  { %8270 = vrot.lane.b32.xlu1 %v8269_v18, %s9684_s8  ;;  %v11340_v27 = vpop.permute.xlu0 %7995 }
  0xf8   :  { %8265 = vrot.lane.b32.xlu0 %v8264_v36, %s9685_s10  ;;  %v8294_v36 = vpack.i.bf16 %v7019_v29, %v7018_v31  ;;  %v8304_v31 = vpack.i.bf16 %v11374_v52, %v6849_v42  ;;  %v11391_v29 = vld [vmem:[%s14815_s0 + $0x86] ss:$2 sm:$0xff] }
  0xfa   :  { %v8011_v60 = vpop.permute.xlu1 %8010 }
  0xfb   :  { %8280 = vrot.lane.b32.xlu1 %v8279_v47, %s9678_s30  ;;  %v8013_v58 = vunpack.i.h.bf16 %v8011_v60  ;;  %v8012_v26 = vunpack.i.l.bf16 %v8011_v60  ;;  %v11355_v43 = vpop.permute.xlu0 %8005 }
  0xfc   :  { %8275 = vrot.lane.b32.xlu0 %v8274_v50, %s9687_s18 }
  0xfd   :  { %v11361_v3 = vsel %vm3216_vm6, %v11074_v63, %v8012_v26  ;;  %v11365_v18 = vsel %vm3216_vm6, %v11078_v53, %v8013_v58  ;;  %v8309_v53 = vpack.i.bf16 %v6894_v4, %v11278_v62 }
  0xfe   :  { %v8021_v47 = vpop.permute.xlu1 %8020 }
  0xff   :  { %8290 = vrot.lane.b32.xlu1 %v8289_v39, %s9681_s14  ;;  %v8023_v50 = vunpack.i.h.bf16 %v8021_v47  ;;  %v8022_v63 = vunpack.i.l.bf16 %v8021_v47  ;;  %v8016_v2 = vpop.permute.xlu0 %8015 }
 0x100   :  { %8285 = vrot.lane.b32.xlu0 %v8284_v44, %s9688_s27  ;;  %v8018_v15 = vunpack.i.h.bf16 %v8016_v2  ;;  %v8017_v39 = vunpack.i.l.bf16 %v8016_v2  ;;  %v6810_v2 = vld [vmem:[%s14815_s0 + $0x84] ss:$2 sm:$0xff] }
 0x101   :  { %v11380_v44 = vsel %vm3216_vm6, %v11110_v24, %v8022_v63  ;;  %v11384_v60 = vsel %vm3216_vm6, %v11114_v28, %v8023_v50  ;;  %v6935_v28 = vld [vmem:[%s14815_s0 + $0x77] ss:$2 sm:$0xff]  ;;  %v8319_v50 = vpack.i.bf16 %v11391_v29, %v6894_v4 }
 0x102   :  { %v11395_v62 = vsel %vm3216_vm6, %v11004_v56, %v8017_v39  ;;  %v11399_v24 = vsel %vm3216_vm6, %v11008_v45, %v8018_v15  ;;  %v8031_v58 = vpop.permute.xlu1 %8030  ;;  %v8314_v63 = vpack.i.bf16 %v6935_v28, %v11319_v30 }
 0x103   :  { %8300 = vrot.lane.b32.xlu1 %v8299_v40, %s9680_s11  ;;  %v8033_v26 = vunpack.i.h.bf16 %v8031_v58  ;;  %v8032_v42 = vunpack.i.l.bf16 %v8031_v58  ;;  %v8026_v40 = vpop.permute.xlu0 %8025 }
 0x104   :  { %8295 = vrot.lane.b32.xlu0 %v8294_v36, %s9689_s13  ;;  %v8028_v36 = vunpack.i.h.bf16 %v8026_v40  ;;  %v8027_v47 = vunpack.i.l.bf16 %v8026_v40  ;;  %v11447_v40 = vld [vmem:[%s14815_s0 + $0x85] ss:$2 sm:$0xff] }
 0x105   :  { %v11408_v56 = vsel %vm3216_vm6, %v11145_v34, %v8032_v42  ;;  %v11412_v45 = vsel %vm3216_vm6, %v11149_v23, %v8033_v26  ;;  %v11430_v23 = vld [vmem:[%s14815_s0 + $0x87] ss:$2 sm:$0xff] }
 0x106   :  { %v11421_v15 = vsel %vm3216_vm6, %v11094_v11, %v8027_v47  ;;  %v11425_v34 = vsel %vm3216_vm6, %v11098_v33, %v8028_v36  ;;  %v8041_v4 = vpop.permute.xlu1 %8040  ;;  %v8329_v11 = vpack.i.bf16 %v6810_v2, %v11347_v57  ;;  %v8324_v42 = vpack.i.bf16 %v11430_v23, %v6935_v28  ;;  %v6980_v28 = vld [vmem:[%s14815_s0 + $0x88] ss:$2 sm:$0xff] }
 0x107   :  { %8310 = vrot.lane.b32.xlu1 %v8309_v53, %s9682_s21  ;;  %v8043_v39 = vunpack.i.h.bf16 %v8041_v4  ;;  %v8042_v30 = vunpack.i.l.bf16 %v8041_v4  ;;  %v8036_v53 = vpop.permute.xlu0 %8035 }
 0x108   :  { %8305 = vrot.lane.b32.xlu0 %v8304_v31, %s9683_s24  ;;  %v8038_v31 = vunpack.i.h.bf16 %v8036_v53  ;;  %v8037_v58 = vunpack.i.l.bf16 %v8036_v53 }
 0x109   :  { %v11436_v26 = vsel %vm3216_vm6, %v11180_v25, %v8042_v30  ;;  %v11440_v33 = vsel %vm3216_vm6, %v11184_v48, %v8043_v39  ;;  %v6979_v48 = vld [vmem:[%s14815_s0 + $0x78] ss:$2 sm:$0xff] }
 0x10a   :  { %v11451_v57 = vsel %vm3216_vm6, %v11131_v6, %v8037_v58  ;;  %v11455_v25 = vsel %vm3216_vm6, %v11135_v0, %v8038_v31  ;;  %v8051_v36 = vpop.permute.xlu1 %8050  ;;  %v8339_v6 = vpack.i.bf16 %v11447_v40, %v11374_v52  ;;  %v8334_v53 = vpack.i.bf16 %v6980_v28, %v6979_v48  ;;  %v11478_v31 = vld [vmem:[%s14815_s0 + $0x94] ss:$2 sm:$0xff] }
 0x10b   :  { %8320 = vrot.lane.b32.xlu1 %v8319_v50, %s9684_s8  ;;  %v8053_v47 = vunpack.i.h.bf16 %v8051_v36  ;;  %v8052_v50 = vunpack.i.l.bf16 %v8051_v36 }
 0x10c   :  { %8315 = vrot.lane.b32.xlu0 %v8314_v63, %s9685_s10  ;;  %v8046_v63 = vpop.permute.xlu0 %8045 }
 0x10d   :  { %v8048_v4 = vunpack.i.h.bf16 %v8046_v63  ;;  %v8047_v39 = vunpack.i.l.bf16 %v8046_v63  ;;  %v11468_v0 = vsel %vm3216_vm6, %v11225_v19, %v8052_v50  ;;  %v11472_v30 = vsel %vm3216_vm6, %v11229_v16, %v8053_v47  ;;  %v7020_v16 = vld [vmem:[%s14815_s0 + $0x79] ss:$2 sm:$0xff] }
 0x10e   :  { %v8061_v52 = vpop.permute.xlu1 %8060 }
 0x10f   :  { %8330 = vrot.lane.b32.xlu1 %v8329_v11, %s9678_s30  ;;  %v11482_v58 = vsel %vm3216_vm6, %v11165_v46, %v8047_v39  ;;  %v11486_v19 = vsel %vm3216_vm6, %v11169_v12, %v8048_v4  ;;  %v7021_v11 = vld [vmem:[%s14815_s0 + $0x89] ss:$2 sm:$0xff]  ;;  %v8062_v36 = vunpack.i.l.bf16 %v8061_v52  ;;  %v8349_v46 = vpack.i.bf16 %v11478_v31, %v6810_v2  ;;  %v6896_v4 = vld [vmem:[%s14815_s0 + $0x96] ss:$2 sm:$0xff] }
 0x110   :  { %8325 = vrot.lane.b32.xlu0 %v8324_v42, %s9687_s18  ;;  %v8063_v42 = vunpack.i.h.bf16 %v8061_v52  ;;  %v8056_v48 = vpop.permute.xlu0 %8055  ;;  %v8344_v63 = vpack.i.bf16 %v7021_v11, %v7020_v16 }
 0x111   :  { %v8058_v28 = vunpack.i.h.bf16 %v8056_v48  ;;  %v8057_v47 = vunpack.i.l.bf16 %v8056_v48  ;;  %v11498_v12 = vsel %vm3216_vm6, %v11254_v51, %v8062_v36  ;;  %v11534_v48 = vld [vmem:[%s14815_s0 + $0xa6] ss:$2 sm:$0xff] }
 0x112   :  { %v11502_v50 = vsel %vm3216_vm6, %v11258_v49, %v8063_v42  ;;  %v8071_v51 = vpop.permute.xlu1 %8070  ;;  %v6852_v49 = vld [vmem:[%s14815_s0 + $0x95] ss:$2 sm:$0xff]  ;;  %v8359_v42 = vpack.i.bf16 %v6896_v4, %v11391_v29 }
 0x113   :  { %8340 = vrot.lane.b32.xlu1 %v8339_v6, %s9681_s14  ;;  %v11510_v39 = vsel %vm3216_vm6, %v11199_v21, %v8057_v47  ;;  %v11514_v2 = vsel %vm3216_vm6, %v11203_v41, %v8058_v28  ;;  %v8073_v6 = vunpack.i.h.bf16 %v8071_v51  ;;  %v8354_v36 = vpack.i.bf16 %v6852_v49, %v11447_v40 }
 0x114   :  { %8335 = vrot.lane.b32.xlu0 %v8334_v53, %s9688_s27  ;;  %v8072_v53 = vunpack.i.l.bf16 %v8071_v51  ;;  %v8066_v52 = vpop.permute.xlu0 %8065 }
 0x115   :  { %v8068_v16 = vunpack.i.h.bf16 %v8066_v52  ;;  %v8067_v11 = vunpack.i.l.bf16 %v8066_v52  ;;  %v11527_v41 = vsel %vm3216_vm6, %v11286_v61, %v8073_v6  ;;  %v6937_v61 = vld [vmem:[%s14815_s0 + $0x97] ss:$2 sm:$0xff]  ;;  %v8369_v6 = vpack.i.bf16 %v11534_v48, %v6896_v4  ;;  %v6812_v52 = vld [vmem:[%s14815_s0 + $0xa4] ss:$2 sm:$0xff] }
 0x116   :  { %v11523_v21 = vsel %vm3216_vm6, %v11282_v54, %v8072_v53  ;;  %v8081_v28 = vpop.permute.xlu1 %8080  ;;  %v8364_v53 = vpack.i.bf16 %v6937_v61, %v11430_v23 }
 0x117   :  { %8350 = vrot.lane.b32.xlu1 %v8349_v46, %s9680_s11  ;;  %v11538_v29 = vsel %vm3216_vm6, %v11242_v22, %v8067_v11  ;;  %v11542_v54 = vsel %vm3216_vm6, %v11246_v7, %v8068_v16  ;;  %v8083_v47 = vunpack.i.h.bf16 %v8081_v28  ;;  %v8082_v40 = vunpack.i.l.bf16 %v8081_v28  ;;  %v6853_v28 = vld [vmem:[%s14815_s0 + $0xa5] ss:$2 sm:$0xff] }
 0x118   :  { %8345 = vrot.lane.b32.xlu0 %v8344_v63, %s9689_s13  ;;  %v8076_v46 = vpop.permute.xlu0 %8075 }
 0x119   :  { %v8078_v63 = vunpack.i.h.bf16 %v8076_v46  ;;  %v8077_v51 = vunpack.i.l.bf16 %v8076_v46  ;;  %v11551_v22 = vsel %vm3216_vm6, %v11308_v10, %v8082_v40  ;;  %v11555_v7 = vsel %vm3216_vm6, %v11312_v38, %v8083_v47  ;;  %v11573_v38 = vld [vmem:[%s14815_s0 + $0xa7] ss:$2 sm:$0xff] }
 0x11a   :  { %v1439_v4 = vpop.permute.xlu1 %1438 }
 0x11b   :  { %8360 = vrot.lane.b32.xlu1 %v8359_v42, %s9682_s21  ;;  %v11564_v16 = vsel %vm3216_vm6, %v11267_v35, %v8077_v51  ;;  %v11568_v10 = vsel %vm3216_vm6, %v11271_v17, %v8078_v63  ;;  %v11577_v23 = vsel %vm3216_vm6, %v11323_v20, %v1439_v4  ;;  %v8379_v35 = vpack.i.bf16 %v6812_v52, %v11478_v31  ;;  %v6981_v31 = vld [vmem:[%s14815_s0 + $0x98] ss:$2 sm:$0xff] }
 0x11c   :  { %8355 = vrot.lane.b32.xlu0 %v8354_v36, %s9683_s24  ;;  %v8086_v11 = vpop.permute.xlu0 %8085  ;;  %v8374_v17 = vpack.i.bf16 %v11573_v38, %v6937_v61  ;;  %v6982_v61 = vld [vmem:[%s14815_s0 + $0xa8] ss:$2 sm:$0xff] }
 0x11d   :  { %v8088_v42 = vunpack.i.h.bf16 %v8086_v11  ;;  %v8087_v36 = vunpack.i.l.bf16 %v8086_v11  ;;  %v8384_v63 = vpack.i.bf16 %v6982_v61, %v6981_v31 }
 0x11e   :  { %v11594_v40 = vpop.permute.xlu1 %8095 }
 0x11f   :  { %8370 = vrot.lane.b32.xlu1 %v8369_v6, %s9684_s8  ;;  %v11588_v47 = vsel %vm3216_vm6, %v11295_v8, %v8087_v36  ;;  %v11592_v20 = vsel %vm3216_vm6, %v11299_v1, %v8088_v42  ;;  %v8389_v8 = vpack.i.bf16 %v6853_v28, %v6852_v49  ;;  %v11609_v1 = vld [vmem:[%s14815_s0 + $0xb4] ss:$2 sm:$0xff]  ;;  %v7022_v6 = vld [vmem:[%s14815_s0 + $0x99] ss:$2 sm:$0xff] }
 0x120   :  { %8365 = vrot.lane.b32.xlu0 %v8364_v53, %s9685_s10  ;;  %v11602_v46 = vpop.permute.xlu0 %8090  ;;  %v7023_v53 = vld [vmem:[%s14815_s0 + $0xa9] ss:$2 sm:$0xff]  ;;  %v8399_v49 = vpack.i.bf16 %v11609_v1, %v6812_v52  ;;  %v6898_v42 = vld [vmem:[%s14815_s0 + $0xb6] ss:$2 sm:$0xff] }
 0x121   :  { %v8394_v11 = vpack.i.bf16 %v7023_v53, %v7022_v6  ;;  %v8409_v52 = vpack.i.bf16 %v6898_v42, %v11534_v48 }
 0x122   :  { %v11611_v51 = vpop.permute.xlu1 %8105 }
 0x123   :  { %8380 = vrot.lane.b32.xlu1 %v8379_v35, %s9678_s30  ;;  %v11630_v35 = vld [vmem:[%s14815_s0 + $0xb5] ss:$2 sm:$0xff] }
 0x124   :  { %8375 = vrot.lane.b32.xlu0 %v8374_v17, %s9687_s18  ;;  %v11619_v4 = vpop.permute.xlu0 %8100  ;;  %v8404_v53 = vpack.i.bf16 %v11630_v35, %v6853_v28 }
 0x126   :  { %v8116_v36 = vpop.permute.xlu1 %8115 }
 0x127   :  { %8390 = vrot.lane.b32.xlu1 %v8389_v8, %s9681_s14  ;;  %v8118_v17 = vunpack.i.h.bf16 %v8116_v36  ;;  %v8117_v31 = vunpack.i.l.bf16 %v8116_v36  ;;  %v11647_v36 = vld [vmem:[%s14815_s0 + $0xc6] ss:$2 sm:$0xff] }
 0x128   :  { %8385 = vrot.lane.b32.xlu0 %v8384_v63, %s9688_s27  ;;  %v8111_v61 = vpop.permute.xlu0 %8110 }
 0x129   :  { %v8113_v8 = vunpack.i.h.bf16 %v8111_v61  ;;  %v8112_v5 = vunpack.i.l.bf16 %v8111_v61  ;;  %v11636_v63 = vsel %vm3258_vm7, %v11395_v62, %v8117_v31  ;;  %v11640_v6 = vsel %vm3258_vm7, %v11399_v24, %v8118_v17  ;;  %v6939_v24 = vld [vmem:[%s14815_s0 + $0xb7] ss:$2 sm:$0xff] }
 0x12a   :  { %14986 = vst [vmem:[#allocation6_spill] sm:$0xff] %v11640_v6  ;;  %v8419_v6 = vpack.i.bf16 %v11647_v36, %v6898_v42 }
 0x12b   :  { %8400 = vrot.lane.b32.xlu1 %v8399_v49, %s9680_s11  ;;  %v11651_v48 = vsel %vm3258_vm7, %v11361_v3, %v8112_v5  ;;  %v11655_v62 = vsel %vm3258_vm7, %v11365_v18, %v8113_v8  ;;  %v8126_v49 = vpop.permute.xlu1 %8125  ;;  %v8414_v18 = vpack.i.bf16 %v6939_v24, %v11573_v38  ;;  %v6814_v8 = vld [vmem:[%s14815_s0 + $0xc4] ss:$2 sm:$0xff] }
 0x12c   :  { %8395 = vrot.lane.b32.xlu0 %v8394_v11, %s9689_s13  ;;  %v8128_v11 = vunpack.i.h.bf16 %v8126_v49  ;;  %v8127_v28 = vunpack.i.l.bf16 %v8126_v49 }
 0x12d   :  { %v8121_v17 = vpop.permute.xlu0 %8120 }
 0x12e   :  { %v8123_v31 = vunpack.i.h.bf16 %v8121_v17  ;;  %v8122_v61 = vunpack.i.l.bf16 %v8121_v17  ;;  %v11664_v5 = vsel %vm3258_vm7, %v11421_v15, %v8127_v28  ;;  %v11668_v3 = vsel %vm3258_vm7, %v11425_v34, %v8128_v11  ;;  %v11686_v34 = vld [vmem:[%s14815_s0 + $0xc7] ss:$2 sm:$0xff] }
 0x12f   :  { %8410 = vrot.lane.b32.xlu1 %v8409_v52, %s9682_s21 }
 0x130   :  { %8405 = vrot.lane.b32.xlu0 %v8404_v53, %s9683_s24  ;;  %v11677_v52 = vsel %vm3258_vm7, %v11380_v44, %v8122_v61  ;;  %v11681_v15 = vsel %vm3258_vm7, %v11384_v60, %v8123_v31  ;;  %v8136_v42 = vpop.permute.xlu1 %8135  ;;  %v8429_v44 = vpack.i.bf16 %v6814_v8, %v11609_v1  ;;  %v8424_v31 = vpack.i.bf16 %v11686_v34, %v6939_v24  ;;  %v11703_v61 = vld [vmem:[%s14815_s0 + $0xc5] ss:$2 sm:$0xff]  ;;  %v6984_v24 = vld [vmem:[%s14815_s0 + $0xc8] ss:$2 sm:$0xff] }
 0x131   :  { %v8138_v53 = vunpack.i.h.bf16 %v8136_v42  ;;  %v8137_v38 = vunpack.i.l.bf16 %v8136_v42 }
 0x132   :  { %v8131_v49 = vpop.permute.xlu0 %8130 }
 0x133   :  { %v8133_v11 = vunpack.i.h.bf16 %v8131_v49  ;;  %v8132_v28 = vunpack.i.l.bf16 %v8131_v49  ;;  %8420 = vrot.lane.b32.xlu1 %v8419_v6, %s9684_s8  ;;  %v11692_v17 = vsel %vm3258_vm7, %v11451_v57, %v8137_v38  ;;  %v11696_v60 = vsel %vm3258_vm7, %v11455_v25, %v8138_v53  ;;  %v6983_v25 = vld [vmem:[%s14815_s0 + $0xb8] ss:$2 sm:$0xff] }
 0x134   :  { %8415 = vrot.lane.b32.xlu0 %v8414_v18, %s9685_s10 }
 0x135   :  { %v11707_v1 = vsel %vm3258_vm7, %v11408_v56, %v8132_v28  ;;  %v11711_v57 = vsel %vm3258_vm7, %v11412_v45, %v8133_v11  ;;  %v8146_v6 = vpop.permute.xlu1 %8145  ;;  %v8439_v56 = vpack.i.bf16 %v11703_v61, %v11630_v35  ;;  %v8434_v28 = vpack.i.bf16 %v6984_v24, %v6983_v25 }
 0x136   :  { %v8148_v18 = vunpack.i.h.bf16 %v8146_v6  ;;  %v8147_v42 = vunpack.i.l.bf16 %v8146_v6  ;;  %v8141_v53 = vpop.permute.xlu0 %8140  ;;  %v11734_v6 = vld [vmem:[%s14815_s0 + $0xd4] ss:$2 sm:$0xff] }
 0x137   :  { %v8143_v38 = vunpack.i.h.bf16 %v8141_v53  ;;  %v8142_v49 = vunpack.i.l.bf16 %v8141_v53  ;;  %8430 = vrot.lane.b32.xlu1 %v8429_v44, %s9678_s30 }
 0x138   :  { %v11724_v45 = vsel %vm3258_vm7, %v11482_v58, %v8147_v42  ;;  %v11728_v11 = vsel %vm3258_vm7, %v11486_v19, %v8148_v18  ;;  %8425 = vrot.lane.b32.xlu0 %v8424_v31, %s9687_s18  ;;  %v7024_v19 = vld [vmem:[%s14815_s0 + $0xb9] ss:$2 sm:$0xff]  ;;  %v7025_v31 = vld [vmem:[%s14815_s0 + $0xc9] ss:$2 sm:$0xff] }
 0x139   :  { %v11738_v44 = vsel %vm3258_vm7, %v11436_v26, %v8142_v49  ;;  %v11742_v58 = vsel %vm3258_vm7, %v11440_v33, %v8143_v38  ;;  %v8156_v35 = vpop.permute.xlu1 %8155  ;;  %v8449_v26 = vpack.i.bf16 %v11734_v6, %v6814_v8  ;;  %v8444_v49 = vpack.i.bf16 %v7025_v31, %v7024_v19 }
 0x13a   :  { %v8158_v25 = vunpack.i.h.bf16 %v8156_v35  ;;  %v8157_v24 = vunpack.i.l.bf16 %v8156_v35  ;;  %v8151_v18 = vpop.permute.xlu0 %8150  ;;  %v6900_v35 = vld [vmem:[%s14815_s0 + $0xd6] ss:$2 sm:$0xff] }
 0x13b   :  { %v8153_v42 = vunpack.i.h.bf16 %v8151_v18  ;;  %v8152_v53 = vunpack.i.l.bf16 %v8151_v18  ;;  %8440 = vrot.lane.b32.xlu1 %v8439_v56, %s9681_s14 }
 0x13c   :  { %v11754_v33 = vsel %vm3258_vm7, %v11510_v39, %v8157_v24  ;;  %v11758_v38 = vsel %vm3258_vm7, %v11514_v2, %v8158_v25  ;;  %8435 = vrot.lane.b32.xlu0 %v8434_v28, %s9688_s27  ;;  %v11775_v2 = vld [vmem:[%s14815_s0 + $0xd5] ss:$2 sm:$0xff] }
 0x13d   :  { %v11766_v56 = vsel %vm3258_vm7, %v11468_v0, %v8152_v53  ;;  %v11770_v8 = vsel %vm3258_vm7, %v11472_v30, %v8153_v42  ;;  %v8166_v39 = vpop.permute.xlu1 %8165  ;;  %v8459_v0 = vpack.i.bf16 %v6900_v35, %v11647_v36  ;;  %v8454_v42 = vpack.i.bf16 %v11775_v2, %v11703_v61  ;;  %v11793_v53 = vld [vmem:[%s14815_s0 + $0xe6] ss:$2 sm:$0xff] }
 0x13e   :  { %v8168_v28 = vunpack.i.h.bf16 %v8166_v39  ;;  %v8167_v19 = vunpack.i.l.bf16 %v8166_v39  ;;  %v8161_v31 = vpop.permute.xlu0 %8160 }
 0x13f   :  { %v8163_v25 = vunpack.i.h.bf16 %v8161_v31  ;;  %v8162_v24 = vunpack.i.l.bf16 %v8161_v31  ;;  %8450 = vrot.lane.b32.xlu1 %v8449_v26, %s9680_s11  ;;  %v6941_v26 = vld [vmem:[%s14815_s0 + $0xd7] ss:$2 sm:$0xff]  ;;  %v8469_v31 = vpack.i.bf16 %v11793_v53, %v6900_v35 }
 0x140   :  { %v11781_v18 = vsel %vm3258_vm7, %v11538_v29, %v8167_v19  ;;  %v11785_v30 = vsel %vm3258_vm7, %v11542_v54, %v8168_v28  ;;  %8445 = vrot.lane.b32.xlu0 %v8444_v49, %s9689_s13 }
 0x141   :  { %14987 = vst [vmem:[#allocation12_spill] sm:$0xff] %v11781_v18  ;;  %14988 = vst [vmem:[#allocation8_spill] sm:$0xff] %v11785_v30  ;;  %v11797_v36 = vsel %vm3258_vm7, %v11498_v12, %v8162_v24  ;;  %v11801_v29 = vsel %vm3258_vm7, %v11502_v50, %v8163_v25  ;;  %v8176_v54 = vpop.permute.xlu1 %8175  ;;  %v8464_v25 = vpack.i.bf16 %v6941_v26, %v11686_v34  ;;  %v11821_v24 = vld [vmem:[%s14815_s0 + $0xe4] ss:$2 sm:$0xff]  ;;  %v7897_v18 = vunpack.i.l.bf16 %v10937_v32 }
 0x142   :  { %14989 = vst [vmem:[#allocation7_spill] sm:$0xff] %v11801_v29  ;;  %v8178_v49 = vunpack.i.h.bf16 %v8176_v54  ;;  %v8177_v61 = vunpack.i.l.bf16 %v8176_v54  ;;  %v8171_v39 = vpop.permute.xlu0 %8170 }
 0x143   :  { %v8173_v28 = vunpack.i.h.bf16 %v8171_v39  ;;  %v8172_v19 = vunpack.i.l.bf16 %v8171_v39  ;;  %8460 = vrot.lane.b32.xlu1 %v8459_v0, %s9682_s21 }
 0x144   :  { %v11810_v12 = vsel %vm3258_vm7, %v11564_v16, %v8177_v61  ;;  %v11814_v50 = vsel %vm3258_vm7, %v11568_v10, %v8178_v49  ;;  %8455 = vrot.lane.b32.xlu0 %v8454_v42, %s9683_s24  ;;  %v11834_v10 = vld [vmem:[%s14815_s0 + $0xe7] ss:$2 sm:$0xff] }
 0x145   :  { %14990 = vst [vmem:[#allocation10_spill] sm:$0xff] %v11810_v12  ;;  %14991 = vst [vmem:[#allocation15_spill] sm:$0xff] %v11814_v50  ;;  %v11825_v35 = vsel %vm3258_vm7, %v11523_v21, %v8172_v19  ;;  %v11829_v16 = vsel %vm3258_vm7, %v11527_v41, %v8173_v28  ;;  %v8186_v0 = vpop.permute.xlu1 %8185  ;;  %v8479_v21 = vpack.i.bf16 %v11821_v24, %v11734_v6  ;;  %v11852_v19 = vld [vmem:[%s14815_s0 + $0xe5] ss:$2 sm:$0xff] }
 0x146   :  { %14992 = vst [vmem:[#allocation14_spill] sm:$0xff] %v11825_v35  ;;  %14993 = vst [vmem:[#allocation11_spill] sm:$0xff] %v11829_v16  ;;  %v8188_v34 = vunpack.i.h.bf16 %v8186_v0  ;;  %v8187_v42 = vunpack.i.l.bf16 %v8186_v0  ;;  %v8181_v54 = vpop.permute.xlu0 %8180  ;;  %v8474_v28 = vpack.i.bf16 %v11834_v10, %v6941_v26  ;;  %v6986_v26 = vld [vmem:[%s14815_s0 + $0xe8] ss:$2 sm:$0xff] }
 0x147   :  { %v8183_v49 = vunpack.i.h.bf16 %v8181_v54  ;;  %v8182_v61 = vunpack.i.l.bf16 %v8181_v54  ;;  %8470 = vrot.lane.b32.xlu1 %v8469_v31, %s9684_s8  ;;  %v14998_v0 = vld [vmem:[#allocation38_spill] sm:$0xff]  ;;  %v27_v54 = vld [vmem:[%s14815_s0] ss:$2 sm:$0xff] }
 0x148   :  { %v11841_v41 = vsel %vm3258_vm7, %v11588_v47, %v8187_v42  ;;  %v11845_v39 = vsel %vm3258_vm7, %v11592_v20, %v8188_v34  ;;  %8465 = vrot.lane.b32.xlu0 %v8464_v25, %s9685_s10  ;;  %v6985_v20 = vld [vmem:[%s14815_s0 + $0xd8] ss:$2 sm:$0xff]  ;;  %v7692_v34 = vunpack.i.l.bf16 %v14998_v0  ;;  %v7693_v42 = vunpack.i.h.bf16 %v14998_v0 }
 0x149   :  { %14994 = vst [vmem:[#allocation13_spill] sm:$0xff] %v11841_v41  ;;  %14995 = vst [vmem:[#allocation20_spill] sm:$0xff] %v11845_v39  ;;  %v11856_v6 = vsel %vm3258_vm7, %v11551_v22, %v8182_v61  ;;  %v11860_v47 = vsel %vm3258_vm7, %v11555_v7, %v8183_v49  ;;  %v8191_v31 = vpop.permute.xlu1 %8190  ;;  %v8489_v7 = vpack.i.bf16 %v11852_v19, %v11775_v2  ;;  %v11884_v61 = vld [vmem:[%s14815_s0 + $0xf4] ss:$2 sm:$0xff]  ;;  %v7793_v2 = vunpack.i.h.bf16 %v10573_v14 }
 0x14a   :  { %14996 = vst [vmem:[#allocation17_spill] sm:$0xff] %v11856_v6  ;;  %14997 = vst [vmem:[#allocation16_spill] sm:$0xff] %v11860_v47  ;;  %v1564_v25 = vpop.permute.xlu0 %1563  ;;  %v8484_v49 = vpack.i.bf16 %v6986_v26, %v6985_v20  ;;  %v7027_v20 = vld [vmem:[%s14815_s0 + $0xe9] ss:$2 sm:$0xff]  ;;  %v7892_v26 = vunpack.i.l.bf16 %v10939_v37  ;;  %v7893_v41 = vunpack.i.h.bf16 %v10939_v37  ;;  %v7993_v47 = vunpack.i.h.bf16 %v11314_v9  ;;  %v12007_v35 = vld [vmem:[%s14815_s0 + $0x114] ss:$2 sm:$0xff] }
 0x14b   :  { %v11871_v22 = vsel %vm3258_vm7, %v11577_v23, %v1564_v25  ;;  %8480 = vrot.lane.b32.xlu1 %v8479_v21, %s9678_s30  ;;  %v6636_v23 = vld [vmem:[%s14815_s0 + $0x10] ss:$2 sm:$0xff]  ;;  %v7792_v21 = vunpack.i.l.bf16 %v10573_v14  ;;  %v8499_v14 = vpack.i.bf16 %v11884_v61, %v11821_v24  ;;  %v7992_v6 = vunpack.i.l.bf16 %v11314_v9  ;;  %v11921_v9 = vld [vmem:[%s14815_s0 + $0xf5] ss:$2 sm:$0xff] }
 0x14c   :  { %14999 = vst [vmem:[#allocation18_spill] sm:$0xff] %v11871_v22  ;;  %8475 = vrot.lane.b32.xlu0 %v8474_v28, %s9687_s18  ;;  %v7026_v28 = vld [vmem:[%s14815_s0 + $0xd9] ss:$2 sm:$0xff]  ;;  %v3091_v22 = vsel %vm3090_vm0, %v27_v54, %v7692_v34  ;;  %v3092_v39 = vsel %vm3090_vm0, %v6636_v23, %v7693_v42  ;;  %v6902_v34 = vld [vmem:[%s14815_s0 + $0xf6] ss:$2 sm:$0xff]  ;;  %v8093_v54 = vunpack.i.h.bf16 %v11602_v46  ;;  %v8092_v24 = vunpack.i.l.bf16 %v11602_v46 }
 0x14d   :  { %v11891_v25 = vpop.permute.xlu1 %8200  ;;  %v8494_v50 = vpack.i.bf16 %v7027_v20, %v7026_v28  ;;  %v3133_v37 = vsel %vm3132_vm1, %v3091_v22, %v7792_v21  ;;  %v8193_v23 = vunpack.i.h.bf16 %v8191_v31  ;;  %v8192_v28 = vunpack.i.l.bf16 %v8191_v31 }
 0x14e   :  { %v8196_v0 = vpop.permute.xlu0 %8195  ;;  %v8509_v21 = vpack.i.bf16 %v6902_v34, %v11793_v53  ;;  %v8504_v31 = vpack.i.bf16 %v11921_v9, %v11852_v19  ;;  %v6943_v53 = vld [vmem:[%s14815_s0 + $0xf7] ss:$2 sm:$0xff]  ;;  %v8202_v19 = vunpack.i.l.bf16 %v11891_v25 }
 0x14f   :  { %8490 = vrot.lane.b32.xlu1 %v8489_v7, %s9681_s14  ;;  %v3134_v7 = vsel %vm3132_vm1, %v3092_v39, %v7793_v2  ;;  %v11927_v39 = vld [vmem:[%s14815_s0 + $0x106] ss:$2 sm:$0xff]  ;;  %v8198_v22 = vunpack.i.h.bf16 %v8196_v0  ;;  %v8197_v2 = vunpack.i.l.bf16 %v8196_v0 }
 0x150   :  { %8485 = vrot.lane.b32.xlu0 %v8484_v49, %s9688_s27  ;;  %v3175_v49 = vsel %vm3174_vm2, %v3133_v37, %v7892_v26  ;;  %v3176_v46 = vsel %vm3174_vm2, %v3134_v7, %v7893_v41  ;;  %v8519_v0 = vpack.i.bf16 %v11927_v39, %v6902_v34 }
 0x151   :  { %v11916_v42 = vpop.permute.xlu1 %8210  ;;  %v3217_v12 = vsel %vm3216_vm6, %v3175_v49, %v7992_v6  ;;  %v3218_v26 = vsel %vm3216_vm6, %v3176_v46, %v7993_v47  ;;  %v11966_v46 = vld [vmem:[%s14815_s0 + $0x107] ss:$2 sm:$0xff] }
 0x152   :  { %v8206_v20 = vpop.permute.xlu0 %8205  ;;  %v3259_v37 = vsel %vm3258_vm7, %v3217_v12, %v8092_v24  ;;  %v3260_v41 = vsel %vm3258_vm7, %v3218_v26, %v8093_v54  ;;  %v11952_v12 = vld [vmem:[%s14815_s0 + $0x104] ss:$2 sm:$0xff]  ;;  %v11975_v26 = vld [vmem:[%s14815_s0 + $0x105] ss:$2 sm:$0xff] }
 0x153   :  { %8500 = vrot.lane.b32.xlu1 %v8499_v14, %s9680_s11  ;;  %v3301_v6 = vsel %vm14869_vm8, %v3259_v37, %v8192_v28  ;;  %v3302_v47 = vsel %vm14869_vm8, %v3260_v41, %v8193_v23  ;;  %v8208_v24 = vunpack.i.h.bf16 %v8206_v20  ;;  %v8207_v49 = vunpack.i.l.bf16 %v8206_v20 }
 0x154   :  { %8495 = vrot.lane.b32.xlu0 %v8494_v50, %s9689_s13  ;;  %v8203_v50 = vunpack.i.h.bf16 %v11891_v25  ;;  %v3343_v34 = vsel %vm14868_vm9, %v3301_v6, %v8197_v2  ;;  %v3344_v54 = vsel %vm14868_vm9, %v3302_v47, %v8198_v22  ;;  %v8514_v23 = vpack.i.bf16 %v6943_v53, %v11834_v10  ;;  %v15000_v6 = vld [vmem:[#allocation40_spill] sm:$0xff] }
 0x155   :  { %v11939_v7 = vpop.permute.xlu1 %8220  ;;  %v8529_v28 = vpack.i.bf16 %v11952_v12, %v11884_v61  ;;  %v8213_v20 = vunpack.i.h.bf16 %v11916_v42  ;;  %v8212_v22 = vunpack.i.l.bf16 %v11916_v42  ;;  %v3385_v2 = vsel %vm14867_vm3, %v3343_v34, %v8202_v19 }
 0x156   :  { %v8216_v14 = vpop.permute.xlu0 %8215  ;;  %v3427_v61 = vsel %vm14866_vm10, %v3385_v2, %v8207_v49  ;;  %v8524_v42 = vpack.i.bf16 %v11966_v46, %v6943_v53  ;;  %v7698_v47 = vunpack.i.h.bf16 %v15000_v6  ;;  %v8539_v34 = vpack.i.bf16 %v11975_v26, %v11921_v9  ;;  %v6637_v53 = vld [vmem:[%s14815_s0 + $0x20] ss:$2 sm:$0xff] }
 0x157   :  { %8510 = vrot.lane.b32.xlu1 %v8509_v21, %s9682_s21  ;;  %v3386_v21 = vsel %vm14867_vm3, %v3344_v54, %v8203_v50  ;;  %v8218_v37 = vunpack.i.h.bf16 %v8216_v14  ;;  %v8217_v41 = vunpack.i.l.bf16 %v8216_v14  ;;  %v7697_v50 = vunpack.i.l.bf16 %v15000_v6  ;;  %v6987_v14 = vld [vmem:[%s14815_s0 + $0xf8] ss:$2 sm:$0xff] }
 0x158   :  { %8505 = vrot.lane.b32.xlu0 %v8504_v31, %s9683_s24  ;;  %v3428_v31 = vsel %vm14866_vm10, %v3386_v21, %v8208_v24  ;;  %v8223_v54 = vunpack.i.h.bf16 %v11939_v7  ;;  %v8222_v24 = vunpack.i.l.bf16 %v11939_v7  ;;  %v3469_v49 = vsel %vm3468_vm11, %v3427_v61, %v8212_v22  ;;  %v15001_v61 = vld [vmem:[#allocation5_spill] sm:$0xff] }
 0x159   :  { %v11959_v25 = vpop.permute.xlu1 %8230  ;;  %v3470_v9 = vsel %vm3468_vm11, %v3428_v31, %v8213_v20  ;;  %v3511_v2 = vsel %vm14865_vm12, %v3469_v49, %v8217_v41  ;;  %v3093_v22 = vsel %vm3090_vm0, %v6637_v53, %v7697_v50  ;;  %v7798_v31 = vunpack.i.h.bf16 %v15001_v61  ;;  %v7029_v41 = vld [vmem:[%s14815_s0 + $0x109] ss:$2 sm:$0xff] }
 0x15a   :  { %v8226_v10 = vpop.permute.xlu0 %8225  ;;  %v3512_v21 = vsel %vm14865_vm12, %v3470_v9, %v8218_v37  ;;  %v7797_v37 = vunpack.i.l.bf16 %v15001_v61  ;;  %v3553_v50 = vsel %vm3552_vm13, %v3511_v2, %v8222_v24  ;;  %vm3678_vm12 = vcmask 490496  }
 0x15b   :  { %8520 = vrot.lane.b32.xlu1 %v8519_v0, %s9684_s8  ;;  %v6988_v0 = vld [vmem:[%s14815_s0 + $0x108] ss:$2 sm:$0xff]  ;;  %v8228_v6 = vunpack.i.h.bf16 %v8226_v10  ;;  %v8227_v16 = vunpack.i.l.bf16 %v8226_v10  ;;  %v8549_v53 = vpack.i.bf16 %v12007_v35, %v11952_v12  ;;  %v7898_v2 = vunpack.i.h.bf16 %v10937_v32 }
 0x15c   :  { %8515 = vrot.lane.b32.xlu0 %v8514_v23, %s9685_s10  ;;  %v8534_v20 = vpack.i.bf16 %v6988_v0, %v6987_v14  ;;  %v3554_v14 = vsel %vm3552_vm13, %v3512_v21, %v8223_v54  ;;  %v6904_v12 = vld [vmem:[%s14815_s0 + $0x116] ss:$2 sm:$0xff]  ;;  %v12055_v32 = vld [vmem:[%s14815_s0 + $0x126] ss:$2 sm:$0xff] }
 0x15d   :  { %v11984_v19 = vpop.permute.xlu1 %8240  ;;  %v3595_v49 = vsel %vm3594_vm14, %v3553_v50, %v8227_v16  ;;  %v3596_v9 = vsel %vm3594_vm14, %v3554_v14, %v8228_v6  ;;  %v8097_v50 = vunpack.i.l.bf16 %v11594_v40  ;;  %v8232_v14 = vunpack.i.l.bf16 %v11959_v25 }
 0x15e   :  { %v8236_v23 = vpop.permute.xlu0 %8235 }
 0x15f   :  { %8530 = vrot.lane.b32.xlu1 %v8529_v28, %s9678_s30  ;;  %v8238_v7 = vunpack.i.h.bf16 %v8236_v23  ;;  %v8237_v30 = vunpack.i.l.bf16 %v8236_v23  ;;  %v7028_v28 = vld [vmem:[%s14815_s0 + $0xf9] ss:$2 sm:$0xff] }
 0x160   :  { %8525 = vrot.lane.b32.xlu0 %v8524_v42, %s9687_s18  ;;  %v6638_v42 = vld [vmem:[%s14815_s0 + $0x30] ss:$2 sm:$0xff]  ;;  %v8544_v54 = vpack.i.bf16 %v7029_v41, %v7028_v28  ;;  %v7997_v28 = vunpack.i.l.bf16 %v11340_v27 }
 0x161   :  { %v12013_v10 = vpop.permute.xlu1 %8250  ;;  %v3637_v29 = vsel %vm3636_vm15, %v3595_v49, %v8237_v30  ;;  %v3638_v24 = vsel %vm3636_vm15, %v3596_v9, %v8238_v7  ;;  %v3094_v16 = vsel %vm3090_vm0, %v6638_v42, %v7698_v47  ;;  %v12047_v30 = vld [vmem:[%s14815_s0 + $0x115] ss:$2 sm:$0xff]  ;;  %v3135_v7 = vsel %vm3132_vm1, %v3093_v22, %v7797_v37 }
 0x162   :  { %v8246_v0 = vpop.permute.xlu0 %8245  ;;  %v8098_v42 = vunpack.i.h.bf16 %v11594_v40  ;;  %v8559_v22 = vpack.i.bf16 %v6904_v12, %v11927_v39  ;;  %v3177_v37 = vsel %vm3174_vm2, %v3135_v7, %v7897_v18  ;;  %v8243_v40 = vunpack.i.h.bf16 %v11984_v19 }
 0x163   :  { %v8248_v23 = vunpack.i.h.bf16 %v8246_v0  ;;  %v8247_v61 = vunpack.i.l.bf16 %v8246_v0  ;;  %8540 = vrot.lane.b32.xlu1 %v8539_v34, %s9681_s14  ;;  %v8569_v18 = vpack.i.bf16 %v12055_v32, %v6904_v12  ;;  %v15002_v49 = vmov 0.0  }
 0x164   :  { %8535 = vrot.lane.b32.xlu0 %v8534_v20, %s9688_s27  ;;  %v7998_v20 = vunpack.i.h.bf16 %v11340_v27  ;;  %v8233_v27 = vunpack.i.h.bf16 %v11959_v25  ;;  %v6945_v25 = vld [vmem:[%s14815_s0 + $0x117] ss:$2 sm:$0xff]  ;;  %v3219_v9 = vsel %vm3216_vm6, %v3177_v37, %v7997_v28 }
 0x165   :  { %v3679_v21 = vsel %vm3678_vm12, %v3637_v29, %v8247_v61  ;;  %v3680_v34 = vsel %vm3678_vm12, %v3638_v24, %v8248_v23  ;;  %v12042_v6 = vpop.permute.xlu1 %8260  ;;  %v3136_v29 = vsel %vm3132_vm1, %v3094_v16, %v7798_v31  ;;  %v8554_v31 = vpack.i.bf16 %v12047_v30, %v11975_v26  ;;  %v12087_v24 = vld [vmem:[%s14815_s0 + $0x124] ss:$2 sm:$0xff]  ;;  %v12114_v37 = vld [vmem:[%s14815_s0 + $0x125] ss:$2 sm:$0xff] }
 0x166   :  { %v8256_v47 = vpop.permute.xlu0 %8255  ;;  %v3720_v41 = vpack.c.bf16 %v3680_v34, %v3679_v21  ;;  %v3178_v0 = vsel %vm3174_vm2, %v3136_v29, %v7898_v2  ;;  %v8253_v23 = vunpack.i.h.bf16 %v12013_v10  ;;  %v8252_v61 = vunpack.i.l.bf16 %v12013_v10 }
 0x167   :  { %8550 = vrot.lane.b32.xlu1 %v8549_v53, %s9680_s11  ;;  %v8242_v53 = vunpack.i.l.bf16 %v11984_v19  ;;  %v3220_v26 = vsel %vm3216_vm6, %v3178_v0, %v7998_v20  ;;  %v8258_v16 = vunpack.i.h.bf16 %v8256_v47  ;;  %v8257_v2 = vunpack.i.l.bf16 %v8256_v47  ;;  %v12105_v47 = vld [vmem:[%s14815_s0 + $0x127] ss:$2 sm:$0xff] }
 0x168   :  { %8545 = vrot.lane.b32.xlu0 %v8544_v54, %s9689_s13  ;;  %7442 = vmatmul.mubr.msk.bf16.vlgmr.msra.gmra.mrb[0].mxu0 %vm3773_vm5, %v3720_v41  ;;  %v3261_v54 = vsel %vm3258_vm7, %v3219_v9, %v8097_v50  ;;  %v3262_v12 = vsel %vm3258_vm7, %v3220_v26, %v8098_v42  ;;  %v8564_v10 = vpack.i.bf16 %v6945_v25, %v11966_v46  ;;  %v8263_v46 = vunpack.i.h.bf16 %v12042_v6  ;;  %v6989_v26 = vld [vmem:[%s14815_s0 + $0x118] ss:$2 sm:$0xff] }
 0x169   :  { %v12072_v39 = vpop.permute.xlu1 %8270  ;;  %7445 = vmatprep.mubr.msk.bf16.mxu0 %vm9686_vm4, %v15002_v49  ;;  %v3303_v21 = vsel %vm14869_vm8, %v3261_v54, %v8232_v14  ;;  %v3304_v34 = vsel %vm14869_vm8, %v3262_v12, %v8233_v27  ;;  %v8579_v41 = vpack.i.bf16 %v12087_v24, %v12007_v35  ;;  %v8262_v50 = vunpack.i.l.bf16 %v12042_v6 }
 0x16a   :  { %v8266_v19 = vpop.permute.xlu0 %8265  ;;  %v3345_v7 = vsel %vm14868_vm9, %v3303_v21, %v8242_v53  ;;  %v3346_v20 = vsel %vm14868_vm9, %v3304_v34, %v8243_v40  ;;  %v8574_v0 = vpack.i.bf16 %v12105_v47, %v6945_v25  ;;  %v15003_v40 = vld [vmem:[#allocation37_spill] sm:$0xff]  ;;  %v8589_v9 = vpack.i.bf16 %v12114_v37, %v12047_v30  ;;  %v12145_v34 = vld [vmem:[%s14815_s0 + $0x134] ss:$2 sm:$0xff] }
 0x16b   :  { %8560 = vrot.lane.b32.xlu1 %v8559_v22, %s9682_s21  ;;  %v3387_v29 = vsel %vm14867_vm3, %v3345_v7, %v8252_v61  ;;  %v3388_v42 = vsel %vm14867_vm3, %v3346_v20, %v8253_v23  ;;  %v8268_v14 = vunpack.i.h.bf16 %v8266_v19  ;;  %v7702_v6 = vunpack.i.l.bf16 %v15003_v40  ;;  %v6990_v23 = vld [vmem:[%s14815_s0 + $0x128] ss:$2 sm:$0xff] }
 0x16c   :  { %8555 = vrot.lane.b32.xlu0 %v8554_v31, %s9683_s24  ;;  %v3429_v35 = vsel %vm14866_vm10, %v3387_v29, %v8257_v2  ;;  %v3430_v27 = vsel %vm14866_vm10, %v3388_v42, %v8258_v16  ;;  %v8267_v31 = vunpack.i.l.bf16 %v8266_v19  ;;  %v8273_v25 = vunpack.i.h.bf16 %v12072_v39  ;;  %v15006_v42 = vld [vmem:[#allocation9_spill] sm:$0xff] }
 0x16d   :  { %v12098_v28 = vpop.permute.xlu1 %8280  ;;  %v8272_v61 = vunpack.i.l.bf16 %v12072_v39  ;;  %v3471_v19 = vsel %vm3468_vm11, %v3429_v35, %v8262_v50  ;;  %v3472_v30 = vsel %vm3468_vm11, %v3430_v27, %v8263_v46  ;;  %vm15004_vm10 = vcmask 359424  }
 0x16e   :  { %v8276_v22 = vpop.permute.xlu0 %8275  ;;  %v3513_v12 = vsel %vm15004_vm10, %v3471_v19, %v8267_v31  ;;  %vm15005_vm3 = vmmov %vm15004_vm10  ;;  %v8584_v7 = vpack.i.bf16 %v6990_v23, %v6989_v26  ;;  %v7703_v20 = vunpack.i.h.bf16 %v15003_v40  ;;  %v7803_v46 = vunpack.i.h.bf16 %v15006_v42  ;;  %v6640_v40 = vld [vmem:[%s14815_s0 + $0x50] ss:$2 sm:$0xff] }
 0x16f   :  { %8570 = vrot.lane.b32.xlu1 %v8569_v18, %s9684_s8  ;;  %v6639_v18 = vld [vmem:[%s14815_s0 + $0x40] ss:$2 sm:$0xff]  ;;  %v3514_v16 = vsel %vm15005_vm3, %v3472_v30, %v8268_v14  ;;  %v8278_v2 = vunpack.i.h.bf16 %v8276_v22  ;;  %v8277_v21 = vunpack.i.l.bf16 %v8276_v22  ;;  %v7031_v22 = vld [vmem:[%s14815_s0 + $0x129] ss:$2 sm:$0xff]  ;;  %v7802_v35 = vunpack.i.l.bf16 %v15006_v42 }
 0x170   :  { %8565 = vrot.lane.b32.xlu0 %v8564_v10, %s9685_s10  ;;  %v3095_v29 = vsel %vm3090_vm0, %v6639_v18, %v7702_v6  ;;  %v3555_v27 = vsel %vm3552_vm13, %v3513_v12, %v8272_v61  ;;  %v3556_v14 = vsel %vm3552_vm13, %v3514_v16, %v8273_v25  ;;  %v7902_v61 = vunpack.i.l.bf16 %v10960_v59  ;;  %v6906_v30 = vld [vmem:[%s14815_s0 + $0x136] ss:$2 sm:$0xff] }
 0x171   :  { %v12122_v53 = vpop.permute.xlu1 %8290  ;;  %v3597_v6 = vsel %vm3594_vm14, %v3555_v27, %v8277_v21  ;;  %v3598_v26 = vsel %vm3594_vm14, %v3556_v14, %v8278_v2  ;;  %v8002_v12 = vunpack.i.l.bf16 %v11332_v13  ;;  %v12186_v21 = vld [vmem:[%s14815_s0 + $0x135] ss:$2 sm:$0xff]  ;;  %v8102_v27 = vunpack.i.l.bf16 %v11619_v4 }
 0x172   :  { %v8286_v54 = vpop.permute.xlu0 %8285  ;;  %v8609_v14 = vpack.i.bf16 %v6906_v30, %v12055_v32  ;;  %vm15007_vm3 = vcmask 261120  }
 0x173   :  { %8580 = vrot.lane.b32.xlu1 %v8579_v41, %s9678_s30  ;;  %v8288_v10 = vunpack.i.h.bf16 %v8286_v54  ;;  %v8287_v39 = vunpack.i.l.bf16 %v8286_v54  ;;  %v7030_v41 = vld [vmem:[%s14815_s0 + $0x119] ss:$2 sm:$0xff]  ;;  %v7903_v54 = vunpack.i.h.bf16 %v10960_v59  ;;  %vm15008_vm10 = vmmov %vm15007_vm3 }
 0x174   :  { %8575 = vrot.lane.b32.xlu0 %v8574_v0, %s9687_s18  ;;  %v8599_v0 = vpack.i.bf16 %v12145_v34, %v12087_v24  ;;  %v8594_v24 = vpack.i.bf16 %v7031_v22, %v7030_v41  ;;  %v8103_v22 = vunpack.i.h.bf16 %v11619_v4  ;;  %v8604_v4 = vpack.i.bf16 %v12186_v21, %v12114_v37 }
 0x175   :  { %v12151_v50 = vpop.permute.xlu1 %8300  ;;  %v3639_v25 = vsel %vm3636_vm15, %v3597_v6, %v8287_v39  ;;  %v3640_v19 = vsel %vm3636_vm15, %v3598_v26, %v8288_v10  ;;  %v3096_v10 = vsel %vm3090_vm0, %v6640_v40, %v7703_v20  ;;  %v3137_v39 = vsel %vm3132_vm1, %v3095_v29, %v7802_v35  ;;  %v12199_v20 = vld [vmem:[%s14815_s0 + $0x146] ss:$2 sm:$0xff] }
 0x176   :  { %v8296_v31 = vpop.permute.xlu0 %8295  ;;  %v3138_v41 = vsel %vm3132_vm1, %v3096_v10, %v7803_v46  ;;  %v3179_v29 = vsel %vm3174_vm2, %v3137_v39, %v7902_v61  ;;  %v8282_v35 = vunpack.i.l.bf16 %v12098_v28  ;;  %v8303_v37 = vunpack.i.h.bf16 %v12151_v50  ;;  %v12244_v39 = vld [vmem:[%s14815_s0 + $0x147] ss:$2 sm:$0xff] }
 0x177   :  { %v8298_v23 = vunpack.i.h.bf16 %v8296_v31  ;;  %v8297_v18 = vunpack.i.l.bf16 %v8296_v31  ;;  %8590 = vrot.lane.b32.xlu1 %v8589_v9, %s9681_s14  ;;  %v3180_v32 = vsel %vm3174_vm2, %v3138_v41, %v7903_v54  ;;  %v3221_v46 = vsel %vm3216_vm6, %v3179_v29, %v8002_v12 }
 0x178   :  { %8585 = vrot.lane.b32.xlu0 %v8584_v7, %s9688_s27  ;;  %v8003_v7 = vunpack.i.h.bf16 %v11332_v13  ;;  %v8283_v13 = vunpack.i.h.bf16 %v12098_v28  ;;  %v8293_v31 = vunpack.i.h.bf16 %v12122_v53  ;;  %v6947_v28 = vld [vmem:[%s14815_s0 + $0x137] ss:$2 sm:$0xff]  ;;  %v8302_v26 = vunpack.i.l.bf16 %v12151_v50 }
 0x179   :  { %v3681_v16 = vsel %vm3678_vm12, %v3639_v25, %v8297_v18  ;;  %v3682_v9 = vsel %vm3678_vm12, %v3640_v19, %v8298_v23  ;;  %v12181_v2 = vpop.permute.xlu1 %8310  ;;  %v8619_v18 = vpack.i.bf16 %v12199_v20, %v6906_v30  ;;  %v3263_v61 = vsel %vm3258_vm7, %v3221_v46, %v8102_v27  ;;  %v6991_v46 = vld [vmem:[%s14815_s0 + $0x138] ss:$2 sm:$0xff] }
 0x17a   :  { %v8306_v59 = vpop.permute.xlu0 %8305  ;;  %v3721_v42 = vpack.c.bf16 %v3682_v9, %v3681_v16  ;;  %v3222_v6 = vsel %vm3216_vm6, %v3180_v32, %v8003_v7  ;;  %v3305_v54 = vsel %vm14869_vm8, %v3263_v61, %v8282_v35  ;;  %v8614_v30 = vpack.i.bf16 %v6947_v28, %v12105_v47  ;;  %v15011_v35 = vld [vmem:[#allocation39_spill] sm:$0xff] }
 0x17b   :  { %8600 = vrot.lane.b32.xlu1 %v8599_v0, %s9680_s11  ;;  %v8292_v0 = vunpack.i.l.bf16 %v12122_v53  ;;  %v12226_v53 = vld [vmem:[%s14815_s0 + $0x144] ss:$2 sm:$0xff]  ;;  %v3264_v25 = vsel %vm3258_vm7, %v3222_v6, %v8103_v22  ;;  %v8308_v19 = vunpack.i.h.bf16 %v8306_v59  ;;  %v8313_v47 = vunpack.i.h.bf16 %v12181_v2  ;;  %v12253_v22 = vld [vmem:[%s14815_s0 + $0x145] ss:$2 sm:$0xff] }
 0x17c   :  { %8595 = vrot.lane.b32.xlu0 %v8594_v24, %s9689_s13  ;;  %7446 = vmatmul.mubr.msk.bf16.gmra.mrb[4].mxu0 %vm3773_vm5, %v3721_v42  ;;  %v8307_v24 = vunpack.i.l.bf16 %v8306_v59  ;;  %v3306_v50 = vsel %vm14869_vm8, %v3264_v25, %v8283_v13  ;;  %v8629_v10 = vpack.i.bf16 %v12226_v53, %v12145_v34  ;;  %v8312_v42 = vunpack.i.l.bf16 %v12181_v2 }
 0x17d   :  { %v12212_v40 = vpop.permute.xlu1 %8320  ;;  %7449 = vmatprep.mubr.msk.bf16.mxu0 %vm9686_vm4, %v15002_v49  ;;  %v3347_v12 = vsel %vm14868_vm9, %v3305_v54, %v8292_v0  ;;  %v3348_v16 = vsel %vm14868_vm9, %v3306_v50, %v8293_v31  ;;  %vm15009_vm9 = vcmask 293888   ;;  %v8624_v13 = vpack.i.bf16 %v12244_v39, %v6947_v28  ;;  %v6992_v31 = vld [vmem:[%s14815_s0 + $0x148] ss:$2 sm:$0xff] }
 0x17e   :  { %v8316_v23 = vpop.permute.xlu0 %8315  ;;  %v3389_v7 = vsel %vm15007_vm3, %v3347_v12, %v8302_v26  ;;  %v3390_v59 = vsel %vm15008_vm10, %v3348_v16, %v8303_v37  ;;  %vm15010_vm8 = vmmov %vm15009_vm9  ;;  %v7707_v2 = vunpack.i.l.bf16 %v15011_v35  ;;  %v8639_v32 = vpack.i.bf16 %v12253_v22, %v12186_v21  ;;  %v6641_v0 = vld [vmem:[%s14815_s0 + $0x60] ss:$2 sm:$0xff] }
 0x17f   :  { %8610 = vrot.lane.b32.xlu1 %v8609_v14, %s9682_s21  ;;  %v3431_v34 = vsel %vm15009_vm9, %v3389_v7, %v8307_v24  ;;  %v3432_v27 = vsel %vm15010_vm8, %v3390_v59, %v8308_v19  ;;  %v8318_v14 = vunpack.i.h.bf16 %v8316_v23  ;;  %v8317_v29 = vunpack.i.l.bf16 %v8316_v23  ;;  %v12284_v19 = vld [vmem:[%s14815_s0 + $0x154] ss:$2 sm:$0xff]  ;;  %v7033_v59 = vld [vmem:[%s14815_s0 + $0x149] ss:$2 sm:$0xff] }
 0x180   :  { %8605 = vrot.lane.b32.xlu0 %v8604_v4, %s9683_s24  ;;  %v8323_v28 = vunpack.i.h.bf16 %v12212_v40  ;;  %v8322_v6 = vunpack.i.l.bf16 %v12212_v40  ;;  %v3473_v37 = vsel %vm3468_vm11, %v3431_v34, %v8312_v42  ;;  %v3474_v21 = vsel %vm3468_vm11, %v3432_v27, %v8313_v47  ;;  %v15014_v12 = vld [vmem:[#allocation4_spill] sm:$0xff] }
 0x181   :  { %v12237_v9 = vpop.permute.xlu1 %8330  ;;  %vm15012_vm8 = vcmask 359424   ;;  %v8634_v54 = vpack.i.bf16 %v6992_v31, %v6991_v46  ;;  %v7708_v50 = vunpack.i.h.bf16 %v15011_v35  ;;  %v7808_v16 = vunpack.i.h.bf16 %v15014_v12 }
 0x182   :  { %v8326_v41 = vpop.permute.xlu0 %8325  ;;  %v3515_v23 = vsel %vm15012_vm8, %v3473_v37, %v8317_v29  ;;  %vm15013_vm9 = vmmov %vm15012_vm8  ;;  %v7807_v47 = vunpack.i.l.bf16 %v15014_v12  ;;  %v8649_v27 = vpack.i.bf16 %v12284_v19, %v12226_v53  ;;  %v7907_v46 = vunpack.i.l.bf16 %v10958_v55 }
 0x183   :  { %8620 = vrot.lane.b32.xlu1 %v8619_v18, %s9684_s8  ;;  %v3516_v18 = vsel %vm15013_vm9, %v3474_v21, %v8318_v14  ;;  %v8328_v61 = vunpack.i.h.bf16 %v8326_v41  ;;  %v8327_v25 = vunpack.i.l.bf16 %v8326_v41  ;;  %v3557_v42 = vsel %vm3552_vm13, %v3515_v23, %v8322_v6  ;;  %v6642_v14 = vld [vmem:[%s14815_s0 + $0x70] ss:$2 sm:$0xff]  ;;  %v12325_v23 = vld [vmem:[%s14815_s0 + $0x155] ss:$2 sm:$0xff] }
 0x184   :  { %8615 = vrot.lane.b32.xlu0 %v8614_v30, %s9685_s10  ;;  %v3097_v30 = vsel %vm3090_vm0, %v6641_v0, %v7707_v2  ;;  %v3558_v41 = vsel %vm3552_vm13, %v3516_v18, %v8323_v28  ;;  %v6908_v28 = vld [vmem:[%s14815_s0 + $0x156] ss:$2 sm:$0xff]  ;;  %v7908_v6 = vunpack.i.h.bf16 %v10958_v55  ;;  %v8007_v37 = vunpack.i.l.bf16 %v11355_v43 }
 0x185   :  { %v12261_v4 = vpop.permute.xlu1 %8340  ;;  %v3599_v29 = vsel %vm3594_vm14, %v3557_v42, %v8327_v25  ;;  %v3098_v18 = vsel %vm3090_vm0, %v6642_v14, %v7708_v50  ;;  %v8008_v25 = vunpack.i.h.bf16 %v11355_v43  ;;  %v8107_v12 = vunpack.i.l.bf16 %v11611_v51  ;;  %v12338_v50 = vld [vmem:[%s14815_s0 + $0x166] ss:$2 sm:$0xff] }
 0x186   :  { %v8336_v26 = vpop.permute.xlu0 %8335  ;;  %v8333_v43 = vunpack.i.h.bf16 %v12237_v9  ;;  %v8342_v42 = vunpack.i.l.bf16 %v12261_v4  ;;  %vm15015_vm0 = vcmask 195584   ;;  %vm15020_vm10 = vcmask 293888  }
 0x187   :  { %8630 = vrot.lane.b32.xlu1 %v8629_v10, %s9678_s30  ;;  %v8338_v24 = vunpack.i.h.bf16 %v8336_v26  ;;  %v8337_v40 = vunpack.i.l.bf16 %v8336_v26  ;;  %v7032_v10 = vld [vmem:[%s14815_s0 + $0x139] ss:$2 sm:$0xff]  ;;  %vm15021_vm8 = vmmov %vm15020_vm10 }
 0x188   :  { %8625 = vrot.lane.b32.xlu0 %v8624_v13, %s9687_s18  ;;  %v3600_v13 = vsel %vm3594_vm14, %v3558_v41, %v8328_v61  ;;  %v8644_v53 = vpack.i.bf16 %v7033_v59, %v7032_v10  ;;  %v3139_v61 = vsel %vm3132_vm1, %v3097_v30, %v7807_v47  ;;  %v8659_v10 = vpack.i.bf16 %v6908_v28, %v12199_v20 }
 0x189   :  { %v12290_v7 = vpop.permute.xlu1 %8350  ;;  %v3641_v31 = vsel %vm3636_vm15, %v3599_v29, %v8337_v40  ;;  %v3642_v0 = vsel %vm3636_vm15, %v3600_v13, %v8338_v24  ;;  %v3140_v40 = vsel %vm3132_vm1, %v3098_v18, %v7808_v16  ;;  %v3181_v30 = vsel %vm3174_vm2, %v3139_v61, %v7907_v46  ;;  %vm15016_vm1 = vmmov %vm15015_vm0 }
 0x18a   :  { %v8346_v34 = vpop.permute.xlu0 %8345  ;;  %v8332_v59 = vunpack.i.l.bf16 %v12237_v9  ;;  %v3182_v20 = vsel %vm3174_vm2, %v3140_v40, %v7908_v6  ;;  %v3223_v16 = vsel %vm3216_vm6, %v3181_v30, %v8007_v37  ;;  %v8343_v47 = vunpack.i.h.bf16 %v12261_v4  ;;  %v6949_v9 = vld [vmem:[%s14815_s0 + $0x157] ss:$2 sm:$0xff]  ;;  %v12363_v4 = vld [vmem:[%s14815_s0 + $0x164] ss:$2 sm:$0xff] }
 0x18b   :  { %v8348_v35 = vunpack.i.h.bf16 %v8346_v34  ;;  %v8347_v2 = vunpack.i.l.bf16 %v8346_v34  ;;  %8640 = vrot.lane.b32.xlu1 %v8639_v32, %s9681_s14  ;;  %v3224_v34 = vsel %vm3216_vm6, %v3182_v20, %v8008_v25  ;;  %v8669_v29 = vpack.i.bf16 %v12338_v50, %v6908_v28  ;;  %v6993_v30 = vld [vmem:[%s14815_s0 + $0x158] ss:$2 sm:$0xff] }
 0x18c   :  { %8635 = vrot.lane.b32.xlu0 %v8634_v54, %s9688_s27  ;;  %v8108_v54 = vunpack.i.h.bf16 %v11611_v51  ;;  %v8654_v51 = vpack.i.bf16 %v12325_v23, %v12253_v22  ;;  %v8353_v22 = vunpack.i.h.bf16 %v12290_v7  ;;  %v3265_v13 = vsel %vm3258_vm7, %v3223_v16, %v8107_v12 }
 0x18d   :  { %v3683_v21 = vsel %vm3678_vm12, %v3641_v31, %v8347_v2  ;;  %v3684_v32 = vsel %vm3678_vm12, %v3642_v0, %v8348_v35  ;;  %v12320_v26 = vpop.permute.xlu1 %8360  ;;  %v3307_v31 = vsel %vm15015_vm0, %v3265_v13, %v8332_v59  ;;  %v8664_v0 = vpack.i.bf16 %v6949_v9, %v12244_v39  ;;  %vm15022_vm0 = vmmov %vm15013_vm9  ;;  %v7034_v13 = vld [vmem:[%s14815_s0 + $0x159] ss:$2 sm:$0xff] }
 0x18e   :  { %v8356_v55 = vpop.permute.xlu0 %8355  ;;  %v3722_v24 = vpack.c.bf16 %v3684_v32, %v3683_v21  ;;  %v3266_v35 = vsel %vm3258_vm7, %v3224_v34, %v8108_v54  ;;  %vm15017_vm2 = vcmask 228352   ;;  %v8679_v37 = vpack.i.bf16 %v12363_v4, %v12284_v19  ;;  %v12381_v21 = vld [vmem:[%s14815_s0 + $0x167] ss:$2 sm:$0xff]  ;;  %vm15019_vm7 = vmmov %vm15007_vm3 }
 0x18f   :  { %8650 = vrot.lane.b32.xlu1 %v8649_v27, %s9680_s11  ;;  %v8352_v27 = vunpack.i.l.bf16 %v12290_v7  ;;  %v8358_v2 = vunpack.i.h.bf16 %v8356_v55  ;;  %v8357_v46 = vunpack.i.l.bf16 %v8356_v55  ;;  %v3308_v7 = vsel %vm15016_vm1, %v3266_v35, %v8333_v43  ;;  %vm15018_vm6 = vmmov %vm15017_vm2  ;;  %v12390_v55 = vld [vmem:[%s14815_s0 + $0x165] ss:$2 sm:$0xff]  ;;  %v6994_v43 = vld [vmem:[%s14815_s0 + $0x168] ss:$2 sm:$0xff] }
 0x190   :  { %8645 = vrot.lane.b32.xlu0 %v8644_v53, %s9689_s13  ;;  %7450 = vmatmul.mubr.msk.bf16.gmra.mrb[8].mxu0 %vm3773_vm5, %v3722_v24  ;;  %v3349_v53 = vsel %vm15017_vm2, %v3307_v31, %v8342_v42  ;;  %v3350_v28 = vsel %vm15018_vm6, %v3308_v7, %v8343_v47  ;;  %v8363_v39 = vunpack.i.h.bf16 %v12320_v26  ;;  %v8362_v61 = vunpack.i.l.bf16 %v12320_v26  ;;  %v7035_v35 = vld [vmem:[%s14815_s0 + $0x169] ss:$2 sm:$0xff]  ;;  %vm15023_vm2 = vmmov %vm15016_vm1 }
 0x191   :  { %v8371_v41 = vpop.permute.xlu1 %8370  ;;  %7453 = vmatprep.mubr.msk.bf16.mxu0 %vm9686_vm4, %v15002_v49  ;;  %v3391_v32 = vsel %vm15019_vm7, %v3349_v53, %v8352_v27  ;;  %v3392_v18 = vsel %vm15007_vm3, %v3350_v28, %v8353_v22  ;;  %v8674_v12 = vpack.i.bf16 %v12381_v21, %v6949_v9  ;;  %v8689_v26 = vpack.i.bf16 %v12390_v55, %v12325_v23  ;;  %v12415_v22 = vld [vmem:[%s14815_s0 + $0x174] ss:$2 sm:$0xff]  ;;  %vm15024_vm7 = vmmov %vm15018_vm6 }
 0x192   :  { %v8366_v14 = vpop.permute.xlu0 %8365  ;;  %v3433_v19 = vsel %vm15020_vm10, %v3391_v32, %v8357_v46  ;;  %v3434_v24 = vsel %vm15021_vm8, %v3392_v18, %v8358_v2  ;;  %v8373_v59 = vunpack.i.h.bf16 %v8371_v41  ;;  %v8699_v7 = vpack.i.bf16 %v12415_v22, %v12363_v4  ;;  %vm15025_vm10 = vmmov %vm15007_vm3 }
 0x193   :  { %8660 = vrot.lane.b32.xlu1 %v8659_v10, %s9682_s21  ;;  %v8368_v40 = vunpack.i.h.bf16 %v8366_v14  ;;  %v8367_v54 = vunpack.i.l.bf16 %v8366_v14  ;;  %v3475_v20 = vsel %vm3468_vm11, %v3433_v19, %v8362_v61  ;;  %v3476_v16 = vsel %vm3468_vm11, %v3434_v24, %v8363_v39  ;;  %v6910_v61 = vld [vmem:[%s14815_s0 + $0x176] ss:$2 sm:$0xff]  ;;  %v12442_v24 = vld [vmem:[%s14815_s0 + $0x175] ss:$2 sm:$0xff] }
 0x194   :  { %8655 = vrot.lane.b32.xlu0 %v8654_v51, %s9683_s24  ;;  %v8372_v51 = vunpack.i.l.bf16 %v8371_v41  ;;  %v8684_v14 = vpack.i.bf16 %v6994_v43, %v6993_v30  ;;  %v8694_v39 = vpack.i.bf16 %v7035_v35, %v7034_v13  ;;  %v8704_v43 = vpack.i.bf16 %v12442_v24, %v12390_v55 }
 0x195   :  { %v12374_v6 = vpop.permute.xlu1 %8380  ;;  %v3517_v42 = vsel %vm15013_vm9, %v3475_v20, %v8367_v54  ;;  %v3518_v9 = vsel %vm15022_vm0, %v3476_v16, %v8368_v40  ;;  %vm15026_vm9 = vmmov %vm15021_vm8 }
 0x196   :  { %v8376_v25 = vpop.permute.xlu0 %8375  ;;  %v3559_v2 = vsel %vm3552_vm13, %v3517_v42, %v8372_v51  ;;  %v3560_v46 = vsel %vm3552_vm13, %v3518_v9, %v8373_v59  ;;  %v8382_v30 = vunpack.i.l.bf16 %v12374_v6  ;;  %v12455_v59 = vld [vmem:[%s14815_s0 + $0x186] ss:$2 sm:$0xff] }
 0x197   :  { %8670 = vrot.lane.b32.xlu1 %v8669_v29, %s9684_s8  ;;  %v8378_v23 = vunpack.i.h.bf16 %v8376_v25  ;;  %v8377_v34 = vunpack.i.l.bf16 %v8376_v25  ;;  %v12467_v42 = vld [vmem:[%s14815_s0 + $0x184] ss:$2 sm:$0xff] }
 0x198   :  { %8665 = vrot.lane.b32.xlu0 %v8664_v0, %s9685_s10  ;;  %v8729_v35 = vpack.i.bf16 %v12467_v42, %v12415_v22 }
 0x199   :  { %v12397_v10 = vpop.permute.xlu1 %8390  ;;  %v3601_v0 = vsel %vm3594_vm14, %v3559_v2, %v8377_v34  ;;  %v3602_v53 = vsel %vm3594_vm14, %v3560_v46, %v8378_v23  ;;  %v3309_v34 = vsel %vm15016_vm1, %v11651_v48, %v8382_v30  ;;  %v12486_v48 = vld [vmem:[%s14815_s0 + $0x187] ss:$2 sm:$0xff]  ;;  %vm15027_vm1 = vmmov %vm15022_vm0 }
 0x19a   :  { %v8386_v47 = vpop.permute.xlu0 %8385  ;;  %v8393_v51 = vunpack.i.h.bf16 %v12397_v10 }
 0x19b   :  { %8680 = vrot.lane.b32.xlu1 %v8679_v37, %s9678_s30  ;;  %v8388_v27 = vunpack.i.h.bf16 %v8386_v47  ;;  %v8387_v41 = vunpack.i.l.bf16 %v8386_v47 }
 0x19c   :  { %8675 = vrot.lane.b32.xlu0 %v8674_v12, %s9687_s18  ;;  %v8709_v12 = vpack.i.bf16 %v6910_v61, %v12338_v50  ;;  %v8392_v50 = vunpack.i.l.bf16 %v12397_v10  ;;  %v8719_v10 = vpack.i.bf16 %v12455_v59, %v6910_v61  ;;  %v6996_v61 = vld [vmem:[%s14815_s0 + $0x188] ss:$2 sm:$0xff] }
 0x19d   :  { %v8401_v29 = vpop.permute.xlu1 %8400  ;;  %v3643_v32 = vsel %vm3636_vm15, %v3601_v0, %v8387_v41  ;;  %v3644_v18 = vsel %vm3636_vm15, %v3602_v53, %v8388_v27 }
 0x19e   :  { %v8396_v31 = vpop.permute.xlu0 %8395  ;;  %v8403_v16 = vunpack.i.h.bf16 %v8401_v29  ;;  %v8402_v47 = vunpack.i.l.bf16 %v8401_v29 }
 0x19f   :  { %v8398_v28 = vunpack.i.h.bf16 %v8396_v31  ;;  %v8397_v37 = vunpack.i.l.bf16 %v8396_v31  ;;  %8690 = vrot.lane.b32.xlu1 %v8689_v26, %s9681_s14  ;;  %v8383_v26 = vunpack.i.h.bf16 %v12374_v6  ;;  %v6951_v6 = vld [vmem:[%s14815_s0 + $0x177] ss:$2 sm:$0xff] }
 0x1a0   :  { %8685 = vrot.lane.b32.xlu0 %v8684_v14, %s9688_s27  ;;  %v8714_v41 = vpack.i.bf16 %v6951_v6, %v12381_v21  ;;  %v3351_v14 = vsel %vm15018_vm6, %v3309_v34, %v8392_v50  ;;  %vm15029_vm6 = vmmov %vm15023_vm2 }
 0x1a1   :  { %v3685_v4 = vsel %vm3678_vm12, %v3643_v32, %v8397_v37  ;;  %v3686_v25 = vsel %vm3678_vm12, %v3644_v18, %v8398_v28  ;;  %v8411_v19 = vpop.permute.xlu1 %8410  ;;  %v3310_v27 = vsel %vm15023_vm2, %v11655_v62, %v8383_v26  ;;  %v3393_v62 = vsel %vm15007_vm3, %v3351_v14, %v8402_v47  ;;  %v7037_v47 = vld [vmem:[%s14815_s0 + $0x189] ss:$2 sm:$0xff]  ;;  %vm15030_vm3 = vmmov %vm15024_vm7 }
 0x1a2   :  { %v8406_v40 = vpop.permute.xlu0 %8405  ;;  %v3723_v54 = vpack.c.bf16 %v3686_v25, %v3685_v4  ;;  %v3352_v29 = vsel %vm15024_vm7, %v3310_v27, %v8393_v51  ;;  %v8413_v46 = vunpack.i.h.bf16 %v8411_v19  ;;  %v8412_v21 = vunpack.i.l.bf16 %v8411_v19 }
 0x1a3   :  { %8700 = vrot.lane.b32.xlu1 %v8699_v7, %s9680_s11  ;;  %v8408_v9 = vunpack.i.h.bf16 %v8406_v40  ;;  %v8407_v23 = vunpack.i.l.bf16 %v8406_v40  ;;  %v3394_v2 = vsel %vm15025_vm10, %v3352_v29, %v8403_v16  ;;  %v12493_v7 = vld [vmem:[%s14815_s0 + $0x185] ss:$2 sm:$0xff]  ;;  %v8724_v37 = vpack.i.bf16 %v12486_v48, %v6951_v6 }
 0x1a4   :  { %8695 = vrot.lane.b32.xlu0 %v8694_v39, %s9689_s13  ;;  %7454 = vmatmul.mubr.msk.bf16.gmra.mrb[12].mxu0 %vm3773_vm5, %v3723_v54  ;;  %v8739_v18 = vpack.i.bf16 %v12493_v7, %v12442_v24  ;;  %v6995_v39 = vld [vmem:[%s14815_s0 + $0x178] ss:$2 sm:$0xff]  ;;  %v7036_v16 = vld [vmem:[%s14815_s0 + $0x179] ss:$2 sm:$0xff] }
 0x1a5   :  { %v8421_v20 = vpop.permute.xlu1 %8420  ;;  %7457 = vmatprep.mubr.msk.bf16.mxu0 %vm9686_vm4, %v15002_v49  ;;  %v3435_v0 = vsel %vm15021_vm8, %v3393_v62, %v8407_v23  ;;  %v3436_v22 = vsel %vm15026_vm9, %v3394_v2, %v8408_v9  ;;  %v8744_v62 = vpack.i.bf16 %v7037_v47, %v7036_v16  ;;  %v6912_v2 = vld [vmem:[%s14815_s0 + $0x196] ss:$2 sm:$0xff]  ;;  %vm15031_vm8 = vmmov %vm15025_vm10 }
 0x1a6   :  { %v8416_v55 = vpop.permute.xlu0 %8415  ;;  %v8423_v4 = vunpack.i.h.bf16 %v8421_v20  ;;  %v8422_v25 = vunpack.i.l.bf16 %v8421_v20  ;;  %v3477_v19 = vsel %vm3468_vm11, %v3435_v0, %v8412_v21  ;;  %v3478_v40 = vsel %vm3468_vm11, %v3436_v22, %v8413_v46 }
 0x1a7   :  { %8710 = vrot.lane.b32.xlu1 %v8709_v12, %s9682_s21  ;;  %v8418_v53 = vunpack.i.h.bf16 %v8416_v55  ;;  %v8417_v28 = vunpack.i.l.bf16 %v8416_v55  ;;  %v8734_v20 = vpack.i.bf16 %v6996_v61, %v6995_v39  ;;  %v12558_v39 = vld [vmem:[%s14815_s0 + $0x1a6] ss:$2 sm:$0xff] }
 0x1a8   :  { %8705 = vrot.lane.b32.xlu0 %v8704_v43, %s9683_s24  ;;  %v12518_v43 = vld [vmem:[%s14815_s0 + $0x194] ss:$2 sm:$0xff] }
 0x1a9   :  { %v12479_v13 = vpop.permute.xlu1 %8430  ;;  %v3519_v12 = vsel %vm15022_vm0, %v3477_v19, %v8417_v28  ;;  %v3520_v26 = vsel %vm15027_vm1, %v3478_v40, %v8418_v53  ;;  %v8759_v53 = vpack.i.bf16 %v6912_v2, %v12455_v59  ;;  %v12570_v40 = vld [vmem:[%s14815_s0 + $0x1a4] ss:$2 sm:$0xff]  ;;  %vm15032_vm0 = vmmov %vm15026_vm9 }
 0x1aa   :  { %v8426_v31 = vpop.permute.xlu0 %8425  ;;  %v3561_v55 = vsel %vm3552_vm13, %v3519_v12, %v8422_v25  ;;  %v3562_v9 = vsel %vm3552_vm13, %v3520_v26, %v8423_v4  ;;  %v8433_v28 = vunpack.i.h.bf16 %v12479_v13  ;;  %v8779_v16 = vpack.i.bf16 %v12570_v40, %v12518_v43 }
 0x1ab   :  { %8720 = vrot.lane.b32.xlu1 %v8719_v10, %s9684_s8  ;;  %v8428_v24 = vunpack.i.h.bf16 %v8426_v31  ;;  %v8427_v30 = vunpack.i.l.bf16 %v8426_v31  ;;  %v8749_v10 = vpack.i.bf16 %v12518_v43, %v12467_v42  ;;  %v12545_v31 = vld [vmem:[%s14815_s0 + $0x195] ss:$2 sm:$0xff] }
 0x1ac   :  { %8715 = vrot.lane.b32.xlu0 %v8714_v41, %s9685_s10 }
 0x1ad   :  { %v12500_v32 = vpop.permute.xlu1 %8440  ;;  %v3603_v34 = vsel %vm3594_vm14, %v3561_v55, %v8427_v30  ;;  %v3604_v27 = vsel %vm3594_vm14, %v3562_v9, %v8428_v24  ;;  %v15028_v24 = vld [vmem:[#allocation6_spill] sm:$0xff] }
 0x1ae   :  { %v8436_v54 = vpop.permute.xlu0 %8435  ;;  %v8443_v61 = vunpack.i.h.bf16 %v12500_v32  ;;  %v8442_v59 = vunpack.i.l.bf16 %v12500_v32  ;;  %v8769_v32 = vpack.i.bf16 %v12558_v39, %v6912_v2  ;;  %v3312_v30 = vsel %vm15029_vm6, %v15028_v24, %v8433_v28  ;;  %v6998_v2 = vld [vmem:[%s14815_s0 + $0x1a8] ss:$2 sm:$0xff] }
 0x1af   :  { %8730 = vrot.lane.b32.xlu1 %v8729_v35, %s9678_s30  ;;  %v8438_v51 = vunpack.i.h.bf16 %v8436_v54  ;;  %v8437_v50 = vunpack.i.l.bf16 %v8436_v54 }
 0x1b0   :  { %8725 = vrot.lane.b32.xlu0 %v8724_v37, %s9687_s18  ;;  %v8432_v37 = vunpack.i.l.bf16 %v12479_v13  ;;  %v6953_v13 = vld [vmem:[%s14815_s0 + $0x197] ss:$2 sm:$0xff] }
 0x1b1   :  { %v8451_v6 = vpop.permute.xlu1 %8450  ;;  %v3645_v29 = vsel %vm3636_vm15, %v3603_v34, %v8437_v50  ;;  %v3646_v35 = vsel %vm3636_vm15, %v3604_v27, %v8438_v51  ;;  %v8764_v51 = vpack.i.bf16 %v6953_v13, %v12486_v48 }
 0x1b2   :  { %v8446_v23 = vpop.permute.xlu0 %8445  ;;  %v8453_v25 = vunpack.i.h.bf16 %v8451_v6  ;;  %v8452_v19 = vunpack.i.l.bf16 %v8451_v6  ;;  %v3311_v26 = vsel %vm15023_vm2, %v11636_v63, %v8432_v37  ;;  %v12589_v63 = vld [vmem:[%s14815_s0 + $0x1a7] ss:$2 sm:$0xff]  ;;  %vm15033_vm2 = vmmov %vm15027_vm1 }
 0x1b3   :  { %v8448_v41 = vunpack.i.h.bf16 %v8446_v23  ;;  %v8447_v14 = vunpack.i.l.bf16 %v8446_v23  ;;  %8740 = vrot.lane.b32.xlu1 %v8739_v18, %s9681_s14  ;;  %v8754_v18 = vpack.i.bf16 %v12545_v31, %v12493_v7  ;;  %v3353_v50 = vsel %vm15024_vm7, %v3311_v26, %v8442_v59  ;;  %vm15034_vm7 = vmmov %vm15029_vm6 }
 0x1b4   :  { %8735 = vrot.lane.b32.xlu0 %v8734_v20, %s9688_s27  ;;  %v3354_v20 = vsel %vm15030_vm3, %v3312_v30, %v8443_v61  ;;  %v3395_v47 = vsel %vm15025_vm10, %v3353_v50, %v8452_v19  ;;  %v7039_v19 = vld [vmem:[%s14815_s0 + $0x1a9] ss:$2 sm:$0xff]  ;;  %vm15035_vm10 = vmmov %vm15030_vm3 }
 0x1b5   :  { %v3687_v42 = vsel %vm3678_vm12, %v3645_v29, %v8447_v14  ;;  %v3688_v46 = vsel %vm3678_vm12, %v3646_v35, %v8448_v41  ;;  %v8461_v21 = vpop.permute.xlu1 %8460  ;;  %v3396_v55 = vsel %vm15031_vm8, %v3354_v20, %v8453_v25  ;;  %v8774_v14 = vpack.i.bf16 %v12589_v63, %v6953_v13  ;;  %v7038_v25 = vld [vmem:[%s14815_s0 + $0x199] ss:$2 sm:$0xff] }
 0x1b6   :  { %v8456_v0 = vpop.permute.xlu0 %8455  ;;  %v3724_v22 = vpack.c.bf16 %v3688_v46, %v3687_v42  ;;  %v8463_v9 = vunpack.i.h.bf16 %v8461_v21  ;;  %v8462_v48 = vunpack.i.l.bf16 %v8461_v21 }
 0x1b7   :  { %8750 = vrot.lane.b32.xlu1 %v8749_v10, %s9680_s11  ;;  %v8458_v54 = vunpack.i.h.bf16 %v8456_v0  ;;  %v8457_v12 = vunpack.i.l.bf16 %v8456_v0  ;;  %v12596_v10 = vld [vmem:[%s14815_s0 + $0x1a5] ss:$2 sm:$0xff] }
 0x1b8   :  { %8745 = vrot.lane.b32.xlu0 %v8744_v62, %s9689_s13  ;;  %7458 = vmatmul.mubr.msk.bf16.gmra.mrb[16].mxu0 %vm3773_vm5, %v3724_v22  ;;  %v8789_v35 = vpack.i.bf16 %v12596_v10, %v12545_v31  ;;  %v6997_v62 = vld [vmem:[%s14815_s0 + $0x198] ss:$2 sm:$0xff] }
 0x1b9   :  { %v8471_v4 = vpop.permute.xlu1 %8470  ;;  %7461 = vmatprep.mubr.msk.bf16.mxu0 %vm9686_vm4, %v15002_v49  ;;  %v3437_v34 = vsel %vm15026_vm9, %v3395_v47, %v8457_v12  ;;  %v3438_v43 = vsel %vm15032_vm0, %v3396_v55, %v8458_v54  ;;  %v6914_v47 = vld [vmem:[%s14815_s0 + $0x1b6] ss:$2 sm:$0xff]  ;;  %vm15036_vm9 = vmmov %vm15031_vm8 }
 0x1ba   :  { %v8466_v7 = vpop.permute.xlu0 %8465  ;;  %v8473_v42 = vunpack.i.h.bf16 %v8471_v4  ;;  %v8472_v46 = vunpack.i.l.bf16 %v8471_v4  ;;  %v3479_v21 = vsel %vm3468_vm11, %v3437_v34, %v8462_v48  ;;  %v3480_v0 = vsel %vm3468_vm11, %v3438_v43, %v8463_v9  ;;  %v12648_v48 = vld [vmem:[%s14815_s0 + $0x1b5] ss:$2 sm:$0xff] }
 0x1bb   :  { %8760 = vrot.lane.b32.xlu1 %v8759_v53, %s9682_s21  ;;  %v8468_v27 = vunpack.i.h.bf16 %v8466_v7  ;;  %v8467_v41 = vunpack.i.l.bf16 %v8466_v7  ;;  %v8784_v4 = vpack.i.bf16 %v6998_v2, %v6997_v62  ;;  %v8809_v43 = vpack.i.bf16 %v6914_v47, %v12558_v39 }
 0x1bc   :  { %8755 = vrot.lane.b32.xlu0 %v8754_v18, %s9683_s24  ;;  %v12621_v18 = vld [vmem:[%s14815_s0 + $0x1b4] ss:$2 sm:$0xff] }
 0x1bd   :  { %v12582_v6 = vpop.permute.xlu1 %8480  ;;  %v3521_v53 = vsel %vm15027_vm1, %v3479_v21, %v8467_v41  ;;  %v3522_v28 = vsel %vm15033_vm2, %v3480_v0, %v8468_v27  ;;  %v12673_v21 = vld [vmem:[%s14815_s0 + $0x1c4] ss:$2 sm:$0xff]  ;;  %vm15037_vm1 = vmmov %vm15032_vm0 }
 0x1be   :  { %v8476_v23 = vpop.permute.xlu0 %8475  ;;  %v3563_v7 = vsel %vm3552_vm13, %v3521_v53, %v8472_v46  ;;  %v3564_v54 = vsel %vm3552_vm13, %v3522_v28, %v8473_v42  ;;  %v8483_v27 = vunpack.i.h.bf16 %v12582_v6  ;;  %v8482_v41 = vunpack.i.l.bf16 %v12582_v6  ;;  %v6955_v6 = vld [vmem:[%s14815_s0 + $0x1b7] ss:$2 sm:$0xff] }
 0x1bf   :  { %8770 = vrot.lane.b32.xlu1 %v8769_v32, %s9684_s8  ;;  %v8478_v31 = vunpack.i.h.bf16 %v8476_v23  ;;  %v8477_v37 = vunpack.i.l.bf16 %v8476_v23  ;;  %v8799_v32 = vpack.i.bf16 %v12621_v18, %v12570_v40 }
 0x1c0   :  { %8765 = vrot.lane.b32.xlu0 %v8764_v51, %s9685_s10  ;;  %v3313_v53 = vsel %vm15029_vm6, %v11677_v52, %v8482_v41  ;;  %v3314_v28 = vsel %vm15034_vm7, %v11681_v15, %v8483_v27  ;;  %v12692_v52 = vld [vmem:[%s14815_s0 + $0x1c7] ss:$2 sm:$0xff]  ;;  %vm15038_vm6 = vmmov %vm15033_vm2 }
 0x1c1   :  { %v12603_v29 = vpop.permute.xlu1 %8490  ;;  %v3605_v26 = vsel %vm3594_vm14, %v3563_v7, %v8477_v37  ;;  %v3606_v24 = vsel %vm3594_vm14, %v3564_v54, %v8478_v31  ;;  %v8814_v31 = vpack.i.bf16 %v6955_v6, %v12589_v63  ;;  %v12699_v7 = vld [vmem:[%s14815_s0 + $0x1c5] ss:$2 sm:$0xff] }
 0x1c2   :  { %v8486_v22 = vpop.permute.xlu0 %8485  ;;  %v8493_v62 = vunpack.i.h.bf16 %v12603_v29  ;;  %v8492_v39 = vunpack.i.l.bf16 %v12603_v29 }
 0x1c3   :  { %8780 = vrot.lane.b32.xlu1 %v8779_v16, %s9678_s30  ;;  %v8488_v61 = vunpack.i.h.bf16 %v8486_v22  ;;  %v8487_v59 = vunpack.i.l.bf16 %v8486_v22  ;;  %v8794_v16 = vpack.i.bf16 %v7039_v19, %v7038_v25 }
 0x1c4   :  { %8775 = vrot.lane.b32.xlu0 %v8774_v14, %s9687_s18  ;;  %v8804_v14 = vpack.i.bf16 %v12648_v48, %v12596_v10  ;;  %v3355_v37 = vsel %vm15030_vm3, %v3313_v53, %v8492_v39  ;;  %v7040_v39 = vld [vmem:[%s14815_s0 + $0x1b9] ss:$2 sm:$0xff]  ;;  %vm15039_vm3 = vmmov %vm15034_vm7 }
 0x1c5   :  { %v8501_v13 = vpop.permute.xlu1 %8500  ;;  %v3647_v50 = vsel %vm3636_vm15, %v3605_v26, %v8487_v59  ;;  %v3648_v20 = vsel %vm3636_vm15, %v3606_v24, %v8488_v61  ;;  %v3356_v61 = vsel %vm15035_vm10, %v3314_v28, %v8493_v62  ;;  %v8824_v26 = vpack.i.bf16 %v12692_v52, %v6955_v6 }
 0x1c6   :  { %v8496_v12 = vpop.permute.xlu0 %8495  ;;  %v8503_v42 = vunpack.i.h.bf16 %v8501_v13  ;;  %v8502_v46 = vunpack.i.l.bf16 %v8501_v13 }
 0x1c7   :  { %v8498_v30 = vunpack.i.h.bf16 %v8496_v12  ;;  %v8497_v51 = vunpack.i.l.bf16 %v8496_v12  ;;  %8790 = vrot.lane.b32.xlu1 %v8789_v35, %s9681_s14  ;;  %v12661_v35 = vld [vmem:[%s14815_s0 + $0x1c6] ss:$2 sm:$0xff] }
 0x1c8   :  { %8785 = vrot.lane.b32.xlu0 %v8784_v4, %s9688_s27  ;;  %v8819_v29 = vpack.i.bf16 %v12661_v35, %v6914_v47  ;;  %v8829_v4 = vpack.i.bf16 %v12673_v21, %v12621_v18  ;;  %v3397_v15 = vsel %vm15031_vm8, %v3355_v37, %v8502_v46  ;;  %v3398_v13 = vsel %vm15036_vm9, %v3356_v61, %v8503_v42  ;;  %v6916_v61 = vld [vmem:[%s14815_s0 + $0x1d6] ss:$2 sm:$0xff]  ;;  %vm15040_vm8 = vmmov %vm15035_vm10 }
 0x1c9   :  { %v3689_v40 = vsel %vm3678_vm12, %v3647_v50, %v8497_v51  ;;  %v3690_v55 = vsel %vm3678_vm12, %v3648_v20, %v8498_v30  ;;  %v8511_v9 = vpop.permute.xlu1 %8510  ;;  %v8839_v30 = vpack.i.bf16 %v12699_v7, %v12648_v48  ;;  %v6999_v51 = vld [vmem:[%s14815_s0 + $0x1b8] ss:$2 sm:$0xff]  ;;  %v7000_v50 = vld [vmem:[%s14815_s0 + $0x1c8] ss:$2 sm:$0xff] }
 0x1ca   :  { %v8506_v23 = vpop.permute.xlu0 %8505  ;;  %v3725_v34 = vpack.c.bf16 %v3690_v55, %v3689_v40  ;;  %v8513_v25 = vunpack.i.h.bf16 %v8511_v9  ;;  %v8512_v63 = vunpack.i.l.bf16 %v8511_v9 }
 0x1cb   :  { %8800 = vrot.lane.b32.xlu1 %v8799_v32, %s9680_s11  ;;  %v8508_v0 = vunpack.i.h.bf16 %v8506_v23  ;;  %v8507_v22 = vunpack.i.l.bf16 %v8506_v23 }
 0x1cc   :  { %8795 = vrot.lane.b32.xlu0 %v8794_v16, %s9689_s13  ;;  %7462 = vmatmul.mubr.msk.bf16.gmra.mrb[20].mxu0 %vm3773_vm5, %v3725_v34 }
 0x1cd   :  { %v8521_v2 = vpop.permute.xlu1 %8520  ;;  %7465 = vmatprep.mubr.msk.bf16.mxu0 %vm9686_vm4, %v15002_v49  ;;  %v3439_v54 = vsel %vm15032_vm0, %v3397_v15, %v8507_v22  ;;  %v3440_v18 = vsel %vm15037_vm1, %v3398_v13, %v8508_v0  ;;  %v12751_v13 = vld [vmem:[%s14815_s0 + $0x1d5] ss:$2 sm:$0xff]  ;;  %vm15041_vm0 = vmmov %vm15036_vm9 }
 0x1ce   :  { %v8516_v10 = vpop.permute.xlu0 %8515  ;;  %v8523_v20 = vunpack.i.h.bf16 %v8521_v2  ;;  %v8522_v16 = vunpack.i.l.bf16 %v8521_v2  ;;  %v3481_v47 = vsel %vm3468_vm11, %v3439_v54, %v8512_v63  ;;  %v3482_v40 = vsel %vm3468_vm11, %v3440_v18, %v8513_v25  ;;  %v7041_v2 = vld [vmem:[%s14815_s0 + $0x1c9] ss:$2 sm:$0xff] }
 0x1cf   :  { %8810 = vrot.lane.b32.xlu1 %v8809_v43, %s9682_s21  ;;  %v8518_v12 = vunpack.i.h.bf16 %v8516_v10  ;;  %v8517_v32 = vunpack.i.l.bf16 %v8516_v10  ;;  %v12724_v43 = vld [vmem:[%s14815_s0 + $0x1d4] ss:$2 sm:$0xff]  ;;  %v8844_v37 = vpack.i.bf16 %v7041_v2, %v7040_v39  ;;  %v12802_v39 = vld [vmem:[%s14815_s0 + $0x1e5] ss:$2 sm:$0xff] }
 0x1d0   :  { %8805 = vrot.lane.b32.xlu0 %v8804_v14, %s9683_s24  ;;  %v8834_v14 = vpack.i.bf16 %v7000_v50, %v6999_v51  ;;  %v8849_v10 = vpack.i.bf16 %v12724_v43, %v12673_v21 }
 0x1d1   :  { %v12685_v59 = vpop.permute.xlu1 %8530  ;;  %v3523_v9 = vsel %vm15033_vm2, %v3481_v47, %v8517_v32  ;;  %v3524_v23 = vsel %vm15038_vm6, %v3482_v40, %v8518_v12  ;;  %v8854_v12 = vpack.i.bf16 %v12751_v13, %v12699_v7  ;;  %v12764_v32 = vld [vmem:[%s14815_s0 + $0x1e6] ss:$2 sm:$0xff]  ;;  %vm15042_vm2 = vmmov %vm15037_vm1 }
 0x1d2   :  { %v8526_v19 = vpop.permute.xlu0 %8525  ;;  %v3565_v6 = vsel %vm3552_vm13, %v3523_v9, %v8522_v16  ;;  %v3566_v42 = vsel %vm3552_vm13, %v3524_v23, %v8523_v20  ;;  %v8533_v54 = vunpack.i.h.bf16 %v12685_v59  ;;  %v8532_v18 = vunpack.i.l.bf16 %v12685_v59  ;;  %v6957_v59 = vld [vmem:[%s14815_s0 + $0x1d7] ss:$2 sm:$0xff]  ;;  %v12776_v20 = vld [vmem:[%s14815_s0 + $0x1e4] ss:$2 sm:$0xff] }
 0x1d3   :  { %8820 = vrot.lane.b32.xlu1 %v8819_v29, %s9684_s8  ;;  %v8528_v48 = vunpack.i.h.bf16 %v8526_v19  ;;  %v8527_v34 = vunpack.i.l.bf16 %v8526_v19  ;;  %v8859_v19 = vpack.i.bf16 %v6916_v61, %v12661_v35  ;;  %v8864_v9 = vpack.i.bf16 %v6957_v59, %v12692_v52 }
 0x1d4   :  { %8815 = vrot.lane.b32.xlu0 %v8814_v31, %s9685_s10  ;;  %v3315_v40 = vsel %vm15034_vm7, %v11664_v5, %v8532_v18  ;;  %v12795_v5 = vld [vmem:[%s14815_s0 + $0x1e7] ss:$2 sm:$0xff]  ;;  %vm15043_vm7 = vmmov %vm15038_vm6 }
 0x1d5   :  { %v12706_v24 = vpop.permute.xlu1 %8540  ;;  %v3607_v0 = vsel %vm3594_vm14, %v3565_v6, %v8527_v34  ;;  %v3608_v22 = vsel %vm3594_vm14, %v3566_v42, %v8528_v48 }
 0x1d6   :  { %v8536_v55 = vpop.permute.xlu0 %8535  ;;  %v8542_v35 = vunpack.i.l.bf16 %v12706_v24 }
 0x1d7   :  { %8830 = vrot.lane.b32.xlu1 %v8829_v4, %s9678_s30  ;;  %v8538_v27 = vunpack.i.h.bf16 %v8536_v55  ;;  %v8537_v41 = vunpack.i.l.bf16 %v8536_v55  ;;  %v3316_v55 = vsel %vm15039_vm3, %v11668_v3, %v8533_v54 }
 0x1d8   :  { %8825 = vrot.lane.b32.xlu0 %v8824_v26, %s9687_s18  ;;  %v8543_v26 = vunpack.i.h.bf16 %v12706_v24  ;;  %v8869_v24 = vpack.i.bf16 %v12764_v32, %v6916_v61  ;;  %v3357_v23 = vsel %vm15035_vm10, %v3315_v40, %v8542_v35  ;;  %vm15044_vm10 = vmmov %vm15039_vm3 }
 0x1d9   :  { %v8551_v62 = vpop.permute.xlu1 %8550  ;;  %v3649_v28 = vsel %vm3636_vm15, %v3607_v0, %v8537_v41  ;;  %v3650_v31 = vsel %vm3636_vm15, %v3608_v22, %v8538_v27  ;;  %v8879_v27 = vpack.i.bf16 %v12776_v20, %v12724_v43  ;;  %v8889_v0 = vpack.i.bf16 %v12802_v39, %v12751_v13  ;;  %v7001_v22 = vld [vmem:[%s14815_s0 + $0x1d8] ss:$2 sm:$0xff] }
 0x1da   :  { %v8546_v46 = vpop.permute.xlu0 %8545  ;;  %v8553_v51 = vunpack.i.h.bf16 %v8551_v62  ;;  %v8552_v50 = vunpack.i.l.bf16 %v8551_v62  ;;  %v3358_v48 = vsel %vm15040_vm8, %v3316_v55, %v8543_v26  ;;  %v7043_v26 = vld [vmem:[%s14815_s0 + $0x1e9] ss:$2 sm:$0xff] }
 0x1db   :  { %v8548_v29 = vunpack.i.h.bf16 %v8546_v46  ;;  %v8547_v53 = vunpack.i.l.bf16 %v8546_v46  ;;  %8840 = vrot.lane.b32.xlu1 %v8839_v30, %s9681_s14  ;;  %v8874_v46 = vpack.i.bf16 %v12795_v5, %v6957_v59 }
 0x1dc   :  { %8835 = vrot.lane.b32.xlu0 %v8834_v14, %s9688_s27  ;;  %v3399_v3 = vsel %vm15036_vm9, %v3357_v23, %v8552_v50  ;;  %v3400_v41 = vsel %vm15041_vm0, %v3358_v48, %v8553_v51  ;;  %vm15045_vm9 = vmmov %vm15040_vm8 }
 0x1dd   :  { %v3691_v21 = vsel %vm3678_vm12, %v3649_v28, %v8547_v53  ;;  %v3692_v4 = vsel %vm3678_vm12, %v3650_v31, %v8548_v29  ;;  %v8561_v15 = vpop.permute.xlu1 %8560  ;;  %v7002_v29 = vld [vmem:[%s14815_s0 + $0x1e8] ss:$2 sm:$0xff] }
 0x1de   :  { %v8556_v25 = vpop.permute.xlu0 %8555  ;;  %v3726_v63 = vpack.c.bf16 %v3692_v4, %v3691_v21  ;;  %v8563_v14 = vunpack.i.h.bf16 %v8561_v15  ;;  %v8562_v52 = vunpack.i.l.bf16 %v8561_v15  ;;  %v8884_v54 = vpack.i.bf16 %v7002_v29, %v7001_v22  ;;  %v12879_v22 = vld [vmem:[%s14815_s0 + $0x204] ss:$2 sm:$0xff] }
 0x1df   :  { %8850 = vrot.lane.b32.xlu1 %v8849_v10, %s9680_s11  ;;  %v8558_v16 = vunpack.i.h.bf16 %v8556_v25  ;;  %v8557_v47 = vunpack.i.l.bf16 %v8556_v25  ;;  %v12827_v25 = vld [vmem:[%s14815_s0 + $0x1f4] ss:$2 sm:$0xff] }
 0x1e0   :  { %8845 = vrot.lane.b32.xlu0 %v8844_v37, %s9689_s13  ;;  %7466 = vmatmul.mubr.msk.bf16.gmra.mrb[24].mxu0 %vm3773_vm5, %v3726_v63  ;;  %v8899_v51 = vpack.i.bf16 %v12827_v25, %v12776_v20 }
 0x1e1   :  { %v8571_v30 = vpop.permute.xlu1 %8570  ;;  %7469 = vmatprep.mubr.msk.bf16.mxu0 %vm9686_vm4, %v15002_v49  ;;  %v3441_v2 = vsel %vm15037_vm1, %v3399_v3, %v8557_v47  ;;  %v3442_v43 = vsel %vm15042_vm2, %v3400_v41, %v8558_v16  ;;  %vm15046_vm1 = vmmov %vm15041_vm0 }
 0x1e2   :  { %v8566_v7 = vpop.permute.xlu0 %8565  ;;  %v8573_v53 = vunpack.i.h.bf16 %v8571_v30  ;;  %v8572_v28 = vunpack.i.l.bf16 %v8571_v30  ;;  %v3483_v31 = vsel %vm3468_vm11, %v3441_v2, %v8562_v52  ;;  %v3484_v37 = vsel %vm3468_vm11, %v3442_v43, %v8563_v14  ;;  %v12867_v43 = vld [vmem:[%s14815_s0 + $0x206] ss:$2 sm:$0xff] }
 0x1e3   :  { %8860 = vrot.lane.b32.xlu1 %v8859_v19, %s9682_s21  ;;  %v8568_v6 = vunpack.i.h.bf16 %v8566_v7  ;;  %v8567_v42 = vunpack.i.l.bf16 %v8566_v7 }
 0x1e4   :  { %8855 = vrot.lane.b32.xlu0 %v8854_v12, %s9683_s24  ;;  %v7042_v12 = vld [vmem:[%s14815_s0 + $0x1d9] ss:$2 sm:$0xff] }
 0x1e5   :  { %v12788_v34 = vpop.permute.xlu1 %8580  ;;  %v3525_v21 = vsel %vm15038_vm6, %v3483_v31, %v8567_v42  ;;  %v3526_v4 = vsel %vm15043_vm7, %v3484_v37, %v8568_v6  ;;  %v8894_v55 = vpack.i.bf16 %v7043_v26, %v7042_v12  ;;  %vm15047_vm6 = vmmov %vm15042_vm2 }
 0x1e6   :  { %v8576_v62 = vpop.permute.xlu0 %8575  ;;  %v3567_v35 = vsel %vm3552_vm13, %v3525_v21, %v8572_v28  ;;  %v3568_v30 = vsel %vm3552_vm13, %v3526_v4, %v8573_v53  ;;  %v8583_v52 = vunpack.i.h.bf16 %v12788_v34 }
 0x1e7   :  { %8870 = vrot.lane.b32.xlu1 %v8869_v24, %s9684_s8  ;;  %v8578_v15 = vunpack.i.h.bf16 %v8576_v62  ;;  %v8577_v13 = vunpack.i.l.bf16 %v8576_v62  ;;  %v8582_v62 = vunpack.i.l.bf16 %v12788_v34  ;;  %v6959_v34 = vld [vmem:[%s14815_s0 + $0x1f7] ss:$2 sm:$0xff] }
 0x1e8   :  { %8865 = vrot.lane.b32.xlu0 %v8864_v9, %s9685_s10  ;;  %v6918_v9 = vld [vmem:[%s14815_s0 + $0x1f6] ss:$2 sm:$0xff]  ;;  %v3318_v31 = vsel %vm15044_vm10, %v11711_v57, %v8583_v52  ;;  %v8914_v37 = vpack.i.bf16 %v6959_v34, %v12795_v5  ;;  %v7044_v52 = vld [vmem:[%s14815_s0 + $0x1f9] ss:$2 sm:$0xff] }
 0x1e9   :  { %v12809_v10 = vpop.permute.xlu1 %8590  ;;  %v3609_v50 = vsel %vm3594_vm14, %v3567_v35, %v8577_v13  ;;  %v3610_v7 = vsel %vm3594_vm14, %v3568_v30, %v8578_v15  ;;  %v8909_v14 = vpack.i.bf16 %v6918_v9, %v12764_v32  ;;  %v3317_v28 = vsel %vm15039_vm3, %v11707_v1, %v8582_v62  ;;  %v12898_v1 = vld [vmem:[%s14815_s0 + $0x207] ss:$2 sm:$0xff]  ;;  %vm15048_vm3 = vmmov %vm15043_vm7 }
 0x1ea   :  { %v8586_v61 = vpop.permute.xlu0 %8585  ;;  %v8593_v6 = vunpack.i.h.bf16 %v12809_v10  ;;  %v8592_v32 = vunpack.i.l.bf16 %v12809_v10  ;;  %v8919_v10 = vpack.i.bf16 %v12867_v43, %v6918_v9  ;;  %v8929_v15 = vpack.i.bf16 %v12879_v22, %v12827_v25  ;;  %v7045_v62 = vld [vmem:[%s14815_s0 + $0x209] ss:$2 sm:$0xff] }
 0x1eb   :  { %8880 = vrot.lane.b32.xlu1 %v8879_v27, %s9678_s30  ;;  %v8588_v63 = vunpack.i.h.bf16 %v8586_v61  ;;  %v8587_v19 = vunpack.i.l.bf16 %v8586_v61  ;;  %v12854_v27 = vld [vmem:[%s14815_s0 + $0x1f5] ss:$2 sm:$0xff]  ;;  %v8924_v35 = vpack.i.bf16 %v12898_v1, %v6959_v34 }
 0x1ec   :  { %8875 = vrot.lane.b32.xlu0 %v8874_v46, %s9687_s18  ;;  %v8904_v2 = vpack.i.bf16 %v12854_v27, %v12802_v39  ;;  %v3359_v61 = vsel %vm15040_vm8, %v3317_v28, %v8592_v32  ;;  %v3360_v21 = vsel %vm15045_vm9, %v3318_v31, %v8593_v6  ;;  %v6920_v28 = vld [vmem:[%s14815_s0 + $0x216] ss:$2 sm:$0xff]  ;;  %vm15049_vm8 = vmmov %vm15044_vm10 }
 0x1ed   :  { %v8601_v18 = vpop.permute.xlu1 %8600  ;;  %v3651_v24 = vsel %vm3636_vm15, %v3609_v50, %v8587_v19  ;;  %v3652_v40 = vsel %vm3636_vm15, %v3610_v7, %v8588_v63  ;;  %v7004_v50 = vld [vmem:[%s14815_s0 + $0x208] ss:$2 sm:$0xff] }
 0x1ee   :  { %v8596_v59 = vpop.permute.xlu0 %8595  ;;  %v8603_v46 = vunpack.i.h.bf16 %v8601_v18 }
 0x1ef   :  { %v8598_v16 = vunpack.i.h.bf16 %v8596_v59  ;;  %v8597_v47 = vunpack.i.l.bf16 %v8596_v59  ;;  %8890 = vrot.lane.b32.xlu1 %v8889_v0, %s9681_s14  ;;  %v8602_v0 = vunpack.i.l.bf16 %v8601_v18 }
 0x1f0   :  { %8885 = vrot.lane.b32.xlu0 %v8884_v54, %s9688_s27  ;;  %v3402_v13 = vsel %vm15046_vm1, %v3360_v21, %v8603_v46  ;;  %v12905_v54 = vld [vmem:[%s14815_s0 + $0x205] ss:$2 sm:$0xff] }
 0x1f1   :  { %v3693_v20 = vsel %vm3678_vm12, %v3651_v24, %v8597_v47  ;;  %v3694_v23 = vsel %vm3678_vm12, %v3652_v40, %v8598_v16  ;;  %v8611_v48 = vpop.permute.xlu1 %8610  ;;  %v3401_v57 = vsel %vm15041_vm0, %v3359_v61, %v8602_v0  ;;  %v8939_v59 = vpack.i.bf16 %v12905_v54, %v12854_v27  ;;  %v12957_v61 = vld [vmem:[%s14815_s0 + $0x215] ss:$2 sm:$0xff]  ;;  %vm15050_vm0 = vmmov %vm15045_vm9 }
 0x1f2   :  { %v8606_v3 = vpop.permute.xlu0 %8605  ;;  %v3727_v41 = vpack.c.bf16 %v3694_v23, %v3693_v20  ;;  %v8613_v63 = vunpack.i.h.bf16 %v8611_v48  ;;  %v8612_v5 = vunpack.i.l.bf16 %v8611_v48  ;;  %v12930_v48 = vld [vmem:[%s14815_s0 + $0x214] ss:$2 sm:$0xff] }
 0x1f3   :  { %8900 = vrot.lane.b32.xlu1 %v8899_v51, %s9680_s11  ;;  %v8608_v29 = vunpack.i.h.bf16 %v8606_v3  ;;  %v8607_v53 = vunpack.i.l.bf16 %v8606_v3  ;;  %v7003_v51 = vld [vmem:[%s14815_s0 + $0x1f8] ss:$2 sm:$0xff] }
 0x1f4   :  { %8895 = vrot.lane.b32.xlu0 %v8894_v55, %s9689_s13  ;;  %7470 = vmatmul.mubr.msk.bf16.gmra.mrb[28].mxu0 %vm3773_vm5, %v3727_v41  ;;  %v8934_v41 = vpack.i.bf16 %v7004_v50, %v7003_v51 }
 0x1f5   :  { %v8621_v42 = vpop.permute.xlu1 %8620  ;;  %7473 = vmatprep.mubr.msk.bf16.mxu0 %vm9686_vm4, %v15002_v49  ;;  %v3443_v18 = vsel %vm15042_vm2, %v3401_v57, %v8607_v53  ;;  %v3444_v25 = vsel %vm15047_vm6, %v3402_v13, %v8608_v29  ;;  %v8959_v57 = vpack.i.bf16 %v6920_v28, %v12867_v43  ;;  %vm15051_vm2 = vmmov %vm15046_vm1 }
 0x1f6   :  { %v8616_v39 = vpop.permute.xlu0 %8615  ;;  %v8623_v7 = vunpack.i.h.bf16 %v8621_v42  ;;  %v8622_v16 = vunpack.i.l.bf16 %v8621_v42  ;;  %v3485_v47 = vsel %vm3468_vm11, %v3443_v18, %v8612_v5  ;;  %v3486_v24 = vsel %vm3468_vm11, %v3444_v25, %v8613_v63 }
 0x1f7   :  { %8910 = vrot.lane.b32.xlu1 %v8909_v14, %s9682_s21  ;;  %v8618_v12 = vunpack.i.h.bf16 %v8616_v39  ;;  %v8617_v26 = vunpack.i.l.bf16 %v8616_v39  ;;  %v8949_v42 = vpack.i.bf16 %v12930_v48, %v12879_v22  ;;  %v8954_v5 = vpack.i.bf16 %v12957_v61, %v12905_v54 }
 0x1f8   :  { %8905 = vrot.lane.b32.xlu0 %v8904_v2, %s9683_s24 }
 0x1f9   :  { %v12891_v4 = vpop.permute.xlu1 %8630  ;;  %v3527_v55 = vsel %vm15043_vm7, %v3485_v47, %v8617_v26  ;;  %v3528_v9 = vsel %vm15048_vm3, %v3486_v24, %v8618_v12  ;;  %vm15052_vm7 = vmmov %vm15047_vm6 }
 0x1fa   :  { %v8626_v19 = vpop.permute.xlu0 %8625  ;;  %v3569_v2 = vsel %vm3552_vm13, %v3527_v55, %v8622_v16  ;;  %v3570_v6 = vsel %vm3552_vm13, %v3528_v9, %v8623_v7  ;;  %v8633_v13 = vunpack.i.h.bf16 %v12891_v4  ;;  %v8632_v63 = vunpack.i.l.bf16 %v12891_v4  ;;  %v6961_v4 = vld [vmem:[%s14815_s0 + $0x217] ss:$2 sm:$0xff] }
 0x1fb   :  { %8920 = vrot.lane.b32.xlu1 %v8919_v10, %s9684_s8  ;;  %v8628_v20 = vunpack.i.h.bf16 %v8626_v19  ;;  %v8627_v23 = vunpack.i.l.bf16 %v8626_v19  ;;  %v8944_v10 = vpack.i.bf16 %v7045_v62, %v7044_v52  ;;  %v12970_v19 = vld [vmem:[%s14815_s0 + $0x226] ss:$2 sm:$0xff]  ;;  %v8964_v16 = vpack.i.bf16 %v6961_v4, %v12898_v1 }
 0x1fc   :  { %8915 = vrot.lane.b32.xlu0 %v8914_v37, %s9685_s10  ;;  %v3319_v50 = vsel %vm15044_vm10, %v11692_v17, %v8632_v63  ;;  %v3320_v7 = vsel %vm15049_vm8, %v11696_v60, %v8633_v13  ;;  %v13001_v17 = vld [vmem:[%s14815_s0 + $0x227] ss:$2 sm:$0xff]  ;;  %vm15053_vm10 = vmmov %vm15048_vm3 }
 0x1fd   :  { %v12912_v30 = vpop.permute.xlu1 %8640  ;;  %v3611_v34 = vsel %vm3594_vm14, %v3569_v2, %v8627_v23  ;;  %v3612_v46 = vsel %vm3594_vm14, %v3570_v6, %v8628_v20  ;;  %v8974_v52 = vpack.i.bf16 %v13001_v17, %v6961_v4  ;;  %v7005_v6 = vld [vmem:[%s14815_s0 + $0x218] ss:$2 sm:$0xff] }
 0x1fe   :  { %v8636_v40 = vpop.permute.xlu0 %8635  ;;  %v8643_v18 = vunpack.i.h.bf16 %v12912_v30  ;;  %v8642_v43 = vunpack.i.l.bf16 %v12912_v30  ;;  %v8969_v30 = vpack.i.bf16 %v12970_v19, %v6920_v28 }
 0x1ff   :  { %8930 = vrot.lane.b32.xlu1 %v8929_v15, %s9678_s30  ;;  %v8638_v27 = vunpack.i.h.bf16 %v8636_v40  ;;  %v8637_v3 = vunpack.i.l.bf16 %v8636_v40 }
 0x200   :  { %8925 = vrot.lane.b32.xlu0 %v8924_v35, %s9687_s18  ;;  %v12982_v35 = vld [vmem:[%s14815_s0 + $0x224] ss:$2 sm:$0xff]  ;;  %v3361_v47 = vsel %vm15045_vm9, %v3319_v50, %v8642_v43  ;;  %v3362_v24 = vsel %vm15050_vm0, %v3320_v7, %v8643_v18  ;;  %v13060_v7 = vld [vmem:[%s14815_s0 + $0x235] ss:$2 sm:$0xff]  ;;  %vm15054_vm9 = vmmov %vm15049_vm8 }
 0x201   :  { %v8651_v14 = vpop.permute.xlu1 %8650  ;;  %v3653_v29 = vsel %vm3636_vm15, %v3611_v34, %v8637_v3  ;;  %v3654_v53 = vsel %vm3636_vm15, %v3612_v46, %v8638_v27  ;;  %v8979_v55 = vpack.i.bf16 %v12982_v35, %v12930_v48  ;;  %v13008_v27 = vld [vmem:[%s14815_s0 + $0x225] ss:$2 sm:$0xff] }
 0x202   :  { %v8646_v32 = vpop.permute.xlu0 %8645  ;;  %v8653_v12 = vunpack.i.h.bf16 %v8651_v14  ;;  %v8652_v26 = vunpack.i.l.bf16 %v8651_v14  ;;  %v8989_v2 = vpack.i.bf16 %v13008_v27, %v12957_v61 }
 0x203   :  { %v8648_v0 = vunpack.i.h.bf16 %v8646_v32  ;;  %v8647_v39 = vunpack.i.l.bf16 %v8646_v32  ;;  %8940 = vrot.lane.b32.xlu1 %v8939_v59, %s9681_s14  ;;  %v7006_v32 = vld [vmem:[%s14815_s0 + $0x228] ss:$2 sm:$0xff] }
 0x204   :  { %8935 = vrot.lane.b32.xlu0 %v8934_v41, %s9688_s27  ;;  %v3403_v60 = vsel %vm15046_vm1, %v3361_v47, %v8652_v26  ;;  %v3404_v9 = vsel %vm15051_vm2, %v3362_v24, %v8653_v12  ;;  %v8984_v61 = vpack.i.bf16 %v7006_v32, %v7005_v6  ;;  %vm15055_vm1 = vmmov %vm15050_vm0 }
 0x205   :  { %v3695_v22 = vsel %vm3678_vm12, %v3653_v29, %v8647_v39  ;;  %v3696_v31 = vsel %vm3678_vm12, %v3654_v53, %v8648_v0  ;;  %v8661_v37 = vpop.permute.xlu1 %8660 }
 0x206   :  { %v8656_v21 = vpop.permute.xlu0 %8655  ;;  %v3728_v15 = vpack.c.bf16 %v3696_v31, %v3695_v22  ;;  %v8663_v20 = vunpack.i.h.bf16 %v8661_v37  ;;  %v8662_v1 = vunpack.i.l.bf16 %v8661_v37  ;;  %v13033_v22 = vld [vmem:[%s14815_s0 + $0x234] ss:$2 sm:$0xff] }
 0x207   :  { %8950 = vrot.lane.b32.xlu1 %v8949_v42, %s9680_s11  ;;  %v8658_v59 = vunpack.i.h.bf16 %v8656_v21  ;;  %v8657_v51 = vunpack.i.l.bf16 %v8656_v21  ;;  %v8999_v18 = vpack.i.bf16 %v13033_v22, %v12982_v35 }
 0x208   :  { %8945 = vrot.lane.b32.xlu0 %v8944_v10, %s9689_s13  ;;  %7474 = vmatmul.mubr.msk.bf16.gmra.mrb[32].mxu0 %vm3773_vm5, %v3728_v15  ;;  %v7046_v15 = vld [vmem:[%s14815_s0 + $0x219] ss:$2 sm:$0xff] }
 0x209   :  { %v8671_v25 = vpop.permute.xlu1 %8670  ;;  %7477 = vmatprep.mubr.msk.bf16.mxu0 %vm9686_vm4, %v15002_v49  ;;  %v3445_v3 = vsel %vm15047_vm6, %v3403_v60, %v8657_v51  ;;  %v3446_v48 = vsel %vm15052_vm7, %v3404_v9, %v8658_v59  ;;  %v6922_v51 = vld [vmem:[%s14815_s0 + $0x236] ss:$2 sm:$0xff]  ;;  %v9004_v9 = vpack.i.bf16 %v13060_v7, %v13008_v27  ;;  %vm15056_vm6 = vmmov %vm15051_vm2 }
 0x20a   :  { %v8666_v54 = vpop.permute.xlu0 %8665  ;;  %v8673_v42 = vunpack.i.h.bf16 %v8671_v25  ;;  %v8672_v34 = vunpack.i.l.bf16 %v8671_v25  ;;  %v3487_v46 = vsel %vm3468_vm11, %v3445_v3, %v8662_v1  ;;  %v3488_v0 = vsel %vm3468_vm11, %v3446_v48, %v8663_v20  ;;  %v13073_v20 = vld [vmem:[%s14815_s0 + $0x246] ss:$2 sm:$0xff] }
 0x20b   :  { %8960 = vrot.lane.b32.xlu1 %v8959_v57, %s9682_s21  ;;  %v8668_v41 = vunpack.i.h.bf16 %v8666_v54  ;;  %v8667_v14 = vunpack.i.l.bf16 %v8666_v54  ;;  %v7047_v57 = vld [vmem:[%s14815_s0 + $0x229] ss:$2 sm:$0xff]  ;;  %v9009_v24 = vpack.i.bf16 %v6922_v51, %v12970_v19 }
 0x20c   :  { %8955 = vrot.lane.b32.xlu0 %v8954_v5, %s9683_s24  ;;  %v8994_v59 = vpack.i.bf16 %v7047_v57, %v7046_v15  ;;  %v7007_v57 = vld [vmem:[%s14815_s0 + $0x238] ss:$2 sm:$0xff] }
 0x20d   :  { %v12994_v40 = vpop.permute.xlu1 %8680  ;;  %v3529_v29 = vsel %vm15048_vm3, %v3487_v46, %v8667_v14  ;;  %v3530_v53 = vsel %vm15053_vm10, %v3488_v0, %v8668_v41  ;;  %v13085_v41 = vld [vmem:[%s14815_s0 + $0x244] ss:$2 sm:$0xff]  ;;  %vm15057_vm3 = vmmov %vm15052_vm7 }
 0x20e   :  { %v8676_v23 = vpop.permute.xlu0 %8675  ;;  %v3571_v13 = vsel %vm3552_vm13, %v3529_v29, %v8672_v34  ;;  %v3572_v63 = vsel %vm3552_vm13, %v3530_v53, %v8673_v42  ;;  %v8682_v60 = vunpack.i.l.bf16 %v12994_v40  ;;  %v9029_v0 = vpack.i.bf16 %v13085_v41, %v13033_v22 }
 0x20f   :  { %8970 = vrot.lane.b32.xlu1 %v8969_v30, %s9684_s8  ;;  %v8678_v10 = vunpack.i.h.bf16 %v8676_v23  ;;  %v8677_v28 = vunpack.i.l.bf16 %v8676_v23 }
 0x210   :  { %8965 = vrot.lane.b32.xlu0 %v8964_v16, %s9685_s10 }
 0x211   :  { %v13015_v62 = vpop.permute.xlu1 %8690  ;;  %v3613_v43 = vsel %vm3594_vm14, %v3571_v13, %v8677_v28  ;;  %v3614_v25 = vsel %vm3594_vm14, %v3572_v63, %v8678_v10  ;;  %v13111_v10 = vld [vmem:[%s14815_s0 + $0x245] ss:$2 sm:$0xff]  ;;  %v7008_v13 = vld [vmem:[%s14815_s0 + $0x248] ss:$2 sm:$0xff] }
 0x212   :  { %v8686_v39 = vpop.permute.xlu0 %8685  ;;  %v8693_v1 = vunpack.i.h.bf16 %v13015_v62  ;;  %v8692_v19 = vunpack.i.l.bf16 %v13015_v62  ;;  %v9019_v62 = vpack.i.bf16 %v13073_v20, %v6922_v51  ;;  %v9039_v15 = vpack.i.bf16 %v13111_v10, %v13060_v7  ;;  %v7048_v7 = vld [vmem:[%s14815_s0 + $0x239] ss:$2 sm:$0xff] }
 0x213   :  { %8980 = vrot.lane.b32.xlu1 %v8979_v55, %s9678_s30  ;;  %v8688_v31 = vunpack.i.h.bf16 %v8686_v39  ;;  %v8687_v37 = vunpack.i.l.bf16 %v8686_v39  ;;  %v8683_v55 = vunpack.i.h.bf16 %v12994_v40  ;;  %v6963_v40 = vld [vmem:[%s14815_s0 + $0x237] ss:$2 sm:$0xff] }
 0x214   :  { %8975 = vrot.lane.b32.xlu0 %v8974_v52, %s9687_s18  ;;  %v9014_v32 = vpack.i.bf16 %v6963_v40, %v13001_v17 }
 0x215   :  { %v8701_v21 = vpop.permute.xlu1 %8700  ;;  %v3655_v26 = vsel %vm3636_vm15, %v3613_v43, %v8687_v37  ;;  %v3656_v54 = vsel %vm3636_vm15, %v3614_v25, %v8688_v31  ;;  %v3322_v6 = vsel %vm15054_vm9, %v11742_v58, %v8683_v55 }
 0x216   :  { %v8696_v5 = vpop.permute.xlu0 %8695  ;;  %v8703_v3 = vunpack.i.h.bf16 %v8701_v21  ;;  %v8702_v48 = vunpack.i.l.bf16 %v8701_v21  ;;  %v3364_v34 = vsel %vm15055_vm1, %v3322_v6, %v8693_v1 }
 0x217   :  { %v8698_v4 = vunpack.i.h.bf16 %v8696_v5  ;;  %v8697_v12 = vunpack.i.l.bf16 %v8696_v5  ;;  %8990 = vrot.lane.b32.xlu1 %v8989_v2, %s9681_s14  ;;  %v3321_v2 = vsel %vm15049_vm8, %v11738_v44, %v8682_v60  ;;  %v13104_v44 = vld [vmem:[%s14815_s0 + $0x247] ss:$2 sm:$0xff]  ;;  %vm15058_vm8 = vmmov %vm15053_vm10 }
 0x218   :  { %8985 = vrot.lane.b32.xlu0 %v8984_v61, %s9688_s27  ;;  %v3363_v42 = vsel %vm15050_vm0, %v3321_v2, %v8692_v19  ;;  %v3406_v39 = vsel %vm15056_vm6, %v3364_v34, %v8703_v3  ;;  %v9024_v61 = vpack.i.bf16 %v13104_v44, %v6963_v40  ;;  %vm15059_vm0 = vmmov %vm15054_vm9 }
 0x219   :  { %v3697_v35 = vsel %vm3678_vm12, %v3655_v26, %v8697_v12  ;;  %v3698_v30 = vsel %vm3678_vm12, %v3656_v54, %v8698_v4  ;;  %v8711_v50 = vpop.permute.xlu1 %8710  ;;  %v3405_v58 = vsel %vm15051_vm2, %v3363_v42, %v8702_v48  ;;  %vm15060_vm2 = vmmov %vm15055_vm1 }
 0x21a   :  { %v8706_v16 = vpop.permute.xlu0 %8705  ;;  %v3729_v47 = vpack.c.bf16 %v3698_v30, %v3697_v35  ;;  %v8713_v29 = vunpack.i.h.bf16 %v8711_v50  ;;  %v8712_v17 = vunpack.i.l.bf16 %v8711_v50  ;;  %v9034_v30 = vpack.i.bf16 %v7008_v13, %v7007_v57 }
 0x21b   :  { %9000 = vrot.lane.b32.xlu1 %v8999_v18, %s9680_s11  ;;  %v8708_v14 = vunpack.i.h.bf16 %v8706_v16  ;;  %v8707_v52 = vunpack.i.l.bf16 %v8706_v16  ;;  %v7049_v16 = vld [vmem:[%s14815_s0 + $0x249] ss:$2 sm:$0xff] }
 0x21c   :  { %8995 = vrot.lane.b32.xlu0 %v8994_v59, %s9689_s13  ;;  %7478 = vmatmul.mubr.msk.bf16.gmra.mrb[36].mxu0 %vm3773_vm5, %v3729_v47  ;;  %v13136_v59 = vld [vmem:[%s14815_s0 + $0x254] ss:$2 sm:$0xff]  ;;  %v9044_v48 = vpack.i.bf16 %v7049_v16, %v7048_v7 }
 0x21d   :  { %v8721_v23 = vpop.permute.xlu1 %8720  ;;  %7481 = vmatprep.mubr.msk.bf16.mxu0 %vm9686_vm4, %v15002_v49  ;;  %v3447_v28 = vsel %vm15052_vm7, %v3405_v58, %v8707_v52  ;;  %v3448_v22 = vsel %vm15057_vm3, %v3406_v39, %v8708_v14  ;;  %v9049_v60 = vpack.i.bf16 %v13136_v59, %v13085_v41  ;;  %v13176_v58 = vld [vmem:[%s14815_s0 + $0x266] ss:$2 sm:$0xff]  ;;  %vm15061_vm7 = vmmov %vm15056_vm6 }
 0x21e   :  { %v8716_v27 = vpop.permute.xlu0 %8715  ;;  %v8723_v63 = vunpack.i.h.bf16 %v8721_v23  ;;  %v8722_v5 = vunpack.i.l.bf16 %v8721_v23  ;;  %v3489_v18 = vsel %vm3468_vm11, %v3447_v28, %v8712_v17  ;;  %v3490_v43 = vsel %vm3468_vm11, %v3448_v22, %v8713_v29  ;;  %v13188_v28 = vld [vmem:[%s14815_s0 + $0x264] ss:$2 sm:$0xff] }
 0x21f   :  { %9010 = vrot.lane.b32.xlu1 %v9009_v24, %s9682_s21  ;;  %v8718_v31 = vunpack.i.h.bf16 %v8716_v27  ;;  %v8717_v37 = vunpack.i.l.bf16 %v8716_v27  ;;  %v6924_v27 = vld [vmem:[%s14815_s0 + $0x256] ss:$2 sm:$0xff] }
 0x220   :  { %9005 = vrot.lane.b32.xlu0 %v9004_v9, %s9683_s24  ;;  %v7010_v7 = vld [vmem:[%s14815_s0 + $0x268] ss:$2 sm:$0xff] }
 0x221   :  { %v13097_v46 = vpop.permute.xlu1 %8730  ;;  %v3531_v4 = vsel %vm15053_vm10, %v3489_v18, %v8717_v37  ;;  %v3532_v12 = vsel %vm15058_vm8, %v3490_v43, %v8718_v31  ;;  %v9069_v37 = vpack.i.bf16 %v13176_v58, %v6924_v27  ;;  %vm15062_vm10 = vmmov %vm15057_vm3 }
 0x222   :  { %v8726_v53 = vpop.permute.xlu0 %8725  ;;  %v3573_v47 = vsel %vm3552_vm13, %v3531_v4, %v8722_v5  ;;  %v3574_v24 = vsel %vm3552_vm13, %v3532_v12, %v8723_v63  ;;  %v8733_v42 = vunpack.i.h.bf16 %v13097_v46  ;;  %v8732_v34 = vunpack.i.l.bf16 %v13097_v46  ;;  %v6965_v46 = vld [vmem:[%s14815_s0 + $0x257] ss:$2 sm:$0xff] }
 0x223   :  { %9020 = vrot.lane.b32.xlu1 %v9019_v62, %s9684_s8  ;;  %v8728_v26 = vunpack.i.h.bf16 %v8726_v53  ;;  %v8727_v54 = vunpack.i.l.bf16 %v8726_v53  ;;  %v13163_v62 = vld [vmem:[%s14815_s0 + $0x255] ss:$2 sm:$0xff]  ;;  %v9079_v5 = vpack.i.bf16 %v13188_v28, %v13136_v59  ;;  %v13214_v4 = vld [vmem:[%s14815_s0 + $0x265] ss:$2 sm:$0xff] }
 0x224   :  { %9015 = vrot.lane.b32.xlu0 %v9014_v32, %s9685_s10  ;;  %v9059_v32 = vpack.i.bf16 %v6924_v27, %v13073_v20 }
 0x225   :  { %v13118_v21 = vpop.permute.xlu1 %8740  ;;  %v3615_v9 = vsel %vm3594_vm14, %v3573_v47, %v8727_v54  ;;  %v3616_v1 = vsel %vm3594_vm14, %v3574_v24, %v8728_v26 }
 0x226   :  { %v8736_v25 = vpop.permute.xlu0 %8735  ;;  %v8743_v39 = vunpack.i.h.bf16 %v13118_v21  ;;  %v8742_v20 = vunpack.i.l.bf16 %v13118_v21  ;;  %v3324_v21 = vsel %vm15059_vm0, %v11728_v11, %v8733_v42  ;;  %vm15064_vm0 = vmmov %vm15056_vm6 }
 0x227   :  { %9030 = vrot.lane.b32.xlu1 %v9029_v0, %s9678_s30  ;;  %v8738_v51 = vunpack.i.h.bf16 %v8736_v25  ;;  %v8737_v35 = vunpack.i.l.bf16 %v8736_v25  ;;  %v9054_v0 = vpack.i.bf16 %v13163_v62, %v13111_v10 }
 0x228   :  { %9025 = vrot.lane.b32.xlu0 %v9024_v61, %s9687_s18  ;;  %v3323_v61 = vsel %vm15054_vm9, %v11724_v45, %v8732_v34  ;;  %v3366_v13 = vsel %vm15060_vm2, %v3324_v21, %v8743_v39  ;;  %v13207_v45 = vld [vmem:[%s14815_s0 + $0x267] ss:$2 sm:$0xff]  ;;  %vm15063_vm9 = vmmov %vm15058_vm8 }
 0x229   :  { %v8751_v50 = vpop.permute.xlu1 %8750  ;;  %v3657_v40 = vsel %vm3636_vm15, %v3615_v9, %v8737_v35  ;;  %v3658_v3 = vsel %vm3636_vm15, %v3616_v1, %v8738_v51  ;;  %v3365_v57 = vsel %vm15055_vm1, %v3323_v61, %v8742_v20  ;;  %v9074_v51 = vpack.i.bf16 %v13207_v45, %v6965_v46 }
 0x22a   :  { %v8746_v55 = vpop.permute.xlu0 %8745  ;;  %v8753_v17 = vunpack.i.h.bf16 %v8751_v50  ;;  %v8752_v53 = vunpack.i.l.bf16 %v8751_v50  ;;  %v7009_v50 = vld [vmem:[%s14815_s0 + $0x258] ss:$2 sm:$0xff]  ;;  %vm15065_vm1 = vcmask 195584  }
 0x22b   :  { %v8748_v19 = vunpack.i.h.bf16 %v8746_v55  ;;  %v8747_v23 = vunpack.i.l.bf16 %v8746_v55  ;;  %9040 = vrot.lane.b32.xlu1 %v9039_v15, %s9681_s14  ;;  %v9064_v15 = vpack.i.bf16 %v6965_v46, %v13104_v44  ;;  %vm15066_vm2 = vmmov %vm15065_vm1 }
 0x22c   :  { %9035 = vrot.lane.b32.xlu0 %v9034_v30, %s9688_s27  ;;  %v3407_v11 = vsel %vm15056_vm6, %v3365_v57, %v8752_v53  ;;  %v3408_v18 = vsel %vm15061_vm7, %v3366_v13, %v8753_v17  ;;  %v9089_v30 = vpack.i.bf16 %v13214_v4, %v13163_v62  ;;  %v6882_v57 = vld [vmem:[%s14815_s0 + $0x275] ss:$2 sm:$0xff]  ;;  %vm15067_vm6 = vcmask 228352  }
 0x22d   :  { %v3699_v41 = vsel %vm3678_vm12, %v3657_v40, %v8747_v23  ;;  %v3700_v14 = vsel %vm3678_vm12, %v3658_v3, %v8748_v19  ;;  %v8761_v52 = vpop.permute.xlu1 %8760  ;;  %v6841_v3 = vld [vmem:[%s14815_s0 + $0x274] ss:$2 sm:$0xff]  ;;  %vm15068_vm7 = vmmov %vm15067_vm6 }
 0x22e   :  { %v8756_v2 = vpop.permute.xlu0 %8755  ;;  %v3730_v6 = vpack.c.bf16 %v3700_v14, %v3699_v41  ;;  %v8763_v43 = vunpack.i.h.bf16 %v8761_v52  ;;  %v8762_v44 = vunpack.i.l.bf16 %v8761_v52  ;;  %v9084_v52 = vpack.i.bf16 %v7010_v7, %v7009_v50 }
 0x22f   :  { %9050 = vrot.lane.b32.xlu1 %v9049_v60, %s9680_s11  ;;  %v8758_v22 = vunpack.i.h.bf16 %v8756_v2  ;;  %v8757_v31 = vunpack.i.l.bf16 %v8756_v2 }
 0x230   :  { %9045 = vrot.lane.b32.xlu0 %v9044_v48, %s9689_s13  ;;  %7482 = vmatmul.mubr.msk.bf16.gmra.mrb[40].mxu0 %vm3773_vm5, %v3730_v6  ;;  %v7050_v6 = vld [vmem:[%s14815_s0 + $0x259] ss:$2 sm:$0xff] }
 0x231   :  { %v8771_v29 = vpop.permute.xlu1 %8770  ;;  %7485 = vmatprep.mubr.msk.bf16.mxu0 %vm9686_vm4, %v15002_v49  ;;  %v3449_v12 = vsel %vm15057_vm3, %v3407_v11, %v8757_v31  ;;  %v3450_v26 = vsel %vm15062_vm10, %v3408_v18, %v8758_v22  ;;  %vm15069_vm3 = vmmov %vm15064_vm0 }
 0x232   :  { %v8766_v10 = vpop.permute.xlu0 %8765  ;;  %v8773_v16 = vunpack.i.h.bf16 %v8771_v29  ;;  %v8772_v47 = vunpack.i.l.bf16 %v8771_v29  ;;  %v3491_v24 = vsel %vm3468_vm11, %v3449_v12, %v8762_v44  ;;  %v3492_v55 = vsel %vm3468_vm11, %v3450_v26, %v8763_v43  ;;  %vm15070_vm10 = vmmov %vm15064_vm0 }
 0x233   :  { %9060 = vrot.lane.b32.xlu1 %v9059_v32, %s9682_s21  ;;  %v8768_v54 = vunpack.i.h.bf16 %v8766_v10  ;;  %v8767_v59 = vunpack.i.l.bf16 %v8766_v10  ;;  %v7051_v32 = vld [vmem:[%s14815_s0 + $0x269] ss:$2 sm:$0xff]  ;;  %v9099_v29 = vpack.i.bf16 %v6841_v3, %v13188_v28  ;;  %v6926_v28 = vld [vmem:[%s14815_s0 + $0x276] ss:$2 sm:$0xff]  ;;  %v9104_v44 = vpack.i.bf16 %v6882_v57, %v13214_v4 }
 0x234   :  { %9055 = vrot.lane.b32.xlu0 %v9054_v0, %s9683_s24  ;;  %v9109_v11 = vpack.i.bf16 %v6926_v28, %v13176_v58  ;;  %v6967_v58 = vld [vmem:[%s14815_s0 + $0x277] ss:$2 sm:$0xff]  ;;  %v7011_v4 = vld [vmem:[%s14815_s0 + $0x278] ss:$2 sm:$0xff] }
 0x235   :  { %v13200_v63 = vpop.permute.xlu1 %8780  ;;  %v3533_v9 = vsel %vm15058_vm8, %v3491_v24, %v8767_v59  ;;  %v3534_v1 = vsel %vm15063_vm9, %v3492_v55, %v8768_v54  ;;  %v9114_v24 = vpack.i.bf16 %v6967_v58, %v13207_v45  ;;  %vm15071_vm8 = vcmask 293888  }
 0x236   :  { %v8776_v25 = vpop.permute.xlu0 %8775  ;;  %v3575_v42 = vsel %vm3552_vm13, %v3533_v9, %v8772_v47  ;;  %v3576_v34 = vsel %vm3552_vm13, %v3534_v1, %v8773_v16  ;;  %v8783_v18 = vunpack.i.h.bf16 %v13200_v63  ;;  %v8782_v43 = vunpack.i.l.bf16 %v13200_v63  ;;  %v6968_v1 = vld [vmem:[%s14815_s0 + $0x287] ss:$2 sm:$0xff]  ;;  %vm15072_vm9 = vmmov %vm15071_vm8 }
 0x237   :  { %9070 = vrot.lane.b32.xlu1 %v9069_v37, %s9684_s8  ;;  %v8778_v19 = vunpack.i.h.bf16 %v8776_v25  ;;  %v8777_v23 = vunpack.i.l.bf16 %v8776_v25  ;;  %v9094_v37 = vpack.i.bf16 %v7051_v32, %v7050_v6  ;;  %v6927_v25 = vld [vmem:[%s14815_s0 + $0x286] ss:$2 sm:$0xff] }
 0x238   :  { %9065 = vrot.lane.b32.xlu0 %v9064_v15, %s9685_s10  ;;  %v9119_v7 = vpack.i.bf16 %v6927_v25, %v6926_v28  ;;  %v3325_v16 = vsel %vm15065_vm1, %v11766_v56, %v8782_v43  ;;  %v3326_v47 = vsel %vm15066_vm2, %v11770_v8, %v8783_v18  ;;  %vm4111_vm2 = vcmask 261122  }
 0x239   :  { %v13221_v35 = vpop.permute.xlu1 %8790  ;;  %v3617_v46 = vsel %vm3594_vm14, %v3575_v42, %v8777_v23  ;;  %v3618_v17 = vsel %vm3594_vm14, %v3576_v34, %v8778_v19 }
 0x23a   :  { %v8786_v60 = vpop.permute.xlu0 %8785  ;;  %v8793_v12 = vunpack.i.h.bf16 %v13221_v35  ;;  %v8792_v26 = vunpack.i.l.bf16 %v13221_v35 }
 0x23b   :  { %v3871_v40 = vpop.f32.mrb[0].mxu0  ;;  %9080 = vrot.lane.b32.xlu1 %v9079_v5, %s9678_s30  ;;  %v8788_v48 = vunpack.i.h.bf16 %v8786_v60  ;;  %v8787_v27 = vunpack.i.l.bf16 %v8786_v60 }
 0x23c   :  { %v4024_v41 = vmul.f32 0.2, %v3871_v40  ;;  %9075 = vrot.lane.b32.xlu0 %v9074_v51, %s9687_s18  ;;  %v7443_v14 = vpop.f32.mrb[1].mxu0  ;;  %v3367_v55 = vsel %vm15067_vm6, %v3325_v16, %v8792_v26  ;;  %v3368_v60 = vsel %vm15068_vm7, %v3326_v47, %v8793_v12  ;;  %vm14870_vm6 = vcmask 254976  }
 0x23d   :  { %v3874_v62 = vpop.f32.mrb[2].mxu0  ;;  %v8801_v2 = vpop.permute.xlu1 %8800  ;;  %v3659_v22 = vsel %vm3636_vm15, %v3617_v46, %v8787_v27  ;;  %v3660_v31 = vsel %vm3636_vm15, %v3618_v17, %v8788_v48  ;;  %v9124_v14 = vpack.i.bf16 %v6968_v1, %v6967_v58  ;;  %vm15075_vm7 = vcmask 195584  }
 0x23e   :  { %v4052_v0 = vmax.f32 %v3871_v40, %v4024_v41  ;;  %v8796_v39 = vpop.permute.xlu0 %8795  ;;  %v7444_v20 = vpop.f32.mrb[3].mxu0  ;;  %v8803_v63 = vunpack.i.h.bf16 %v8801_v2  ;;  %v8802_v59 = vunpack.i.l.bf16 %v8801_v2  ;;  %v7052_v62 = vld [vmem:[%s14815_s0 + $0x279] ss:$2 sm:$0xff]  ;;  %v7053_v2 = vld [vmem:[%s14815_s0 + $0x289] ss:$2 sm:$0xff] }
 0x23f   :  { %v8798_v53 = vunpack.i.h.bf16 %v8796_v39  ;;  %v8797_v10 = vunpack.i.l.bf16 %v8796_v39  ;;  %9090 = vrot.lane.b32.xlu1 %v9089_v30, %s9681_s14  ;;  %v7012_v30 = vld [vmem:[%s14815_s0 + $0x288] ss:$2 sm:$0xff] }
 0x240   :  { %4110 = vst.msk [vmem:[#allocation2 + $0xb] sm:$0xff] %vm15064_vm0, %v4052_v0  ;;  %9085 = vrot.lane.b32.xlu0 %v9084_v52, %s9688_s27  ;;  %v9129_v19 = vpack.i.bf16 %v7012_v30, %v7011_v4  ;;  %v3409_v56 = vsel %vm15069_vm3, %v3367_v55, %v8802_v59  ;;  %v3410_v23 = vsel %vm15070_vm10, %v3368_v60, %v8803_v63  ;;  %vm15073_vm0 = vcmask 359424   ;;  %vm15076_vm3 = vmmov %vm15075_vm7 }
 0x241   :  { %v3701_v61 = vsel %vm3678_vm12, %v3659_v22, %v8797_v10  ;;  %v3702_v21 = vsel %vm3678_vm12, %v3660_v31, %v8798_v53  ;;  %v8811_v15 = vpop.permute.xlu1 %8810  ;;  %vm15074_vm1 = vmmov %vm15073_vm0  ;;  %vm15077_vm10 = vcmask 228352  }
 0x242   :  { %v8806_v13 = vpop.permute.xlu0 %8805  ;;  %v3731_v5 = vpack.c.bf16 %v3702_v21, %v3701_v61  ;;  %v8813_v8 = vunpack.i.h.bf16 %v8811_v15  ;;  %v8812_v40 = vunpack.i.l.bf16 %v8811_v15 }
 0x243   :  { %9100 = vrot.lane.b32.xlu1 %v9099_v29, %s9680_s11  ;;  %v8808_v35 = vunpack.i.h.bf16 %v8806_v13  ;;  %v8807_v50 = vunpack.i.l.bf16 %v8806_v13 }
 0x244   :  { %9095 = vrot.lane.b32.xlu0 %v9094_v37, %s9689_s13  ;;  %7486 = vmatmul.mubr.msk.bf16.gmra.mrb[44].mxu0 %vm3773_vm5, %v3731_v5  ;;  %v9134_v37 = vpack.i.bf16 %v7053_v2, %v7052_v62 }
 0x245   :  { %v8821_v54 = vpop.permute.xlu1 %8820  ;;  %7489 = vmatprep.mubr.msk.bf16.mxu0 %vm9686_vm4, %v15002_v49  ;;  %v3451_v45 = vsel %vm15071_vm8, %v3409_v56, %v8807_v50  ;;  %v3452_v48 = vsel %vm15072_vm9, %v3410_v23, %v8808_v35  ;;  %vm15078_vm8 = vmmov %vm15077_vm10  ;;  %vm15079_vm9 = vcmask 261120  }
 0x246   :  { %v8816_v51 = vpop.permute.xlu0 %8815  ;;  %v8823_v6 = vunpack.i.h.bf16 %v8821_v54  ;;  %v8822_v32 = vunpack.i.l.bf16 %v8821_v54  ;;  %v3493_v42 = vsel %vm3468_vm11, %v3451_v45, %v8812_v40  ;;  %v3494_v34 = vsel %vm3468_vm11, %v3452_v48, %v8813_v8 }
 0x247   :  { %9110 = vrot.lane.b32.xlu1 %v9109_v11, %s9682_s21  ;;  %v8818_v27 = vunpack.i.h.bf16 %v8816_v51  ;;  %v8817_v41 = vunpack.i.l.bf16 %v8816_v51 }
 0x248   :  { %9105 = vrot.lane.b32.xlu0 %v9104_v44, %s9683_s24 }
 0x249   :  { %v13296_v9 = vpop.permute.xlu1 %8830  ;;  %v3535_v39 = vsel %vm15073_vm0, %v3493_v42, %v8817_v41  ;;  %v3536_v20 = vsel %vm15074_vm1, %v3494_v34, %v8818_v27  ;;  %vm15080_vm0 = vmmov %vm15079_vm9  ;;  %vm15081_vm1 = vcmask 293888  }
 0x24a   :  { %v8826_v3 = vpop.permute.xlu0 %8825  ;;  %v3577_v21 = vsel %vm3552_vm13, %v3535_v39, %v8822_v32  ;;  %v3578_v15 = vsel %vm3552_vm13, %v3536_v20, %v8823_v6  ;;  %v8833_v30 = vunpack.i.h.bf16 %v13296_v9  ;;  %v8832_v35 = vunpack.i.l.bf16 %v13296_v9 }
 0x24b   :  { %9120 = vrot.lane.b32.xlu1 %v9119_v7, %s9684_s8  ;;  %v8828_v29 = vunpack.i.h.bf16 %v8826_v3  ;;  %v8827_v46 = vunpack.i.l.bf16 %v8826_v3 }
 0x24c   :  { %9115 = vrot.lane.b32.xlu0 %v9114_v24, %s9685_s10  ;;  %v3328_v56 = vsel %vm15076_vm3, %v11758_v38, %v8833_v30  ;;  %v9638_v30 = vld [vmem:[%s14817_s2 + $0x8] sm:$0xff]  }
 0x24d   :  { %v8841_v52 = vpop.permute.xlu1 %8840  ;;  %v3619_v18 = vsel %vm3594_vm14, %v3577_v21, %v8827_v46  ;;  %v3620_v43 = vsel %vm3594_vm14, %v3578_v15, %v8828_v29 }
 0x24e   :  { %v8836_v0 = vpop.permute.xlu0 %8835  ;;  %v8843_v50 = vunpack.i.h.bf16 %v8841_v52  ;;  %v8842_v7 = vunpack.i.l.bf16 %v8841_v52 }
 0x24f   :  { %v3878_v17 = vpop.f32.mrb[4].mxu0  ;;  %9130 = vrot.lane.b32.xlu1 %v9129_v19, %s9688_s27  ;;  %v8838_v53 = vunpack.i.h.bf16 %v8836_v0  ;;  %v8837_v10 = vunpack.i.l.bf16 %v8836_v0  ;;  %v3327_v19 = vsel %vm15075_vm7, %v11754_v33, %v8832_v35  ;;  %vm15083_vm7 = vcmask 359424  }
 0x250   :  { %v4025_v22 = vmul.f32 0.2, %v3878_v17  ;;  %9125 = vrot.lane.b32.xlu0 %v9124_v14, %s9687_s18  ;;  %v7447_v31 = vpop.f32.mrb[5].mxu0  ;;  %v3369_v9 = vsel %vm15077_vm10, %v3327_v19, %v8842_v7  ;;  %v3370_v23 = vsel %vm15078_vm8, %v3328_v56, %v8843_v50  ;;  %vm15084_vm3 = vmmov %vm15083_vm7  ;;  %vm14873_vm10 = vcmask 257024   ;;  %v4170_v56 = vld [vmem:[#allocation2 + $0x1] ss:$2 sm:$0xff] }
 0x251   :  { %v3881_v28 = vpop.f32.mrb[6].mxu0  ;;  %v8851_v61 = vpop.permute.xlu1 %8850  ;;  %v3661_v12 = vsel %vm3636_vm15, %v3619_v18, %v8837_v10  ;;  %v3662_v26 = vsel %vm3636_vm15, %v3620_v43, %v8838_v53  ;;  %v9635_v43 = vld [vmem:[%s14817_s2 + $0x40] sm:$0xff]   ;;  %vm15085_vm8 = vcmask 195584  }
 0x252   :  { %v4053_v57 = vmax.f32 %v3878_v17, %v4025_v22  ;;  %v4026_v13 = vmul.f32 0.2, %v3881_v28  ;;  %v8846_v5 = vpop.permute.xlu0 %8845  ;;  %v7448_v11 = vpop.f32.mrb[7].mxu0  ;;  %v8853_v47 = vunpack.i.h.bf16 %v8851_v61  ;;  %v8852_v24 = vunpack.i.l.bf16 %v8851_v61  ;;  %7141 = vmatprep.subr.bf16.mxu1 %v9635_v43 }
 0x253   :  { %v8848_v44 = vunpack.i.h.bf16 %v8846_v5  ;;  %v8847_v25 = vunpack.i.l.bf16 %v8846_v5 }
 0x254   :  { %4112 = vst.msk [vmem:[#allocation2 + $0x13] sm:$0xfc] %vm4111_vm2, %v4053_v57  ;;  %v4054_v54 = vmax.f32 %v3881_v28, %v4026_v13  ;;  %9135 = vrot.lane.b32.xlu0 %v9134_v37, %s9689_s13  ;;  %v3411_v40 = vsel %vm15079_vm9, %v3369_v9, %v8852_v24  ;;  %v3412_v3 = vsel %vm15080_vm0, %v3370_v23, %v8853_v47  ;;  %vm15087_vm9 = vmmov %vm15085_vm8  ;;  %vm15088_vm0 = vcmask 228352  }
 0x255   :  { %v3703_v58 = vsel %vm3678_vm12, %v3661_v12, %v8847_v25  ;;  %v3704_v63 = vsel %vm3678_vm12, %v3662_v26, %v8848_v44  ;;  %v8861_v59 = vpop.permute.xlu1 %8860  ;;  %v9636_v26 = vld [vmem:[%s14817_s2] sm:$0xff]  }
 0x256   :  { %4114 = vst.msk [vmem:[#allocation2 + $0x1b] sm:$0x3] %vm14870_vm6, %v4054_v54  ;;  %v8856_v51 = vpop.permute.xlu0 %8855  ;;  %v3732_v4 = vpack.c.bf16 %v3704_v63, %v3703_v58  ;;  %v8863_v45 = vunpack.i.h.bf16 %v8861_v59  ;;  %v8862_v48 = vunpack.i.l.bf16 %v8861_v59  ;;  %vm15082_vm6 = vmmov %vm15081_vm1  ;;  %7142 = vmatpush3.bf16.msra.mxu1 %v9636_v26 }
 0x257   :  { %v8858_v60 = vunpack.i.h.bf16 %v8856_v51  ;;  %v8857_v1 = vunpack.i.l.bf16 %v8856_v51 }
 0x258   :  { %7490 = vmatmul.mubr.msk.bf16.gmra.mrb[48].mxu0 %vm3773_vm5, %v3732_v4  ;;  %v9637_v4 = vld [vmem:[%s14817_s2 + $0x48] sm:$0xff]  }
 0x259   :  { %v8871_v16 = vpop.permute.xlu1 %8870  ;;  %7493 = vmatprep.mubr.msk.bf16.mxu0 %vm9686_vm4, %v15002_v49  ;;  %v3453_v41 = vsel %vm15081_vm1, %v3411_v40, %v8857_v1  ;;  %v3454_v33 = vsel %vm15082_vm6, %v3412_v3, %v8858_v60  ;;  %vm14874_vm6 = vcmask 261124   ;;  %7143 = vmatprep.subr.bf16.mxu1 %v9637_v4  ;;  %v15086_v40 = vld [vmem:[#allocation7_spill] sm:$0xff]  ;;  %vm15089_vm1 = vmmov %vm15088_vm0 }
 0x25a   :  { %v8866_v55 = vpop.permute.xlu0 %8865  ;;  %v8873_v62 = vunpack.i.h.bf16 %v8871_v16  ;;  %v8872_v2 = vunpack.i.l.bf16 %v8871_v16  ;;  %v3495_v6 = vsel %vm3468_vm11, %v3453_v41, %v8862_v48  ;;  %v3496_v32 = vsel %vm3468_vm11, %v3454_v33, %v8863_v45  ;;  %7144 = vmatpush3.bf16.msra.mxu1 %v9638_v30  ;;  %v9639_v48 = vld [vmem:[%s14817_s2 + $0x50] sm:$0xff]  }
 0x25b   :  { %v8868_v14 = vunpack.i.h.bf16 %v8866_v55  ;;  %v8867_v52 = vunpack.i.l.bf16 %v8866_v55  ;;  %7145 = vmatprep.subr.bf16.mxu1 %v9639_v48 }
 0x25d   :  { %v13341_v8 = vpop.permute.xlu1 %8880  ;;  %v3537_v34 = vsel %vm15083_vm7, %v3495_v6, %v8867_v52  ;;  %v3538_v0 = vsel %vm15084_vm3, %v3496_v32, %v8868_v14  ;;  %vm15090_vm7 = vcmask 261120   ;;  %v4196_v6 = vld [vmem:[#allocation2 + $0x2] ss:$2 sm:$0xff]  ;;  %v9641_v32 = vld [vmem:[%s14817_s2 + $0x58] sm:$0xff]  }
 0x25e   :  { %v8876_v27 = vpop.permute.xlu0 %8875  ;;  %v3579_v37 = vsel %vm3552_vm13, %v3537_v34, %v8872_v2  ;;  %v3580_v28 = vsel %vm3552_vm13, %v3538_v0, %v8873_v62  ;;  %v8883_v35 = vunpack.i.h.bf16 %v13341_v8  ;;  %v8882_v50 = vunpack.i.l.bf16 %v13341_v8  ;;  %vm15091_vm3 = vmmov %vm15090_vm7 }
 0x25f   :  { %v8878_v39 = vunpack.i.h.bf16 %v8876_v27  ;;  %v8877_v20 = vunpack.i.l.bf16 %v8876_v27  ;;  %v9640_v27 = vld [vmem:[%s14817_s2 + $0x10] sm:$0xff]  }
 0x260   :  { %v3329_v8 = vsel %vm15085_vm8, %v11797_v36, %v8882_v50  ;;  %v3330_v3 = vsel %vm15087_vm9, %v15086_v40, %v8883_v35  ;;  %vm15092_vm8 = vcmask 293888   ;;  %7146 = vmatpush3.bf16.msra.mxu1 %v9640_v27  ;;  %v9646_v50 = vld [vmem:[%s14817_s2 + $0x28] sm:$0xff]  }
 0x261   :  { %v13347_v38 = vpop.permute.xlu1 %8890  ;;  %v3621_v13 = vsel %vm3594_vm14, %v3579_v37, %v8877_v20  ;;  %v3622_v5 = vsel %vm3594_vm14, %v3580_v28, %v8878_v39  ;;  %vm15093_vm9 = vmmov %vm15092_vm8  ;;  %7147 = vmatprep.subr.bf16.mxu1 %v9641_v32 }
 0x262   :  { %v8886_v42 = vpop.permute.xlu0 %8885  ;;  %v8893_v7 = vunpack.i.h.bf16 %v13347_v38  ;;  %v8892_v16 = vunpack.i.l.bf16 %v13347_v38 }
 0x263   :  { %v3886_v29 = vpop.f32.mrb[8].mxu0  ;;  %v8888_v46 = vunpack.i.h.bf16 %v8886_v42  ;;  %v8887_v17 = vunpack.i.l.bf16 %v8886_v42  ;;  %v9642_v42 = vld [vmem:[%s14817_s2 + $0x18] sm:$0xff]  }
 0x264   :  { %v4027_v53 = vmul.f32 0.2, %v3886_v29  ;;  %v7451_v10 = vpop.f32.mrb[9].mxu0  ;;  %v3371_v41 = vsel %vm15088_vm0, %v3329_v8, %v8892_v16  ;;  %v3372_v33 = vsel %vm15089_vm1, %v3330_v3, %v8893_v7  ;;  %vm15094_vm0 = vcmask 359424   ;;  %7148 = vmatpush3.bf16.msra.mxu1 %v9642_v42  ;;  %v9648_v8 = vld [vmem:[%s14817_s2 + $0x30] sm:$0xff]   ;;  %v15096_v42 = vld [vmem:[#allocation12_spill] sm:$0xff] }
 0x265   :  { %v3889_v22 = vpop.f32.mrb[10].mxu0  ;;  %v8901_v31 = vpop.permute.xlu1 %8900  ;;  %v3663_v44 = vsel %vm3636_vm15, %v3621_v13, %v8887_v17  ;;  %v3664_v25 = vsel %vm3636_vm15, %v3622_v5, %v8888_v46  ;;  %v9643_v46 = vld [vmem:[%s14817_s2 + $0x60] sm:$0xff]   ;;  %vm15095_vm1 = vmmov %vm15094_vm0 }
 0x266   :  { %v4055_v61 = vmax.f32 %v3886_v29, %v4027_v53  ;;  %v4028_v21 = vmul.f32 0.2, %v3889_v22  ;;  %v8896_v15 = vpop.permute.xlu0 %8895  ;;  %v7452_v57 = vpop.f32.mrb[11].mxu0  ;;  %v8903_v24 = vunpack.i.h.bf16 %v8901_v31  ;;  %v8902_v55 = vunpack.i.l.bf16 %v8901_v31  ;;  %v4222_v5 = vld [vmem:[#allocation2 + $0x3] ss:$2 sm:$0xff]  ;;  %7149 = vmatprep.subr.bf16.mxu1 %v9643_v46 }
 0x267   :  { %v8898_v11 = vunpack.i.h.bf16 %v8896_v15  ;;  %v8897_v18 = vunpack.i.l.bf16 %v8896_v15 }
 0x268   :  { %4116 = vst.msk [vmem:[#allocation2 + $0x1b] sm:$0xf0] %vm14874_vm6, %v4055_v61  ;;  %v4056_v12 = vmax.f32 %v3889_v22, %v4028_v21  ;;  %v3413_v36 = vsel %vm15090_vm7, %v3371_v41, %v8902_v55  ;;  %v3414_v52 = vsel %vm15091_vm3, %v3372_v33, %v8903_v24  ;;  %vm14872_vm7 = vcmask 261126  }
 0x269   :  { %v3705_v54 = vsel %vm3678_vm12, %v3663_v44, %v8897_v18  ;;  %v3706_v58 = vsel %vm3678_vm12, %v3664_v25, %v8898_v11  ;;  %v8911_v63 = vpop.permute.xlu1 %8910  ;;  %v9644_v11 = vld [vmem:[%s14817_s2 + $0x20] sm:$0xff]   ;;  %vm14871_vm3 = vcmask 259072  }
 0x26a   :  { %4118 = vst.msk [vmem:[#allocation2 + $0x23] sm:$0xf] %vm14873_vm10, %v4056_v12  ;;  %v8906_v59 = vpop.permute.xlu0 %8905  ;;  %v3733_v51 = vpack.c.bf16 %v3706_v58, %v3705_v54  ;;  %v8913_v38 = vunpack.i.h.bf16 %v8911_v63  ;;  %v8912_v62 = vunpack.i.l.bf16 %v8911_v63  ;;  %v9645_v58 = vld [vmem:[%s14817_s2 + $0x68] sm:$0xff]   ;;  %7150 = vmatpush3.bf16.msra.mxu1 %v9644_v11  ;;  %vm15116_vm10 = vcmask 293888  }
 0x26b   :  { %v8908_v1 = vunpack.i.h.bf16 %v8906_v59  ;;  %v8907_v19 = vunpack.i.l.bf16 %v8906_v59  ;;  %7151 = vmatprep.subr.bf16.mxu1 %v9645_v58  ;;  %vm15117_vm6 = vmmov %vm15116_vm10 }
 0x26c   :  { %7494 = vmatmul.mubr.msk.bf16.gmra.mrb[52].mxu0 %vm3773_vm5, %v3733_v51 }
 0x26d   :  { %v13380_v47 = vpop.permute.xlu1 %8920  ;;  %7497 = vmatprep.mubr.msk.bf16.mxu0 %vm9686_vm4, %v15002_v49  ;;  %v3455_v34 = vsel %vm15092_vm8, %v3413_v36, %v8907_v19  ;;  %v3456_v0 = vsel %vm15093_vm9, %v3414_v52, %v8908_v1  ;;  %vm15097_vm8 = vcmask 195584  }
 0x26e   :  { %v8916_v60 = vpop.permute.xlu0 %8915  ;;  %v8923_v10 = vunpack.i.h.bf16 %v13380_v47  ;;  %v8922_v22 = vunpack.i.l.bf16 %v13380_v47  ;;  %v3497_v31 = vsel %vm3468_vm11, %v3455_v34, %v8912_v62  ;;  %v3498_v37 = vsel %vm3468_vm11, %v3456_v0, %v8913_v38  ;;  %7152 = vmatpush3.bf16.msra.mxu1 %v9646_v50  ;;  %v15098_v0 = vld [vmem:[#allocation8_spill] sm:$0xff]  ;;  %vm15099_vm9 = vmmov %vm15097_vm8 }
 0x26f   :  { %v4172_v9 = vld [vmem:[#allocation2 + $0x11] ss:$2 sm:$0xff]  ;;  %v4198_v23 = vld [vmem:[#allocation2 + $0x12] ss:$2 sm:$0xff]  ;;  %v8918_v39 = vunpack.i.h.bf16 %v8916_v60  ;;  %v8917_v20 = vunpack.i.l.bf16 %v8916_v60 }
 0x270   :  { %v9144_v45 = vpack.i.bf16 %v4172_v9, %v4170_v56  ;;  %v4224_v29 = vld [vmem:[#allocation2 + $0x13] ss:$2 sm:$0xff]  ;;  %v9154_v17 = vpack.i.bf16 %v4198_v23, %v4196_v6 }
 0x271   :  { %v13396_v14 = vpop.permute.xlu1 %8930  ;;  %v3539_v61 = vsel %vm15094_vm0, %v3497_v31, %v8917_v20  ;;  %v3540_v21 = vsel %vm15095_vm1, %v3498_v37, %v8918_v39  ;;  %v9164_v12 = vpack.i.bf16 %v4224_v29, %v4222_v5  ;;  %v9647_v23 = vld [vmem:[%s14817_s2 + $0x70] sm:$0xff]   ;;  %v9650_v29 = vld [vmem:[%s14817_s2 + $0x38] sm:$0xff]   ;;  %vm15100_vm0 = vcmask 228352  }
 0x272   :  { %v8926_v2 = vpop.permute.xlu0 %8925  ;;  %9145 = vrot.lane.b32.xlu0 %v9144_v45, %s9680_s11  ;;  %v3581_v63 = vsel %vm3552_vm13, %v3539_v61, %v8922_v22  ;;  %v3582_v59 = vsel %vm3552_vm13, %v3540_v21, %v8923_v10  ;;  %v8933_v45 = vunpack.i.h.bf16 %v13396_v14  ;;  %v8932_v48 = vunpack.i.l.bf16 %v13396_v14  ;;  %7153 = vmatprep.subr.bf16.mxu1 %v9647_v23  ;;  %v4274_v6 = vld [vmem:[#allocation2 + $0xb] ss:$2 sm:$0xff]  ;;  %vm15101_vm1 = vmmov %vm15100_vm0  ;;  %v4300_v5 = vld [vmem:[#allocation2 + $0xc] ss:$2 sm:$0xff] }
 0x273   :  { %v8928_v15 = vunpack.i.h.bf16 %v8926_v2  ;;  %v8927_v57 = vunpack.i.l.bf16 %v8926_v2  ;;  %7154 = vmatpush3.bf16.msra.mxu1 %v9648_v8  ;;  %v9649_v14 = vld [vmem:[%s14817_s2 + $0x78] sm:$0xff]  }
 0x274   :  { %v3331_v34 = vsel %vm15097_vm8, %v15096_v42, %v8932_v48  ;;  %v3332_v39 = vsel %vm15099_vm9, %v15098_v0, %v8933_v45  ;;  %7155 = vmatprep.subr.bf16.mxu1 %v9649_v14  ;;  %vm15104_vm8 = vcmask 293888  }
 0x275   :  { %v13412_v53 = vpop.permute.xlu1 %8940  ;;  %v3623_v7 = vsel %vm3594_vm14, %v3581_v63, %v8927_v57  ;;  %v3624_v16 = vsel %vm3594_vm14, %v3582_v59, %v8928_v15  ;;  %vm15105_vm9 = vmmov %vm15104_vm8 }
 0x276   :  { %v8936_v28 = vpop.permute.xlu0 %8935  ;;  %9155 = vrot.lane.b32.xlu0 %v9154_v17, %s9690_s28  ;;  %v8943_v27 = vunpack.i.h.bf16 %v13412_v53  ;;  %v8942_v41 = vunpack.i.l.bf16 %v13412_v53 }
 0x277   :  { %v3894_v13 = vpop.f32.mrb[12].mxu0  ;;  %v8938_v18 = vunpack.i.h.bf16 %v8936_v28  ;;  %v8937_v43 = vunpack.i.l.bf16 %v8936_v28  ;;  %7156 = vmatpush3.bf16.msra.mxu1 %v9650_v29 }
 0x278   :  { %v4029_v44 = vmul.f32 0.2, %v3894_v13  ;;  %v7455_v25 = vpop.f32.mrb[13].mxu0  ;;  %v3373_v46 = vsel %vm15100_vm0, %v3331_v34, %v8942_v41  ;;  %v3374_v17 = vsel %vm15101_vm1, %v3332_v39, %v8943_v27  ;;  %vm15108_vm0 = vcmask 261120  }
 0x279   :  { %v3897_v26 = vpop.f32.mrb[14].mxu0  ;;  %v8951_v54 = vpop.permute.xlu1 %8950  ;;  %v3665_v55 = vsel %vm3636_vm15, %v3623_v7, %v8937_v43  ;;  %v3666_v60 = vsel %vm3636_vm15, %v3624_v16, %v8938_v18  ;;  %vm15110_vm1 = vcmask 195584  }
 0x27a   :  { %v4057_v51 = vmax.f32 %v3894_v13, %v4029_v44  ;;  %v4030_v4 = vmul.f32 0.2, %v3897_v26  ;;  %v8946_v30 = vpop.permute.xlu0 %8945  ;;  %9165 = vrot.lane.b32.xlu0 %v9164_v12, %s9691_s12  ;;  %v7456_v35 = vpop.f32.mrb[15].mxu0  ;;  %v8953_v36 = vunpack.i.h.bf16 %v8951_v54  ;;  %v8952_v52 = vunpack.i.l.bf16 %v8951_v54 }
 0x27b   :  { %v8948_v47 = vunpack.i.h.bf16 %v8946_v30  ;;  %v8947_v24 = vunpack.i.l.bf16 %v8946_v30  ;;  %v4326_v30 = vld [vmem:[#allocation2 + $0xd] ss:$2 sm:$0xff] }
 0x27c   :  { %4120 = vst.msk [vmem:[#allocation2 + $0x23] sm:$0xc0] %vm14872_vm7, %v4057_v51  ;;  %v4058_v1 = vmax.f32 %v3897_v26, %v4030_v4 }
 0x27d   :  { %v3707_v19 = vsel %vm3678_vm12, %v3665_v55, %v8947_v24  ;;  %v3708_v56 = vsel %vm3678_vm12, %v3666_v60, %v8948_v47  ;;  %v8961_v9 = vpop.permute.xlu1 %8960 }
 0x27e   :  { %4122 = vst.msk [vmem:[#allocation2 + $0x2b] sm:$0x3f] %vm14871_vm3, %v4058_v1  ;;  %v8956_v40 = vpop.permute.xlu0 %8955  ;;  %v3734_v3 = vpack.c.bf16 %v3708_v56, %v3707_v19  ;;  %vm15102_vm3 = vcmask 261120   ;;  %v8963_v37 = vunpack.i.h.bf16 %v8961_v9  ;;  %v8962_v28 = vunpack.i.l.bf16 %v8961_v9 }
 0x27f   :  { %v8958_v62 = vunpack.i.h.bf16 %v8956_v40  ;;  %v8957_v2 = vunpack.i.l.bf16 %v8956_v40  ;;  %v3415_v22 = vsel %vm15102_vm3, %v3373_v46, %v8952_v52  ;;  %vm15103_vm7 = vmmov %vm15102_vm3  ;;  %v15111_v46 = vld [vmem:[#allocation11_spill] sm:$0xff] }
 0x280   :  { %7498 = vmatmul.mubr.msk.bf16.gmra.mrb[56].mxu0 %vm3773_vm5, %v3734_v3  ;;  %v3416_v31 = vsel %vm15103_vm7, %v3374_v17, %v8953_v36  ;;  %vm15106_vm7 = vcmask 359424  }
 0x281   :  { %v8971_v33 = vpop.permute.xlu1 %8970  ;;  %7501 = vmatprep.mubr.msk.bf16.mxu0 %vm9686_vm4, %v15002_v49  ;;  %v3457_v21 = vsel %vm15104_vm8, %v3415_v22, %v8957_v2  ;;  %v3458_v15 = vsel %vm15105_vm9, %v3416_v31, %v8958_v62  ;;  %vm15107_vm3 = vmmov %vm15106_vm7  ;;  %vm15113_vm9 = vcmask 228352  }
 0x282   :  { %v8966_v38 = vpop.permute.xlu0 %8965  ;;  %v8973_v44 = vunpack.i.h.bf16 %v8971_v33  ;;  %v8972_v25 = vunpack.i.l.bf16 %v8971_v33  ;;  %v3499_v12 = vsel %vm3468_vm11, %v3457_v21, %v8962_v28  ;;  %v3500_v26 = vsel %vm3468_vm11, %v3458_v15, %v8963_v37  ;;  %vm15112_vm8 = vmmov %vm15110_vm1 }
 0x283   :  { %v4276_v32 = vld [vmem:[#allocation2 + $0x1b] ss:$2 sm:$0xff]  ;;  %v4302_v10 = vld [vmem:[#allocation2 + $0x1c] ss:$2 sm:$0xff]  ;;  %v8968_v57 = vunpack.i.h.bf16 %v8966_v38  ;;  %v8967_v13 = vunpack.i.l.bf16 %v8966_v38 }
 0x284   :  { %v9139_v20 = vpack.i.bf16 %v4276_v32, %v4274_v6  ;;  %v9149_v18 = vpack.i.bf16 %v4302_v10, %v4300_v5 }
 0x285   :  { %v13466_v53 = vpop.permute.xlu1 %8980  ;;  %v4328_v11 = vld [vmem:[#allocation2 + $0x1d] ss:$2 sm:$0xff]  ;;  %v3541_v58 = vsel %vm15106_vm7, %v3499_v12, %v8967_v13  ;;  %v3542_v63 = vsel %vm15107_vm3, %v3500_v26, %v8968_v57  ;;  %vm15114_vm7 = vmmov %vm15113_vm9 }
 0x286   :  { %v8976_v61 = vpop.permute.xlu0 %8975  ;;  %9140 = vrot.lane.b32.xlu1 %v9139_v20, %s9680_s11  ;;  %v9159_v16 = vpack.i.bf16 %v4328_v11, %v4326_v30  ;;  %v3583_v55 = vsel %vm3552_vm13, %v3541_v58, %v8972_v25  ;;  %v3584_v60 = vsel %vm3552_vm13, %v3542_v63, %v8973_v44  ;;  %v8983_v38 = vunpack.i.h.bf16 %v13466_v53  ;;  %v15109_v20 = vld [vmem:[#allocation14_spill] sm:$0xff]  ;;  %vm15115_vm3 = vmmov %vm15108_vm0 }
 0x287   :  { %v8978_v59 = vunpack.i.h.bf16 %v8976_v61  ;;  %v8977_v51 = vunpack.i.l.bf16 %v8976_v61  ;;  %v8982_v62 = vunpack.i.l.bf16 %v13466_v53 }
 0x288   :  { %v3334_v17 = vsel %vm15112_vm8, %v15111_v46, %v8983_v38 }
 0x289   :  { %v8991_v43 = vpop.permute.xlu1 %8990  ;;  %v3625_v9 = vsel %vm3594_vm14, %v3583_v55, %v8977_v51  ;;  %v3626_v23 = vsel %vm3594_vm14, %v3584_v60, %v8978_v59  ;;  %v3333_v29 = vsel %vm15110_vm1, %v15109_v20, %v8982_v62  ;;  %vm15118_vm1 = vcmask 359424  }
 0x28a   :  { %v8986_v54 = vpop.permute.xlu0 %8985  ;;  %9150 = vrot.lane.b32.xlu1 %v9149_v18, %s9690_s28  ;;  %v8993_v2 = vunpack.i.h.bf16 %v8991_v43  ;;  %v8992_v6 = vunpack.i.l.bf16 %v8991_v43  ;;  %vm15119_vm8 = vmmov %vm15118_vm1 }
 0x28b   :  { %v3902_v4 = vpop.f32.mrb[16].mxu0  ;;  %v8988_v35 = vunpack.i.h.bf16 %v8986_v54  ;;  %v8987_v50 = vunpack.i.l.bf16 %v8986_v54 }
 0x28c   :  { %v7459_v7 = vpop.f32.mrb[17].mxu0  ;;  %v3375_v53 = vsel %vm15113_vm9, %v3333_v29, %v8992_v6  ;;  %v3376_v10 = vsel %vm15114_vm7, %v3334_v17, %v8993_v2  ;;  %vm15124_vm9 = vmmov %vm15114_vm7 }
 0x28d   :  { %v3904_v47 = vpop.f32.mrb[18].mxu0  ;;  %v9001_v24 = vpop.permute.xlu1 %9000  ;;  %v3667_v3 = vsel %vm3636_vm15, %v3625_v9, %v8987_v50  ;;  %v3668_v45 = vsel %vm3636_vm15, %v3626_v23, %v8988_v35 }
 0x28e   :  { %v4031_v1 = vmul.f32 0.2, %v3904_v47  ;;  %v8996_v19 = vpop.permute.xlu0 %8995  ;;  %9160 = vrot.lane.b32.xlu1 %v9159_v16, %s9691_s12  ;;  %v7460_v56 = vpop.f32.mrb[19].mxu0  ;;  %v9003_v14 = vunpack.i.h.bf16 %v9001_v24  ;;  %v9002_v42 = vunpack.i.l.bf16 %v9001_v24 }
 0x28f   :  { %v8998_v8 = vunpack.i.h.bf16 %v8996_v19  ;;  %v8997_v40 = vunpack.i.l.bf16 %v8996_v19 }
 0x290   :  { %v4059_v48 = vmax.f32 %v3904_v47, %v4031_v1  ;;  %v3417_v31 = vsel %vm15115_vm3, %v3375_v53, %v9002_v42  ;;  %v3418_v37 = vsel %vm15108_vm0, %v3376_v10, %v9003_v14  ;;  %vm15125_vm3 = vmmov %vm15108_vm0 }
 0x291   :  { %v3709_v27 = vsel %vm3678_vm12, %v3667_v3, %v8997_v40  ;;  %v3710_v41 = vsel %vm3678_vm12, %v3668_v45, %v8998_v8  ;;  %v9011_v33 = vpop.permute.xlu1 %9010 }
 0x292   :  { %4123 = vst.msk [vmem:[#allocation2 + $0x33] sm:$0xff] %vm15108_vm0, %v4059_v48  ;;  %v9006_v36 = vpop.permute.xlu0 %9005  ;;  %v3735_v52 = vpack.c.bf16 %v3710_v41, %v3709_v27  ;;  %v9013_v28 = vunpack.i.h.bf16 %v9011_v33  ;;  %v9012_v61 = vunpack.i.l.bf16 %v9011_v33 }
 0x293   :  { %v9008_v0 = vunpack.i.h.bf16 %v9006_v36  ;;  %v9007_v39 = vunpack.i.l.bf16 %v9006_v36 }
 0x294   :  { %7502 = vmatmul.mubr.msk.bf16.gmra.mrb[60].mxu0 %vm3773_vm5, %v3735_v52 }
 0x295   :  { %v9021_v32 = vpop.permute.xlu1 %9020  ;;  %7505 = vmatprep.mubr.msk.bf16.mxu0 %vm9686_vm4, %v15002_v49  ;;  %v3459_v15 = vsel %vm15116_vm10, %v3417_v31, %v9007_v39  ;;  %v3460_v57 = vsel %vm15117_vm6, %v3418_v37, %v9008_v0  ;;  %vm15121_vm6 = vcmask 195584   ;;  %v15122_v0 = vld [vmem:[#allocation15_spill] sm:$0xff] }
 0x296   :  { %v9016_v34 = vpop.permute.xlu0 %9015  ;;  %v9023_v18 = vunpack.i.h.bf16 %v9021_v32  ;;  %v9022_v43 = vunpack.i.l.bf16 %v9021_v32  ;;  %v3501_v44 = vsel %vm3468_vm11, %v3459_v15, %v9012_v61  ;;  %v3502_v25 = vsel %vm3468_vm11, %v3460_v57, %v9013_v28  ;;  %v15120_v32 = vld [vmem:[#allocation10_spill] sm:$0xff]  ;;  %vm15123_vm10 = vmmov %vm15121_vm6  ;;  %v4174_v57 = vld [vmem:[#allocation2 + $0x21] ss:$2 sm:$0xff] }
 0x297   :  { %v9018_v13 = vunpack.i.h.bf16 %v9016_v34  ;;  %v9017_v5 = vunpack.i.l.bf16 %v9016_v34 }
 0x299   :  { %v9031_v22 = vpop.permute.xlu1 %9030  ;;  %v3543_v26 = vsel %vm15118_vm1, %v3501_v44, %v9017_v5  ;;  %v3544_v54 = vsel %vm15119_vm8, %v3502_v25, %v9018_v13  ;;  %vm15126_vm1 = vcmask 293888  }
 0x29a   :  { %v9026_v21 = vpop.permute.xlu0 %9025  ;;  %v3585_v7 = vsel %vm3552_vm13, %v3543_v26, %v9022_v43  ;;  %v3586_v16 = vsel %vm3552_vm13, %v3544_v54, %v9023_v18  ;;  %v9032_v48 = vunpack.i.l.bf16 %v9031_v22  ;;  %v9033_v33 = vunpack.i.h.bf16 %v9031_v22  ;;  %vm15127_vm8 = vmmov %vm15126_vm1 }
 0x29b   :  { %v9028_v58 = vunpack.i.h.bf16 %v9026_v21  ;;  %v9027_v63 = vunpack.i.l.bf16 %v9026_v21 }
 0x29c   :  { %v3335_v14 = vsel %vm15121_vm6, %v15120_v32, %v9032_v48  ;;  %v3336_v39 = vsel %vm15123_vm10, %v15122_v0, %v9033_v33  ;;  %vm15128_vm6 = vcmask 359424  }
 0x29d   :  { %v9041_v11 = vpop.permute.xlu1 %9040  ;;  %v3627_v60 = vsel %vm3594_vm14, %v3585_v7, %v9027_v63  ;;  %v3628_v1 = vsel %vm3594_vm14, %v3586_v16, %v9028_v58  ;;  %vm15129_vm10 = vmmov %vm15128_vm6 }
 0x29e   :  { %v9036_v12 = vpop.permute.xlu0 %9035  ;;  %v9042_v36 = vunpack.i.l.bf16 %v9041_v11  ;;  %v9043_v52 = vunpack.i.h.bf16 %v9041_v11 }
 0x29f   :  { %v3909_v59 = vpop.f32.mrb[20].mxu0  ;;  %v9038_v51 = vunpack.i.h.bf16 %v9036_v12  ;;  %v9037_v4 = vunpack.i.l.bf16 %v9036_v12 }
 0x2a0   :  { %v7463_v30 = vpop.f32.mrb[21].mxu0  ;;  %v3377_v20 = vsel %vm15124_vm9, %v3335_v14, %v9042_v36  ;;  %v3378_v29 = vsel %vm15114_vm7, %v3336_v39, %v9043_v52  ;;  %v4200_v59 = vld [vmem:[#allocation2 + $0x22] ss:$2 sm:$0xff]  ;;  %vm15130_vm9 = vcmask 254976   ;;  %vm15132_vm7 = vcmask 195584  }
 0x2a1   :  { %v3911_v35 = vpop.f32.mrb[22].mxu0  ;;  %v9051_v50 = vpop.permute.xlu1 %9050  ;;  %v3669_v9 = vsel %vm3636_vm15, %v3627_v60, %v9037_v4  ;;  %v3670_v23 = vsel %vm3636_vm15, %v3628_v1, %v9038_v51  ;;  %v15133_v39 = vld [vmem:[#allocation16_spill] sm:$0xff] }
 0x2a2   :  { %v4032_v47 = vmul.f32 0.2, %v3911_v35  ;;  %v9046_v24 = vpop.permute.xlu0 %9045  ;;  %v7464_v55 = vpop.f32.mrb[23].mxu0  ;;  %v9052_v38 = vunpack.i.l.bf16 %v9051_v50  ;;  %v9053_v62 = vunpack.i.h.bf16 %v9051_v50 }
 0x2a3   :  { %v9048_v19 = vunpack.i.h.bf16 %v9046_v24  ;;  %v9047_v56 = vunpack.i.l.bf16 %v9046_v24  ;;  %v4226_v55 = vld [vmem:[#allocation2 + $0x23] ss:$2 sm:$0xff] }
 0x2a4   :  { %v4060_v8 = vmax.f32 %v3911_v35, %v4032_v47  ;;  %v3419_v46 = vsel %vm15125_vm3, %v3377_v20, %v9052_v38  ;;  %v3420_v53 = vsel %vm15108_vm0, %v3378_v29, %v9053_v62  ;;  %vm15134_vm3 = vmmov %vm15132_vm7  ;;  %vm15135_vm0 = vcmask 261124  }
 0x2a5   :  { %v3711_v40 = vsel %vm3678_vm12, %v3669_v9, %v9047_v56  ;;  %v3712_v3 = vsel %vm3678_vm12, %v3670_v23, %v9048_v19  ;;  %v9061_v45 = vpop.permute.xlu1 %9060 }
 0x2a6   :  { %4124 = vst.msk [vmem:[#allocation2 + $0x3b] sm:$0xfc] %vm4111_vm2, %v4060_v8  ;;  %v9056_v27 = vpop.permute.xlu0 %9055  ;;  %v3736_v41 = vpack.c.bf16 %v3712_v3, %v3711_v40  ;;  %v9062_v17 = vunpack.i.l.bf16 %v9061_v45  ;;  %v9063_v10 = vunpack.i.h.bf16 %v9061_v45 }
 0x2a7   :  { %v9057_v2 = vunpack.i.l.bf16 %v9056_v27  ;;  %v9058_v42 = vunpack.i.h.bf16 %v9056_v27 }
 0x2a8   :  { %7506 = vmatmul.mubr.msk.bf16.gmra.mrb[64].mxu0 %vm3773_vm5, %v3736_v41 }
 0x2a9   :  { %v9071_v6 = vpop.permute.xlu1 %9070  ;;  %7509 = vmatprep.mubr.msk.bf16.mxu0 %vm9686_vm4, %v15002_v49  ;;  %v3461_v22 = vsel %vm15126_vm1, %v3419_v46, %v9057_v2  ;;  %v3462_v61 = vsel %vm15127_vm8, %v3420_v53, %v9058_v42  ;;  %vm15136_vm1 = vcmask 228352  }
 0x2aa   :  { %v9066_v34 = vpop.permute.xlu0 %9065  ;;  %v9073_v5 = vunpack.i.h.bf16 %v9071_v6  ;;  %v9072_v11 = vunpack.i.l.bf16 %v9071_v6  ;;  %v3503_v18 = vsel %vm3468_vm11, %v3461_v22, %v9062_v17  ;;  %v3504_v44 = vsel %vm3468_vm11, %v3462_v61, %v9063_v10  ;;  %vm15137_vm8 = vmmov %vm15136_vm1 }
 0x2ab   :  { %v9067_v31 = vunpack.i.l.bf16 %v9066_v34  ;;  %v9068_v21 = vunpack.i.h.bf16 %v9066_v34  ;;  %v15131_v34 = vld [vmem:[#allocation17_spill] sm:$0xff] }
 0x2ad   :  { %v9081_v37 = vpop.permute.xlu1 %9080  ;;  %v4176_v28 = vld [vmem:[#allocation2 + $0x31] ss:$2 sm:$0xff]  ;;  %v4202_v43 = vld [vmem:[#allocation2 + $0x32] ss:$2 sm:$0xff]  ;;  %v3545_v25 = vsel %vm15128_vm6, %v3503_v18, %v9067_v31  ;;  %v3546_v54 = vsel %vm15129_vm10, %v3504_v44, %v9068_v21  ;;  %vm15138_vm6 = vcmask 261120  }
 0x2ae   :  { %v9076_v15 = vpop.permute.xlu0 %9075  ;;  %v13529_v13 = vpack.i.bf16 %v4176_v28, %v4174_v57  ;;  %v4228_v51 = vld [vmem:[#allocation2 + $0x33] ss:$2 sm:$0xff]  ;;  %v9184_v35 = vpack.i.bf16 %v4202_v43, %v4200_v59  ;;  %v9083_v50 = vunpack.i.h.bf16 %v9081_v37  ;;  %v3587_v7 = vsel %vm3552_vm13, %v3545_v25, %v9072_v11  ;;  %vm15139_vm10 = vmmov %vm15138_vm6 }
 0x2af   :  { %v9077_v12 = vunpack.i.l.bf16 %v9076_v15  ;;  %v9078_v58 = vunpack.i.h.bf16 %v9076_v15  ;;  %v9082_v60 = vunpack.i.l.bf16 %v9081_v37  ;;  %v3588_v1 = vsel %vm3552_vm13, %v3546_v54, %v9073_v5 }
 0x2b0   :  { %9175 = vrot.lane.b32.xlu0 %v13529_v13, %s9680_s11  ;;  %v9194_v23 = vpack.i.bf16 %v4228_v51, %v4226_v55  ;;  %v3338_v20 = vsel %vm15134_vm3, %v15133_v39, %v9083_v50  ;;  %vm15142_vm3 = vcmask 359424   ;;  %v4278_v51 = vld [vmem:[#allocation2 + $0x2b] ss:$2 sm:$0xff] }
 0x2b1   :  { %v9091_v26 = vpop.permute.xlu1 %9090  ;;  %v3629_v19 = vsel %vm3594_vm14, %v3587_v7, %v9077_v12  ;;  %v3630_v8 = vsel %vm3594_vm14, %v3588_v1, %v9078_v58  ;;  %v3337_v0 = vsel %vm15132_vm7, %v15131_v34, %v9082_v60 }
 0x2b2   :  { %v9086_v63 = vpop.permute.xlu0 %9085  ;;  %v9093_v40 = vunpack.i.h.bf16 %v9091_v26  ;;  %v9092_v41 = vunpack.i.l.bf16 %v9091_v26 }
 0x2b3   :  { %v9087_v4 = vunpack.i.l.bf16 %v9086_v63  ;;  %v3916_v30 = vpop.f32.mrb[24].mxu0  ;;  %v9088_v16 = vunpack.i.h.bf16 %v9086_v63 }
 0x2b4   :  { %v4033_v47 = vmul.f32 0.2, %v3916_v30  ;;  %v7467_v24 = vpop.f32.mrb[25].mxu0  ;;  %9185 = vrot.lane.b32.xlu0 %v9184_v35, %s9690_s28  ;;  %v3379_v17 = vsel %vm15136_vm1, %v3337_v0, %v9092_v41  ;;  %v3380_v53 = vsel %vm15137_vm8, %v3338_v20, %v9093_v40  ;;  %vm15144_vm1 = vcmask 257024  }
 0x2b5   :  { %v3919_v56 = vpop.f32.mrb[26].mxu0  ;;  %v9101_v9 = vpop.permute.xlu1 %9100  ;;  %v3671_v33 = vsel %vm3636_vm15, %v3629_v19, %v9087_v4  ;;  %v3672_v38 = vsel %vm3636_vm15, %v3630_v8, %v9088_v16  ;;  %v4304_v19 = vld [vmem:[#allocation2 + $0x2c] ss:$2 sm:$0xff]  ;;  %vm15145_vm8 = vcmask 261126  }
 0x2b6   :  { %v4061_v3 = vmax.f32 %v3916_v30, %v4033_v47  ;;  %v4034_v45 = vmul.f32 0.2, %v3919_v56  ;;  %v9096_v48 = vpop.permute.xlu0 %9095  ;;  %v7468_v27 = vpop.f32.mrb[27].mxu0  ;;  %v9103_v2 = vunpack.i.h.bf16 %v9101_v9  ;;  %v9102_v6 = vunpack.i.l.bf16 %v9101_v9 }
 0x2b7   :  { %v9098_v36 = vunpack.i.h.bf16 %v9096_v48  ;;  %v9097_v52 = vunpack.i.l.bf16 %v9096_v48 }
 0x2b8   :  { %4125 = vst.msk [vmem:[#allocation2 + $0x43] sm:$0x3] %vm15130_vm9, %v4061_v3  ;;  %v4062_v62 = vmax.f32 %v3919_v56, %v4034_v45  ;;  %9195 = vrot.lane.b32.xlu0 %v9194_v23, %s9691_s12  ;;  %v3421_v31 = vsel %vm15138_vm6, %v3379_v17, %v9102_v6  ;;  %v3422_v37 = vsel %vm15139_vm10, %v3380_v53, %v9103_v2  ;;  %vm15140_vm9 = vcmask 293888   ;;  %v4330_v6 = vld [vmem:[#allocation2 + $0x2d] ss:$2 sm:$0xff] }
 0x2b9   :  { %v3713_v32 = vsel %vm3678_vm12, %v3671_v33, %v9097_v52  ;;  %v3714_v14 = vsel %vm3678_vm12, %v3672_v38, %v9098_v36  ;;  %v9111_v42 = vpop.permute.xlu1 %9110  ;;  %vm15141_vm7 = vmmov %vm15140_vm9  ;;  %vm15146_vm6 = vcmask 259072  }
 0x2ba   :  { %4126 = vst.msk [vmem:[#allocation2 + $0x43] sm:$0xf0] %vm15135_vm0, %v4062_v62  ;;  %v9106_v29 = vpop.permute.xlu0 %9105  ;;  %v3737_v46 = vpack.c.bf16 %v3714_v14, %v3713_v32  ;;  %v9113_v28 = vunpack.i.h.bf16 %v9111_v42  ;;  %v9112_v61 = vunpack.i.l.bf16 %v9111_v42  ;;  %vm15143_vm0 = vmmov %vm15142_vm3 }
 0x2bb   :  { %v9108_v10 = vunpack.i.h.bf16 %v9106_v29  ;;  %v9107_v22 = vunpack.i.l.bf16 %v9106_v29 }
 0x2bc   :  { %7510 = vmatmul.mubr.msk.bf16.gmra.mrb[68].mxu0 %vm3773_vm5, %v3737_v46  ;;  %v4284_v46 = vld [vmem:[#allocation2 + $0x5b] ss:$2 sm:$0xff] }
 0x2bd   :  { %v3463_v21 = vsel %vm15140_vm9, %v3421_v31, %v9107_v22  ;;  %v3464_v15 = vsel %vm15141_vm7, %v3422_v37, %v9108_v10  ;;  %v9121_v57 = vpop.permute.xlu1 %9120  ;;  %7513 = vmatprep.mubr.msk.bf16.mxu0 %vm9686_vm4, %v15002_v49  ;;  %vm15147_vm9 = vmmov %vm15139_vm10  ;;  %vm5157_vm7 = vcmask 785408  }
 0x2be   :  { %v9116_v5 = vpop.permute.xlu0 %9115  ;;  %v3505_v43 = vsel %vm3468_vm11, %v3463_v21, %v9112_v61  ;;  %v3506_v44 = vsel %vm3468_vm11, %v3464_v15, %v9113_v28  ;;  %v9123_v25 = vunpack.i.h.bf16 %v9121_v57  ;;  %v9122_v12 = vunpack.i.l.bf16 %v9121_v57  ;;  %v4310_v28 = vld [vmem:[#allocation2 + $0x5c] ss:$2 sm:$0xff] }
 0x2bf   :  { %v9118_v11 = vunpack.i.h.bf16 %v9116_v5  ;;  %v9117_v18 = vunpack.i.l.bf16 %v9116_v5 }
 0x2c1   :  { %v3547_v26 = vsel %vm15142_vm3, %v3505_v43, %v9117_v18  ;;  %v3548_v54 = vsel %vm15143_vm0, %v3506_v44, %v9118_v11  ;;  %v9131_v58 = vpop.permute.xlu1 %9130  ;;  %v4280_v63 = vld [vmem:[#allocation2 + $0x3b] ss:$2 sm:$0xff]  ;;  %v4306_v24 = vld [vmem:[#allocation2 + $0x3c] ss:$2 sm:$0xff]  ;;  %vm15148_vm3 = vmmov %vm15147_vm9 }
 0x2c2   :  { %v9126_v59 = vpop.permute.xlu0 %9125  ;;  %v9169_v35 = vpack.i.bf16 %v4280_v63, %v4278_v51  ;;  %v3589_v50 = vsel %vm3552_vm13, %v3547_v26, %v9122_v12  ;;  %v3590_v7 = vsel %vm3552_vm13, %v3548_v54, %v9123_v25  ;;  %v9133_v16 = vunpack.i.h.bf16 %v9131_v58  ;;  %v4336_v11 = vld [vmem:[#allocation2 + $0x5d] ss:$2 sm:$0xff]  ;;  %vm15149_vm0 = vmmov %vm15148_vm3 }
 0x2c3   :  { %v9128_v4 = vunpack.i.h.bf16 %v9126_v59  ;;  %v9127_v30 = vunpack.i.l.bf16 %v9126_v59  ;;  %v9132_v47 = vunpack.i.l.bf16 %v9131_v58  ;;  %v9179_v8 = vpack.i.bf16 %v4306_v24, %v4304_v19 }
 0x2c4   :  { %9170 = vrot.lane.b32.xlu1 %v9169_v35, %s9680_s11 }
 0x2c5   :  { %v3631_v55 = vsel %vm3594_vm14, %v3589_v50, %v9127_v30  ;;  %v3632_v60 = vsel %vm3594_vm14, %v3590_v7, %v9128_v4 }
 0x2c6   :  { %v9136_v1 = vpop.permute.xlu0 %9135  ;;  %v3673_v40 = vsel %vm3636_vm15, %v3631_v55, %v9132_v47  ;;  %v3674_v3 = vsel %vm3636_vm15, %v3632_v60, %v9133_v16  ;;  %v4144_v55 = vld [vmem:[#allocation2] ss:$2 sm:$0xff]  ;;  %v4146_v60 = vld [vmem:[#allocation2 + $0x10] ss:$2 sm:$0xff] }
 0x2c7   :  { %v9138_v56 = vunpack.i.h.bf16 %v9136_v1  ;;  %v9137_v9 = vunpack.i.l.bf16 %v9136_v1  ;;  %v3924_v23 = vpop.f32.mrb[28].mxu0 }
 0x2c8   :  { %v4035_v45 = vmul.f32 0.2, %v3924_v23  ;;  %v7471_v48 = vpop.f32.mrb[29].mxu0  ;;  %9180 = vrot.lane.b32.xlu1 %v9179_v8, %s9690_s28 }
 0x2c9   :  { %v3715_v27 = vsel %vm3678_vm12, %v3673_v40, %v9137_v9  ;;  %v3716_v41 = vsel %vm3678_vm12, %v3674_v3, %v9138_v56  ;;  %v3927_v33 = vpop.f32.mrb[30].mxu0  ;;  %v4248_v3 = vld [vmem:[#allocation2 + $0xa] ss:$2 sm:$0xff] }
 0x2ca   :  { %v4063_v36 = vmax.f32 %v3924_v23, %v4035_v45  ;;  %v4036_v52 = vmul.f32 0.2, %v3927_v33  ;;  %v7472_v38 = vpop.f32.mrb[31].mxu0  ;;  %v3738_v62 = vpack.c.bf16 %v3716_v41, %v3715_v27  ;;  %v4250_v45 = vld [vmem:[#allocation2 + $0x1a] ss:$2 sm:$0xff] }
 0x2cc   :  { %4127 = vst.msk [vmem:[#allocation2 + $0x4b] sm:$0xf] %vm15144_vm1, %v4063_v36  ;;  %v4064_v2 = vmax.f32 %v3927_v33, %v4036_v52  ;;  %7514 = vmatmul.mubr.msk.bf16.gmra.mrb[72].mxu0 %vm3773_vm5, %v3738_v62  ;;  %vm15150_vm1 = vcmask 254976  }
 0x2cd   :  { %7517 = vmatprep.mubr.msk.bf16.mxu0 %vm9686_vm4, %v15002_v49 }
 0x2ce   :  { %4128 = vst.msk [vmem:[#allocation2 + $0x4b] sm:$0xc0] %vm15145_vm8, %v4064_v2  ;;  %vm15151_vm8 = vcmask 261124  }
 0x2d3   :  { %v4332_v32 = vld [vmem:[#allocation2 + $0x3d] ss:$2 sm:$0xff]  ;;  %v4204_v21 = vld [vmem:[#allocation2 + $0x42] ss:$2 sm:$0xff] }
 0x2d4   :  { %v9189_v14 = vpack.i.bf16 %v4332_v32, %v4330_v6  ;;  %v4178_v53 = vld [vmem:[#allocation2 + $0x41] ss:$2 sm:$0xff] }
 0x2d5   :  { %v4230_v25 = vld [vmem:[#allocation2 + $0x43] ss:$2 sm:$0xff] }
 0x2d6   :  { %9190 = vrot.lane.b32.xlu1 %v9189_v14, %s9691_s12 }
 0x2db   :  { %v3932_v42 = vpop.f32.mrb[32].mxu0 }
 0x2dc   :  { %v4037_v34 = vmul.f32 0.2, %v3932_v42  ;;  %v7475_v0 = vpop.f32.mrb[33].mxu0 }
 0x2dd   :  { %v3935_v39 = vpop.f32.mrb[34].mxu0 }
 0x2de   :  { %v4065_v20 = vmax.f32 %v3932_v42, %v4037_v34  ;;  %v7476_v29 = vpop.f32.mrb[35].mxu0 }
 0x2e0   :  { %4129 = vst.msk [vmem:[#allocation2 + $0x53] sm:$0x3f] %vm15146_vm6, %v4065_v20  ;;  %vm15152_vm6 = vcmask 257024  }
 0x2e4   :  { %v9146_v43 = vpop.permute.xlu0 %9145 }
 0x2e5   :  { %v9148_v4 = vunpack.i.h.bf16 %v9146_v43  ;;  %v9147_v30 = vunpack.i.l.bf16 %v9146_v43 }
 0x2e7   :  { %v4282_v17 = vld [vmem:[#allocation2 + $0x4b] ss:$2 sm:$0xff]  ;;  %v4308_v37 = vld [vmem:[#allocation2 + $0x4c] ss:$2 sm:$0xff]  ;;  %v5132_v23 = vsel %vm15139_vm10, %v4146_v60, %v9148_v4  ;;  %v5131_v8 = vsel %vm15147_vm9, %v4144_v55, %v9147_v30  ;;  %vm15153_vm10 = vcmask 261126   ;;  %vm15154_vm9 = vcmask 259072  }
 0x2e8   :  { %v4180_v10 = vld [vmem:[#allocation2 + $0x51] ss:$2 sm:$0xff]  ;;  %v9199_v22 = vpack.i.bf16 %v4284_v46, %v4282_v17  ;;  %v4206_v61 = vld [vmem:[#allocation2 + $0x52] ss:$2 sm:$0xff]  ;;  %v9209_v15 = vpack.i.bf16 %v4310_v28, %v4308_v37  ;;  %v9156_v59 = vpop.permute.xlu0 %9155 }
 0x2e9   :  { %v13583_v31 = vpack.i.bf16 %v4180_v10, %v4178_v53  ;;  %v9214_v57 = vpack.i.bf16 %v4206_v61, %v4204_v21  ;;  %v4334_v5 = vld [vmem:[#allocation2 + $0x4d] ss:$2 sm:$0xff]  ;;  %v9158_v50 = vunpack.i.h.bf16 %v9156_v59  ;;  %v9157_v7 = vunpack.i.l.bf16 %v9156_v59 }
 0x2ea   :  { %9200 = vrot.lane.b32.xlu1 %v9199_v22, %s9680_s11  ;;  %v4232_v18 = vld [vmem:[#allocation2 + $0x53] ss:$2 sm:$0xff]  ;;  %v9219_v26 = vpack.i.bf16 %v4336_v11, %v4334_v5 }
 0x2eb   :  { %9205 = vrot.lane.b32.xlu0 %v13583_v31, %s9680_s11  ;;  %v9224_v54 = vpack.i.bf16 %v4232_v18, %v4230_v25  ;;  %v5144_v48 = vsel %vm3773_vm5, %v5131_v8, %v9157_v7  ;;  %v5145_v27 = vsel %vm3773_vm5, %v5132_v23, %v9158_v50 }
 0x2ec   :  { %v9166_v35 = vpop.permute.xlu0 %9165 }
 0x2ed   :  { %v9168_v1 = vunpack.i.h.bf16 %v9166_v35  ;;  %v9167_v19 = vunpack.i.l.bf16 %v9166_v35 }
 0x2ee   :  { %9210 = vrot.lane.b32.xlu1 %v9209_v15, %s9690_s28 }
 0x2ef   :  { %9215 = vrot.lane.b32.xlu0 %v9214_v57, %s9690_s28  ;;  %v3939_v44 = vpop.f32.mrb[36].mxu0  ;;  %v5158_v2 = vsel %vm5157_vm7, %v5144_v48, %v9167_v19  ;;  %v5159_v6 = vsel %vm5157_vm7, %v5145_v27, %v9168_v1 }
 0x2f0   :  { %v7479_v12 = vpop.f32.mrb[37].mxu0  ;;  %v5288_v29 = vpack.c.bf16 %v5159_v6, %v5158_v2 }
 0x2f1   :  { %v3941_v58 = vpop.f32.mrb[38].mxu0 }
 0x2f2   :  { %9220 = vrot.lane.b32.xlu1 %v9219_v26, %s9691_s12  ;;  %v7480_v63 = vpop.f32.mrb[39].mxu0 }
 0x2f3   :  { %9225 = vrot.lane.b32.xlu0 %v9224_v54, %s9691_s12 }
 0x2f8   :  { %v9141_v51 = vpop.permute.xlu1 %9140 }
 0x2f9   :  { %v9143_v47 = vunpack.i.h.bf16 %v9141_v51  ;;  %v9142_v24 = vunpack.i.l.bf16 %v9141_v51 }
 0x2fb   :  { %v5171_v36 = vsel %vm15148_vm3, %v4248_v3, %v9142_v24  ;;  %v5172_v52 = vsel %vm15149_vm0, %v4250_v45, %v9143_v47  ;;  %vm15155_vm3 = vmmov %vm15149_vm0 }
 0x2fc   :  { %v9151_v16 = vpop.permute.xlu1 %9150 }
 0x2fd   :  { %v9153_v56 = vunpack.i.h.bf16 %v9151_v16  ;;  %v9152_v9 = vunpack.i.l.bf16 %v9151_v16 }
 0x2ff   :  { %v5184_v38 = vsel %vm3773_vm5, %v5171_v36, %v9152_v9  ;;  %v5185_v62 = vsel %vm3773_vm5, %v5172_v52, %v9153_v56 }
 0x300   :  { %v9161_v40 = vpop.permute.xlu1 %9160 }
 0x301   :  { %v9163_v41 = vunpack.i.h.bf16 %v9161_v40  ;;  %v9162_v33 = vunpack.i.l.bf16 %v9161_v40 }
 0x303   :  { %v3945_v32 = vpop.f32.mrb[40].mxu0  ;;  %v5197_v14 = vsel %vm5157_vm7, %v5184_v38, %v9162_v33  ;;  %v5198_v42 = vsel %vm5157_vm7, %v5185_v62, %v9163_v41 }
 0x304   :  { %v4038_v34 = vmul.f32 0.2, %v3945_v32  ;;  %v7483_v0 = vpop.f32.mrb[41].mxu0  ;;  %v5289_v39 = vpack.c.bf16 %v5198_v42, %v5197_v14  ;;  %v13619_v42 = vld [vmem:[#allocation2 + $0x20] ss:$2 sm:$0xff] }
 0x305   :  { %v3948_v20 = vpop.f32.mrb[42].mxu0 }
 0x306   :  { %v4066_v46 = vmax.f32 %v3945_v32, %v4038_v34  ;;  %v4039_v17 = vmul.f32 0.2, %v3948_v20  ;;  %v7484_v53 = vpop.f32.mrb[43].mxu0  ;;  %5604 = vmatprep.mubr.bf16.mxu1 %v5289_v39  ;;  %v13621_v34 = vld [vmem:[#allocation2 + $0x30] ss:$2 sm:$0xff] }
 0x307   :  { %5605 = vmatmul.mubr.bf16.vlgmr.msra.gmra.mrb[0].mxu1 %v5288_v29  ;;  %v4252_v53 = vld [vmem:[#allocation2 + $0x2a] ss:$2 sm:$0xff] }
 0x308   :  { %4130 = vst.msk [vmem:[#allocation2 + $0x6d] sm:$0xfc] %vm4111_vm2, %v4066_v46  ;;  %v4067_v10 = vmax.f32 %v3948_v20, %v4039_v17 }
 0x30a   :  { %4131 = vst.msk [vmem:[#allocation2 + $0x75] sm:$0x3] %vm15150_vm1, %v4067_v10  ;;  %vm15156_vm1 = vmmov %vm15149_vm0  ;;  %v4254_v10 = vld [vmem:[#allocation2 + $0x3a] ss:$2 sm:$0xff] }
 0x30f   :  { %v4182_v11 = vld [vmem:[#allocation2 + $0x61] ss:$2 sm:$0xff]  ;;  %v4208_v25 = vld [vmem:[#allocation2 + $0x62] ss:$2 sm:$0xff] }
 0x310   :  { %v4234_v51 = vld [vmem:[#allocation2 + $0x63] ss:$2 sm:$0xff] }
 0x317   :  { %v3953_v22 = vpop.f32.mrb[44].mxu0 }
 0x318   :  { %v4040_v37 = vmul.f32 0.2, %v3953_v22  ;;  %v7487_v28 = vpop.f32.mrb[45].mxu0 }
 0x319   :  { %v3956_v61 = vpop.f32.mrb[46].mxu0 }
 0x31a   :  { %v4068_v21 = vmax.f32 %v3953_v22, %v4040_v37  ;;  %v4041_v15 = vmul.f32 0.2, %v3956_v61  ;;  %v7488_v57 = vpop.f32.mrb[47].mxu0 }
 0x31c   :  { %4132 = vst.msk [vmem:[#allocation2 + $0x75] sm:$0xf0] %vm15151_vm8, %v4068_v21  ;;  %v4069_v5 = vmax.f32 %v3956_v61, %v4041_v15  ;;  %vm15157_vm8 = vmmov %vm15149_vm0 }
 0x31e   :  { %4133 = vst.msk [vmem:[#allocation2 + $0x7d] sm:$0xf] %vm15152_vm6, %v4069_v5  ;;  %vm15158_vm6 = vmmov %vm15149_vm0 }
 0x322   :  { %v9176_v16 = vpop.permute.xlu0 %9175 }
 0x323   :  { %v4286_v47 = vld [vmem:[#allocation2 + $0x6b] ss:$2 sm:$0xff]  ;;  %v4312_v56 = vld [vmem:[#allocation2 + $0x6c] ss:$2 sm:$0xff]  ;;  %v9178_v33 = vunpack.i.h.bf16 %v9176_v16  ;;  %v9177_v36 = vunpack.i.l.bf16 %v9176_v16 }
 0x324   :  { %v4338_v45 = vld [vmem:[#allocation2 + $0x6d] ss:$2 sm:$0xff] }
 0x325   :  { %v4184_v18 = vld [vmem:[#allocation2 + $0x71] ss:$2 sm:$0xff]  ;;  %v4210_v44 = vld [vmem:[#allocation2 + $0x72] ss:$2 sm:$0xff]  ;;  %v5133_v46 = vsel %vm15149_vm0, %v13619_v42, %v9177_v36  ;;  %v5134_v17 = vsel %vm15156_vm1, %v13621_v34, %v9178_v33  ;;  %vm15164_vm1 = vcmask 261124  }
 0x326   :  { %v13608_v43 = vpack.i.bf16 %v4184_v18, %v4182_v11  ;;  %v9244_v12 = vpack.i.bf16 %v4210_v44, %v4208_v25  ;;  %v4236_v54 = vld [vmem:[#allocation2 + $0x73] ss:$2 sm:$0xff]  ;;  %v9186_v1 = vpop.permute.xlu0 %9185 }
 0x327   :  { %v9254_v50 = vpack.i.bf16 %v4236_v54, %v4234_v51  ;;  %v9188_v62 = vunpack.i.h.bf16 %v9186_v1  ;;  %v9187_v2 = vunpack.i.l.bf16 %v9186_v1  ;;  %v4258_v1 = vld [vmem:[#allocation2 + $0x5a] ss:$2 sm:$0xff] }
 0x328   :  { %9235 = vrot.lane.b32.xlu0 %v13608_v43, %s9680_s11 }
 0x329   :  { %v5146_v37 = vsel %vm3773_vm5, %v5133_v46, %v9187_v2  ;;  %v5147_v28 = vsel %vm3773_vm5, %v5134_v17, %v9188_v62 }
 0x32a   :  { %v9196_v52 = vpop.permute.xlu0 %9195 }
 0x32b   :  { %v3961_v26 = vpop.f32.mrb[48].mxu0  ;;  %v9198_v0 = vunpack.i.h.bf16 %v9196_v52  ;;  %v9197_v39 = vunpack.i.l.bf16 %v9196_v52 }
 0x32c   :  { %v4042_v58 = vmul.f32 0.2, %v3961_v26  ;;  %9245 = vrot.lane.b32.xlu0 %v9244_v12, %s9690_s28  ;;  %v7491_v63 = vpop.f32.mrb[49].mxu0 }
 0x32d   :  { %v3964_v59 = vpop.f32.mrb[50].mxu0  ;;  %v5160_v18 = vsel %vm5157_vm7, %v5146_v37, %v9197_v39  ;;  %v5161_v44 = vsel %vm5157_vm7, %v5147_v28, %v9198_v0 }
 0x32e   :  { %v4070_v4 = vmax.f32 %v3961_v26, %v4042_v58  ;;  %v4043_v30 = vmul.f32 0.2, %v3964_v59  ;;  %v7492_v35 = vpop.f32.mrb[51].mxu0  ;;  %v5292_v54 = vpack.c.bf16 %v5161_v44, %v5160_v18 }
 0x330   :  { %4134 = vst.msk [vmem:[#allocation2 + $0x7d] sm:$0xc0] %vm15153_vm10, %v4070_v4  ;;  %v4071_v7 = vmax.f32 %v3964_v59, %v4043_v30  ;;  %9255 = vrot.lane.b32.xlu0 %v9254_v50, %s9691_s12  ;;  %vm15159_vm10 = vmmov %vm15149_vm0 }
 0x332   :  { %4135 = vst.msk [vmem:[#allocation2 + $0x85] sm:$0x3f] %vm15154_vm9, %v4071_v7  ;;  %vm15161_vm9 = vmmov %vm15149_vm0 }
 0x336   :  { %v9171_v19 = vpop.permute.xlu1 %9170 }
 0x337   :  { %v9173_v32 = vunpack.i.h.bf16 %v9171_v19  ;;  %v9172_v14 = vunpack.i.l.bf16 %v9171_v19 }
 0x339   :  { %v4288_v24 = vld [vmem:[#allocation2 + $0x7b] ss:$2 sm:$0xff]  ;;  %v4314_v60 = vld [vmem:[#allocation2 + $0x7c] ss:$2 sm:$0xff]  ;;  %v5173_v61 = vsel %vm15157_vm8, %v4252_v53, %v9172_v14  ;;  %v5174_v21 = vsel %vm15158_vm6, %v4254_v10, %v9173_v32  ;;  %vm15165_vm8 = vcmask 257024   ;;  %vm15166_vm6 = vcmask 261126  }
 0x33a   :  { %v9229_v55 = vpack.i.bf16 %v4288_v24, %v4286_v47  ;;  %v9239_v9 = vpack.i.bf16 %v4314_v60, %v4312_v56  ;;  %v4340_v8 = vld [vmem:[#allocation2 + $0x7d] ss:$2 sm:$0xff]  ;;  %v9181_v38 = vpop.permute.xlu1 %9180 }
 0x33b   :  { %v9249_v41 = vpack.i.bf16 %v4340_v8, %v4338_v45  ;;  %v9183_v20 = vunpack.i.h.bf16 %v9181_v38  ;;  %v9182_v29 = vunpack.i.l.bf16 %v9181_v38  ;;  %v4256_v8 = vld [vmem:[#allocation2 + $0x4a] ss:$2 sm:$0xff] }
 0x33c   :  { %9230 = vrot.lane.b32.xlu1 %v9229_v55, %s9680_s11 }
 0x33d   :  { %v5186_v5 = vsel %vm3773_vm5, %v5173_v61, %v9182_v29  ;;  %v5187_v11 = vsel %vm3773_vm5, %v5174_v21, %v9183_v20 }
 0x33f   :  { %v3969_v23 = vpop.f32.mrb[52].mxu0 }
 0x340   :  { %9240 = vrot.lane.b32.xlu1 %v9239_v9, %s9690_s28  ;;  %v7495_v40 = vpop.f32.mrb[53].mxu0 }
 0x341   :  { %v3971_v3 = vpop.f32.mrb[54].mxu0  ;;  %v13639_v40 = vld [vmem:[#allocation2 + $0x40] ss:$2 sm:$0xff] }
 0x342   :  { %v4044_v48 = vmul.f32 0.2, %v3971_v3  ;;  %v7496_v27 = vpop.f32.mrb[55].mxu0 }
 0x344   :  { %v4072_v6 = vmax.f32 %v3971_v3, %v4044_v48  ;;  %9250 = vrot.lane.b32.xlu1 %v9249_v41, %s9691_s12  ;;  %v13641_v3 = vld [vmem:[#allocation2 + $0x50] ss:$2 sm:$0xff] }
 0x346   :  { %4136 = vst.msk [vmem:[#allocation2 + $0x8d] sm:$0xff] %vm15155_vm3, %v4072_v6  ;;  %vm15162_vm3 = vmmov %vm15149_vm0 }
 0x348   :  { %v9191_v22 = vpop.permute.xlu1 %9190 }
 0x349   :  { %v9193_v15 = vunpack.i.h.bf16 %v9191_v22  ;;  %v9192_v57 = vunpack.i.l.bf16 %v9191_v22 }
 0x34b   :  { %v5199_v25 = vsel %vm5157_vm7, %v5186_v5, %v9192_v57  ;;  %v5200_v12 = vsel %vm5157_vm7, %v5187_v11, %v9193_v15 }
 0x34c   :  { %v5293_v26 = vpack.c.bf16 %v5200_v12, %v5199_v25 }
 0x34d   :  { %v4186_v5 = vld [vmem:[#allocation2 + $0x81] ss:$2 sm:$0xff]  ;;  %v4212_v25 = vld [vmem:[#allocation2 + $0x82] ss:$2 sm:$0xff] }
 0x34e   :  { %5612 = vmatprep.mubr.bf16.mxu1 %v5293_v26 }
 0x34f   :  { %5613 = vmatmul.mubr.bf16.gmra.mrb[4].mxu1 %v5292_v54 }
 0x353   :  { %v3976_v58 = vpop.f32.mrb[56].mxu0 }
 0x354   :  { %v7499_v63 = vpop.f32.mrb[57].mxu0  ;;  %v4238_v58 = vld [vmem:[#allocation2 + $0x83] ss:$2 sm:$0xff] }
 0x355   :  { %v3978_v59 = vpop.f32.mrb[58].mxu0 }
 0x356   :  { %v4045_v51 = vmul.f32 0.2, %v3978_v59  ;;  %v7500_v4 = vpop.f32.mrb[59].mxu0 }
 0x358   :  { %v4073_v30 = vmax.f32 %v3978_v59, %v4045_v51 }
 0x35a   :  { %4137 = vst.msk [vmem:[#allocation2 + $0x95] sm:$0xfc] %vm4111_vm2, %v4073_v30  ;;  %vm15160_vm2 = vmmov %vm15149_vm0  ;;  %vm15163_vm0 = vcmask 254976  }
 0x35c   :  { %v9201_v35 = vpop.permute.xlu1 %9200 }
 0x35d   :  { %v9206_v50 = vpop.permute.xlu0 %9205  ;;  %v9203_v7 = vunpack.i.h.bf16 %v9201_v35  ;;  %v9202_v16 = vunpack.i.l.bf16 %v9201_v35 }
 0x35e   :  { %v9208_v47 = vunpack.i.h.bf16 %v9206_v50  ;;  %v9207_v24 = vunpack.i.l.bf16 %v9206_v50 }
 0x35f   :  { %v5176_v45 = vsel %vm15159_vm10, %v4258_v1, %v9203_v7  ;;  %v5175_v48 = vsel %vm15160_vm2, %v4256_v8, %v9202_v16  ;;  %vm15167_vm10 = vcmask 259072  }
 0x360   :  { %v9211_v55 = vpop.permute.xlu1 %9210  ;;  %v5135_v27 = vsel %vm15161_vm9, %v13639_v40, %v9207_v24  ;;  %v5136_v41 = vsel %vm15162_vm3, %v13641_v3, %v9208_v47  ;;  %vm15168_vm9 = vmmov %vm15160_vm2 }
 0x361   :  { %v9216_v60 = vpop.permute.xlu0 %9215  ;;  %v9213_v19 = vunpack.i.h.bf16 %v9211_v55  ;;  %v9212_v56 = vunpack.i.l.bf16 %v9211_v55  ;;  %v4290_v16 = vld [vmem:[#allocation2 + $0x8b] ss:$2 sm:$0xff]  ;;  %vm15169_vm3 = vmmov %vm15160_vm2 }
 0x362   :  { %v9218_v9 = vunpack.i.h.bf16 %v9216_v60  ;;  %v9217_v23 = vunpack.i.l.bf16 %v9216_v60  ;;  %v4316_v60 = vld [vmem:[#allocation2 + $0x8c] ss:$2 sm:$0xff] }
 0x363   :  { %v5188_v6 = vsel %vm3773_vm5, %v5175_v48, %v9212_v56  ;;  %v5189_v32 = vsel %vm3773_vm5, %v5176_v45, %v9213_v19  ;;  %v9692_v56 = vmov 0  }
 0x364   :  { %v9221_v33 = vpop.permute.xlu1 %9220  ;;  %v5148_v14 = vsel %vm3773_vm5, %v5135_v27, %v9217_v23  ;;  %v5149_v0 = vsel %vm3773_vm5, %v5136_v41, %v9218_v9  ;;  %9530 = vset.pattern.permute.xlu0 %v9692_v56  ;;  %9529 = vset.pattern.permute.xlu1 %v9692_v56  ;;  %v4342_v23 = vld [vmem:[#allocation2 + $0x8d] ss:$2 sm:$0xff] }
 0x365   :  { %v9226_v36 = vpop.permute.xlu0 %9225  ;;  %v9223_v52 = vunpack.i.h.bf16 %v9221_v33  ;;  %v9222_v38 = vunpack.i.l.bf16 %v9221_v33 }
 0x366   :  { %v9228_v62 = vunpack.i.h.bf16 %v9226_v36  ;;  %v9227_v2 = vunpack.i.l.bf16 %v9226_v36  ;;  %v9651_v36 = vld [vmem:[%s14817_s2 + $0xc0] sm:$0xff]  }
 0x367   :  { %v3983_v39 = vpop.f32.mrb[60].mxu0  ;;  %v5201_v20 = vsel %vm5157_vm7, %v5188_v6, %v9222_v38  ;;  %v5202_v29 = vsel %vm5157_vm7, %v5189_v32, %v9223_v52  ;;  %v9652_v52 = vld [vmem:[%s14817_s2 + $0x80] sm:$0xff]   ;;  %7199 = vmatprep.subr.bf16.mxu1 %v9651_v36 }
 0x368   :  { %v5162_v46 = vsel %vm5157_vm7, %v5148_v14, %v9227_v2  ;;  %v5163_v17 = vsel %vm5157_vm7, %v5149_v0, %v9228_v62  ;;  %v4046_v53 = vmul.f32 0.2, %v3983_v39  ;;  %v7503_v10 = vpop.f32.mrb[61].mxu0  ;;  %v5297_v22 = vpack.c.bf16 %v5202_v29, %v5201_v20  ;;  %7200 = vmatpush3.bf16.msra.mxu1 %v9652_v52  ;;  %v9654_v20 = vld [vmem:[%s14817_s2 + $0x88] sm:$0xff]  }
 0x369   :  { %v5296_v37 = vpack.c.bf16 %v5163_v17, %v5162_v46  ;;  %v3986_v28 = vpop.f32.mrb[62].mxu0  ;;  %v9655_v17 = vld [vmem:[%s14817_s2 + $0xd0] sm:$0xff]  }
 0x36a   :  { %v4074_v61 = vmax.f32 %v3983_v39, %v4046_v53  ;;  %v4047_v21 = vmul.f32 0.2, %v3986_v28  ;;  %v7504_v15 = vpop.f32.mrb[63].mxu0  ;;  %5620 = vmatprep.mubr.bf16.mxu1 %v5297_v22  ;;  %v9653_v39 = vld [vmem:[%s14817_s2 + $0xc8] sm:$0xff]   ;;  %v9656_v53 = vld [vmem:[%s14817_s2 + $0x90] sm:$0xff]  }
 0x36b   :  { %5621 = vmatmul.mubr.bf16.gmra.mrb[8].mxu1 %v5296_v37  ;;  %7201 = vmatprep.subr.bf16.mxu1 %v9653_v39 }
 0x36c   :  { %4138 = vst.msk [vmem:[#allocation2 + $0x9d] sm:$0x3] %vm15163_vm0, %v4074_v61  ;;  %v4075_v57 = vmax.f32 %v3986_v28, %v4047_v21  ;;  %7202 = vmatpush3.bf16.msra.mxu1 %v9654_v20  ;;  %vm15170_vm0 = vmmov %vm15160_vm2 }
 0x36d   :  { %7203 = vmatprep.subr.bf16.mxu1 %v9655_v17  ;;  %v4246_v17 = vld [vmem:[#allocation2 + $0xc3] ss:$2 sm:$0xf] }
 0x36e   :  { %4139 = vst.msk [vmem:[#allocation2 + $0x9d] sm:$0xf0] %vm15164_vm1, %v4075_v57  ;;  %vm15171_vm1 = vmmov %vm15170_vm0 }
 0x370   :  { %7204 = vmatpush3.bf16.msra.mxu1 %v9656_v53  ;;  %v4350_v53 = vld [vmem:[#allocation2 + $0xcd] ss:$2 sm:$0xf] }
 0x373   :  { %v4188_v11 = vld [vmem:[#allocation2 + $0x91] ss:$2 sm:$0xff]  ;;  %v4214_v44 = vld [vmem:[#allocation2 + $0x92] ss:$2 sm:$0xff] }
 0x374   :  { %v13659_v18 = vpack.i.bf16 %v4188_v11, %v4186_v5  ;;  %v9274_v12 = vpack.i.bf16 %v4214_v44, %v4212_v25 }
 0x375   :  { %v4240_v26 = vld [vmem:[#allocation2 + $0x93] ss:$2 sm:$0xff] }
 0x376   :  { %9265 = vrot.lane.b32.xlu0 %v13659_v18, %s9680_s11  ;;  %v9284_v51 = vpack.i.bf16 %v4240_v26, %v4238_v58  ;;  %v4348_v26 = vld [vmem:[#allocation2 + $0xbd] ss:$2 sm:$0xff] }
 0x377   :  { %v9657_v58 = vld [vmem:[%s14817_s2 + $0xd8] sm:$0xff]  }
 0x378   :  { %7205 = vmatprep.subr.bf16.mxu1 %v9657_v58 }
 0x37a   :  { %9275 = vrot.lane.b32.xlu0 %v9274_v12, %s9690_s28 }
 0x37b   :  { %v3991_v54 = vpop.f32.mrb[64].mxu0 }
 0x37c   :  { %v4048_v63 = vmul.f32 0.2, %v3991_v54  ;;  %v7507_v59 = vpop.f32.mrb[65].mxu0 }
 0x37d   :  { %v3994_v4 = vpop.f32.mrb[66].mxu0 }
 0x37e   :  { %v4076_v30 = vmax.f32 %v3991_v54, %v4048_v63  ;;  %v4049_v35 = vmul.f32 0.2, %v3994_v4  ;;  %9285 = vrot.lane.b32.xlu0 %v9284_v51, %s9691_s12  ;;  %v7508_v50 = vpop.f32.mrb[67].mxu0  ;;  %v4194_v54 = vld [vmem:[#allocation2 + $0xc1] ss:$2 sm:$0xf] }
 0x380   :  { %4140 = vst.msk [vmem:[#allocation2 + $0xa5] sm:$0xf] %vm15165_vm8, %v4076_v30  ;;  %v4077_v7 = vmax.f32 %v3994_v4, %v4049_v35  ;;  %v9658_v30 = vld [vmem:[%s14817_s2 + $0x98] sm:$0xff]   ;;  %v13703_v35 = vld [vmem:[#allocation2 + $0x60] ss:$2 sm:$0xff]  ;;  %vm15172_vm8 = vmmov %vm15170_vm0 }
 0x381   :  { %7206 = vmatpush3.bf16.msra.mxu1 %v9658_v30  ;;  %v9344_v30 = vpack.i.bf16 %v13621_v34, %v13619_v42  ;;  %v4488_v42 = vld [vmem:[#allocation2 + $0x4f] ss:$2 sm:$0xff] }
 0x382   :  { %4141 = vst.msk [vmem:[#allocation2 + $0xa5] sm:$0xc0] %vm15166_vm6, %v4077_v7  ;;  %v4430_v34 = vld [vmem:[#allocation2 + $0x17] ss:$2 sm:$0xff]  ;;  %vm15173_vm6 = vmmov %vm15170_vm0 }
 0x387   :  { %v4292_v47 = vld [vmem:[#allocation2 + $0x9b] ss:$2 sm:$0xff]  ;;  %v4318_v55 = vld [vmem:[#allocation2 + $0x9c] ss:$2 sm:$0xff] }
 0x388   :  { %v9259_v24 = vpack.i.bf16 %v4292_v47, %v4290_v16  ;;  %v9269_v1 = vpack.i.bf16 %v4318_v55, %v4316_v60  ;;  %v4298_v47 = vld [vmem:[#allocation2 + $0xcb] ss:$2 sm:$0xf] }
 0x389   :  { %v4344_v19 = vld [vmem:[#allocation2 + $0x9d] ss:$2 sm:$0xff] }
 0x38a   :  { %9260 = vrot.lane.b32.xlu1 %v9259_v24, %s9680_s11  ;;  %v9279_v48 = vpack.i.bf16 %v4344_v19, %v4342_v23  ;;  %v4220_v24 = vld [vmem:[#allocation2 + $0xc2] ss:$2 sm:$0xf]  ;;  %v13709_v23 = vld [vmem:[#allocation2 + $0x70] ss:$2 sm:$0xff] }
 0x38e   :  { %9270 = vrot.lane.b32.xlu1 %v9269_v1, %s9690_s28 }
 0x38f   :  { %v3999_v9 = vpop.f32.mrb[68].mxu0 }
 0x390   :  { %v4050_v8 = vmul.f32 0.2, %v3999_v9  ;;  %v7511_v45 = vpop.f32.mrb[69].mxu0 }
 0x391   :  { %v4002_v27 = vpop.f32.mrb[70].mxu0 }
 0x392   :  { %v4078_v41 = vmax.f32 %v3999_v9, %v4050_v8  ;;  %9280 = vrot.lane.b32.xlu1 %v9279_v48, %s9691_s12  ;;  %v7512_v33 = vpop.f32.mrb[71].mxu0  ;;  %v4324_v9 = vld [vmem:[#allocation2 + $0xcc] ss:$2 sm:$0xf] }
 0x393   :  { %v9660_v33 = vld [vmem:[%s14817_s2 + $0xa0] sm:$0xff]  }
 0x394   :  { %4142 = vst.msk [vmem:[#allocation2 + $0xad] sm:$0x3f] %vm15167_vm10, %v4078_v41  ;;  %v9659_v41 = vld [vmem:[%s14817_s2 + $0xe0] sm:$0xff]   ;;  %vm15174_vm10 = vmmov %vm15170_vm0 }
 0x395   :  { %7207 = vmatprep.subr.bf16.mxu1 %v9659_v41  ;;  %v4436_v41 = vld [vmem:[#allocation2 + $0x47] ss:$2 sm:$0xff] }
 0x396   :  { %7208 = vmatpush3.bf16.msra.mxu1 %v9660_v33  ;;  %v4490_v33 = vld [vmem:[#allocation2 + $0x5f] ss:$2 sm:$0xff] }
 0x39a   :  { %v9236_v0 = vpop.permute.xlu0 %9235 }
 0x39b   :  { %v4190_v46 = vld [vmem:[#allocation2 + $0xa1] ss:$2 sm:$0xff]  ;;  %v4216_v11 = vld [vmem:[#allocation2 + $0xa2] ss:$2 sm:$0xff]  ;;  %v9238_v63 = vunpack.i.h.bf16 %v9236_v0  ;;  %v9237_v59 = vunpack.i.l.bf16 %v9236_v0 }
 0x39c   :  { %v4242_v56 = vld [vmem:[#allocation2 + $0xa3] ss:$2 sm:$0xff] }
 0x39d   :  { %v5137_v36 = vsel %vm15168_vm9, %v13703_v35, %v9237_v59  ;;  %v5138_v52 = vsel %vm15169_vm3, %v13709_v23, %v9238_v63  ;;  %v9664_v63 = vld [vmem:[%s14817_s2 + $0xb0] sm:$0xff]   ;;  %vm15176_vm9 = vmmov %vm15170_vm0 }
 0x39e   :  { %v13684_v29 = vpop.permute.xlu0 %9245  ;;  %v4380_v59 = vld [vmem:[#allocation2 + $0x25] ss:$2 sm:$0xff]  ;;  %vm15177_vm3 = vmmov %vm15170_vm0 }
 0x39f   :  { %v4006_v38 = vpop.f32.mrb[72].mxu0  ;;  %v9248_v50 = vunpack.i.h.bf16 %v13684_v29  ;;  %v9247_v7 = vunpack.i.l.bf16 %v13684_v29 }
 0x3a0   :  { %v4051_v62 = vmul.f32 0.2, %v4006_v38  ;;  %v7515_v2 = vpop.f32.mrb[73].mxu0 }
 0x3a1   :  { %v4009_v6 = vpop.f32.mrb[74].mxu0  ;;  %v4262_v2 = vld [vmem:[#allocation2 + $0x7a] ss:$2 sm:$0xff]  ;;  %v5151_v0 = vsel %vm3773_vm5, %v5138_v52, %v9248_v50  ;;  %v4434_v52 = vld [vmem:[#allocation2 + $0x37] ss:$2 sm:$0xff] }
 0x3a2   :  { %v4079_v32 = vmax.f32 %v4006_v38, %v4051_v62  ;;  %v7516_v14 = vpop.f32.mrb[75].mxu0  ;;  %v9256_v44 = vpop.permute.xlu0 %9255  ;;  %v9319_v38 = vpack.i.bf16 %v4194_v54, %v4298_v47  ;;  %v4260_v62 = vld [vmem:[#allocation2 + $0x6a] ss:$2 sm:$0xff] }
 0x3a3   :  { %v9258_v55 = vunpack.i.h.bf16 %v9256_v44  ;;  %v9257_v60 = vunpack.i.l.bf16 %v9256_v44  ;;  %v5150_v14 = vsel %vm3773_vm5, %v5137_v36, %v9247_v7  ;;  %v9663_v54 = vld [vmem:[%s14817_s2 + $0xf0] sm:$0xff]   ;;  %v9665_v50 = vld [vmem:[%s14817_s2 + $0xf8] sm:$0xff]  }
 0x3a4   :  { %4143 = vst.msk [vmem:[#allocation2 + $0xb5] sm:$0xff] %vm15160_vm2, %v4079_v32  ;;  %v9324_v32 = vpack.i.bf16 %v4220_v24, %v4324_v9  ;;  %v9666_v7 = vld [vmem:[%s14817_s2 + $0xb8] sm:$0xff]   ;;  %vm15175_vm2 = vmmov %vm15170_vm0 }
 0x3a5   :  { %v4404_v47 = vld [vmem:[#allocation2 + $0x16] ss:$2 sm:$0xff]  ;;  %v4382_v9 = vld [vmem:[#allocation2 + $0x35] ss:$2 sm:$0xff] }
 0x3a6   :  { %v4492_v36 = vld [vmem:[#allocation2 + $0x6f] ss:$2 sm:$0xff] }
 0x3ab   :  { %v4294_v10 = vld [vmem:[#allocation2 + $0xab] ss:$2 sm:$0xff]  ;;  %v4296_v22 = vld [vmem:[#allocation2 + $0xbb] ss:$2 sm:$0xff]  ;;  %v4320_v21 = vld [vmem:[#allocation2 + $0xac] ss:$2 sm:$0xff] }
 0x3ac   :  { %v4192_v37 = vld [vmem:[#allocation2 + $0xb1] ss:$2 sm:$0xff]  ;;  %v9289_v28 = vpack.i.bf16 %v4296_v22, %v4294_v10  ;;  %v4322_v15 = vld [vmem:[#allocation2 + $0xbc] ss:$2 sm:$0xff] }
 0x3ad   :  { %v13692_v61 = vpack.i.bf16 %v4192_v37, %v4190_v46  ;;  %v4218_v57 = vld [vmem:[#allocation2 + $0xb2] ss:$2 sm:$0xff]  ;;  %v9299_v25 = vpack.i.bf16 %v4322_v15, %v4320_v21  ;;  %v4346_v51 = vld [vmem:[#allocation2 + $0xad] ss:$2 sm:$0xff]  ;;  %v5164_v37 = vsel %vm5157_vm7, %v5150_v14, %v9257_v60 }
 0x3ae   :  { %v9231_v5 = vpop.permute.xlu1 %9230  ;;  %9290 = vrot.lane.b32.xlu1 %v9289_v28, %s9680_s11  ;;  %v9304_v12 = vpack.i.bf16 %v4218_v57, %v4216_v11  ;;  %v4244_v4 = vld [vmem:[#allocation2 + $0xb3] ss:$2 sm:$0xff]  ;;  %v9309_v48 = vpack.i.bf16 %v4348_v26, %v4346_v51  ;;  %v5165_v28 = vsel %vm5157_vm7, %v5151_v0, %v9258_v55  ;;  %v9661_v21 = vld [vmem:[%s14817_s2 + $0xe8] sm:$0xff]   ;;  %v4412_v0 = vld [vmem:[#allocation2 + $0x56] ss:$2 sm:$0xff] }
 0x3af   :  { %9295 = vrot.lane.b32.xlu0 %v13692_v61, %s9680_s11  ;;  %v9233_v1 = vunpack.i.h.bf16 %v9231_v5  ;;  %v9232_v19 = vunpack.i.l.bf16 %v9231_v5  ;;  %v9314_v27 = vpack.i.bf16 %v4244_v4, %v4242_v56  ;;  %v9662_v15 = vld [vmem:[%s14817_s2 + $0xa8] sm:$0xff]   ;;  %7209 = vmatprep.subr.bf16.mxu1 %v9661_v21  ;;  %v4378_v51 = vld [vmem:[#allocation2 + $0x15] ss:$2 sm:$0xff]  ;;  %v13784_v21 = vld [vmem:[#allocation2 + $0x90] ss:$2 sm:$0xff] }
 0x3b0   :  { %v4484_v11 = vld [vmem:[#allocation2 + $0x2f] ss:$2 sm:$0xff]  ;;  %v4482_v26 = vld [vmem:[#allocation2 + $0x1f] ss:$2 sm:$0xff]  ;;  %7210 = vmatpush3.bf16.msra.mxu1 %v9662_v15  ;;  %v9339_v4 = vpack.i.bf16 %v4380_v59, %v4378_v51 }
 0x3b1   :  { %v5177_v39 = vsel %vm15170_vm0, %v4260_v62, %v9232_v19  ;;  %v5178_v20 = vsel %vm15171_vm1, %v4262_v2, %v9233_v1  ;;  %v9334_v58 = vpack.i.bf16 %v4484_v11, %v4482_v26  ;;  %7211 = vmatprep.subr.bf16.mxu1 %v9663_v54  ;;  %v4432_v55 = vld [vmem:[#allocation2 + $0x27] ss:$2 sm:$0xff]  ;;  %v9394_v62 = vpack.i.bf16 %v4492_v36, %v4490_v33  ;;  %v4442_v54 = vld [vmem:[#allocation2 + $0x77] ss:$2 sm:$0xff]  ;;  %vm15178_vm1 = vmmov %vm15170_vm0 }
 0x3b2   :  { %v9241_v16 = vpop.permute.xlu1 %9240  ;;  %9300 = vrot.lane.b32.xlu1 %v9299_v25, %s9690_s28  ;;  %v9329_v25 = vpack.i.bf16 %v4246_v17, %v4350_v53  ;;  %v4486_v60 = vld [vmem:[#allocation2 + $0x3f] ss:$2 sm:$0xff]  ;;  %v9359_v1 = vpack.i.bf16 %v4432_v55, %v4430_v34  ;;  %v4496_v53 = vld [vmem:[#allocation2 + $0x8f] ss:$2 sm:$0xff] }
 0x3b3   :  { %9305 = vrot.lane.b32.xlu0 %v9304_v12, %s9690_s28  ;;  %v9243_v8 = vunpack.i.h.bf16 %v9241_v16  ;;  %v9242_v45 = vunpack.i.l.bf16 %v9241_v16  ;;  %v5300_v12 = vpack.c.bf16 %v5165_v28, %v5164_v37  ;;  %v4406_v16 = vld [vmem:[#allocation2 + $0x26] ss:$2 sm:$0xff]  ;;  %v9364_v19 = vpack.i.bf16 %v4488_v42, %v4486_v60  ;;  %v4384_v56 = vld [vmem:[#allocation2 + $0x45] ss:$2 sm:$0xff]  ;;  %v4390_v15 = vld [vmem:[#allocation2 + $0x75] ss:$2 sm:$0xff] }
 0x3b4   :  { %7212 = vmatpush3.bf16.msra.mxu1 %v9664_v63  ;;  %v9349_v24 = vpack.i.bf16 %v4406_v16, %v4404_v47  ;;  %v4388_v2 = vld [vmem:[#allocation2 + $0x65] ss:$2 sm:$0xff] }
 0x3b5   :  { %v5190_v10 = vsel %vm3773_vm5, %v5177_v39, %v9242_v45  ;;  %v5191_v22 = vsel %vm3773_vm5, %v5178_v20, %v9243_v8  ;;  %7213 = vmatprep.subr.bf16.mxu1 %v9665_v50  ;;  %v9369_v8 = vpack.i.bf16 %v4384_v56, %v4382_v9  ;;  %v9374_v45 = vpack.i.bf16 %v13641_v3, %v13639_v40  ;;  %v4386_v40 = vld [vmem:[#allocation2 + $0x55] ss:$2 sm:$0xff]  ;;  %v4392_v28 = vld [vmem:[#allocation2 + $0x85] ss:$2 sm:$0xff]  ;;  %v13801_v50 = vld [vmem:[#allocation2 + $0xa0] ss:$2 sm:$0xff] }
 0x3b6   :  { %v9251_v6 = vpop.permute.xlu1 %9250  ;;  %9310 = vrot.lane.b32.xlu1 %v9309_v48, %s9691_s12  ;;  %v4410_v48 = vld [vmem:[#allocation2 + $0x46] ss:$2 sm:$0xff]  ;;  %v9399_v3 = vpack.i.bf16 %v4388_v2, %v4386_v40  ;;  %v4440_v17 = vld [vmem:[#allocation2 + $0x67] ss:$2 sm:$0xff]  ;;  %v4446_v56 = vld [vmem:[#allocation2 + $0x97] ss:$2 sm:$0xff] }
 0x3b7   :  { %9315 = vrot.lane.b32.xlu0 %v9314_v27, %s9691_s12  ;;  %v9253_v29 = vunpack.i.h.bf16 %v9251_v6  ;;  %v9252_v46 = vunpack.i.l.bf16 %v9251_v6  ;;  %v9404_v6 = vpack.i.bf16 %v13709_v23, %v13703_v35  ;;  %v4438_v35 = vld [vmem:[#allocation2 + $0x57] ss:$2 sm:$0xff]  ;;  %v4448_v60 = vld [vmem:[#allocation2 + $0xa7] ss:$2 sm:$0xff]  ;;  %v4507_v9 = vld [vmem:[#allocation2 + $0xc0] ss:$2 sm:$0xff] }
 0x3b8   :  { %7214 = vmatpush3.bf16.msra.mxu1 %v9666_v7  ;;  %v4494_v23 = vld [vmem:[#allocation2 + $0x7f] ss:$2 sm:$0xff]  ;;  %v4500_v26 = vld [vmem:[#allocation2 + $0xaf] ss:$2 sm:$0xff] }
 0x3b9   :  { %v5203_v57 = vsel %vm5157_vm7, %v5190_v10, %v9252_v46  ;;  %v5204_v5 = vsel %vm5157_vm7, %v5191_v22, %v9253_v29  ;;  %v9419_v22 = vpack.i.bf16 %v4440_v17, %v4438_v35  ;;  %v9424_v37 = vpack.i.bf16 %v4496_v53, %v4494_v23  ;;  %v4396_v51 = vld [vmem:[#allocation2 + $0xa5] ss:$2 sm:$0xff]  ;;  %v4428_v17 = vld [vmem:[#allocation2 + $0xd6] ss:$2 sm:$0xf] }
 0x3ba   :  { %9320 = vrot.lane.b32.xlu1 %v9319_v38, %s9680_s11  ;;  %v5301_v44 = vpack.c.bf16 %v5204_v5, %v5203_v57  ;;  %v9389_v38 = vpack.i.bf16 %v4436_v41, %v4434_v52  ;;  %v13788_v57 = vld [vmem:[#allocation2 + $0x80] ss:$2 sm:$0xff]  ;;  %v9429_v5 = vpack.i.bf16 %v4392_v28, %v4390_v15  ;;  %v4502_v55 = vld [vmem:[#allocation2 + $0xbf] ss:$2 sm:$0xff]  ;;  %v4504_v42 = vld [vmem:[#allocation2 + $0xcf] ss:$2 sm:$0xff] }
 0x3bb   :  { %9325 = vrot.lane.b32.xlu0 %v9324_v32, %s9690_s28  ;;  %v4414_v32 = vld [vmem:[#allocation2 + $0x66] ss:$2 sm:$0xff]  ;;  %v9434_v11 = vpack.i.bf16 %v13784_v21, %v13788_v57  ;;  %v4512_v41 = vld [vmem:[#allocation2 + $0xc1] ss:$2 sm:$0xff]  ;;  %v4514_v33 = vld [vmem:[#allocation2 + $0xd1] ss:$2 sm:$0xff] }
 0x3bc   :  { %5628 = vmatprep.mubr.bf16.mxu1 %v5301_v44  ;;  %v9409_v29 = vpack.i.bf16 %v4414_v32, %v4412_v0  ;;  %v4418_v44 = vld [vmem:[#allocation2 + $0x86] ss:$2 sm:$0xff]  ;;  %v9504_v40 = vpack.i.bf16 %v4514_v33, %v4512_v41  ;;  %v4450_v23 = vld [vmem:[#allocation2 + $0xb7] ss:$2 sm:$0xff] }
 0x3bd   :  { %5629 = vmatmul.mubr.bf16.gmra.mrb[12].mxu1 %v5300_v12  ;;  %v4444_v12 = vld [vmem:[#allocation2 + $0x87] ss:$2 sm:$0xff]  ;;  %v5755_v41 = vld [vmem:[%s14818_s3 + $0x38] sm:$0xff] }
 0x3be   :  { %9330 = vrot.lane.b32.xlu1 %v9329_v25, %s9691_s12  ;;  %v9449_v63 = vpack.i.bf16 %v4444_v12, %v4442_v54  ;;  %v4266_v12 = vld [vmem:[#allocation2 + $0x9a] ss:$2 sm:$0xff]  ;;  %v5758_v33 = vld [vmem:[%s14818_s3 + $0x50] sm:$0xff] }
 0x3bf   :  { %9335 = vrot.lane.b32.xlu0 %v9334_v58, %s9680_s11  ;;  %v4498_v58 = vld [vmem:[#allocation2 + $0x9f] ss:$2 sm:$0xff] }
 0x3c0   :  { %v9454_v59 = vpack.i.bf16 %v4500_v26, %v4498_v58 }
 0x3c2   :  { %9340 = vrot.lane.b32.xlu1 %v9339_v4, %s9680_s11  ;;  %v13797_v4 = vld [vmem:[#allocation2 + $0xb0] ss:$2 sm:$0xff] }
 0x3c3   :  { %9345 = vrot.lane.b32.xlu0 %v9344_v30, %s9690_s28  ;;  %v4394_v30 = vld [vmem:[#allocation2 + $0x95] ss:$2 sm:$0xff]  ;;  %v9464_v16 = vpack.i.bf16 %v13797_v4, %v13801_v50 }
 0x3c4   :  { %v9459_v7 = vpack.i.bf16 %v4396_v51, %v4394_v30 }
 0x3c6   :  { %9350 = vrot.lane.b32.xlu1 %v9349_v24, %s9690_s28  ;;  %v4420_v24 = vld [vmem:[#allocation2 + $0x96] ss:$2 sm:$0xff] }
 0x3c7   :  { %9355 = vrot.lane.b32.xlu0 %v13529_v13, %s9691_s12  ;;  %v4408_v13 = vld [vmem:[#allocation2 + $0x36] ss:$2 sm:$0xff] }
 0x3c8   :  { %v9379_v27 = vpack.i.bf16 %v4410_v48, %v4408_v13  ;;  %v4398_v48 = vld [vmem:[#allocation2 + $0xb5] ss:$2 sm:$0xff]  ;;  %v4400_v13 = vld [vmem:[#allocation2 + $0xc5] ss:$2 sm:$0xff] }
 0x3c9   :  { %v9489_v52 = vpack.i.bf16 %v4400_v13, %v4398_v48  ;;  %v5754_v48 = vld [vmem:[%s14818_s3 + $0x30] sm:$0xff]  ;;  %v5753_v13 = vld [vmem:[%s14818_s3 + $0x28] sm:$0xff] }
 0x3ca   :  { %9360 = vrot.lane.b32.xlu1 %v9359_v1, %s9691_s12  ;;  %v9484_v1 = vpack.i.bf16 %v4504_v42, %v4502_v55 }
 0x3cb   :  { %9365 = vrot.lane.b32.xlu0 %v9364_v19, %s9680_s11 }
 0x3ce   :  { %9370 = vrot.lane.b32.xlu1 %v9369_v8, %s9680_s11  ;;  %v4509_v8 = vld [vmem:[#allocation2 + $0xd0] ss:$2 sm:$0xff] }
 0x3cf   :  { %9375 = vrot.lane.b32.xlu0 %v9374_v45, %s9690_s28  ;;  %v9479_v45 = vpack.i.bf16 %v4448_v60, %v4446_v56  ;;  %v5749_v56 = vld [vmem:[%s14818_s3 + $0x8] sm:$0xff] }
 0x3d2   :  { %9380 = vrot.lane.b32.xlu1 %v9379_v27, %s9690_s28  ;;  %v9494_v27 = vpack.i.bf16 %v4509_v8, %v4507_v9  ;;  %v5750_v9 = vld [vmem:[%s14818_s3 + $0x10] sm:$0xff]  ;;  %v5752_v8 = vld [vmem:[%s14818_s3 + $0x20] sm:$0xff] }
 0x3d3   :  { %9385 = vrot.lane.b32.xlu0 %v13583_v31, %s9691_s12 }
 0x3d6   :  { %9390 = vrot.lane.b32.xlu1 %v9389_v38, %s9691_s12 }
 0x3d7   :  { %9395 = vrot.lane.b32.xlu0 %v9394_v62, %s9680_s11  ;;  %v4424_v62 = vld [vmem:[#allocation2 + $0xb6] ss:$2 sm:$0xff] }
 0x3da   :  { %v7157_v14 = vpop.f32.mrb[0].mxu1  ;;  %9400 = vrot.lane.b32.xlu1 %v9399_v3, %s9680_s11  ;;  %v4402_v3 = vld [vmem:[#allocation2 + $0xd5] ss:$2 sm:$0xf] }
 0x3db   :  { %9405 = vrot.lane.b32.xlu0 %v9404_v6, %s9690_s28  ;;  %v7158_v31 = vpop.f32.mrb[1].mxu1  ;;  %v4506_v6 = vld [vmem:[#allocation2 + $0xdf] ss:$2 sm:$0xf] }
 0x3dc   :  { %v13777_v39 = vadd.f32 %v7158_v31, %v7157_v14  ;;  %v7160_v20 = vpop.f32.mrb[2].mxu1 }
 0x3dd   :  { %v7161_v46 = vpop.f32.mrb[3].mxu1 }
 0x3de   :  { %v13779_v10 = vadd.f32 %v7161_v46, %v7160_v20  ;;  %9410 = vrot.lane.b32.xlu1 %v9409_v29, %s9690_s28  ;;  %v4452_v46 = vld [vmem:[#allocation2 + $0xc7] ss:$2 sm:$0xff] }
 0x3df   :  { %9415 = vrot.lane.b32.xlu0 %v13608_v43, %s9691_s12  ;;  %v4416_v43 = vld [vmem:[#allocation2 + $0x76] ss:$2 sm:$0xff]  ;;  %v9509_v58 = vpack.i.bf16 %v4452_v46, %v4450_v23 }
 0x3e0   :  { %v9439_v25 = vpack.i.bf16 %v4418_v44, %v4416_v43 }
 0x3e2   :  { %9420 = vrot.lane.b32.xlu1 %v9419_v22, %s9691_s12  ;;  %v9514_v22 = vpack.i.bf16 %v4402_v3, %v4506_v6  ;;  %v5759_v3 = vld [vmem:[%s14818_s3 + $0x58] sm:$0xff] }
 0x3e3   :  { %9425 = vrot.lane.b32.xlu0 %v9424_v37, %s9680_s11  ;;  %v4511_v37 = vld [vmem:[#allocation2 + $0xe0] ss:$2 sm:$0xf] }
 0x3e4   :  { %v9669_v6 = vld [vmem:[%s14815_s0 + $0x274] ss:$2 sm:$0xff] }
 0x3e6   :  { %9430 = vrot.lane.b32.xlu1 %v9429_v5, %s9680_s11 }
 0x3e7   :  { %9435 = vrot.lane.b32.xlu0 %v9434_v11, %s9690_s28 }
 0x3e8   :  { %v9266_v47 = vpop.permute.xlu0 %9265 }
 0x3e9   :  { %v9267_v2 = vunpack.i.l.bf16 %v9266_v47  ;;  %v9268_v32 = vunpack.i.h.bf16 %v9266_v47 }
 0x3ea   :  { %9440 = vrot.lane.b32.xlu1 %v9439_v25, %s9690_s28  ;;  %v4264_v25 = vld [vmem:[#allocation2 + $0x8a] ss:$2 sm:$0xff] }
 0x3eb   :  { %9445 = vrot.lane.b32.xlu0 %v13659_v18, %s9691_s12  ;;  %v4422_v18 = vld [vmem:[#allocation2 + $0xa6] ss:$2 sm:$0xff]  ;;  %v5139_v28 = vsel %vm15172_vm8, %v13788_v57, %v9267_v2  ;;  %v5140_v44 = vsel %vm15173_vm6, %v13784_v21, %v9268_v32  ;;  %v4454_v57 = vld [vmem:[#allocation2 + $0xd7] ss:$2 sm:$0xf]  ;;  %vm15179_vm8 = vmmov %vm15170_vm0 }
 0x3ec   :  { %v9469_v34 = vpack.i.bf16 %v4422_v18, %v4420_v24  ;;  %v9276_v19 = vpop.permute.xlu0 %9275  ;;  %vm15180_vm6 = vmmov %vm15170_vm0 }
 0x3ed   :  { %v9277_v14 = vunpack.i.l.bf16 %v9276_v19  ;;  %v9278_v31 = vunpack.i.h.bf16 %v9276_v19  ;;  %v5748_v19 = vld [vmem:[%s14818_s3] sm:$0xff] }
 0x3ee   :  { %9450 = vrot.lane.b32.xlu1 %v9449_v63, %s9691_s12  ;;  %v9519_v63 = vpack.i.bf16 %v4428_v17, %v4511_v37  ;;  %v6885_v17 = vld [vmem:[%s14815_s0 + $0x294] ss:$2 sm:$0xff]  ;;  %v6887_v37 = vld [vmem:[%s14815_s0 + $0x295] ss:$2 sm:$0xff] }
 0x3ef   :  { %9455 = vrot.lane.b32.xlu0 %v9454_v59, %s9680_s11  ;;  %v5152_v43 = vsel %vm3773_vm5, %v5139_v28, %v9277_v14  ;;  %v5153_v26 = vsel %vm3773_vm5, %v5140_v44, %v9278_v31  ;;  %v4516_v59 = vld [vmem:[#allocation2 + $0xe1] ss:$2 sm:$0xf]  ;;  %v13893_v28 = vld [vmem:[%s14815_s0 + $0x296] ss:$2 sm:$0xff] }
 0x3f0   :  { %v9286_v38 = vpop.permute.xlu0 %9285  ;;  %v6883_v14 = vld [vmem:[%s14815_s0 + $0x285] ss:$2 sm:$0xff]  ;;  %v9670_v44 = vld [vmem:[%s14815_s0 + $0x275] ss:$2 sm:$0xff] }
 0x3f1   :  { %v9287_v0 = vunpack.i.l.bf16 %v9286_v38  ;;  %v9288_v15 = vunpack.i.h.bf16 %v9286_v38 }
 0x3f2   :  { %9460 = vrot.lane.b32.xlu1 %v9459_v7, %s9680_s11 }
 0x3f3   :  { %9465 = vrot.lane.b32.xlu0 %v9464_v16, %s9690_s28  ;;  %v5166_v51 = vsel %vm5157_vm7, %v5152_v43, %v9287_v0  ;;  %v5167_v24 = vsel %vm5157_vm7, %v5153_v26, %v9288_v15  ;;  %v9536_v43 = vpack.i.bf16 %v6883_v14, %v9670_v44 }
 0x3f6   :  { %9470 = vrot.lane.b32.xlu1 %v9469_v34, %s9690_s28  ;;  %v9524_v34 = vpack.i.bf16 %v4454_v57, %v4516_v59 }
 0x3f7   :  { %9475 = vrot.lane.b32.xlu0 %v13692_v61, %s9691_s12  ;;  %v4426_v61 = vld [vmem:[#allocation2 + $0xc6] ss:$2 sm:$0xff] }
 0x3f8   :  { %v9499_v29 = vpack.i.bf16 %v4426_v61, %v4424_v62  ;;  %v5760_v62 = vld [vmem:[%s14818_s3 + $0x60] sm:$0xf]  ;;  %v6842_v61 = vld [vmem:[%s14815_s0 + $0x284] ss:$2 sm:$0xff] }
 0x3f9   :  { %v9531_v32 = vpack.i.bf16 %v6842_v61, %v9669_v6 }
 0x3fa   :  { %9480 = vrot.lane.b32.xlu1 %v9479_v45, %s9691_s12  ;;  %v5751_v45 = vld [vmem:[%s14818_s3 + $0x18] sm:$0xff] }
 0x3fb   :  { %9485 = vrot.lane.b32.xlu0 %v9484_v1, %s9680_s11  ;;  %v5304_v1 = vpack.c.bf16 %v5167_v24, %v5166_v51  ;;  %v9546_v51 = vpack.i.bf16 %v6887_v37, %v6883_v14  ;;  %v6973_v14 = vld [vmem:[%s14815_s0 + $0x2a7] ss:$2 sm:$0xff] }
 0x3fc   :  { %v9261_v36 = vpop.permute.xlu1 %9260 }
 0x3fd   :  { %v9263_v53 = vunpack.i.h.bf16 %v9261_v36  ;;  %v9262_v35 = vunpack.i.l.bf16 %v9261_v36  ;;  %v5757_v36 = vld [vmem:[%s14818_s3 + $0x48] sm:$0xff] }
 0x3fe   :  { %9490 = vrot.lane.b32.xlu1 %v9489_v52, %s9680_s11 }
 0x3ff   :  { %9495 = vrot.lane.b32.xlu0 %v9494_v27, %s9690_s28  ;;  %v5179_v30 = vsel %vm15174_vm10, %v4264_v25, %v9262_v35  ;;  %v5180_v7 = vsel %vm15175_vm2, %v4266_v12, %v9263_v53  ;;  %v5756_v27 = vld [vmem:[%s14818_s3 + $0x40] sm:$0xff]  ;;  %v4268_v25 = vld [vmem:[#allocation2 + $0xaa] ss:$2 sm:$0xff]  ;;  %vm15181_vm10 = vmmov %vm15170_vm0 }
 0x400   :  { %v9271_v20 = vpop.permute.xlu1 %9270  ;;  %v4270_v12 = vld [vmem:[#allocation2 + $0xba] ss:$2 sm:$0xff]  ;;  %vm15182_vm2 = vmmov %vm15170_vm0 }
 0x401   :  { %v9273_v5 = vunpack.i.h.bf16 %v9271_v20  ;;  %v9272_v11 = vunpack.i.l.bf16 %v9271_v20 }
 0x402   :  { %9500 = vrot.lane.b32.xlu1 %v9499_v29, %s9690_s28 }
 0x403   :  { %9505 = vrot.lane.b32.xlu0 %v9504_v40, %s9691_s12  ;;  %v5192_v21 = vsel %vm3773_vm5, %v5179_v30, %v9272_v11  ;;  %v5193_v18 = vsel %vm3773_vm5, %v5180_v7, %v9273_v5  ;;  %v9671_v30 = vld [vmem:[%s14815_s0 + $0x286] ss:$2 sm:$0xff] }
 0x404   :  { %v9281_v54 = vpop.permute.xlu1 %9280  ;;  %v9551_v7 = vpack.i.bf16 %v13893_v28, %v9671_v30 }
 0x405   :  { %v9283_v16 = vunpack.i.h.bf16 %v9281_v54  ;;  %v9282_v47 = vunpack.i.l.bf16 %v9281_v54 }
 0x406   :  { %9510 = vrot.lane.b32.xlu1 %v9509_v58, %s9691_s12  ;;  %v9541_v58 = vpack.i.bf16 %v6885_v17, %v6842_v61 }
 0x407   :  { %9515 = vrot.lane.b32.xlu0 %v9514_v22, %s9680_s11  ;;  %v5205_v55 = vsel %vm5157_vm7, %v5192_v21, %v9282_v47  ;;  %v5206_v42 = vsel %vm5157_vm7, %v5193_v18, %v9283_v16 }
 0x408   :  { %v5305_v60 = vpack.c.bf16 %v5206_v42, %v5205_v55 }
 0x40a   :  { %5636 = vmatprep.mubr.bf16.mxu1 %v5305_v60  ;;  %9520 = vrot.lane.b32.xlu1 %v9519_v63, %s9690_s28 }
 0x40b   :  { %9525 = vrot.lane.b32.xlu0 %v9524_v34, %s9691_s12  ;;  %5637 = vmatmul.mubr.bf16.gmra.mrb[16].mxu1 %v5304_v1 }
 0x40e   :  { %5763 = vperm.xlu1 %9529, %v5748_v19  }
 0x40f   :  { %5768 = vperm.xlu0 %9530, %v5749_v56   ;;  %v4168_v56 = vld [vmem:[#allocation2 + $0xc0] ss:$2 sm:$0xf] }
 0x412   :  { %5773 = vperm.xlu1 %9529, %v5750_v9   ;;  %v6969_v9 = vld [vmem:[%s14815_s0 + $0x297] ss:$2 sm:$0xff] }
 0x413   :  { %5783 = vperm.xlu0 %9530, %v5752_v8   ;;  %v4272_v8 = vld [vmem:[#allocation2 + $0xca] ss:$2 sm:$0xf] }
 0x416   :  { %5778 = vperm.xlu1 %9529, %v5751_v45  }
 0x417   :  { %5793 = vperm.xlu0 %9530, %v5754_v48  }
 0x41a   :  { %5788 = vperm.xlu1 %9529, %v5753_v13  }
 0x41b   :  { %5803 = vperm.xlu0 %9530, %v5756_v27  }
 0x41e   :  { %5798 = vperm.xlu1 %9529, %v5755_v41   ;;  %v6971_v41 = vld [vmem:[%s14815_s0 + $0x2a6] ss:$2 sm:$0xff] }
 0x41f   :  { %5813 = vperm.xlu0 %9530, %v5758_v33  }
 0x420   :  { %v9291_v52 = vpop.permute.xlu1 %9290 }
 0x421   :  { %v9296_v38 = vpop.permute.xlu0 %9295  ;;  %v9293_v31 = vunpack.i.h.bf16 %v9291_v52  ;;  %v9292_v0 = vunpack.i.l.bf16 %v9291_v52 }
 0x422   :  { %v7163_v2 = vpop.f32.mrb[4].mxu1  ;;  %5808 = vperm.xlu1 %9529, %v5757_v36   ;;  %v9298_v53 = vunpack.i.h.bf16 %v9296_v38  ;;  %v9297_v35 = vunpack.i.l.bf16 %v9296_v38 }
 0x423   :  { %5823 = vperm.xlu0 %9530, %v5760_v62   ;;  %v7164_v40 = vpop.f32.mrb[5].mxu1  ;;  %v5181_v63 = vsel %vm15176_vm9, %v4268_v25, %v9292_v0  ;;  %v5182_v57 = vsel %vm15177_vm3, %v4270_v12, %v9293_v31  ;;  %v4456_v12 = vld [vmem:[#allocation2 + $0x1e] ss:$2 sm:$0xff]  ;;  %vm15183_vm9 = vmmov %vm15170_vm0 }
 0x424   :  { %v13882_v20 = vadd.f32 %v7164_v40, %v7163_v2  ;;  %v7166_v29 = vpop.f32.mrb[6].mxu1  ;;  %v9301_v46 = vpop.permute.xlu1 %9300  ;;  %v5141_v16 = vsel %vm15170_vm0, %v13801_v50, %v9297_v35  ;;  %v5142_v47 = vsel %vm15178_vm1, %v13797_v4, %v9298_v53  ;;  %v9672_v2 = vld [vmem:[%s14815_s0 + $0x287] ss:$2 sm:$0xff]  ;;  %v9566_v35 = vpack.i.bf16 %v6973_v14, %v6969_v9  ;;  %vm15184_vm3 = vmmov %vm15170_vm0 }
 0x425   :  { %v9306_v23 = vpop.permute.xlu0 %9305  ;;  %v7167_v22 = vpop.f32.mrb[7].mxu1  ;;  %v9303_v15 = vunpack.i.h.bf16 %v9301_v46  ;;  %v9302_v5 = vunpack.i.l.bf16 %v9301_v46  ;;  %v9556_v40 = vpack.i.bf16 %v6969_v9, %v9672_v2  ;;  %vm15185_vm1 = vmmov %vm15170_vm0 }
 0x426   :  { %v13895_v11 = vadd.f32 %v7167_v22, %v7166_v29  ;;  %5818 = vperm.xlu1 %9529, %v5759_v3   ;;  %v9308_v26 = vunpack.i.h.bf16 %v9306_v23  ;;  %v9307_v54 = vunpack.i.l.bf16 %v9306_v23 }
 0x427   :  { %9532 = vrot.lane.b32.xlu0 %v9531_v32, %s9678_s30  ;;  %v5194_v55 = vsel %vm3773_vm5, %v5181_v63, %v9302_v5  ;;  %v5195_v42 = vsel %vm3773_vm5, %v5182_v57, %v9303_v15  ;;  %v9561_v32 = vpack.i.bf16 %v6971_v41, %v13893_v28  ;;  %v6843_v5 = vld [vmem:[%s14815_s0 + $0x294] ss:$2 sm:$0xf] }
 0x428   :  { %v9311_v59 = vpop.permute.xlu1 %9310  ;;  %v5154_v1 = vsel %vm3773_vm5, %v5141_v16, %v9307_v54  ;;  %v5155_v19 = vsel %vm3773_vm5, %v5142_v47, %v9308_v26 }
 0x429   :  { %v9313_v21 = vunpack.i.h.bf16 %v9311_v59  ;;  %v9312_v18 = vunpack.i.l.bf16 %v9311_v59  ;;  %v9316_v24 = vpop.permute.xlu0 %9315  ;;  %v6884_v59 = vld [vmem:[%s14815_s0 + $0x295] ss:$2 sm:$0xf] }
 0x42a   :  { %v9318_v34 = vunpack.i.h.bf16 %v9316_v24  ;;  %v9317_v60 = vunpack.i.l.bf16 %v9316_v24  ;;  %9537 = vrot.lane.b32.xlu1 %v9536_v43, %s9681_s14 }
 0x42b   :  { %v5207_v50 = vsel %vm5157_vm7, %v5194_v55, %v9312_v18  ;;  %v5208_v4 = vsel %vm5157_vm7, %v5195_v42, %v9313_v21  ;;  %9542 = vrot.lane.b32.xlu0 %v9541_v58, %s9680_s11  ;;  %v4458_v58 = vld [vmem:[#allocation2 + $0x2e] ss:$2 sm:$0xff] }
 0x42c   :  { %v9321_v45 = vpop.permute.xlu1 %9320  ;;  %v5309_v48 = vpack.c.bf16 %v5208_v4, %v5207_v50  ;;  %v5168_v13 = vsel %vm5157_vm7, %v5154_v1, %v9317_v60  ;;  %v5169_v27 = vsel %vm5157_vm7, %v5155_v19, %v9318_v34  ;;  %v4354_v55 = vld [vmem:[#allocation2 + $0x24] ss:$2 sm:$0xff]  ;;  %v4352_v60 = vld [vmem:[#allocation2 + $0x14] ss:$2 sm:$0xff] }
 0x42d   :  { %v9323_v33 = vunpack.i.h.bf16 %v9321_v45  ;;  %v9322_v36 = vunpack.i.l.bf16 %v9321_v45  ;;  %v9326_v52 = vpop.permute.xlu0 %9325  ;;  %v5308_v38 = vpack.c.bf16 %v5169_v27, %v5168_v13  ;;  %v6886_v4 = vld [vmem:[%s14815_s0 + $0x2a4] ss:$2 sm:$0xf] }
 0x42e   :  { %v9328_v62 = vunpack.i.h.bf16 %v9326_v52  ;;  %v9327_v61 = vunpack.i.l.bf16 %v9326_v52  ;;  %5644 = vmatprep.mubr.bf16.mxu1 %v5309_v48  ;;  %9547 = vrot.lane.b32.xlu1 %v9546_v51, %s9683_s24 }
 0x42f   :  { %v5143_v3 = vsel %vm15179_vm8, %v4168_v56, %v9323_v33  ;;  %v5183_v6 = vsel %vm15180_vm6, %v4272_v8, %v9322_v36  ;;  %5645 = vmatmul.mubr.bf16.gmra.mrb[20].mxu1 %v5308_v38  ;;  %9552 = vrot.lane.b32.xlu0 %v9551_v7, %s9682_s21  ;;  %vm15186_vm8 = vmmov %vm15170_vm0 }
 0x430   :  { %v9331_v31 = vpop.permute.xlu1 %9330  ;;  %v5156_v17 = vsel %vm3773_vm5, %v5143_v3, %v9328_v62  ;;  %v5196_v53 = vsel %vm3773_vm5, %v5183_v6, %v9327_v61  ;;  %v6888_v3 = vld [vmem:[%s14815_s0 + $0x2a5] ss:$2 sm:$0xf]  ;;  %vm15187_vm6 = vmmov %vm15170_vm0 }
 0x431   :  { %v9333_v0 = vunpack.i.h.bf16 %v9331_v31  ;;  %v9332_v29 = vunpack.i.l.bf16 %v9331_v31  ;;  %v9336_v46 = vpop.permute.xlu0 %9335 }
 0x432   :  { %9557 = vrot.lane.b32.xlu1 %v9556_v40, %s9685_s10  ;;  %v9338_v44 = vunpack.i.h.bf16 %v9336_v46  ;;  %v9337_v43 = vunpack.i.l.bf16 %v9336_v46 }
 0x433   :  { %v5209_v23 = vsel %vm5157_vm7, %v5196_v53, %v9332_v29  ;;  %v5170_v22 = vsel %vm5157_vm7, %v5156_v17, %v9333_v0  ;;  %9562 = vrot.lane.b32.xlu0 %v9561_v32, %s9684_s8  ;;  %v4460_v17 = vld [vmem:[#allocation2 + $0x3e] ss:$2 sm:$0xff]  ;;  %v4462_v53 = vld [vmem:[#allocation2 + $0x4e] ss:$2 sm:$0xff] }
 0x434   :  { %v9341_v37 = vpop.permute.xlu1 %9340  ;;  %v5313_v28 = vpack.c.bf16 %v5209_v23, %v5209_v23  ;;  %v5312_v15 = vpack.c.bf16 %v5170_v22, %v5170_v22  ;;  %v5250_v51 = vsel %vm15181_vm10, %v4458_v58, %v9338_v44  ;;  %v5249_v30 = vsel %vm15182_vm2, %v4456_v12, %v9337_v43  ;;  %v4358_v12 = vld [vmem:[#allocation2 + $0x44] ss:$2 sm:$0xff]  ;;  %v4356_v58 = vld [vmem:[#allocation2 + $0x34] ss:$2 sm:$0xff]  ;;  %vm15188_vm10 = vmmov %vm15170_vm0 }
 0x435   :  { %v9346_v25 = vpop.permute.xlu0 %9345  ;;  %v9343_v63 = vunpack.i.h.bf16 %v9341_v37  ;;  %v9342_v7 = vunpack.i.l.bf16 %v9341_v37  ;;  %vm15189_vm2 = vmmov %vm15170_vm0 }
 0x436   :  { %5652 = vmatprep.mubr.bf16.mxu1 %v5313_v28  ;;  %9567 = vrot.lane.b32.xlu1 %v9566_v35, %s9687_s18  ;;  %v9348_v26 = vunpack.i.h.bf16 %v9346_v25  ;;  %v9347_v54 = vunpack.i.l.bf16 %v9346_v25 }
 0x437   :  { %5653 = vmatmul.mubr.bf16.gmra.mrb[24].mxu1 %v5312_v15  ;;  %1727 = vrot.lane.b32.xlu0 %v6843_v5, %s9678_s30  ;;  %v5211_v1 = vsel %vm15183_vm9, %v4354_v55, %v9343_v63  ;;  %v5210_v9 = vsel %vm15184_vm3, %v4352_v60, %v9342_v7  ;;  %vm15190_vm9 = vmmov %vm15170_vm0 }
 0x438   :  { %v9351_v57 = vpop.permute.xlu1 %9350  ;;  %v5262_v42 = vsel %vm3773_vm5, %v5249_v30, %v9347_v54  ;;  %v5263_v34 = vsel %vm3773_vm5, %v5250_v51, %v9348_v26  ;;  %vm15191_vm3 = vmmov %vm15170_vm0 }
 0x439   :  { %v9356_v16 = vpop.permute.xlu0 %9355  ;;  %v9353_v47 = vunpack.i.h.bf16 %v9351_v57  ;;  %v9352_v21 = vunpack.i.l.bf16 %v9351_v57 }
 0x43a   :  { %v9358_v18 = vunpack.i.h.bf16 %v9356_v16  ;;  %v9357_v24 = vunpack.i.l.bf16 %v9356_v16 }
 0x43b   :  { %1891 = vrot.lane.b32.xlu0 %v6884_v59, %s9681_s14  ;;  %v5223_v27 = vsel %vm3773_vm5, %v5210_v9, %v9352_v21  ;;  %v5224_v41 = vsel %vm3773_vm5, %v5211_v1, %v9353_v47 }
 0x43c   :  { %v9361_v19 = vpop.permute.xlu1 %9360  ;;  %v5275_v56 = vsel %vm5157_vm7, %v5262_v42, %v9357_v24  ;;  %v5276_v50 = vsel %vm5157_vm7, %v5263_v34, %v9358_v18 }
 0x43d   :  { %v9363_v8 = vunpack.i.h.bf16 %v9361_v19  ;;  %v9362_v45 = vunpack.i.l.bf16 %v9361_v19  ;;  %v9366_v48 = vpop.permute.xlu0 %9365  ;;  %v5291_v13 = vpack.c.bf16 %v5276_v50, %v5275_v56  ;;  %v4464_v50 = vld [vmem:[#allocation2 + $0x5e] ss:$2 sm:$0xff] }
 0x43e   :  { %v7169_v33 = vpop.f32.mrb[8].mxu1  ;;  %v9368_v6 = vunpack.i.h.bf16 %v9366_v48  ;;  %v9367_v32 = vunpack.i.l.bf16 %v9366_v48 }
 0x43f   :  { %v5236_v36 = vsel %vm5157_vm7, %v5223_v27, %v9362_v45  ;;  %v5237_v52 = vsel %vm5157_vm7, %v5224_v41, %v9363_v8  ;;  %5692 = vmatprep.mubr.bf16.mxu1 %v5291_v13  ;;  %v7170_v38 = vpop.f32.mrb[9].mxu1  ;;  %2016 = vrot.lane.b32.xlu0 %v6886_v4, %s9680_s11  ;;  %v4466_v8 = vld [vmem:[#allocation2 + $0x6e] ss:$2 sm:$0xff] }
 0x440   :  { %v5290_v62 = vpack.c.bf16 %v5237_v52, %v5236_v36  ;;  %v13969_v61 = vadd.f32 %v7170_v38, %v7169_v33  ;;  %v7172_v2 = vpop.f32.mrb[10].mxu1  ;;  %v9371_v40 = vpop.permute.xlu1 %9370  ;;  %v5252_v22 = vsel %vm15170_vm0, %v4462_v53, %v9368_v6  ;;  %v5251_v37 = vsel %vm15185_vm1, %v4460_v17, %v9367_v32  ;;  %v4360_v6 = vld [vmem:[#allocation2 + $0x54] ss:$2 sm:$0xff]  ;;  %vm15192_vm1 = vmmov %vm15170_vm0 }
 0x441   :  { %v9376_v14 = vpop.permute.xlu0 %9375  ;;  %v7173_v31 = vpop.f32.mrb[11].mxu1  ;;  %v9373_v35 = vunpack.i.h.bf16 %v9371_v40  ;;  %v9372_v28 = vunpack.i.l.bf16 %v9371_v40 }
 0x442   :  { %v13974_v0 = vadd.f32 %v7173_v31, %v7172_v2  ;;  %5693 = vmatmul.mubr.bf16.vlgmr.msra.gmra.mrb[28].mxu1 %v5290_v62  ;;  %v9378_v29 = vunpack.i.h.bf16 %v9376_v14  ;;  %v9377_v46 = vunpack.i.l.bf16 %v9376_v14  ;;  %v4362_v2 = vld [vmem:[#allocation2 + $0x64] ss:$2 sm:$0xff] }
 0x443   :  { %2141 = vrot.lane.b32.xlu0 %v6888_v3, %s9683_s24  ;;  %v5213_v63 = vsel %vm15186_vm8, %v4358_v12, %v9373_v35  ;;  %v5212_v30 = vsel %vm15187_vm6, %v4356_v58, %v9372_v28  ;;  %v4468_v58 = vld [vmem:[#allocation2 + $0x7e] ss:$2 sm:$0xff]  ;;  %vm15193_vm8 = vmmov %vm15170_vm0 }
 0x444   :  { %v9381_v23 = vpop.permute.xlu1 %9380  ;;  %v5264_v26 = vsel %vm3773_vm5, %v5251_v37, %v9377_v46  ;;  %v5265_v54 = vsel %vm3773_vm5, %v5252_v22, %v9378_v29  ;;  %vm15194_vm6 = vmmov %vm15170_vm0 }
 0x445   :  { %v9386_v15 = vpop.permute.xlu0 %9385  ;;  %v9383_v5 = vunpack.i.h.bf16 %v9381_v23  ;;  %v9382_v44 = vunpack.i.l.bf16 %v9381_v23 }
 0x446   :  { %v9388_v43 = vunpack.i.h.bf16 %v9386_v15  ;;  %v9387_v25 = vunpack.i.l.bf16 %v9386_v15 }
 0x447   :  { %v5225_v18 = vsel %vm3773_vm5, %v5212_v30, %v9382_v44  ;;  %v5226_v24 = vsel %vm3773_vm5, %v5213_v63, %v9383_v5  ;;  %v4470_v63 = vld [vmem:[#allocation2 + $0x8e] ss:$2 sm:$0xff] }
 0x448   :  { %v9391_v57 = vpop.permute.xlu1 %9390  ;;  %v5277_v59 = vsel %vm5157_vm7, %v5264_v26, %v9387_v25  ;;  %v5278_v51 = vsel %vm5157_vm7, %v5265_v54, %v9388_v43 }
 0x449   :  { %v9393_v7 = vunpack.i.h.bf16 %v9391_v57  ;;  %v9392_v16 = vunpack.i.l.bf16 %v9391_v57  ;;  %v9396_v47 = vpop.permute.xlu0 %9395  ;;  %v5295_v21 = vpack.c.bf16 %v5278_v51, %v5277_v59 }
 0x44a   :  { %v9398_v1 = vunpack.i.h.bf16 %v9396_v47  ;;  %v9397_v19 = vunpack.i.l.bf16 %v9396_v47 }
 0x44b   :  { %5700 = vmatprep.mubr.bf16.mxu1 %v5295_v21  ;;  %v5238_v55 = vsel %vm5157_vm7, %v5225_v18, %v9392_v16  ;;  %v5239_v42 = vsel %vm5157_vm7, %v5226_v24, %v9393_v7 }
 0x44c   :  { %v9401_v34 = vpop.permute.xlu1 %9400  ;;  %v5294_v60 = vpack.c.bf16 %v5239_v42, %v5238_v55  ;;  %v5254_v13 = vsel %vm15188_vm10, %v4466_v8, %v9398_v1  ;;  %v5253_v27 = vsel %vm15189_vm2, %v4464_v50, %v9397_v19  ;;  %v4366_v55 = vld [vmem:[#allocation2 + $0x84] ss:$2 sm:$0xff]  ;;  %vm15195_vm10 = vmmov %vm15170_vm0 }
 0x44d   :  { %v9406_v56 = vpop.permute.xlu0 %9405  ;;  %v9403_v45 = vunpack.i.h.bf16 %v9401_v34  ;;  %v9402_v41 = vunpack.i.l.bf16 %v9401_v34  ;;  %vm15196_vm2 = vmmov %vm15170_vm0 }
 0x44e   :  { %5701 = vmatmul.mubr.bf16.gmra.mrb[32].mxu1 %v5294_v60  ;;  %v9408_v4 = vunpack.i.h.bf16 %v9406_v56  ;;  %v9407_v9 = vunpack.i.l.bf16 %v9406_v56  ;;  %v4364_v60 = vld [vmem:[#allocation2 + $0x74] ss:$2 sm:$0xff] }
 0x44f   :  { %v5215_v32 = vsel %vm15190_vm9, %v4362_v2, %v9403_v45  ;;  %v5214_v46 = vsel %vm15191_vm3, %v4360_v6, %v9402_v41  ;;  %v4472_v6 = vld [vmem:[#allocation2 + $0x9e] ss:$2 sm:$0xff]  ;;  %vm15197_vm9 = vmmov %vm15170_vm0 }
 0x450   :  { %v9411_v48 = vpop.permute.xlu1 %9410  ;;  %v5266_v40 = vsel %vm3773_vm5, %v5253_v27, %v9407_v9  ;;  %v5267_v3 = vsel %vm3773_vm5, %v5254_v13, %v9408_v4  ;;  %vm15198_vm3 = vmmov %vm15170_vm0 }
 0x451   :  { %v9416_v33 = vpop.permute.xlu0 %9415  ;;  %v9413_v36 = vunpack.i.h.bf16 %v9411_v48  ;;  %v9412_v52 = vunpack.i.l.bf16 %v9411_v48 }
 0x452   :  { %v9418_v38 = vunpack.i.h.bf16 %v9416_v33  ;;  %v9417_v62 = vunpack.i.l.bf16 %v9416_v33 }
 0x453   :  { %v5227_v22 = vsel %vm3773_vm5, %v5214_v46, %v9412_v52  ;;  %v5228_v37 = vsel %vm3773_vm5, %v5215_v32, %v9413_v36  ;;  %v4474_v32 = vld [vmem:[#allocation2 + $0xae] ss:$2 sm:$0xff] }
 0x454   :  { %v9421_v14 = vpop.permute.xlu1 %9420  ;;  %v5279_v31 = vsel %vm5157_vm7, %v5266_v40, %v9417_v62  ;;  %v5280_v29 = vsel %vm5157_vm7, %v5267_v3, %v9418_v38 }
 0x455   :  { %v9423_v17 = vunpack.i.h.bf16 %v9421_v14  ;;  %v9422_v53 = vunpack.i.l.bf16 %v9421_v14  ;;  %v9426_v35 = vpop.permute.xlu0 %9425  ;;  %v5299_v23 = vpack.c.bf16 %v5280_v29, %v5279_v31 }
 0x456   :  { %v9428_v43 = vunpack.i.h.bf16 %v9426_v35  ;;  %v9427_v25 = vunpack.i.l.bf16 %v9426_v35 }
 0x457   :  { %5708 = vmatprep.mubr.bf16.mxu1 %v5299_v23  ;;  %v5240_v28 = vsel %vm5157_vm7, %v5227_v22, %v9422_v53  ;;  %v5241_v15 = vsel %vm5157_vm7, %v5228_v37, %v9423_v17 }
 0x458   :  { %v9431_v5 = vpop.permute.xlu1 %9430  ;;  %v5298_v44 = vpack.c.bf16 %v5241_v15, %v5240_v28  ;;  %v5256_v51 = vsel %vm15170_vm0, %v4470_v63, %v9428_v43  ;;  %v5255_v30 = vsel %vm15192_vm1, %v4468_v58, %v9427_v25  ;;  %v4370_v28 = vld [vmem:[#allocation2 + $0xa4] ss:$2 sm:$0xff]  ;;  %vm15199_vm1 = vmmov %vm15170_vm0 }
 0x459   :  { %v9436_v12 = vpop.permute.xlu0 %9435  ;;  %v9433_v57 = vunpack.i.h.bf16 %v9431_v5  ;;  %v9432_v7 = vunpack.i.l.bf16 %v9431_v5 }
 0x45a   :  { %5709 = vmatmul.mubr.bf16.gmra.mrb[36].mxu1 %v5298_v44  ;;  %v9438_v26 = vunpack.i.h.bf16 %v9436_v12  ;;  %v9437_v54 = vunpack.i.l.bf16 %v9436_v12  ;;  %v4368_v44 = vld [vmem:[#allocation2 + $0x94] ss:$2 sm:$0xff] }
 0x45b   :  { %v5217_v1 = vsel %vm15193_vm8, %v4366_v55, %v9433_v57  ;;  %v5216_v4 = vsel %vm15194_vm6, %v4364_v60, %v9432_v7  ;;  %v4476_v55 = vld [vmem:[#allocation2 + $0xbe] ss:$2 sm:$0xff]  ;;  %vm15200_vm8 = vmmov %vm15170_vm0 }
 0x45c   :  { %v9441_v59 = vpop.permute.xlu1 %9440  ;;  %v5268_v42 = vsel %vm3773_vm5, %v5255_v30, %v9437_v54  ;;  %v5269_v34 = vsel %vm3773_vm5, %v5256_v51, %v9438_v26  ;;  %vm15201_vm6 = vmmov %vm15170_vm0 }
 0x45d   :  { %v9446_v16 = vpop.permute.xlu0 %9445  ;;  %v9443_v47 = vunpack.i.h.bf16 %v9441_v59  ;;  %v9442_v21 = vunpack.i.l.bf16 %v9441_v59 }
 0x45e   :  { %v9448_v18 = vunpack.i.h.bf16 %v9446_v16  ;;  %v9447_v24 = vunpack.i.l.bf16 %v9446_v16 }
 0x45f   :  { %v5229_v13 = vsel %vm3773_vm5, %v5216_v4, %v9442_v21  ;;  %v5230_v27 = vsel %vm3773_vm5, %v5217_v1, %v9443_v47 }
 0x460   :  { %v9451_v19 = vpop.permute.xlu1 %9450  ;;  %v5281_v56 = vsel %vm5157_vm7, %v5268_v42, %v9447_v24  ;;  %v5282_v50 = vsel %vm5157_vm7, %v5269_v34, %v9448_v18  ;;  %v4478_v42 = vld [vmem:[#allocation2 + $0xce] ss:$2 sm:$0xff] }
 0x461   :  { %v9453_v9 = vunpack.i.h.bf16 %v9451_v19  ;;  %v9452_v8 = vunpack.i.l.bf16 %v9451_v19  ;;  %v9456_v45 = vpop.permute.xlu0 %9455  ;;  %v5303_v48 = vpack.c.bf16 %v5282_v50, %v5281_v56 }
 0x462   :  { %v9458_v38 = vunpack.i.h.bf16 %v9456_v45  ;;  %v9457_v62 = vunpack.i.l.bf16 %v9456_v45 }
 0x463   :  { %5716 = vmatprep.mubr.bf16.mxu1 %v5303_v48  ;;  %v5242_v41 = vsel %vm5157_vm7, %v5229_v13, %v9452_v8  ;;  %v5243_v33 = vsel %vm5157_vm7, %v5230_v27, %v9453_v9  ;;  %v4374_v9 = vld [vmem:[#allocation2 + $0xc4] ss:$2 sm:$0xff] }
 0x464   :  { %v9461_v36 = vpop.permute.xlu1 %9460  ;;  %v5302_v52 = vpack.c.bf16 %v5243_v33, %v5242_v41  ;;  %v5258_v29 = vsel %vm15195_vm10, %v4474_v32, %v9458_v38  ;;  %v5257_v46 = vsel %vm15196_vm2, %v4472_v6, %v9457_v62  ;;  %vm15202_vm10 = vmmov %vm15170_vm0 }
 0x465   :  { %v9466_v2 = vpop.permute.xlu0 %9465  ;;  %v9463_v14 = vunpack.i.h.bf16 %v9461_v36  ;;  %v9462_v17 = vunpack.i.l.bf16 %v9461_v36  ;;  %vm15203_vm2 = vmmov %vm15170_vm0 }
 0x466   :  { %5717 = vmatmul.mubr.bf16.gmra.mrb[40].mxu1 %v5302_v52  ;;  %v9468_v40 = vunpack.i.h.bf16 %v9466_v2  ;;  %v9467_v3 = vunpack.i.l.bf16 %v9466_v2  ;;  %v4372_v52 = vld [vmem:[#allocation2 + $0xb4] ss:$2 sm:$0xff] }
 0x467   :  { %v5219_v43 = vsel %vm15197_vm9, %v4370_v28, %v9463_v14  ;;  %v5218_v54 = vsel %vm15198_vm3, %v4368_v44, %v9462_v17  ;;  %v4376_v14 = vld [vmem:[#allocation2 + $0xd4] ss:$2 sm:$0xf]  ;;  %vm6016_vm9 = vcmask 521218   ;;  %vm6018_vm3 = vcmask 523268  }
 0x468   :  { %v9471_v31 = vpop.permute.xlu1 %9470  ;;  %v5271_v15 = vsel %vm3773_vm5, %v5258_v29, %v9468_v40  ;;  %v5270_v5 = vsel %vm3773_vm5, %v5257_v46, %v9467_v3 }
 0x469   :  { %v9476_v53 = vpop.permute.xlu0 %9475  ;;  %v9473_v35 = vunpack.i.h.bf16 %v9471_v31  ;;  %v9472_v23 = vunpack.i.l.bf16 %v9471_v31  ;;  %v4480_v31 = vld [vmem:[#allocation2 + $0xde] ss:$2 sm:$0xf] }
 0x46a   :  { %v9478_v22 = vunpack.i.h.bf16 %v9476_v53  ;;  %v9477_v37 = vunpack.i.l.bf16 %v9476_v53 }
 0x46b   :  { %v5231_v51 = vsel %vm3773_vm5, %v5218_v54, %v9472_v23  ;;  %v5232_v30 = vsel %vm3773_vm5, %v5219_v43, %v9473_v35 }
 0x46c   :  { %v9481_v25 = vpop.permute.xlu1 %9480  ;;  %v5283_v12 = vsel %vm5157_vm7, %v5270_v5, %v9477_v37  ;;  %v5284_v26 = vsel %vm5157_vm7, %v5271_v15, %v9478_v22 }
 0x46d   :  { %v9483_v58 = vunpack.i.h.bf16 %v9481_v25  ;;  %v9482_v63 = vunpack.i.l.bf16 %v9481_v25  ;;  %v9486_v57 = vpop.permute.xlu0 %9485  ;;  %v5307_v59 = vpack.c.bf16 %v5284_v26, %v5283_v12 }
 0x46e   :  { %v9488_v47 = vunpack.i.h.bf16 %v9486_v57  ;;  %v9487_v21 = vunpack.i.l.bf16 %v9486_v57 }
 0x46f   :  { %5724 = vmatprep.mubr.bf16.mxu1 %v5307_v59  ;;  %v5244_v7 = vsel %vm5157_vm7, %v5231_v51, %v9482_v63  ;;  %v5245_v16 = vsel %vm5157_vm7, %v5232_v30, %v9483_v58 }
 0x470   :  { %v9491_v18 = vpop.permute.xlu1 %9490  ;;  %v5306_v24 = vpack.c.bf16 %v5245_v16, %v5244_v7  ;;  %v5260_v19 = vsel %vm15170_vm0, %v4478_v42, %v9488_v47  ;;  %v5259_v56 = vsel %vm15199_vm1, %v4476_v55, %v9487_v21  ;;  %vm6020_vm0 = vcmask 523270  }
 0x471   :  { %v9496_v34 = vpop.permute.xlu0 %9495  ;;  %v9493_v50 = vunpack.i.h.bf16 %v9491_v18  ;;  %v9492_v8 = vunpack.i.l.bf16 %v9491_v18  ;;  %vm6022_vm1 = vcmask 517120  }
 0x472   :  { %5725 = vmatmul.mubr.bf16.gmra.mrb[44].mxu1 %v5306_v24  ;;  %v9498_v60 = vunpack.i.h.bf16 %v9496_v34  ;;  %v9497_v1 = vunpack.i.l.bf16 %v9496_v34 }
 0x473   :  { %v5221_v38 = vsel %vm15200_vm8, %v4374_v9, %v9493_v50  ;;  %v5220_v3 = vsel %vm15201_vm6, %v4372_v52, %v9492_v8  ;;  %vm15205_vm8 = vcmask 195584  }
 0x474   :  { %v9501_v4 = vpop.permute.xlu1 %9500  ;;  %v5272_v33 = vsel %vm3773_vm5, %v5259_v56, %v9497_v1  ;;  %v5273_v36 = vsel %vm3773_vm5, %v5260_v19, %v9498_v60  ;;  %vm15207_vm6 = vmmov %vm15205_vm8 }
 0x475   :  { %v9506_v45 = vpop.permute.xlu0 %9505  ;;  %v9503_v48 = vunpack.i.h.bf16 %v9501_v4  ;;  %v9502_v13 = vunpack.i.l.bf16 %v9501_v4 }
 0x476   :  { %v9508_v27 = vunpack.i.h.bf16 %v9506_v45  ;;  %v9507_v41 = vunpack.i.l.bf16 %v9506_v45 }
 0x477   :  { %v5233_v17 = vsel %vm3773_vm5, %v5220_v3, %v9502_v13  ;;  %v5234_v53 = vsel %vm3773_vm5, %v5221_v38, %v9503_v48 }
 0x478   :  { %v9511_v62 = vpop.permute.xlu1 %9510  ;;  %v5285_v2 = vsel %vm5157_vm7, %v5272_v33, %v9507_v41  ;;  %v5286_v40 = vsel %vm5157_vm7, %v5273_v36, %v9508_v27 }
 0x479   :  { %v9513_v6 = vunpack.i.h.bf16 %v9511_v62  ;;  %v9512_v32 = vunpack.i.l.bf16 %v9511_v62  ;;  %v9516_v29 = vpop.permute.xlu0 %9515  ;;  %v5311_v46 = vpack.c.bf16 %v5286_v40, %v5285_v2 }
 0x47a   :  { %v9518_v35 = vunpack.i.h.bf16 %v9516_v29  ;;  %v9517_v23 = vunpack.i.l.bf16 %v9516_v29 }
 0x47b   :  { %5732 = vmatprep.mubr.bf16.mxu1 %v5311_v46  ;;  %v5246_v22 = vsel %vm5157_vm7, %v5233_v17, %v9512_v32  ;;  %v5247_v37 = vsel %vm5157_vm7, %v5234_v53, %v9513_v6 }
 0x47c   :  { %v5222_v28 = vsel %vm15202_vm10, %v4376_v14, %v9518_v35  ;;  %v5261_v15 = vsel %vm15203_vm2, %v4480_v31, %v9517_v23  ;;  %v9521_v5 = vpop.permute.xlu1 %9520  ;;  %v5310_v44 = vpack.c.bf16 %v5247_v37, %v5246_v22  ;;  %vm15208_vm10 = vcmask 228352  }
 0x47d   :  { %v9523_v43 = vunpack.i.h.bf16 %v9521_v5  ;;  %v9522_v25 = vunpack.i.l.bf16 %v9521_v5  ;;  %v9526_v12 = vpop.permute.xlu0 %9525  ;;  %vm15209_vm2 = vmmov %vm15208_vm10 }
 0x47e   :  { %v9528_v26 = vunpack.i.h.bf16 %v9526_v12  ;;  %v9527_v54 = vunpack.i.l.bf16 %v9526_v12  ;;  %5733 = vmatmul.mubr.bf16.gmra.mrb[48].mxu1 %v5310_v44 }
 0x47f   :  { %v5235_v58 = vsel %vm3773_vm5, %v5222_v28, %v9523_v43  ;;  %v5274_v63 = vsel %vm3773_vm5, %v5261_v15, %v9522_v25 }
 0x480   :  { %v5287_v57 = vsel %vm5157_vm7, %v5274_v63, %v9527_v54  ;;  %v5248_v51 = vsel %vm5157_vm7, %v5235_v58, %v9528_v26  ;;  %vm5862_vm7 = vcmask 519168  }
 0x481   :  { %v5315_v59 = vpack.c.bf16 %v5287_v57, %v5287_v57  ;;  %v5314_v30 = vpack.c.bf16 %v5248_v51, %v5248_v51 }
 0x483   :  { %5740 = vmatprep.mubr.bf16.mxu1 %v5315_v59 }
 0x486   :  { %5741 = vmatmul.mubr.bf16.gmra.mrb[52].mxu1 %v5314_v30 }
 0x48d   :  { %v14060_v6 = vpop.permute.xlu1 %5763 }
 0x48e   :  { %v14067_v31 = vpop.permute.xlu0 %5768 }
 0x490   :  { %v7175_v7 = vpop.f32.mrb[12].mxu1 }
 0x491   :  { %v7176_v16 = vpop.f32.mrb[13].mxu1  ;;  %v14073_v35 = vpop.permute.xlu1 %5773 }
 0x492   :  { %v14043_v47 = vadd.f32 %v7176_v16, %v7175_v7  ;;  %v7178_v21 = vpop.f32.mrb[14].mxu1  ;;  %v14092_v7 = vpop.permute.xlu0 %5783 }
 0x493   :  { %v7179_v18 = vpop.f32.mrb[15].mxu1 }
 0x494   :  { %v14045_v24 = vadd.f32 %v7179_v18, %v7178_v21 }
 0x495   :  { %v14083_v43 = vpop.permute.xlu1 %5778 }
 0x499   :  { %v14099_v18 = vpop.permute.xlu1 %5788 }
 0x4de   :  { %v7181_v55 = vpop.f32.mrb[16].mxu1 }
 0x4df   :  { %v7182_v42 = vpop.f32.mrb[17].mxu1 }
 0x4e0   :  { %v14047_v34 = vadd.f32 %v7182_v42, %v7181_v55  ;;  %v7184_v60 = vpop.f32.mrb[18].mxu1 }
 0x4e1   :  { %v7185_v1 = vpop.f32.mrb[19].mxu1 }
 0x4e2   :  { %v14049_v19 = vadd.f32 %v7185_v1, %v7184_v60 }
 0x502   :  { %v7187_v56 = vpop.f32.mrb[20].mxu1 }
 0x503   :  { %v7188_v50 = vpop.f32.mrb[21].mxu1 }
 0x504   :  { %v14051_v4 = vadd.f32 %v7188_v50, %v7187_v56  ;;  %v7190_v9 = vpop.f32.mrb[22].mxu1 }
 0x505   :  { %v7191_v8 = vpop.f32.mrb[23].mxu1 }
 0x506   :  { %v14053_v45 = vadd.f32 %v7191_v8, %v7190_v9 }
 0x50a   :  { %v7193_v48 = vpop.f32.mrb[24].mxu1 }
 0x50b   :  { %v7194_v13 = vpop.f32.mrb[25].mxu1 }
 0x50c   :  { %v14055_v27 = vadd.f32 %v7194_v13, %v7193_v48  ;;  %v7196_v41 = vpop.f32.mrb[26].mxu1 }
 0x50d   :  { %v7197_v33 = vpop.f32.mrb[27].mxu1  ;;  %v14108_v41 = vpop.permute.xlu0 %5793 }
 0x50e   :  { %v6970_v33 = vld [vmem:[%s14815_s0 + $0x2a7] ss:$2 sm:$0xf] }
 0x50f   :  { %2469 = vrot.lane.b32.xlu0 %v6970_v33, %s9685_s10 }
 0x515   :  { %v7215_v36 = vpop.f32.mrb[28].mxu1 }
 0x516   :  { %v7216_v52 = vpop.f32.mrb[29].mxu1 }
 0x517   :  { %v7217_v38 = vadd.f32 %v7216_v52, %v7215_v36  ;;  %v7218_v62 = vpop.f32.mrb[30].mxu1 }
 0x518   :  { %v7219_v2 = vpop.f32.mrb[31].mxu1 }
 0x519   :  { %v14058_v40 = vadd.f32 %v7217_v38, %v13777_v39  ;;  %v7220_v3 = vadd.f32 %v7219_v2, %v7218_v62  ;;  %v6249_v38 = vld [vmem:[%s14819_s6 + $0x280] sm:$0xff]  ;;  %v14128_v2 = vpop.permute.xlu1 %5798 }
 0x51a   :  { %v6233_v62 = vld [vmem:[%s14819_s6 + $0x200] sm:$0xff] }
 0x51b   :  { %v5826_v32 = vmul.f32 %v14060_v6, %v14058_v40  ;;  %v14065_v14 = vadd.f32 %v7220_v3, %v13779_v10 }
 0x51d   :  { %v5827_v29 = vmul.f32 %v14067_v31, %v14065_v14  ;;  %v5839_v46 = vsel %vm3773_vm5, %v5826_v32, 0.0  ;;  %v7015_v32 = vld [vmem:[%s14815_s0 + $0x2b8] ss:$2 sm:$0xf] }
 0x51e   :  { %2883 = vrot.lane.b32.xlu0 %v7015_v32, %s9688_s27 }
 0x51f   :  { %v5840_v17 = vsel %vm3773_vm5, %v5827_v29, 0.0 }
 0x520   :  { %v5841_v39 = vadd.f32 %v5840_v17, %v5839_v46 }
 0x521   :  { %v7221_v53 = vpop.f32.mrb[32].mxu1 }
 0x522   :  { %v7222_v23 = vpop.f32.mrb[33].mxu1 }
 0x523   :  { %v7223_v22 = vadd.f32 %v7222_v23, %v7221_v53  ;;  %v7224_v37 = vpop.f32.mrb[34].mxu1 }
 0x524   :  { %v7225_v28 = vpop.f32.mrb[35].mxu1 }
 0x525   :  { %v14076_v10 = vadd.f32 %v7223_v22, %v13882_v20  ;;  %v7226_v15 = vadd.f32 %v7225_v28, %v7224_v37 }
 0x527   :  { %v5828_v5 = vmul.f32 %v14073_v35, %v14076_v10  ;;  %v14081_v44 = vadd.f32 %v7226_v15, %v13895_v11 }
 0x529   :  { %v5842_v25 = vsel %vm3773_vm5, %v5828_v5, 0.0  ;;  %v5829_v12 = vmul.f32 %v14083_v43, %v14081_v44 }
 0x52a   :  { %v5843_v26 = vadd.f32 %v5842_v25, %v5841_v39 }
 0x52b   :  { %v5844_v54 = vsel %vm3773_vm5, %v5829_v12, 0.0 }
 0x52c   :  { %v5845_v58 = vadd.f32 %v5844_v54, %v5843_v26  ;;  %v14144_v26 = vpop.permute.xlu0 %5803 }
 0x52d   :  { %v7227_v20 = vpop.f32.mrb[36].mxu1 }
 0x52e   :  { %v7228_v63 = vpop.f32.mrb[37].mxu1 }
 0x52f   :  { %v7229_v57 = vadd.f32 %v7228_v63, %v7227_v20  ;;  %v7230_v59 = vpop.f32.mrb[38].mxu1  ;;  %v14151_v20 = vpop.permute.xlu1 %5808  ;;  %v6251_v63 = vld [vmem:[%s14819_s6 + $0x290] sm:$0xff] }
 0x530   :  { %v7231_v51 = vpop.f32.mrb[39].mxu1 }
 0x531   :  { %v14090_v30 = vadd.f32 %v7229_v57, %v13969_v61  ;;  %v7232_v11 = vadd.f32 %v7231_v51, %v7230_v59  ;;  %v6252_v59 = vld [vmem:[%s14819_s6 + $0x298] sm:$0xff] }
 0x532   :  { %v6236_v51 = vld [vmem:[%s14819_s6 + $0x218] sm:$0xff] }
 0x533   :  { %v5830_v16 = vmul.f32 %v14092_v7, %v14090_v30  ;;  %v14097_v21 = vadd.f32 %v7232_v11, %v13974_v0 }
 0x535   :  { %v5846_v55 = vsel %vm3773_vm5, %v5830_v16, 0.0  ;;  %v5831_v42 = vmul.f32 %v14099_v18, %v14097_v21  ;;  %v7593_v16 = vpack.c.bf16 %v6252_v59, %v6251_v63 }
 0x536   :  { %v5847_v60 = vadd.f32 %v5846_v55, %v5845_v58 }
 0x537   :  { %v5848_v61 = vsel %vm3773_vm5, %v5831_v42, 0.0 }
 0x538   :  { %v5849_v1 = vadd.f32 %v5848_v61, %v5847_v60 }
 0x539   :  { %v7233_v56 = vpop.f32.mrb[40].mxu1 }
 0x53a   :  { %v7234_v50 = vpop.f32.mrb[41].mxu1 }
 0x53b   :  { %v7235_v9 = vadd.f32 %v7234_v50, %v7233_v56  ;;  %v7236_v8 = vpop.f32.mrb[42].mxu1 }
 0x53c   :  { %v7237_v48 = vpop.f32.mrb[43].mxu1 }
 0x53d   :  { %v14106_v13 = vadd.f32 %v7235_v9, %v14043_v47  ;;  %v7238_v0 = vadd.f32 %v7237_v48, %v7236_v8  ;;  %v6250_v47 = vld [vmem:[%s14819_s6 + $0x288] sm:$0xff] }
 0x53e   :  { %v7589_v3 = vpack.c.bf16 %v6250_v47, %v6249_v38  ;;  %v14174_v38 = vpop.permute.xlu1 %5818 }
 0x53f   :  { %v5832_v36 = vmul.f32 %v14108_v41, %v14106_v13  ;;  %v14116_v52 = vadd.f32 %v7238_v0, %v14045_v24  ;;  %v6234_v24 = vld [vmem:[%s14819_s6 + $0x208] sm:$0xff]  ;;  %v14170_v0 = vpop.permute.xlu0 %5813 }
 0x540   :  { %v7591_v17 = vpack.c.bf16 %v6234_v24, %v6233_v62  ;;  %7590 = vmatprep.subr.bf16.mxu0 %v7589_v3 }
 0x541   :  { %v5850_v29 = vsel %vm3773_vm5, %v5832_v36, 0.0  ;;  %v5833_v46 = vmul.f32 %v14128_v2, %v14116_v52 }
 0x542   :  { %v5851_v39 = vadd.f32 %v5850_v29, %v5849_v1  ;;  %7592 = vmatpush3.bf16.msra.mxu0 %v7591_v17 }
 0x543   :  { %v5852_v53 = vsel %vm3773_vm5, %v5833_v46, 0.0  ;;  %7594 = vmatprep.subr.bf16.mxu0 %v7593_v16  ;;  %v6256_v16 = vld [vmem:[%s14819_s6 + $0x2b8] sm:$0xff] }
 0x544   :  { %v5853_v23 = vadd.f32 %v5852_v53, %v5851_v39 }
 0x545   :  { %v7239_v22 = vpop.f32.mrb[44].mxu1 }
 0x546   :  { %v7240_v37 = vpop.f32.mrb[45].mxu1 }
 0x547   :  { %v7241_v28 = vadd.f32 %v7240_v37, %v7239_v22  ;;  %v7242_v15 = vpop.f32.mrb[46].mxu1  ;;  %v6254_v22 = vld [vmem:[%s14819_s6 + $0x2a8] sm:$0xff] }
 0x548   :  { %v7243_v5 = vpop.f32.mrb[47].mxu1 }
 0x549   :  { %v14142_v25 = vadd.f32 %v7241_v28, %v14047_v34  ;;  %v7244_v12 = vadd.f32 %v7243_v5, %v7242_v15 }
 0x54b   :  { %v5834_v54 = vmul.f32 %v14144_v26, %v14142_v25  ;;  %v14149_v58 = vadd.f32 %v7244_v12, %v14049_v19  ;;  %v6235_v19 = vld [vmem:[%s14819_s6 + $0x210] sm:$0xff]  ;;  %v6238_v12 = vld [vmem:[%s14819_s6 + $0x228] sm:$0xff] }
 0x54c   :  { %v7595_v55 = vpack.c.bf16 %v6236_v51, %v6235_v19 }
 0x54d   :  { %v5854_v57 = vsel %vm3773_vm5, %v5834_v54, 0.0  ;;  %v5835_v34 = vmul.f32 %v14151_v20, %v14149_v58 }
 0x54e   :  { %v5855_v11 = vadd.f32 %v5854_v57, %v5853_v23  ;;  %7596 = vmatpush3.bf16.msra.mxu0 %v7595_v55  ;;  %v14180_v23 = vpop.permute.xlu0 %5823  ;;  %v6239_v55 = vld [vmem:[%s14819_s6 + $0x230] sm:$0xff] }
 0x54f   :  { %v5856_v42 = vsel %vm3773_vm5, %v5835_v34, 0.0 }
 0x550   :  { %v5857_v60 = vadd.f32 %v5856_v42, %v5855_v11  ;;  %v6255_v11 = vld [vmem:[%s14819_s6 + $0x2b0] sm:$0xff] }
 0x551   :  { %v7245_v61 = vpop.f32.mrb[48].mxu1  ;;  %v7601_v42 = vpack.c.bf16 %v6256_v16, %v6255_v11  ;;  %v6174_v11 = vld [vmem:[%s14819_s6 + $0x28] sm:$0xff] }
 0x552   :  { %v7246_v1 = vpop.f32.mrb[49].mxu1 }
 0x553   :  { %v7247_v56 = vadd.f32 %v7246_v1, %v7245_v61  ;;  %v7248_v50 = vpop.f32.mrb[50].mxu1  ;;  %v6185_v61 = vld [vmem:[%s14819_s6 + $0x80] sm:$0xff]  ;;  %v6186_v1 = vld [vmem:[%s14819_s6 + $0x88] sm:$0xff] }
 0x554   :  { %v7249_v9 = vpop.f32.mrb[51].mxu1 }
 0x555   :  { %v5735_v8 = vadd.f32 %v7247_v56, %v14051_v4  ;;  %v7250_v48 = vadd.f32 %v7249_v9, %v7248_v50  ;;  %v7525_v9 = vpack.c.bf16 %v6186_v1, %v6185_v61  ;;  %v6191_v61 = vld [vmem:[%s14819_s6 + $0xb0] sm:$0xff]  ;;  %v6260_v1 = vld [vmem:[%s14819_s6 + $0x2d8] sm:$0xff] }
 0x557   :  { %v5836_v33 = vmul.f32 %v14170_v0, %v5735_v8  ;;  %v5738_v36 = vadd.f32 %v7250_v48, %v14053_v45  ;;  %v6253_v45 = vld [vmem:[%s14819_s6 + $0x2a0] sm:$0xff]  ;;  %7526 = vmatprep.subr.bf16.mxu1 %v7525_v9 }
 0x558   :  { %v7597_v28 = vpack.c.bf16 %v6254_v22, %v6253_v45  ;;  %v6169_v48 = vld [vmem:[%s14819_s6] sm:$0xff] }
 0x559   :  { %v5858_v47 = vsel %vm3773_vm5, %v5836_v33, 0.0  ;;  %v5837_v62 = vmul.f32 %v14174_v38, %v5738_v36  ;;  %v7251_v3 = vpop.f32.mrb[52].mxu1  ;;  %v6170_v33 = vld [vmem:[%s14819_s6 + $0x8] sm:$0xff] }
 0x55a   :  { %v5859_v24 = vadd.f32 %v5858_v47, %v5857_v60  ;;  %v7252_v32 = vpop.f32.mrb[53].mxu1  ;;  %7598 = vmatprep.subr.bf16.mxu0 %v7597_v28  ;;  %v6240_v60 = vld [vmem:[%s14819_s6 + $0x238] sm:$0xff]  ;;  %v7527_v47 = vpack.c.bf16 %v6170_v33, %v6169_v48  ;;  %v6243_v33 = vld [vmem:[%s14819_s6 + $0x250] sm:$0xff] }
 0x55b   :  { %v5860_v29 = vsel %vm3773_vm5, %v5837_v62, 0.0  ;;  %v7253_v46 = vadd.f32 %v7252_v32, %v7251_v3  ;;  %v7254_v4 = vpop.f32.mrb[54].mxu1  ;;  %v7603_v50 = vpack.c.bf16 %v6240_v60, %v6239_v55  ;;  %v6192_v48 = vld [vmem:[%s14819_s6 + $0xb8] sm:$0xff] }
 0x55c   :  { %v5861_v17 = vadd.f32 %v5860_v29, %v5859_v24  ;;  %v7255_v39 = vpop.f32.mrb[55].mxu1  ;;  %7528 = vmatpush3.bf16.msra.mxu1 %v7527_v47  ;;  %v6244_v47 = vld [vmem:[%s14819_s6 + $0x258] sm:$0xff] }
 0x55d   :  { %v5743_v53 = vadd.f32 %v7253_v46, %v14055_v27  ;;  %v6237_v27 = vld [vmem:[%s14819_s6 + $0x220] sm:$0xff] }
 0x55e   :  { %v7599_v54 = vpack.c.bf16 %v6238_v12, %v6237_v27  ;;  %v6241_v27 = vld [vmem:[%s14819_s6 + $0x240] sm:$0xff] }
 0x55f   :  { %v5838_v37 = vmul.f32 %v14180_v23, %v5743_v53 }
 0x560   :  { %7600 = vmatpush3.bf16.msra.mxu0 %v7599_v54  ;;  %v6242_v54 = vld [vmem:[%s14819_s6 + $0x248] sm:$0xff] }
 0x561   :  { %v5863_v15 = vsel %vm5862_vm7, %v5838_v37, 0.0  ;;  %7602 = vmatprep.subr.bf16.mxu0 %v7601_v42  ;;  %v6188_v37 = vld [vmem:[%s14819_s6 + $0x98] sm:$0xff]  ;;  %v7607_v9 = vpack.c.bf16 %v6242_v54, %v6241_v27 }
 0x562   :  { %v5864_v5 = vadd.f32 %v5863_v15, %v5861_v17  ;;  %v6257_v15 = vld [vmem:[%s14819_s6 + $0x2c0] sm:$0xff] }
 0x564   :  { %v5865_v63 = vrot.slane %v5864_v5, 4  ;;  %7604 = vmatpush3.bf16.msra.mxu0 %v7603_v50 }
 0x566   :  { %v5866_v57 = vadd.f32 %v5865_v63, %v5864_v5  ;;  %v6258_v5 = vld [vmem:[%s14819_s6 + $0x2c8] sm:$0xff] }
 0x567   :  { %v6190_v63 = vld [vmem:[%s14819_s6 + $0xa8] sm:$0xff]  ;;  %v7605_v50 = vpack.c.bf16 %v6258_v5, %v6257_v15  ;;  %v6245_v15 = vld [vmem:[%s14819_s6 + $0x260] sm:$0xff] }
 0x568   :  { %v5867_v34 = vrot.slane %v5866_v57, 2  ;;  %v6246_v5 = vld [vmem:[%s14819_s6 + $0x268] sm:$0xff] }
 0x569   :  { %7606 = vmatprep.subr.bf16.mxu0 %v7605_v50  ;;  %v6179_v50 = vld [vmem:[%s14819_s6 + $0x50] sm:$0xff] }
 0x56a   :  { %v5868_v59 = vadd.f32 %v5867_v34, %v5866_v57  ;;  %7608 = vmatpush3.bf16.msra.mxu0 %v7607_v9  ;;  %v6180_v9 = vld [vmem:[%s14819_s6 + $0x58] sm:$0xff] }
 0x56c   :  { %v5869_v19 = vrot.slane %v5868_v59, 1 }
 0x56e   :  { %v5870_v51 = vadd.f32 %v5869_v19, %v5868_v59 }
 0x570   :  { %v5871_v56 = vmul.f32 0.03125, %v5870_v51  ;;  %v6173_v51 = vld [vmem:[%s14819_s6 + $0x20] sm:$0xff] }
 0x572   :  { %v14221_v62 = vsub.f32 %v14058_v40, %v5871_v56  ;;  %v14224_v3 = vsub.f32 %v14065_v14, %v5871_v56  ;;  %v14227_v24 = vsub.f32 %v14076_v10, %v5871_v56  ;;  %v14230_v32 = vsub.f32 %v14081_v44, %v5871_v56 }
 0x573   :  { %v14233_v29 = vsub.f32 %v14090_v30, %v5871_v56  ;;  %v5877_v46 = vsub.f32 %v14097_v21, %v5871_v56  ;;  %v14237_v4 = vsub.f32 %v14106_v13, %v5871_v56  ;;  %v14240_v40 = vsub.f32 %v14116_v52, %v5871_v56 }
 0x574   :  { %v14243_v14 = vsub.f32 %v14142_v25, %v5871_v56  ;;  %v14246_v10 = vsub.f32 %v14149_v58, %v5871_v56  ;;  %v14248_v44 = vsub.f32 %v5735_v8, %v5871_v56  ;;  %v14250_v17 = vsub.f32 %v5738_v36, %v5871_v56 }
 0x575   :  { %v14252_v30 = vsub.f32 %v5743_v53, %v5871_v56  ;;  %v5885_v21 = vmul.f32 %v14221_v62, %v14221_v62  ;;  %v5886_v13 = vmul.f32 %v14224_v3, %v14224_v3  ;;  %v5887_v52 = vmul.f32 %v14227_v24, %v14227_v24  ;;  %v6187_v53 = vld [vmem:[%s14819_s6 + $0x90] sm:$0xff] }
 0x576   :  { %v5888_v25 = vmul.f32 %v14230_v32, %v14230_v32  ;;  %v5889_v36 = vmul.f32 %v14233_v29, %v14233_v29  ;;  %v5890_v45 = vmul.f32 %v5877_v46, %v5877_v46  ;;  %v5891_v57 = vmul.f32 %v14237_v4, %v14237_v4 }
 0x577   :  { %v5898_v58 = vmul.f32 %v5885_v21, %v14060_v6  ;;  %v5899_v8 = vmul.f32 %v5886_v13, %v14067_v31  ;;  %v5900_v39 = vmul.f32 %v5887_v52, %v14073_v35  ;;  %v6171_v6 = vld [vmem:[%s14819_s6 + $0x10] sm:$0xff]  ;;  %v6172_v31 = vld [vmem:[%s14819_s6 + $0x18] sm:$0xff]  ;;  %v5892_v34 = vmul.f32 %v14240_v40, %v14240_v40 }
 0x578   :  { %v5901_v35 = vmul.f32 %v5888_v25, %v14083_v43  ;;  %v6189_v43 = vld [vmem:[%s14819_s6 + $0xa0] sm:$0xff]  ;;  %v5902_v59 = vmul.f32 %v5889_v36, %v14092_v7  ;;  %v5903_v16 = vmul.f32 %v5890_v45, %v14099_v18  ;;  %v7529_v42 = vpack.c.bf16 %v6188_v37, %v6187_v53  ;;  %v6259_v7 = vld [vmem:[%s14819_s6 + $0x2d0] sm:$0xff]  ;;  %v6262_v36 = vld [vmem:[%s14819_s6 + $0x2e8] sm:$0xff] }
 0x579   :  { %v5911_v22 = vsel %vm3773_vm5, %v5898_v58, 0.0  ;;  %v5912_v28 = vsel %vm3773_vm5, %v5899_v8, 0.0  ;;  %v5914_v19 = vsel %vm3773_vm5, %v5900_v39, 0.0  ;;  %v7531_v60 = vpack.c.bf16 %v6172_v31, %v6171_v6  ;;  %v6261_v8 = vld [vmem:[%s14819_s6 + $0x2e0] sm:$0xff]  ;;  %v6176_v45 = vld [vmem:[%s14819_s6 + $0x38] sm:$0xff] }
 0x57a   :  { %v5913_v12 = vadd.f32 %v5912_v28, %v5911_v22  ;;  %v5916_v56 = vsel %vm3773_vm5, %v5901_v35, 0.0  ;;  %v7533_v18 = vpack.c.bf16 %v6190_v63, %v6189_v43  ;;  %v5893_v46 = vmul.f32 %v14243_v14, %v14243_v14  ;;  %7530 = vmatprep.subr.bf16.mxu1 %v7529_v42  ;;  %v6193_v22 = vld [vmem:[%s14819_s6 + $0xc0] sm:$0xff]  ;;  %v6194_v28 = vld [vmem:[%s14819_s6 + $0xc8] sm:$0xff]  ;;  %v6196_v42 = vld [vmem:[%s14819_s6 + $0xd8] sm:$0xff] }
 0x57b   :  { %v5904_v13 = vmul.f32 %v5891_v57, %v14108_v41  ;;  %v5918_v52 = vsel %vm3773_vm5, %v5902_v59, 0.0  ;;  %7532 = vmatpush3.bf16.msra.mxu1 %v7531_v60  ;;  %v7535_v25 = vpack.c.bf16 %v6174_v11, %v6173_v51  ;;  %v7609_v58 = vpack.c.bf16 %v6260_v1, %v6259_v7  ;;  %v6175_v41 = vld [vmem:[%s14819_s6 + $0x30] sm:$0xff]  ;;  %v6177_v59 = vld [vmem:[%s14819_s6 + $0x40] sm:$0xff] }
 0x57c   :  { %v5915_v55 = vadd.f32 %v5914_v19, %v5913_v12  ;;  %7534 = vmatprep.subr.bf16.mxu1 %v7533_v18  ;;  %v7537_v53 = vpack.c.bf16 %v6192_v48, %v6191_v61  ;;  %v7611_v37 = vpack.c.bf16 %v6244_v47, %v6243_v33  ;;  %v5894_v6 = vmul.f32 %v14246_v10, %v14246_v10  ;;  %v6178_v19 = vld [vmem:[%s14819_s6 + $0x48] sm:$0xff]  ;;  %v6197_v18 = vld [vmem:[%s14819_s6 + $0xe0] sm:$0xff] }
 0x57d   :  { %v5905_v31 = vmul.f32 %v5892_v34, %v14128_v2  ;;  %v5920_v35 = vsel %vm3773_vm5, %v5903_v16, 0.0  ;;  %7610 = vmatprep.subr.bf16.mxu0 %v7609_v58  ;;  %v7613_v12 = vpack.c.bf16 %v6262_v36, %v6261_v8  ;;  %v5895_v2 = vmul.f32 %v14248_v44, %v14248_v44  ;;  %v6198_v48 = vld [vmem:[%s14819_s6 + $0xe8] sm:$0xff]  ;;  %v6200_v8 = vld [vmem:[%s14819_s6 + $0xf8] sm:$0xff] }
 0x57e   :  { %v5917_v21 = vadd.f32 %v5916_v56, %v5915_v55  ;;  %v5906_v54 = vmul.f32 %v5893_v46, %v14144_v26  ;;  %v5922_v43 = vsel %vm3773_vm5, %v5904_v13, 0.0  ;;  %v7539_v63 = vpack.c.bf16 %v6176_v45, %v6175_v41  ;;  %7612 = vmatpush3.bf16.msra.mxu0 %v7611_v37  ;;  %v6195_v55 = vld [vmem:[%s14819_s6 + $0xd0] sm:$0xff]  ;;  %v6184_v37 = vld [vmem:[%s14819_s6 + $0x78] sm:$0xff] }
 0x57f   :  { %7536 = vmatpush3.bf16.msra.mxu1 %v7535_v25  ;;  %v7541_v34 = vpack.c.bf16 %v6194_v28, %v6193_v22  ;;  %v7615_v51 = vpack.c.bf16 %v6246_v5, %v6245_v15  ;;  %v5896_v26 = vmul.f32 %v14250_v17, %v14250_v17  ;;  %v5907_v11 = vmul.f32 %v5894_v6, %v14151_v20  ;;  %v6182_v25 = vld [vmem:[%s14819_s6 + $0x68] sm:$0xff]  ;;  %v6183_v22 = vld [vmem:[%s14819_s6 + $0x70] sm:$0xff] }
 0x580   :  { %v5919_v39 = vadd.f32 %v5918_v52, %v5917_v21  ;;  %7538 = vmatprep.subr.bf16.mxu1 %v7537_v53  ;;  %v5924_v16 = vsel %vm3773_vm5, %v5905_v31, 0.0  ;;  %7614 = vmatprep.subr.bf16.mxu0 %v7613_v12  ;;  %v5897_v61 = vmul.f32 %v14252_v30, %v14252_v30  ;;  %v5908_v7 = vmul.f32 %v5895_v2, %v14170_v0  ;;  %v6181_v52 = vld [vmem:[%s14819_s6 + $0x60] sm:$0xff] }
 0x581   :  { %v5926_v17 = vsel %vm3773_vm5, %v5906_v54, 0.0  ;;  %v7543_v20 = vpack.c.bf16 %v6178_v19, %v6177_v59  ;;  %v7545_v56 = vpack.c.bf16 %v6196_v42, %v6195_v55  ;;  %v5909_v30 = vmul.f32 %v5896_v26, %v14174_v38 }
 0x582   :  { %v5921_v27 = vadd.f32 %v5920_v35, %v5919_v39  ;;  %7616 = vmatpush3.bf16.msra.mxu0 %v7615_v51  ;;  %v5928_v0 = vsel %vm3773_vm5, %v5907_v11, 0.0  ;;  %v5910_v47 = vmul.f32 %v5897_v61, %v14180_v23  ;;  %v5930_v46 = vsel %vm3773_vm5, %v5908_v7, 0.0  ;;  %v6199_v23 = vld [vmem:[%s14819_s6 + $0xf0] sm:$0xff] }
 0x583   :  { %7540 = vmatpush3.bf16.msra.mxu1 %v7539_v63  ;;  %v7547_v21 = vpack.c.bf16 %v6180_v9, %v6179_v50  ;;  %v7549_v38 = vpack.c.bf16 %v6198_v48, %v6197_v18  ;;  %v5932_v58 = vsel %vm3773_vm5, %v5909_v30, 0.0  ;;  %v7551_v53 = vpack.c.bf16 %v6182_v25, %v6181_v52 }
 0x584   :  { %v5923_v57 = vadd.f32 %v5922_v43, %v5921_v27  ;;  %7542 = vmatprep.subr.bf16.mxu1 %v7541_v34  ;;  %v5934_v39 = vsel %vm5862_vm7, %v5910_v47, 0.0  ;;  %v7553_v45 = vpack.c.bf16 %v6200_v8, %v6199_v23  ;;  %v7555_v31 = vpack.c.bf16 %v6184_v37, %v6183_v22  ;;  %v7114_v43 = vld [vmem:[%s14820_s4] ss:$0 sm:$0xff] }
 0x586   :  { %v5925_v60 = vadd.f32 %v5924_v16, %v5923_v57 }
 0x587   :  { %7544 = vmatpush3.bf16.msra.mxu1 %v7543_v20 }
 0x588   :  { %v5927_v1 = vadd.f32 %v5926_v17, %v5925_v60  ;;  %7546 = vmatprep.subr.bf16.mxu1 %v7545_v56 }
 0x58a   :  { %v5929_v33 = vadd.f32 %v5928_v0, %v5927_v1 }
 0x58b   :  { %7548 = vmatpush3.bf16.msra.mxu1 %v7547_v21 }
 0x58c   :  { %v5931_v13 = vadd.f32 %v5930_v46, %v5929_v33  ;;  %7550 = vmatprep.subr.bf16.mxu1 %v7549_v38 }
 0x58e   :  { %v5933_v36 = vadd.f32 %v5932_v58, %v5931_v13 }
 0x58f   :  { %7552 = vmatpush3.bf16.msra.mxu1 %v7551_v53 }
 0x590   :  { %v5935_v41 = vadd.f32 %v5934_v39, %v5933_v36  ;;  %7554 = vmatprep.subr.bf16.mxu1 %v7553_v45  ;;  %v6218_v45 = vld [vmem:[%s14819_s6 + $0x188] sm:$0xff] }
 0x592   :  { %v5936_v6 = vrot.slane %v5935_v41, 4 }
 0x593   :  { %7556 = vmatpush3.bf16.msra.mxu1 %v7555_v31 }
 0x594   :  { %v5937_v35 = vadd.f32 %v5936_v6, %v5935_v41  ;;  %v6217_v41 = vld [vmem:[%s14819_s6 + $0x180] sm:$0xff] }
 0x595   :  { %v7557_v31 = vpack.c.bf16 %v6218_v45, %v6217_v41 }
 0x596   :  { %v5938_v28 = vrot.slane %v5937_v35, 2 }
 0x597   :  { %7558 = vmatprep.subr.bf16.mxu1 %v7557_v31 }
 0x598   :  { %v5939_v15 = vadd.f32 %v5938_v28, %v5937_v35  ;;  %v7013_v35 = vld [vmem:[%s14815_s0 + $0x298] ss:$2 sm:$0xff] }
 0x59a   :  { %v5940_v5 = vrot.slane %v5939_v15, 1 }
 0x59c   :  { %v5941_v27 = vadd.f32 %v5940_v5, %v5939_v15  ;;  %v7014_v5 = vld [vmem:[%s14815_s0 + $0x2a8] ss:$2 sm:$0xff] }
 0x59e   :  { %v5942_v12 = vmul.f32 0.03125, %v5941_v27 }
 0x5a0   :  { %v5943_v2 = vadd.f32 1e-05, %v5942_v12 }
 0x5a2   :  { %9667 = vrsqrt.f32 %v5943_v2 }
 0x5ac   :  { %v9668_v54 = vpop.eup %9667 }
 0x5ad   :  { %v5945_v63 = vmul.f32 %v9668_v54, %v14221_v62  ;;  %v5946_v57 = vmul.f32 %v9668_v54, %v14224_v3  ;;  %v5947_v34 = vmul.f32 %v9668_v54, %v14227_v24  ;;  %v5948_v59 = vmul.f32 %v9668_v54, %v14230_v32  ;;  %v7115_v24 = vld [vmem:[%s14821_s5] ss:$0 sm:$0xff] }
 0x5ae   :  { %v5949_v19 = vmul.f32 %v9668_v54, %v14233_v29  ;;  %v5950_v51 = vmul.f32 %v9668_v54, %v14237_v4  ;;  %v5951_v26 = vmul.f32 %v9668_v54, %v14240_v40  ;;  %v5952_v11 = vmul.f32 %v9668_v54, %v14243_v14 }
 0x5af   :  { %v5953_v16 = vmul.f32 %v9668_v54, %v14246_v10  ;;  %v5954_v62 = vmul.f32 %v9668_v54, %v14248_v44  ;;  %v5962_v55 = vmul.f32 %v7114_v43, %v5945_v63  ;;  %v5963_v3 = vmul.f32 %v7114_v43, %v5946_v57  ;;  %v7054_v63 = vld [vmem:[%s14815_s0 + $0x299] ss:$2 sm:$0xff] }
 0x5b0   :  { %v5964_v32 = vmul.f32 %v7114_v43, %v5947_v34  ;;  %v5965_v29 = vmul.f32 %v7114_v43, %v5948_v59  ;;  %v5966_v4 = vmul.f32 %v7114_v43, %v5949_v19  ;;  %v5967_v40 = vmul.f32 %v7114_v43, %v5950_v51  ;;  %v7055_v59 = vld [vmem:[%s14815_s0 + $0x2a9] ss:$2 sm:$0xff] }
 0x5b1   :  { %v5968_v42 = vmul.f32 %v7114_v43, %v5951_v26  ;;  %v5969_v14 = vmul.f32 %v7114_v43, %v5952_v11  ;;  %v5970_v60 = vmul.f32 %v7114_v43, %v5953_v16  ;;  %v5971_v61 = vmul.f32 %v7114_v43, %v5954_v62  ;;  %v6263_v16 = vld [vmem:[%s14819_s6 + $0x2f0] sm:$0xff]  ;;  %v6264_v62 = vld [vmem:[%s14819_s6 + $0x2f8] sm:$0xff] }
 0x5b2   :  { %v5979_v7 = vadd.f32 %v7115_v24, %v5962_v55  ;;  %v5980_v10 = vadd.f32 %v7115_v24, %v5963_v3  ;;  %v5981_v17 = vadd.f32 %v7115_v24, %v5964_v32  ;;  %v5982_v44 = vadd.f32 %v7115_v24, %v5965_v29  ;;  %v6247_v55 = vld [vmem:[%s14819_s6 + $0x270] sm:$0xff]  ;;  %v6248_v32 = vld [vmem:[%s14819_s6 + $0x278] sm:$0xff] }
 0x5b3   :  { %v5983_v20 = vadd.f32 %v7115_v24, %v5966_v4  ;;  %v5984_v1 = vadd.f32 %v7115_v24, %v5967_v40  ;;  %v5985_v56 = vadd.f32 %v7115_v24, %v5968_v42  ;;  %v5986_v50 = vadd.f32 %v7115_v24, %v5969_v14  ;;  %v6929_v40 = vld [vmem:[%s14815_s0 + $0x2a6] ss:$2 sm:$0xf]  ;;  %v6066_v14 = vld [vmem:[#allocation3 + $0x25] sm:$0xff] }
 0x5b4   :  { %v5987_v9 = vadd.f32 %v7115_v24, %v5970_v60  ;;  %v5988_v30 = vadd.f32 %v7115_v24, %v5971_v61  ;;  %v5989_v0 = vmul.f32 0.2, %v5979_v7  ;;  %v5990_v18 = vmul.f32 0.2, %v5980_v10  ;;  %v6068_v60 = vld [vmem:[#allocation3 + $0x27] sm:$0xff] }
 0x5b5   :  { %v5991_v48 = vmul.f32 0.2, %v5981_v17  ;;  %v5992_v33 = vmul.f32 0.2, %v5982_v44  ;;  %v5993_v47 = vmul.f32 0.2, %v5983_v20  ;;  %v9576_v43 = vpack.i.bf16 %v7014_v5, %v7013_v35 }
 0x5b6   :  { %v5994_v46 = vmul.f32 0.2, %v5984_v1  ;;  %v5995_v21 = vmul.f32 0.2, %v5985_v56  ;;  %v5996_v13 = vmul.f32 0.2, %v5986_v50  ;;  %v5999_v38 = vmax.f32 %v5979_v7, %v5989_v0 }
 0x5b7   :  { %v5997_v52 = vmul.f32 0.2, %v5987_v9  ;;  %v5998_v25 = vmul.f32 0.2, %v5988_v30  ;;  %v6000_v58 = vmax.f32 %v5980_v10, %v5990_v18  ;;  %v6001_v23 = vmax.f32 %v5981_v17, %v5991_v48  ;;  %v15204_v35 = vld [vmem:[#allocation20_spill] sm:$0xff] }
 0x5b8   :  { %v6002_v8 = vmax.f32 %v5982_v44, %v5992_v33  ;;  %v6003_v36 = vmax.f32 %v5983_v20, %v5993_v47  ;;  %v6004_v39 = vmax.f32 %v5984_v1, %v5994_v46  ;;  %v6005_v53 = vmax.f32 %v5985_v56, %v5995_v21  ;;  %6015 = vst.msk [vmem:[#allocation3] sm:$0xf] %vm5862_vm7, %v5999_v38  ;;  %v6972_v7 = vld [vmem:[%s14815_s0 + $0x2b6] ss:$2 sm:$0xf]  ;;  %v6281_v56 = vld [vmem:[%s14819_s6 + $0x380] sm:$0xff] }
 0x5b9   :  { %v6006_v22 = vmax.f32 %v5986_v50, %v5996_v13  ;;  %v6007_v37 = vmax.f32 %v5987_v9, %v5997_v52  ;;  %v6008_v6 = vmax.f32 %v5988_v30, %v5998_v25  ;;  %6017 = vst.msk [vmem:[#allocation3 + $0x2] sm:$0x3c] %vm6016_vm9, %v6000_v58  ;;  %v9581_v51 = vpack.i.bf16 %v7055_v59, %v7054_v63  ;;  %v6974_v1 = vld [vmem:[%s14815_s0 + $0x2b7] ss:$2 sm:$0xf]  ;;  %v6282_v50 = vld [vmem:[%s14819_s6 + $0x388] sm:$0xff]  ;;  %v9533_v52 = vpop.permute.xlu0 %9532 }
 0x5ba   :  { %6019 = vst.msk [vmem:[#allocation3 + $0x4] sm:$0xf0] %vm6018_vm3, %v6001_v23  ;;  %6025 = vst.msk [vmem:[#allocation3 + $0x10] sm:$0xf0] %vm6018_vm3, %v6005_v53  ;;  %v7617_v24 = vpack.c.bf16 %v6264_v62, %v6263_v16  ;;  %v7619_v42 = vpack.c.bf16 %v6248_v32, %v6247_v55  ;;  %v9626_v10 = vpack.i.bf16 %v6066_v14, %v6068_v60  ;;  %v6062_v46 = vld [vmem:[#allocation3 + $0x21] sm:$0xff]  ;;  %v9535_v45 = vunpack.i.h.bf16 %v9533_v52 }
 0x5bb   :  { %6021 = vst.msk [vmem:[#allocation3 + $0x6] sm:$0xc0] %vm6020_vm0, %v6002_v8  ;;  %6026 = vst.msk [vmem:[#allocation3 + $0x12] sm:$0xc0] %vm6020_vm0, %v6006_v22  ;;  %v14507_v9 = vpack.c.bf16 %v6282_v50, %v6281_v56  ;;  %v6064_v21 = vld [vmem:[#allocation3 + $0x23] sm:$0xff]  ;;  %v9538_v8 = vpop.permute.xlu1 %9537  ;;  %v9534_v22 = vunpack.i.l.bf16 %v9533_v52  ;;  %vm15212_vm3 = vcmask 293888  }
 0x5bc   :  { %6023 = vst.msk [vmem:[#allocation3 + $0xe] sm:$0x3] %vm6022_vm1, %v6003_v36  ;;  %6027 = vst.msk [vmem:[#allocation3 + $0x1a] sm:$0x3] %vm6022_vm1, %v6007_v37  ;;  %7618 = vmatprep.subr.bf16.mxu0 %v7617_v24  ;;  %v9621_v38 = vpack.i.bf16 %v6062_v46, %v6064_v21  ;;  %v9540_v37 = vunpack.i.h.bf16 %v9538_v8  ;;  %v6219_v24 = vld [vmem:[%s14819_s6 + $0x190] sm:$0xff]  ;;  %v6220_v32 = vld [vmem:[%s14819_s6 + $0x198] sm:$0xff] }
 0x5bd   :  { %6024 = vst.msk [vmem:[#allocation3 + $0xe] sm:$0x3c] %vm6016_vm9, %v6004_v39  ;;  %7620 = vmatpush3.bf16.msra.mxu0 %v7619_v42  ;;  %v7056_v30 = vld [vmem:[%s14815_s0 + $0x2b9] ss:$2 sm:$0xf]  ;;  %v9543_v25 = vpop.permute.xlu0 %9542  ;;  %vm15213_vm0 = vmmov %vm15212_vm3  ;;  %vm15214_vm1 = vcmask 359424  }
 0x5be   :  { %6028 = vst.msk [vmem:[#allocation3 + $0x1c] sm:$0xf] %vm5862_vm7, %v6008_v6  ;;  %7622 = vmatprep.subr.bf16.mxu0 %v14507_v9  ;;  %v9539_v6 = vunpack.i.l.bf16 %v9538_v8  ;;  %vm15210_vm7 = vcmask 261120   ;;  %v6206_v8 = vld [vmem:[%s14819_s6 + $0x128] sm:$0xff] }
 0x5bf   :  { %v9548_v39 = vpop.permute.xlu1 %9547  ;;  %vm15211_vm9 = vmmov %vm15210_vm7 }
 0x5c0   :  { %v9549_v63 = vunpack.i.l.bf16 %v9548_v39  ;;  %v6029_v60 = vld [vmem:[#allocation3] sm:$0xff] }
 0x5c1   :  { %v6033_v28 = vld [vmem:[#allocation3 + $0x1] sm:$0xff]  ;;  %v9553_v58 = vpop.permute.xlu0 %9552 }
 0x5c2   :  { %v6041_v15 = vld [vmem:[#allocation3 + $0x3] sm:$0xff]  ;;  %v9555_v16 = vunpack.i.h.bf16 %v9553_v58  ;;  %v9554_v62 = vunpack.i.l.bf16 %v9553_v58 }
 0x5c3   :  { %v9571_v27 = vpack.i.bf16 %v6033_v28, %v6041_v15  ;;  %v6049_v0 = vld [vmem:[#allocation3 + $0x5] sm:$0xff]  ;;  %v9558_v41 = vpop.permute.xlu1 %9557  ;;  %v3340_v28 = vsel %vm15205_vm8, %v15204_v35, %v9535_v45  ;;  %v15206_v15 = vld [vmem:[#allocation13_spill] sm:$0xff]  ;;  %vm15215_vm8 = vmmov %vm15214_vm1 }
 0x5c4   :  { %v6035_v12 = vld [vmem:[#allocation3 + $0x11] sm:$0xff]  ;;  %v6034_v17 = vld [vmem:[#allocation3 + $0x9] sm:$0xff]  ;;  %v3339_v5 = vsel %vm15207_vm6, %v15206_v15, %v9534_v22  ;;  %v6223_v22 = vld [vmem:[%s14819_s6 + $0x1b0] sm:$0xff] }
 0x5c5   :  { %v6043_v2 = vld [vmem:[#allocation3 + $0x13] sm:$0xff]  ;;  %9572 = vrot.lane.b32.xlu1 %v9571_v27, %s9690_s28  ;;  %v6044_v34 = vld [vmem:[#allocation3 + $0x1b] sm:$0xff]  ;;  %v6042_v44 = vld [vmem:[#allocation3 + $0xb] sm:$0xff]  ;;  %v14517_v23 = vpop.permute.xlu0 %9562  ;;  %v9545_v27 = vunpack.i.h.bf16 %v9543_v25 }
 0x5c6   :  { %v9591_v54 = vpack.i.bf16 %v6035_v12, %v6043_v2  ;;  %v6036_v57 = vld [vmem:[#allocation3 + $0x19] sm:$0xff]  ;;  %v6050_v26 = vld [vmem:[#allocation3 + $0xd] sm:$0xff]  ;;  %v9586_v20 = vpack.i.bf16 %v6034_v17, %v6042_v44  ;;  %v9544_v12 = vunpack.i.l.bf16 %v9543_v25  ;;  %v3381_v2 = vsel %vm15208_vm10, %v3339_v5, %v9539_v6  ;;  %v6037_v14 = vld [vmem:[#allocation3 + $0x2] sm:$0xff] }
 0x5c7   :  { %v9596_v19 = vpack.i.bf16 %v6036_v57, %v6044_v34  ;;  %v6058_v11 = vld [vmem:[#allocation3 + $0xf] sm:$0xff]  ;;  %v6052_v29 = vld [vmem:[#allocation3 + $0x1d] sm:$0xff]  ;;  %v6057_v18 = vld [vmem:[#allocation3 + $0x7] sm:$0xff]  ;;  %v9568_v57 = vpop.permute.xlu1 %9567  ;;  %v7561_v17 = vpack.c.bf16 %v6220_v32, %v6219_v24  ;;  %v9565_v50 = vunpack.i.h.bf16 %v14517_v23 }
 0x5c8   :  { %9592 = vrot.lane.b32.xlu0 %v9591_v54, %s9690_s28  ;;  %v9606_v3 = vpack.i.bf16 %v6050_v26, %v6058_v11  ;;  %v6060_v4 = vld [vmem:[#allocation3 + $0x1f] sm:$0xff]  ;;  %v9601_v48 = vpack.i.bf16 %v6049_v0, %v6057_v18  ;;  %v6051_v33 = vld [vmem:[#allocation3 + $0x15] sm:$0xff]  ;;  %v3382_v54 = vsel %vm15209_vm2, %v3340_v28, %v9540_v37  ;;  %v3423_v34 = vsel %vm15210_vm7, %v3381_v2, %v9544_v12  ;;  %v6224_v37 = vld [vmem:[%s14819_s6 + $0x1b8] sm:$0xff] }
 0x5c9   :  { %9577 = vrot.lane.b32.xlu1 %v9576_v43, %s9688_s27  ;;  %v9616_v61 = vpack.i.bf16 %v6052_v29, %v6060_v4  ;;  %v6059_v47 = vld [vmem:[#allocation3 + $0x17] sm:$0xff]  ;;  %v14519_v36 = vpop.permute.xlu0 %1727  ;;  %v9550_v43 = vunpack.i.h.bf16 %v9548_v39  ;;  %v3424_v59 = vsel %vm15211_vm9, %v3382_v54, %v9545_v27  ;;  %v3465_v26 = vsel %vm15212_vm3, %v3423_v34, %v9549_v63  ;;  %v6203_v44 = vld [vmem:[%s14819_s6 + $0x110] sm:$0xff]  ;;  %v6208_v34 = vld [vmem:[%s14819_s6 + $0x138] sm:$0xff] }
 0x5ca   :  { %v9611_v13 = vpack.i.bf16 %v6051_v33, %v6059_v47  ;;  %v9560_v29 = vunpack.i.h.bf16 %v9558_v41  ;;  %v9559_v4 = vunpack.i.l.bf16 %v9558_v41  ;;  %v6222_v33 = vld [vmem:[%s14819_s6 + $0x1a8] sm:$0xff]  ;;  %v9570_v21 = vunpack.i.h.bf16 %v9568_v57  ;;  %v15216_v24 = vld [vmem:[#allocation18_spill] sm:$0xff]  ;;  %vm15217_vm10 = vmmov %vm15209_vm2 }
 0x5cb   :  { %v3466_v11 = vsel %vm15213_vm0, %v3424_v59, %v9550_v43  ;;  %v7569_v63 = vpack.c.bf16 %v6224_v37, %v6223_v22  ;;  %v3341_v32 = vsel %vm15207_vm6, %v15216_v24, %v14519_v36  ;;  %vm15218_vm2 = vmmov %vm15210_vm7  ;;  %v6031_v22 = vld [vmem:[#allocation3 + $0x10] sm:$0xff] }
 0x5cc   :  { %9597 = vrot.lane.b32.xlu0 %v9596_v19, %s9690_s28  ;;  %v6201_v19 = vld [vmem:[%s14819_s6 + $0x100] sm:$0xff]  ;;  %v3508_v56 = vsel %vm3468_vm11, %v3466_v11, %v9555_v16  ;;  %vm15220_vm7 = vmmov %vm15214_vm1 }
 0x5cd   :  { %9582 = vrot.lane.b32.xlu1 %v9581_v51, %s9689_s13  ;;  %v14521_v53 = vpop.permute.xlu0 %1891  ;;  %v6202_v51 = vld [vmem:[%s14819_s6 + $0x108] sm:$0xff]  ;;  %v3550_v46 = vsel %vm15215_vm8, %v3508_v56, %v9560_v29 }
 0x5ce   :  { %v3592_v41 = vsel %vm3552_vm13, %v3550_v46, %v9565_v50  ;;  %v6038_v50 = vld [vmem:[#allocation3 + $0xa] sm:$0xff] }
 0x5cf   :  { %v3634_v35 = vsel %vm3594_vm14, %v3592_v41, %v9570_v21  ;;  %v6213_v21 = vld [vmem:[%s14819_s6 + $0x160] sm:$0xff] }
 0x5d0   :  { %9607 = vrot.lane.b32.xlu0 %v9606_v3, %s9690_s28 }
 0x5d1   :  { %2305 = vrot.lane.b32.xlu1 %v6929_v40, %s9682_s21  ;;  %v14523_v31 = vpop.permute.xlu0 %2016 }
 0x5d4   :  { %9617 = vrot.lane.b32.xlu0 %v9616_v61, %s9690_s28  ;;  %v7559_v61 = vpack.c.bf16 %v6202_v51, %v6201_v19  ;;  %v6225_v51 = vld [vmem:[%s14819_s6 + $0x1c0] sm:$0xff] }
 0x5d5   :  { %2594 = vrot.lane.b32.xlu1 %v6972_v7, %s9684_s8  ;;  %v14541_v55 = vpop.permute.xlu0 %2141 }
 0x5d8   :  { %9627 = vrot.lane.b32.xlu0 %v9626_v10, %s9690_s28 }
 0x5d9   :  { %9587 = vrot.lane.b32.xlu1 %v9586_v20, %s9690_s28  ;;  %v6204_v20 = vld [vmem:[%s14819_s6 + $0x118] sm:$0xff]  ;;  %v14561_v0 = vpop.permute.xlu0 %2469 }
 0x5da   :  { %v7563_v25 = vpack.c.bf16 %v6204_v20, %v6203_v44 }
 0x5dd   :  { %2719 = vrot.lane.b32.xlu1 %v6974_v1, %s9687_s18  ;;  %v3507_v1 = vsel %vm3468_vm11, %v3465_v26, %v9554_v62  ;;  %v14587_v5 = vpop.permute.xlu0 %2883  ;;  %v6226_v26 = vld [vmem:[%s14819_s6 + $0x1c8] sm:$0xff]  ;;  %v6209_v62 = vld [vmem:[%s14819_s6 + $0x140] sm:$0xff] }
 0x5de   :  { %v3549_v47 = vsel %vm15214_vm1, %v3507_v1, %v9559_v4  ;;  %v7573_v16 = vpack.c.bf16 %v6226_v26, %v6225_v51 }
 0x5e1   :  { %3047 = vrot.lane.b32.xlu1 %v7056_v30, %s9689_s13  ;;  %v9564_v30 = vunpack.i.l.bf16 %v14517_v23  ;;  %v6205_v23 = vld [vmem:[%s14819_s6 + $0x120] sm:$0xff] }
 0x5e2   :  { %v7567_v2 = vpack.c.bf16 %v6206_v8, %v6205_v23  ;;  %v6232_v23 = vld [vmem:[%s14819_s6 + $0x1f8] sm:$0xff] }
 0x5e3   :  { %v3591_v39 = vsel %vm3552_vm13, %v3549_v47, %v9564_v30  ;;  %v6030_v30 = vld [vmem:[#allocation3 + $0x8] sm:$0xff] }
 0x5e5   :  { %9602 = vrot.lane.b32.xlu1 %v9601_v48, %s9690_s28  ;;  %v6221_v48 = vld [vmem:[%s14819_s6 + $0x1a0] sm:$0xff] }
 0x5e6   :  { %v7565_v58 = vpack.c.bf16 %v6222_v33, %v6221_v48 }
 0x5e9   :  { %9612 = vrot.lane.b32.xlu1 %v9611_v13, %s9690_s28  ;;  %v9569_v13 = vunpack.i.l.bf16 %v9568_v57  ;;  %v6207_v57 = vld [vmem:[%s14819_s6 + $0x130] sm:$0xff] }
 0x5ea   :  { %v7571_v11 = vpack.c.bf16 %v6208_v34, %v6207_v57 }
 0x5eb   :  { %v3633_v6 = vsel %vm3594_vm14, %v3591_v39, %v9569_v13  ;;  %v6214_v13 = vld [vmem:[%s14819_s6 + $0x168] sm:$0xff] }
 0x5ed   :  { %9622 = vrot.lane.b32.xlu1 %v9621_v38, %s9690_s28 }
 0x637   :  { %v9573_v3 = vpop.permute.xlu1 %9572 }
 0x638   :  { %v9575_v40 = vunpack.i.h.bf16 %v9573_v3  ;;  %v9574_v42 = vunpack.i.l.bf16 %v9573_v3  ;;  %v6210_v3 = vld [vmem:[%s14819_s6 + $0x148] sm:$0xff] }
 0x63a   :  { %v6153_v7 = vsel %vm3773_vm5, %v6037_v14, %v9574_v42  ;;  %v6149_v10 = vsel %vm3773_vm5, %v6029_v60, %v9575_v40  ;;  %v9593_v29 = vpop.permute.xlu0 %9592  ;;  %v6227_v40 = vld [vmem:[%s14819_s6 + $0x1d0] sm:$0xff]  ;;  %v6228_v42 = vld [vmem:[%s14819_s6 + $0x1d8] sm:$0xff]  ;;  %v3383_v14 = vsel %vm15217_vm10, %v3341_v32, %v14521_v53  ;;  %v7575_v60 = vpack.c.bf16 %v6210_v3, %v6209_v62 }
 0x63b   :  { %v9578_v18 = vpop.permute.xlu1 %9577  ;;  %6361 = vmatprep.mubr.f32.mxu1 %v6153_v7  ;;  %v6211_v7 = vld [vmem:[%s14819_s6 + $0x150] sm:$0xff]  ;;  %v9594_v44 = vunpack.i.l.bf16 %v9593_v29 }
 0x63c   :  { %6362 = vmatmul.mubr.f32.vlgmr.msra.gmra.mrb[56].mxu1 %v6149_v10  ;;  %v9580_v38 = vunpack.i.h.bf16 %v9578_v18  ;;  %v9579_v52 = vunpack.i.l.bf16 %v9578_v18  ;;  %v6212_v10 = vld [vmem:[%s14819_s6 + $0x158] sm:$0xff] }
 0x63d   :  { %7560 = vmatpush3.bf16.msra.mxu1 %v7559_v61  ;;  %v7577_v61 = vpack.c.bf16 %v6228_v42, %v6227_v40  ;;  %v7579_v18 = vpack.c.bf16 %v6212_v10, %v6211_v7  ;;  %v6053_v32 = vld [vmem:[#allocation3 + $0x6] sm:$0xff]  ;;  %v6054_v7 = vld [vmem:[#allocation3 + $0xe] sm:$0xff] }
 0x63e   :  { %7562 = vmatprep.subr.bf16.mxu1 %v7561_v17  ;;  %v3676_v27 = vsel %vm3636_vm15, %v3634_v35, %v9580_v38  ;;  %v3675_v12 = vsel %vm3636_vm15, %v3633_v6, %v9579_v52  ;;  %v9598_v56 = vpop.permute.xlu0 %9597  ;;  %v9595_v38 = vunpack.i.h.bf16 %v9593_v29  ;;  %v6215_v6 = vld [vmem:[%s14819_s6 + $0x170] sm:$0xff]  ;;  %v6216_v35 = vld [vmem:[%s14819_s6 + $0x178] sm:$0xff] }
 0x63f   :  { %v9583_v45 = vpop.permute.xlu1 %9582  ;;  %v9599_v8 = vunpack.i.l.bf16 %v9598_v56  ;;  %v7587_v34 = vpack.c.bf16 %v6216_v35, %v6215_v6  ;;  %v6045_v29 = vld [vmem:[#allocation3 + $0x4] sm:$0xff] }
 0x640   :  { %v9585_v28 = vunpack.i.h.bf16 %v9583_v45  ;;  %v9584_v15 = vunpack.i.l.bf16 %v9583_v45  ;;  %v7583_v45 = vpack.c.bf16 %v6214_v13, %v6213_v21 }
 0x641   :  { %7564 = vmatpush3.bf16.msra.mxu1 %v7563_v25 }
 0x642   :  { %v3717_v54 = vsel %vm3678_vm12, %v3675_v12, %v9584_v15  ;;  %v3718_v43 = vsel %vm3678_vm12, %v3676_v27, %v9585_v28  ;;  %7566 = vmatprep.subr.bf16.mxu1 %v7565_v58  ;;  %v6231_v58 = vld [vmem:[%s14819_s6 + $0x1f0] sm:$0xff]  ;;  %v9600_v28 = vunpack.i.h.bf16 %v9598_v56  ;;  %v14676_v12 = vsel %vm3773_vm5, %v6031_v22, %v9595_v38  ;;  %v6047_v38 = vld [vmem:[#allocation3 + $0x14] sm:$0xff] }
 0x643   :  { %v3739_v59 = vpack.c.bf16 %v3718_v43, %v3717_v54  ;;  %v2306_v19 = vpop.permute.xlu1 %2305  ;;  %v7585_v37 = vpack.c.bf16 %v6232_v23, %v6231_v58  ;;  %v6056_v23 = vld [vmem:[#allocation3 + $0x1e] sm:$0xff]  ;;  %v6289_v22 = vld [vmem:[%s14819_s6 + $0x3c0] sm:$0xff] }
 0x645   :  { %7568 = vmatpush3.bf16.msra.mxu1 %v7567_v2  ;;  %7518 = vmatmul.mubr.msk.bf16.gmra.mrb[76].mxu0 %vm3773_vm5, %v3739_v59  ;;  %v6040_v2 = vld [vmem:[#allocation3 + $0x1a] sm:$0xff]  ;;  %v6265_v59 = vld [vmem:[%s14819_s6 + $0x300] sm:$0xff] }
 0x646   :  { %7570 = vmatprep.subr.bf16.mxu1 %v7569_v63  ;;  %7521 = vmatprep.mubr.msk.bf16.mxu0 %vm9686_vm4, %v15002_v49  ;;  %v3425_v49 = vsel %vm15218_vm2, %v3383_v14, %v14523_v31  ;;  %vm15219_vm4 = vmmov %vm15213_vm0  ;;  %v6229_v31 = vld [vmem:[%s14819_s6 + $0x1e0] sm:$0xff]  ;;  %v14681_v43 = vsel %vm3773_vm5, %v6040_v2, %v9599_v8  ;;  %v9608_v63 = vpop.permute.xlu0 %9607 }
 0x647   :  { %v2595_v4 = vpop.permute.xlu1 %2594  ;;  %v3467_v36 = vsel %vm15219_vm4, %v3425_v49, %v14541_v55  ;;  %v6230_v55 = vld [vmem:[%s14819_s6 + $0x1e8] sm:$0xff]  ;;  %v9609_v62 = vunpack.i.l.bf16 %v9608_v63  ;;  %v6267_v49 = vld [vmem:[%s14819_s6 + $0x310] sm:$0xff] }
 0x648   :  { %v3509_v53 = vsel %vm3468_vm11, %v3467_v36, %v2306_v19  ;;  %v7581_v46 = vpack.c.bf16 %v6230_v55, %v6229_v31  ;;  %v6266_v19 = vld [vmem:[%s14819_s6 + $0x308] sm:$0xff]  ;;  %v9610_v36 = vunpack.i.h.bf16 %v9608_v63  ;;  %v6291_v63 = vld [vmem:[%s14819_s6 + $0x3d0] sm:$0xff] }
 0x649   :  { %7572 = vmatpush3.bf16.msra.mxu1 %v7571_v11  ;;  %v3551_v48 = vsel %vm15220_vm7, %v3509_v53, %v14561_v0  ;;  %v6039_v0 = vld [vmem:[#allocation3 + $0x12] sm:$0xff]  ;;  %v6283_v11 = vld [vmem:[%s14819_s6 + $0x390] sm:$0xff]  ;;  %v14711_v10 = vsel %vm3773_vm5, %v6054_v7, %v9609_v62 }
 0x64a   :  { %7574 = vmatprep.subr.bf16.mxu1 %v7573_v16  ;;  %v3593_v52 = vsel %vm3552_vm13, %v3551_v48, %v2595_v4  ;;  %v14664_v41 = vsel %vm3773_vm5, %v6039_v0, %v9594_v44  ;;  %v6284_v16 = vld [vmem:[%s14819_s6 + $0x398] sm:$0xff]  ;;  %v7623_v4 = vpack.c.bf16 %v6266_v19, %v6265_v59  ;;  %v6286_v53 = vld [vmem:[%s14819_s6 + $0x3a8] sm:$0xff]  ;;  %v9618_v55 = vpop.permute.xlu0 %9617  ;;  %v6275_v19 = vld [vmem:[%s14819_s6 + $0x350] sm:$0xff] }
 0x64b   :  { %v9588_v17 = vpop.permute.xlu1 %9587  ;;  %v7625_v14 = vpack.c.bf16 %v6284_v16, %v6283_v11  ;;  %v6046_v44 = vld [vmem:[#allocation3 + $0xc] sm:$0xff]  ;;  %v9619_v21 = vunpack.i.l.bf16 %v9618_v55  ;;  %v9620_v0 = vunpack.i.h.bf16 %v9618_v55  ;;  %v6294_v11 = vld [vmem:[%s14819_s6 + $0x3e8] sm:$0xff] }
 0x64c   :  { %v9590_v20 = vunpack.i.h.bf16 %v9588_v17  ;;  %v9589_v1 = vunpack.i.l.bf16 %v9588_v17 }
 0x64d   :  { %7576 = vmatpush3.bf16.msra.mxu1 %v7575_v60  ;;  %v6268_v60 = vld [vmem:[%s14819_s6 + $0x318] sm:$0xff]  ;;  %v6164_v6 = vsel %vm3773_vm5, %v6056_v23, %v9619_v21 }
 0x64e   :  { %v6154_v33 = vsel %vm3773_vm5, %v6038_v50, %v9589_v1  ;;  %7578 = vmatprep.subr.bf16.mxu1 %v7577_v61  ;;  %v14646_v47 = vsel %vm3773_vm5, %v6030_v30, %v9590_v20  ;;  %v7627_v31 = vpack.c.bf16 %v6268_v60, %v6267_v49  ;;  %v6269_v20 = vld [vmem:[%s14819_s6 + $0x320] sm:$0xff]  ;;  %v6270_v1 = vld [vmem:[%s14819_s6 + $0x328] sm:$0xff]  ;;  %v14728_v50 = vsel %vm3773_vm5, %v6046_v44, %v9610_v36  ;;  %v9628_v60 = vpop.permute.xlu0 %9627 }
 0x64f   :  { %v2720_v25 = vpop.permute.xlu1 %2719  ;;  %6366 = vmatprep.mubr.f32.mxu1 %v6154_v33  ;;  %v7631_v13 = vpack.c.bf16 %v6270_v1, %v6269_v20  ;;  %v9629_v36 = vunpack.i.l.bf16 %v9628_v60  ;;  %v9630_v7 = vunpack.i.h.bf16 %v9628_v60 }
 0x650   :  { %v3635_v39 = vsel %vm3594_vm14, %v3593_v52, %v2720_v25  ;;  %6367 = vmatmul.mubr.f32.gmra.mrb[58].mxu1 %v14646_v47  ;;  %v6271_v52 = vld [vmem:[%s14819_s6 + $0x330] sm:$0xff]  ;;  %v6272_v25 = vld [vmem:[%s14819_s6 + $0x338] sm:$0xff] }
 0x651   :  { %7580 = vmatpush3.bf16.msra.mxu1 %v7579_v18  ;;  %6370 = vmatprep.mubr.f32.mxu1 %v14664_v41  ;;  %v3677_v15 = vsel %vm3636_vm15, %v3635_v39, %v14587_v5  ;;  %v6032_v5 = vld [vmem:[#allocation3 + $0x18] sm:$0xff]  ;;  %v7635_v35 = vpack.c.bf16 %v6272_v25, %v6271_v52 }
 0x652   :  { %7582 = vmatprep.subr.bf16.mxu1 %v7581_v46  ;;  %v14692_v26 = vsel %vm3773_vm5, %v6032_v5, %v9600_v28  ;;  %v6055_v18 = vld [vmem:[#allocation3 + $0x16] sm:$0xff]  ;;  %v6288_v46 = vld [vmem:[%s14819_s6 + $0x3b8] sm:$0xff]  ;;  %v6061_v28 = vld [vmem:[#allocation3 + $0x20] sm:$0xff] }
 0x653   :  { %v3048_v27 = vpop.permute.xlu1 %3047 }
 0x654   :  { %v3719_v54 = vsel %vm3678_vm12, %v3677_v15, %v3048_v27  ;;  %6371 = vmatmul.mubr.f32.gmra.mrb[60].mxu1 %v14676_v12  ;;  %v6048_v15 = vld [vmem:[#allocation3 + $0x1c] sm:$0xff]  ;;  %v6273_v27 = vld [vmem:[%s14819_s6 + $0x340] sm:$0xff] }
 0x655   :  { %v3740_v57 = vpack.c.bf16 %v3719_v54, %v3719_v54  ;;  %7584 = vmatpush3.bf16.msra.mxu1 %v7583_v45  ;;  %6375 = vmatprep.mubr.f32.mxu1 %v14681_v43  ;;  %v6063_v45 = vld [vmem:[#allocation3 + $0x22] sm:$0xff]  ;;  %v6160_v2 = vsel %vm3773_vm5, %v6048_v15, %v9620_v0 }
 0x656   :  { %7586 = vmatprep.subr.bf16.mxu1 %v7585_v37  ;;  %v6290_v37 = vld [vmem:[%s14819_s6 + $0x3c8] sm:$0xff] }
 0x657   :  { %v9603_v51 = vpop.permute.xlu1 %9602  ;;  %7522 = vmatmul.mubr.msk.bf16.gmra.mrb[80].mxu0 %vm3773_vm5, %v3740_v57  ;;  %v6292_v57 = vld [vmem:[%s14819_s6 + $0x3d8] sm:$0xff] }
 0x658   :  { %v9605_v3 = vunpack.i.h.bf16 %v9603_v51  ;;  %v9604_v24 = vunpack.i.l.bf16 %v9603_v51  ;;  %6376 = vmatmul.mubr.f32.gmra.mrb[62].mxu1 %v14692_v26  ;;  %6527 = vmatprep.mubr.f32.mxu0 %v6154_v33  ;;  %v6287_v33 = vld [vmem:[%s14819_s6 + $0x3b0] sm:$0xff]  ;;  %v7641_v59 = vpack.c.bf16 %v6292_v57, %v6291_v63  ;;  %v6276_v51 = vld [vmem:[%s14819_s6 + $0x358] sm:$0xff] }
 0x659   :  { %7588 = vmatpush3.bf16.msra.mxu1 %v7587_v34  ;;  %v7633_v39 = vpack.c.bf16 %v6288_v46, %v6287_v33  ;;  %v7643_v16 = vpack.c.bf16 %v6276_v51, %v6275_v19 }
 0x65a   :  { %v6161_v40 = vsel %vm3773_vm5, %v6053_v32, %v9604_v24  ;;  %7653 = vmatprep.subr.bf16.mxu1 %v14507_v9  ;;  %v6157_v42 = vsel %vm3773_vm5, %v6045_v29, %v9605_v3  ;;  %v6285_v9 = vld [vmem:[%s14819_s6 + $0x3a0] sm:$0xff]  ;;  %v6278_v24 = vld [vmem:[%s14819_s6 + $0x368] sm:$0xff]  ;;  %v6295_v32 = vld [vmem:[%s14819_s6 + $0x3f0] sm:$0xff] }
 0x65b   :  { %v9613_v61 = vpop.permute.xlu1 %9612  ;;  %6444 = vmatprep.mubr.f32.mxu1 %v6161_v40  ;;  %v7629_v30 = vpack.c.bf16 %v6286_v53, %v6285_v9  ;;  %v6277_v3 = vld [vmem:[%s14819_s6 + $0x360] sm:$0xff]  ;;  %v6296_v29 = vld [vmem:[%s14819_s6 + $0x3f8] sm:$0xff] }
 0x65c   :  { %6445 = vmatmul.mubr.f32.vlgmr.msra.gmra.mrb[64].mxu1 %v6157_v42  ;;  %v9614_v17 = vunpack.i.l.bf16 %v9613_v61  ;;  %v9615_v56 = vunpack.i.h.bf16 %v9613_v61  ;;  %v7649_v40 = vpack.c.bf16 %v6296_v29, %v6295_v32  ;;  %v6279_v42 = vld [vmem:[%s14819_s6 + $0x370] sm:$0xff] }
 0x65d   :  { %7661 = vmatpush3.bf16.msra.mxu1 %v7623_v4  ;;  %6449 = vmatprep.mubr.f32.mxu1 %v14711_v10  ;;  %v6067_v61 = vld [vmem:[#allocation3 + $0x26] sm:$0xff] }
 0x65e   :  { %7654 = vmatprep.subr.bf16.mxu1 %v7625_v14  ;;  %v14747_v58 = vsel %vm3773_vm5, %v6047_v38, %v9615_v56  ;;  %v6065_v9 = vld [vmem:[#allocation3 + $0x24] sm:$0xff] }
 0x65f   :  { %6528 = vmatmul.mubr.f32.vlgmr.msra.gmra.mrb[84].mxu0 %v14646_v47  ;;  %v9623_v48 = vpop.permute.xlu1 %9622  ;;  %v6163_v47 = vsel %vm3773_vm5, %v6055_v18, %v9614_v17  ;;  %v6167_v53 = vsel %vm3773_vm5, %v6065_v9, %v9630_v7 }
 0x660   :  { %7624 = vmatpush3.bf16.msra.mxu0 %v7623_v4  ;;  %6450 = vmatmul.mubr.f32.gmra.mrb[66].mxu1 %v14728_v50  ;;  %v9624_v8 = vunpack.i.l.bf16 %v9623_v48  ;;  %v7647_v4 = vpack.c.bf16 %v6278_v24, %v6277_v3 }
 0x661   :  { %6532 = vmatprep.mubr.f32.mxu0 %v14664_v41  ;;  %7662 = vmatpush3.bf16.msra.mxu1 %v7627_v31  ;;  %v9625_v41 = vunpack.i.h.bf16 %v9623_v48 }
 0x662   :  { %6453 = vmatprep.mubr.f32.mxu1 %v6163_v47  ;;  %7626 = vmatprep.subr.bf16.mxu0 %v7625_v14  ;;  %v6166_v54 = vsel %vm3773_vm5, %v6063_v45, %v9624_v8  ;;  %v6280_v14 = vld [vmem:[%s14819_s6 + $0x378] sm:$0xff] }
 0x663   :  { %6533 = vmatmul.mubr.f32.gmra.mrb[86].mxu0 %v14676_v12  ;;  %7655 = vmatprep.subr.bf16.mxu1 %v7629_v30  ;;  %v6274_v12 = vld [vmem:[%s14819_s6 + $0x348] sm:$0xff]  ;;  %v6165_v34 = vsel %vm3773_vm5, %v6061_v28, %v9625_v41  ;;  %v7651_v49 = vpack.c.bf16 %v6280_v14, %v6279_v42 }
 0x664   :  { %7628 = vmatpush3.bf16.msra.mxu0 %v7627_v31  ;;  %6454 = vmatmul.mubr.f32.gmra.mrb[68].mxu1 %v14747_v58  ;;  %v7639_v5 = vpack.c.bf16 %v6274_v12, %v6273_v27 }
 0x665   :  { %6536 = vmatprep.mubr.f32.mxu0 %v14681_v43  ;;  %7663 = vmatpush3.bf16.msra.mxu1 %v7631_v13  ;;  %v7637_v43 = vpack.c.bf16 %v6290_v37, %v6289_v22 }
 0x666   :  { %6458 = vmatprep.mubr.f32.mxu1 %v6164_v6  ;;  %7630 = vmatprep.subr.bf16.mxu0 %v7629_v30 }
 0x667   :  { %6537 = vmatmul.mubr.f32.gmra.mrb[88].mxu0 %v14692_v26  ;;  %7656 = vmatprep.subr.bf16.mxu1 %v7633_v39  ;;  %v6293_v26 = vld [vmem:[%s14819_s6 + $0x3e0] sm:$0xff] }
 0x668   :  { %7632 = vmatpush3.bf16.msra.mxu0 %v7631_v13  ;;  %6459 = vmatmul.mubr.f32.gmra.mrb[70].mxu1 %v6160_v2  ;;  %v7645_v62 = vpack.c.bf16 %v6294_v11, %v6293_v26 }
 0x669   :  { %7664 = vmatpush3.bf16.msra.mxu1 %v7635_v35  ;;  %6615 = vmatprep.mubr.f32.mxu1 %v6163_v47 }
 0x66a   :  { %6541 = vmatprep.mubr.f32.mxu0 %v6166_v54  ;;  %7634 = vmatprep.subr.bf16.mxu0 %v7633_v39 }
 0x66b   :  { %6542 = vmatmul.mubr.f32.gmra.mrb[90].mxu0 %v6165_v34  ;;  %7657 = vmatprep.subr.bf16.mxu1 %v7637_v43 }
 0x66c   :  { %7636 = vmatpush3.bf16.msra.mxu0 %v7635_v35  ;;  %6610 = vmatprep.mubr.f32.mxu0 %v14711_v10  ;;  %v6168_v10 = vsel %vm3773_vm5, %v6067_v61, %v9629_v36  ;;  %vm6629_vm5 = vcmask 0  }
 0x66d   :  { %7665 = vmatpush3.bf16.msra.mxu1 %v7639_v5  ;;  %7638 = vmatprep.subr.bf16.mxu0 %v7637_v43 }
 0x66e   :  { %7658 = vmatprep.subr.bf16.mxu1 %v7641_v59 }
 0x670   :  { %7640 = vmatpush3.bf16.msra.mxu0 %v7639_v5 }
 0x671   :  { %7666 = vmatpush3.bf16.msra.mxu1 %v7643_v16  ;;  %7642 = vmatprep.subr.bf16.mxu0 %v7641_v59 }
 0x672   :  { %7659 = vmatprep.subr.bf16.mxu1 %v7645_v62 }
 0x674   :  { %7644 = vmatpush3.bf16.msra.mxu0 %v7643_v16 }
 0x675   :  { %7667 = vmatpush3.bf16.msra.mxu1 %v7647_v4  ;;  %7646 = vmatprep.subr.bf16.mxu0 %v7645_v62 }
 0x676   :  { %7660 = vmatprep.subr.bf16.mxu1 %v7649_v40 }
 0x678   :  { %7648 = vmatpush3.bf16.msra.mxu0 %v7647_v4 }
 0x679   :  { %7668 = vmatpush3.bf16.msra.mxu1 %v7651_v49  ;;  %7650 = vmatprep.subr.bf16.mxu0 %v7649_v40 }
 0x67c   :  { %7652 = vmatpush3.bf16.msra.mxu0 %v7651_v49  ;;  %6616 = vmatmul.mubr.f32.vlgmr.msra.gmra.mrb[72].mxu1 %v14747_v58 }
 0x67d   :  { %6619 = vmatprep.mubr.f32.mxu1 %v6164_v6 }
 0x67f   :  { %6611 = vmatmul.mubr.f32.vlgmr.msra.gmra.mrb[92].mxu0 %v14728_v50 }
 0x680   :  { %6620 = vmatmul.mubr.f32.gmra.mrb[74].mxu1 %v6160_v2 }
 0x681   :  { %6624 = vmatprep.mubr.f32.mxu1 %v6168_v10 }
 0x684   :  { %6625 = vmatmul.mubr.f32.gmra.mrb[76].mxu1 %v6167_v53 }
 0x70f   :  { %v7289_v17 = vpop.f32.mrb[56].mxu1 }
 0x710   :  { %v7290_v31 = vpop.f32.mrb[57].mxu1 }
 0x711   :  { %v7291_v55 = vadd.f32 %v7290_v31, %v7289_v17 }
 0x718   :  { %v4013_v44 = vpop.f32.mrb[76].mxu0 }
 0x719   :  { %v7519_v20 = vpop.f32.mrb[77].mxu0 }
 0x71a   :  { %v4015_v1 = vpop.f32.mrb[78].mxu0 }
 0x71b   :  { %v7520_v56 = vpop.f32.mrb[79].mxu0 }
 0x723   :  { %v7292_v30 = vpop.f32.mrb[58].mxu1 }
 0x724   :  { %v7293_v18 = vpop.f32.mrb[59].mxu1 }
 0x727   :  { %v7295_v48 = vpop.f32.mrb[60].mxu1 }
 0x728   :  { %v7296_v33 = vpop.f32.mrb[61].mxu1 }
 0x729   :  { %v7297_v46 = vadd.f32 %v7296_v33, %v7295_v48 }
 0x72a   :  { %v4019_v21 = vpop.f32.mrb[80].mxu0 }
 0x72b   :  { %v7523_v47 = vpop.f32.mrb[81].mxu0  ;;  %v7298_v50 = vpop.f32.mrb[62].mxu1 }
 0x72c   :  { %v4021_v13 = vpop.f32.mrb[82].mxu0  ;;  %v7299_v38 = vpop.f32.mrb[63].mxu1 }
 0x72d   :  { %v7524_v52 = vpop.f32.mrb[83].mxu0 }
 0x72f   :  { %v7333_v25 = vpop.f32.mrb[64].mxu1 }
 0x730   :  { %v7334_v0 = vpop.f32.mrb[65].mxu1 }
 0x731   :  { %v7335_v58 = vadd.f32 %v7334_v0, %v7333_v25 }
 0x732   :  { %v7377_v23 = vpop.f32.mrb[84].mxu0 }
 0x733   :  { %v6447_v8 = vadd.f32 %v7335_v58, %v7291_v55  ;;  %v7336_v39 = vpop.f32.mrb[66].mxu1  ;;  %v7378_v41 = vpop.f32.mrb[85].mxu0 }
 0x734   :  { %v7379_v45 = vadd.f32 %v7378_v41, %v7377_v23  ;;  %v7337_v22 = vpop.f32.mrb[67].mxu1 }
 0x736   :  { %v6530_v37 = vadd.f32 %v7379_v45, %v6447_v8  ;;  %v7380_v6 = vpop.f32.mrb[86].mxu0 }
 0x737   :  { %v7339_v35 = vpop.f32.mrb[68].mxu1  ;;  %v7381_v28 = vpop.f32.mrb[87].mxu0 }
 0x738   :  { %v7340_v15 = vpop.f32.mrb[69].mxu1 }
 0x739   :  { %v7341_v27 = vadd.f32 %v7340_v15, %v7339_v35 }
 0x73a   :  { %v7383_v12 = vpop.f32.mrb[88].mxu0 }
 0x73b   :  { %v6456_v2 = vadd.f32 %v7341_v27, %v7297_v46  ;;  %v7342_v54 = vpop.f32.mrb[70].mxu1  ;;  %v7384_v43 = vpop.f32.mrb[89].mxu0 }
 0x73c   :  { %v7385_v63 = vadd.f32 %v7384_v43, %v7383_v12  ;;  %v7343_v57 = vpop.f32.mrb[71].mxu1 }
 0x73e   :  { %v6539_v34 = vadd.f32 %v7385_v63, %v6456_v2  ;;  %v7386_v5 = vpop.f32.mrb[90].mxu0 }
 0x73f   :  { %v7387_v59 = vpop.f32.mrb[91].mxu0 }
 0x74f   :  { %v7424_v19 = vpop.f32.mrb[72].mxu1 }
 0x750   :  { %v7425_v51 = vpop.f32.mrb[73].mxu1 }
 0x752   :  { %v7421_v26 = vpop.f32.mrb[92].mxu0 }
 0x753   :  { %v7422_v11 = vpop.f32.mrb[93].mxu0  ;;  %v7427_v16 = vpop.f32.mrb[74].mxu1 }
 0x754   :  { %v7423_v62 = vadd.f32 %v7422_v11, %v7421_v26  ;;  %v7428_v3 = vpop.f32.mrb[75].mxu1 }
 0x755   :  { %v7429_v24 = vadd.f32 %v7428_v3, %v7427_v16 }
 0x756   :  { %v6613_v32 = vadd.f32 %v7423_v62, %v6530_v37 }
 0x757   :  { %v6622_v29 = vadd.f32 %v7429_v24, %v6539_v34  ;;  %v7430_v4 = vpop.f32.mrb[76].mxu1 }
 0x758   :  { %6630 = vst.msk [vmem:[%s14822_s7] sm:$0x1] %vm6629_vm5, %v6613_v32  ;;  %v7431_v40 = vpop.f32.mrb[77].mxu1 }
 0x759   :  { %6631 = vst.msk [vmem:[%s14822_s7 + $0x1] sm:$0x1] %vm6629_vm5, %v6622_v29 }

</bundles_post_ra>
